<compile_context>
chip_gen: v7x
topology: tpu7x:2x2x1
jax: 0.10.0
libtpu: 0.0.40
codegen_flags: <defaults>
</compile_context>

<pallas_src>
import functools
import math

import jax
import jax.numpy as jnp
from jax import lax
from jax.experimental import pallas as pl
from jax.experimental.pallas import tpu as pltpu

VMEM_SPEC = pl.BlockSpec(memory_space=pltpu.MemorySpace.VMEM)


# ----------------------------------------------------------------------------
# Fused kernel: 3 BiLSTM layers + transformer head + final Linear
# ----------------------------------------------------------------------------
def branchnet_kernel(d_true,
                     x_ref, pos_ref,
                     wi1_ref, whd1_ref, b1_ref,
                     wi2_ref, whd2_ref, b2_ref,
                     wi3_ref, whd3_ref, b3_ref,
                     wv_ref, bv_ref, wo_ref, bo_ref,
                     w1_ref, fb1_ref, w2_ref, fb2_ref,
                     ln1w_ref, ln1b_ref, ln2w_ref, ln2b_ref,
                     fcw_ref, fcb_ref,
                     out_ref,
                     y1_ref, y2_ref):
    B = pos_ref.shape[0]
    TB = x_ref.shape[0]
    T = TB // B

    def lstm_act(g, c, H):
        # PyTorch gate order (i, f, g, o). sigmoid full width (one vreg at
        # these sizes), tanh only on the g-gate lanes. All math in f32.
        sg = jax.nn.sigmoid(g)
        gg = jnp.tanh(g[:, 2 * H:3 * H])
        c_new = sg[:, H:2 * H] * c + sg[:, 0:H] * gg
        h_new = sg[:, 3 * H:4 * H] * jnp.tanh(c_new)
        return h_new, c_new

    def bilstm(x_bf, wi_ref, whd_ref, b_ref, y_ref):
        """One bidirectional LSTM layer. x_bf: (T*B, Din) bf16, time-major."""
        H = whd_ref.shape[0] // 2
        H4, H8 = 4 * H, 8 * H

        # Fused input projection: ONE matmul for all timesteps and both
        # directions; result stays in vregs (no scratch round trip).
        gin = (jnp.dot(x_bf, wi_ref[...], preferred_element_type=jnp.float32)
               + b_ref[...])                                   # (T*B, 8H)
        whd = whd_ref[...]          # (2H, 8H) bf16 block-diag [wh_f | wh_b]

        z = jnp.zeros((B, H), jnp.float32)
        h_f, c_f, h_b, c_b = z, z, z, z

        # Fully unrolled recurrence with static slice indices; forward and
        # backward directions share a single recurrent matmul per step.
        for k in range(T):
            tb = T - 1 - k
            h_cat = jnp.concatenate([h_f, h_b], axis=-1).astype(jnp.bfloat16)
            g_rec = jnp.dot(h_cat, whd,
                            preferred_element_type=jnp.float32)  # (B, 8H)
            g_f = gin[k * B:(k + 1) * B, 0:H4] + g_rec[:, 0:H4]
            g_b = gin[tb * B:(tb + 1) * B, H4:H8] + g_rec[:, H4:H8]
            h_f, c_f = lstm_act(g_f, c_f, H)
            h_b, c_b = lstm_act(g_b, c_b, H)
            if y_ref is not None:
                # Flat consumer layout (T*B, 2H): fwd lanes [0,H), bwd [H,2H).
                y_ref[k * B:(k + 1) * B, 0:H] = h_f
                y_ref[tb * B:(tb + 1) * B, H:2 * H] = h_b
        return h_f, h_b  # == PyTorch hn[0], hn[1] for this layer

    # Three stacked BiLSTM layers; only layer 3's final hidden states are used.
    bilstm(x_ref[...], wi1_ref, whd1_ref, b1_ref, y1_ref)
    bilstm(y1_ref[...].astype(jnp.bfloat16), wi2_ref, whd2_ref, b2_ref, y2_ref)
    h_f3, h_b3 = bilstm(y2_ref[...].astype(jnp.bfloat16),
                        wi3_ref, whd3_ref, b3_ref, None)

    # Head input: concat([hn_fwd, hn_bwd, pos_padded]) -> (B, d_pad) with the
    # pad lanes exactly zero (pos was zero-padded in the wrapper).
    x = jnp.concatenate([h_f3, h_b3, pos_ref[...]], axis=-1)
    inv_d = 1.0 / float(d_true)

    def layernorm(v, w, b):
        # Pad lanes of v are zero, so lane sums over d_pad equal sums over the
        # true d_model; divide by the true feature count. Pad lanes of w/b are
        # zero so the output pad lanes stay zero.
        mu = jnp.sum(v, axis=-1, keepdims=True) * inv_d
        ex2 = jnp.sum(v * v, axis=-1, keepdims=True) * inv_d
        var = ex2 - mu * mu
        return (v - mu) * lax.rsqrt(var + 1e-5) * w[None, :] + b[None, :]

    # TransformerEncoder (post-norm, relu FFN). The reference forward feeds a
    # sequence of length exactly 1, so softmax over a single key is 1 and
    # self-attention reduces exactly to out_proj(value_proj(x)).
    n_tr = wv_ref.shape[0]
    for l in range(n_tr):
        v = (jnp.dot(x.astype(jnp.bfloat16), wv_ref[l],
                     preferred_element_type=jnp.float32) + bv_ref[l][None, :])
        attn = (jnp.dot(v.astype(jnp.bfloat16), wo_ref[l],
                        preferred_element_type=jnp.float32) + bo_ref[l][None, :])
        x = layernorm(x + attn, ln1w_ref[l], ln1b_ref[l])
        h = jnp.maximum(
            jnp.dot(x.astype(jnp.bfloat16), w1_ref[l],
                    preferred_element_type=jnp.float32) + fb1_ref[l][None, :],
            0.0)
        ff = (jnp.dot(h.astype(jnp.bfloat16), w2_ref[l],
                      preferred_element_type=jnp.float32) + fb2_ref[l][None, :])
        x = layernorm(x + ff, ln2w_ref[l], ln2b_ref[l])

    out_ref[...] = (jnp.dot(x.astype(jnp.bfloat16), fcw_ref[...],
                            preferred_element_type=jnp.float32)
                    + fcb_ref[...])


# ----------------------------------------------------------------------------
# Wrapper (matches BranchNet.forward semantics, eval mode)
# ----------------------------------------------------------------------------
def _pad_axis(a, axis, new_size):
    pad = new_size - a.shape[axis]
    if pad <= 0:
        return a
    widths = [(0, 0)] * a.ndim
    widths[axis] = (0, pad)
    return jnp.pad(a, widths)


def branchnet_forward(params, x, pos):
    B, T, Din = x.shape
    l1, l2, l3 = params["lstm1"], params["lstm2"], params["lstm3"]
    hp = params["head"]
    H1 = l1["w_hh"].shape[1]
    H2 = l2["w_hh"].shape[1]
    H3 = l3["w_hh"].shape[1]
    pos_dim = pos.shape[1]
    d_true = 2 * H3 + pos_dim
    d_pad = max(128, ((d_true + 127) // 128) * 128)     # lane-align d_model
    n_out = hp["fc_w"].shape[1]

    def lstm_pack(lp):
        H = lp["w_hh"].shape[1]
        # [wi_fwd | wi_bwd]: (Din, 8H), bf16 for the MXU.
        wi = jnp.concatenate([lp["w_ih"][0], lp["w_ih"][1]],
                             axis=1).astype(jnp.bfloat16)
        # blockdiag(wh_fwd, wh_bwd): (2H, 8H) so both directions' recurrent
        # dots fuse into one matmul per timestep.
        whd = jnp.zeros((2 * H, 8 * H), jnp.float32)
        whd = whd.at[0:H, 0:4 * H].set(lp["w_hh"][0])
        whd = whd.at[H:2 * H, 4 * H:8 * H].set(lp["w_hh"][1])
        whd = whd.astype(jnp.bfloat16)
        b = jnp.concatenate([lp["b"][0], lp["b"][1]], axis=0)[None, :]  # f32
        return wi, whd, b

    wi1, whd1, b1 = lstm_pack(l1)
    wi2, whd2, b2 = lstm_pack(l2)
    wi3, whd3, b3 = lstm_pack(l3)

    # Head weights zero-padded to d_pad lanes (bf16 for MXU operands).
    wv = _pad_axis(_pad_axis(hp["wv"], 1, d_pad), 2, d_pad).astype(jnp.bfloat16)
    wo = _pad_axis(_pad_axis(hp["wo"], 1, d_pad), 2, d_pad).astype(jnp.bfloat16)
    bv = _pad_axis(hp["bv"], 1, d_pad)
    bo = _pad_axis(hp["bo"], 1, d_pad)
    w1 = _pad_axis(hp["w1"], 1, d_pad).astype(jnp.bfloat16)
    fb1 = hp["b1"]
    w2 = _pad_axis(hp["w2"], 2, d_pad).astype(jnp.bfloat16)
    fb2 = _pad_axis(hp["b2"], 1, d_pad)
    ln1w = _pad_axis(hp["ln1w"], 1, d_pad)
    ln1b = _pad_axis(hp["ln1b"], 1, d_pad)
    ln2w = _pad_axis(hp["ln2w"], 1, d_pad)
    ln2b = _pad_axis(hp["ln2b"], 1, d_pad)
    fcw = _pad_axis(hp["fc_w"], 0, d_pad).astype(jnp.bfloat16)
    fcb = hp["fc_b"]

    # Time-major flattened input (row r = t*B + b) and zero-padded pos so the
    # in-kernel concat yields a d_pad-lane head input with zero pad lanes.
    x_flat = jnp.transpose(x, (1, 0, 2)).reshape(T * B, Din).astype(jnp.bfloat16)
    pos_pad = _pad_axis(pos.astype(jnp.float32), 1, d_pad - 2 * H3)

    args = (x_flat, pos_pad,
            wi1, whd1, b1, wi2, whd2, b2, wi3, whd3, b3,
            wv, bv, wo, bo, w1, fb1, w2, fb2,
            ln1w, ln1b, ln2w, ln2b, fcw, fcb)
    scratch = [
        pltpu.VMEM((T * B, 2 * H1), jnp.float32),   # y1 (flat consumer layout)
        pltpu.VMEM((T * B, 2 * H2), jnp.float32),   # y2 (flat consumer layout)
    ]

    # Explicit VMEM budget (grid-less call: everything resident once).
    in_bytes = sum(int(a.size) * a.dtype.itemsize for a in args)
    scratch_bytes = 4 * (T * B * 2 * H1 + T * B * 2 * H2)
    out_bytes = B * n_out * 4
    total_bytes = in_bytes + scratch_bytes + out_bytes
    if total_bytes > 48 * 1024 * 1024:
        # TODO(synk): tile the FFN dff axis with a BlockSpec grid if the head
        # weights ever outgrow the v7x 64 MiB VMEM budget.
        raise ValueError(f"VMEM budget exceeded: {total_bytes} bytes")
    vmem_limit = int(min(64 * 1024 * 1024,
                         max(16 * 1024 * 1024, 2 * total_bytes)))

    return pl.pallas_call(
        functools.partial(branchnet_kernel, d_true),
        out_shape=jax.ShapeDtypeStruct((B, n_out), jnp.float32),
        in_specs=[VMEM_SPEC] * len(args),
        out_specs=VMEM_SPEC,
        scratch_shapes=scratch,
        compiler_params=pltpu.CompilerParams(vmem_limit_bytes=vmem_limit),
    )(*args)


# ----------------------------------------------------------------------------
# Deterministic synthetic parameter init (shapes follow BranchNet.__init__,
# stored pre-transposed for the kernel: y = x @ W)
# ----------------------------------------------------------------------------
def init_params(key, input_size, hidden_sizes, pos_dim, n_layers=2,
                dff=2048, n_out=64):
    keys = iter(jax.random.split(key, 64))

    def u(shape, fan_in):
        s = 1.0 / math.sqrt(fan_in)
        return jax.random.uniform(next(keys), shape, jnp.float32, -s, s)

    params = {}
    din = input_size
    for idx, H in enumerate(hidden_sizes, start=1):
        params[f"lstm{idx}"] = {
            "w_ih": u((2, din, 4 * H), H),    # pre-transposed input->gate
            "w_hh": u((2, H, 4 * H), H),      # pre-transposed hidden->gate
            "b": u((2, 4 * H), H),            # b_ih + b_hh combined
        }
        din = 2 * H

    d = 2 * hidden_sizes[2] + pos_dim
    params["head"] = {
        "wv": u((n_layers, d, d), d),     "bv": u((n_layers, d), d),
        "wo": u((n_layers, d, d), d),     "bo": u((n_layers, d), d),
        "w1": u((n_layers, d, dff), d),   "b1": u((n_layers, dff), d),
        "w2": u((n_layers, dff, d), dff), "b2": u((n_layers, d), dff),
        "ln1w": jnp.ones((n_layers, d), jnp.float32),
        "ln1b": jnp.zeros((n_layers, d), jnp.float32),
        "ln2w": jnp.ones((n_layers, d), jnp.float32),
        "ln2b": jnp.zeros((n_layers, d), jnp.float32),
        "fc_w": u((d, n_out), d),
        "fc_b": u((1, n_out), d),
    }
    return params


if __name__ == "__main__":
    B, T = 2, 8
    input_size = 16
    hidden_sizes = [32, 32, 32]
    pos_dim = 8

    key = jax.random.PRNGKey(0)
    kp, kx, kpos = jax.random.split(key, 3)
    params = init_params(kp, input_size, hidden_sizes, pos_dim)

    x = jax.random.normal(kx, (B, T, input_size), jnp.float32)
    pos = jax.random.normal(kpos, (B, pos_dim), jnp.float32)

    fwd = jax.jit(branchnet_forward)
    out = jax.block_until_ready(fwd(params, x, pos))
    assert out.shape == (B, 64) and out.dtype == jnp.float32
    assert bool(jnp.all(jnp.isfinite(out)))
    # TODO(synk): dropout layers (do1/do2/do3/do_fc + transformer dropouts) are
    # identity here (eval-mode forward).
    print("KERNEL_OK")
</pallas_src>

<mosaic_0001>
module attributes {stable_mosaic.version = 11 : i64} {
  func.func @branchnet_kernel(%arg0: memref<16x16xbf16, #tpu.memory_space<vmem>>, %arg1: memref<2x64xf32, #tpu.memory_space<vmem>>, %arg2: memref<16x256xbf16, #tpu.memory_space<vmem>>, %arg3: memref<64x256xbf16, #tpu.memory_space<vmem>>, %arg4: memref<1x256xf32, #tpu.memory_space<vmem>>, %arg5: memref<64x256xbf16, #tpu.memory_space<vmem>>, %arg6: memref<64x256xbf16, #tpu.memory_space<vmem>>, %arg7: memref<1x256xf32, #tpu.memory_space<vmem>>, %arg8: memref<64x256xbf16, #tpu.memory_space<vmem>>, %arg9: memref<64x256xbf16, #tpu.memory_space<vmem>>, %arg10: memref<1x256xf32, #tpu.memory_space<vmem>>, %arg11: memref<2x128x128xbf16, #tpu.memory_space<vmem>>, %arg12: memref<2x128xf32, #tpu.memory_space<vmem>>, %arg13: memref<2x128x128xbf16, #tpu.memory_space<vmem>>, %arg14: memref<2x128xf32, #tpu.memory_space<vmem>>, %arg15: memref<2x128x2048xbf16, #tpu.memory_space<vmem>>, %arg16: memref<2x2048xf32, #tpu.memory_space<vmem>>, %arg17: memref<2x2048x128xbf16, #tpu.memory_space<vmem>>, %arg18: memref<2x128xf32, #tpu.memory_space<vmem>>, %arg19: memref<2x128xf32, #tpu.memory_space<vmem>>, %arg20: memref<2x128xf32, #tpu.memory_space<vmem>>, %arg21: memref<2x128xf32, #tpu.memory_space<vmem>>, %arg22: memref<2x128xf32, #tpu.memory_space<vmem>>, %arg23: memref<128x64xbf16, #tpu.memory_space<vmem>>, %arg24: memref<1x64xf32, #tpu.memory_space<vmem>>, %arg25: memref<2x64xf32, #tpu.memory_space<vmem>>, %arg26: memref<16x64xf32, #tpu.memory_space<vmem>>, %arg27: memref<16x64xf32, #tpu.memory_space<vmem>>) attributes {dimension_semantics = [], scalar_prefetch = 0 : i64, scratch_operands = 2 : i64, tpu.core_type = #tpu.core_type<tc>} {
    %c0 = arith.constant 0 : index
    %c0_0 = arith.constant 0 : index
    %0 = vector.load %arg0[%c0, %c0_0] : memref<16x16xbf16, #tpu.memory_space<vmem>>, vector<16x16xbf16>
    %c0_1 = arith.constant 0 : index
    %c0_2 = arith.constant 0 : index
    %1 = vector.load %arg2[%c0_1, %c0_2] : memref<16x256xbf16, #tpu.memory_space<vmem>>, vector<16x256xbf16>
    %cst = arith.constant dense<0.000000e+00> : vector<16x256xf32>
    %2 = tpu.matmul %0, %1, %cst {dimension_numbers = #tpu.dot_dimension_numbers<[1], [0], [0], [1], [0, 0, 1, 1], [], []>} : vector<16x16xbf16>, vector<16x256xbf16>, vector<16x256xf32> -> vector<16x256xf32>
    %c0_3 = arith.constant 0 : index
    %c0_4 = arith.constant 0 : index
    %3 = vector.load %arg4[%c0_3, %c0_4] : memref<1x256xf32, #tpu.memory_space<vmem>>, vector<1x256xf32>
    %4 = vector.broadcast %3 : vector<1x256xf32> to vector<16x256xf32>
    %5 = arith.addf %2, %4 : vector<16x256xf32>
    %c0_5 = arith.constant 0 : index
    %c0_6 = arith.constant 0 : index
    %6 = vector.load %arg3[%c0_5, %c0_6] : memref<64x256xbf16, #tpu.memory_space<vmem>>, vector<64x256xbf16>
    %cst_7 = arith.constant 0.000000e+00 : f32
    %7 = vector.broadcast %cst_7 : f32 to vector<2x32xf32>
    %8 = tpu.concatenate %7, %7 in 1 : vector<2x32xf32>, vector<2x32xf32> -> vector<2x64xf32>
    %9 = arith.truncf %8 : vector<2x64xf32> to vector<2x64xbf16>
    %cst_8 = arith.constant dense<0.000000e+00> : vector<2x256xf32>
    %10 = tpu.matmul %9, %6, %cst_8 {dimension_numbers = #tpu.dot_dimension_numbers<[1], [0], [0], [1], [0, 0, 1, 1], [], []>} : vector<2x64xbf16>, vector<64x256xbf16>, vector<2x256xf32> -> vector<2x256xf32>
    %11 = vector.extract_strided_slice %5 {offsets = [0, 0], sizes = [2, 128], strides = [1, 1]} : vector<16x256xf32> to vector<2x128xf32>
    %12 = vector.extract_strided_slice %10 {offsets = [0, 0], sizes = [2, 128], strides = [1, 1]} : vector<2x256xf32> to vector<2x128xf32>
    %13 = arith.addf %11, %12 : vector<2x128xf32>
    %14 = vector.extract_strided_slice %5 {offsets = [14, 128], sizes = [2, 128], strides = [1, 1]} : vector<16x256xf32> to vector<2x128xf32>
    %15 = vector.extract_strided_slice %10 {offsets = [0, 128], sizes = [2, 128], strides = [1, 1]} : vector<2x256xf32> to vector<2x128xf32>
    %16 = arith.addf %14, %15 : vector<2x128xf32>
    %17 = arith.negf %13 : vector<2x128xf32>
    %18 = math.exp %17 : vector<2x128xf32>
    %cst_9 = arith.constant 1.000000e+00 : f32
    %19 = vector.broadcast %cst_9 : f32 to vector<2x128xf32>
    %20 = arith.addf %19, %18 : vector<2x128xf32>
    %21 = arith.divf %19, %20 : vector<2x128xf32>
    %22 = vector.extract_strided_slice %13 {offsets = [0, 64], sizes = [2, 32], strides = [1, 1]} : vector<2x128xf32> to vector<2x32xf32>
    %23 = math.tanh %22 : vector<2x32xf32>
    %24 = vector.extract_strided_slice %21 {offsets = [0, 32], sizes = [2, 32], strides = [1, 1]} : vector<2x128xf32> to vector<2x32xf32>
    %25 = arith.mulf %24, %7 : vector<2x32xf32>
    %26 = vector.extract_strided_slice %21 {offsets = [0, 0], sizes = [2, 32], strides = [1, 1]} : vector<2x128xf32> to vector<2x32xf32>
    %27 = arith.mulf %26, %23 : vector<2x32xf32>
    %28 = arith.addf %25, %27 : vector<2x32xf32>
    %29 = vector.extract_strided_slice %21 {offsets = [0, 96], sizes = [2, 32], strides = [1, 1]} : vector<2x128xf32> to vector<2x32xf32>
    %30 = math.tanh %28 : vector<2x32xf32>
    %31 = arith.mulf %29, %30 : vector<2x32xf32>
    %32 = arith.negf %16 : vector<2x128xf32>
    %33 = math.exp %32 : vector<2x128xf32>
    %cst_10 = arith.constant 1.000000e+00 : f32
    %34 = vector.broadcast %cst_10 : f32 to vector<2x128xf32>
    %35 = arith.addf %34, %33 : vector<2x128xf32>
    %36 = arith.divf %34, %35 : vector<2x128xf32>
    %37 = vector.extract_strided_slice %16 {offsets = [0, 64], sizes = [2, 32], strides = [1, 1]} : vector<2x128xf32> to vector<2x32xf32>
    %38 = math.tanh %37 : vector<2x32xf32>
    %39 = vector.extract_strided_slice %36 {offsets = [0, 32], sizes = [2, 32], strides = [1, 1]} : vector<2x128xf32> to vector<2x32xf32>
    %40 = arith.mulf %39, %7 : vector<2x32xf32>
    %41 = vector.extract_strided_slice %36 {offsets = [0, 0], sizes = [2, 32], strides = [1, 1]} : vector<2x128xf32> to vector<2x32xf32>
    %42 = arith.mulf %41, %38 : vector<2x32xf32>
    %43 = arith.addf %40, %42 : vector<2x32xf32>
    %44 = vector.extract_strided_slice %36 {offsets = [0, 96], sizes = [2, 32], strides = [1, 1]} : vector<2x128xf32> to vector<2x32xf32>
    %45 = math.tanh %43 : vector<2x32xf32>
    %46 = arith.mulf %44, %45 : vector<2x32xf32>
    %c0_11 = arith.constant 0 : index
    %c0_12 = arith.constant 0 : index
    %47 = vector.load %arg26[%c0_11, %c0_12] : memref<16x64xf32, #tpu.memory_space<vmem>>, vector<2x32xf32>
    tpu.vector_store %arg26[%c0_11, %c0_12], %31 {strides = array<i32>} : memref<16x64xf32, #tpu.memory_space<vmem>>, vector<2x32xf32>,
    %c14 = arith.constant 14 : index
    %c32 = arith.constant 32 : index
    %48 = vector.load %arg26[%c14, %c32] : memref<16x64xf32, #tpu.memory_space<vmem>>, vector<2x32xf32>
    tpu.vector_store %arg26[%c14, %c32], %46 {strides = array<i32>} : memref<16x64xf32, #tpu.memory_space<vmem>>, vector<2x32xf32>,
    %49 = tpu.concatenate %31, %46 in 1 : vector<2x32xf32>, vector<2x32xf32> -> vector<2x64xf32>
    %50 = arith.truncf %49 : vector<2x64xf32> to vector<2x64xbf16>
    %cst_13 = arith.constant dense<0.000000e+00> : vector<2x256xf32>
    %51 = tpu.matmul %50, %6, %cst_13 {dimension_numbers = #tpu.dot_dimension_numbers<[1], [0], [0], [1], [0, 0, 1, 1], [], []>} : vector<2x64xbf16>, vector<64x256xbf16>, vector<2x256xf32> -> vector<2x256xf32>
    %52 = vector.extract_strided_slice %5 {offsets = [2, 0], sizes = [2, 128], strides = [1, 1]} : vector<16x256xf32> to vector<2x128xf32>
    %53 = vector.extract_strided_slice %51 {offsets = [0, 0], sizes = [2, 128], strides = [1, 1]} : vector<2x256xf32> to vector<2x128xf32>
    %54 = arith.addf %52, %53 : vector<2x128xf32>
    %55 = vector.extract_strided_slice %5 {offsets = [12, 128], sizes = [2, 128], strides = [1, 1]} : vector<16x256xf32> to vector<2x128xf32>
    %56 = vector.extract_strided_slice %51 {offsets = [0, 128], sizes = [2, 128], strides = [1, 1]} : vector<2x256xf32> to vector<2x128xf32>
    %57 = arith.addf %55, %56 : vector<2x128xf32>
    %58 = arith.negf %54 : vector<2x128xf32>
    %59 = math.exp %58 : vector<2x128xf32>
    %cst_14 = arith.constant 1.000000e+00 : f32
    %60 = vector.broadcast %cst_14 : f32 to vector<2x128xf32>
    %61 = arith.addf %60, %59 : vector<2x128xf32>
    %62 = arith.divf %60, %61 : vector<2x128xf32>
    %63 = vector.extract_strided_slice %54 {offsets = [0, 64], sizes = [2, 32], strides = [1, 1]} : vector<2x128xf32> to vector<2x32xf32>
    %64 = math.tanh %63 : vector<2x32xf32>
    %65 = vector.extract_strided_slice %62 {offsets = [0, 32], sizes = [2, 32], strides = [1, 1]} : vector<2x128xf32> to vector<2x32xf32>
    %66 = arith.mulf %65, %28 : vector<2x32xf32>
    %67 = vector.extract_strided_slice %62 {offsets = [0, 0], sizes = [2, 32], strides = [1, 1]} : vector<2x128xf32> to vector<2x32xf32>
    %68 = arith.mulf %67, %64 : vector<2x32xf32>
    %69 = arith.addf %66, %68 : vector<2x32xf32>
    %70 = vector.extract_strided_slice %62 {offsets = [0, 96], sizes = [2, 32], strides = [1, 1]} : vector<2x128xf32> to vector<2x32xf32>
    %71 = math.tanh %69 : vector<2x32xf32>
    %72 = arith.mulf %70, %71 : vector<2x32xf32>
    %73 = arith.negf %57 : vector<2x128xf32>
    %74 = math.exp %73 : vector<2x128xf32>
    %cst_15 = arith.constant 1.000000e+00 : f32
    %75 = vector.broadcast %cst_15 : f32 to vector<2x128xf32>
    %76 = arith.addf %75, %74 : vector<2x128xf32>
    %77 = arith.divf %75, %76 : vector<2x128xf32>
    %78 = vector.extract_strided_slice %57 {offsets = [0, 64], sizes = [2, 32], strides = [1, 1]} : vector<2x128xf32> to vector<2x32xf32>
    %79 = math.tanh %78 : vector<2x32xf32>
    %80 = vector.extract_strided_slice %77 {offsets = [0, 32], sizes = [2, 32], strides = [1, 1]} : vector<2x128xf32> to vector<2x32xf32>
    %81 = arith.mulf %80, %43 : vector<2x32xf32>
    %82 = vector.extract_strided_slice %77 {offsets = [0, 0], sizes = [2, 32], strides = [1, 1]} : vector<2x128xf32> to vector<2x32xf32>
    %83 = arith.mulf %82, %79 : vector<2x32xf32>
    %84 = arith.addf %81, %83 : vector<2x32xf32>
    %85 = vector.extract_strided_slice %77 {offsets = [0, 96], sizes = [2, 32], strides = [1, 1]} : vector<2x128xf32> to vector<2x32xf32>
    %86 = math.tanh %84 : vector<2x32xf32>
    %87 = arith.mulf %85, %86 : vector<2x32xf32>
    %c2 = arith.constant 2 : index
    %c0_16 = arith.constant 0 : index
    %88 = vector.load %arg26[%c2, %c0_16] : memref<16x64xf32, #tpu.memory_space<vmem>>, vector<2x32xf32>
    tpu.vector_store %arg26[%c2, %c0_16], %72 {strides = array<i32>} : memref<16x64xf32, #tpu.memory_space<vmem>>, vector<2x32xf32>,
    %c12 = arith.constant 12 : index
    %c32_17 = arith.constant 32 : index
    %89 = vector.load %arg26[%c12, %c32_17] : memref<16x64xf32, #tpu.memory_space<vmem>>, vector<2x32xf32>
    tpu.vector_store %arg26[%c12, %c32_17], %87 {strides = array<i32>} : memref<16x64xf32, #tpu.memory_space<vmem>>, vector<2x32xf32>,
    %90 = tpu.concatenate %72, %87 in 1 : vector<2x32xf32>, vector<2x32xf32> -> vector<2x64xf32>
    %91 = arith.truncf %90 : vector<2x64xf32> to vector<2x64xbf16>
    %cst_18 = arith.constant dense<0.000000e+00> : vector<2x256xf32>
    %92 = tpu.matmul %91, %6, %cst_18 {dimension_numbers = #tpu.dot_dimension_numbers<[1], [0], [0], [1], [0, 0, 1, 1], [], []>} : vector<2x64xbf16>, vector<64x256xbf16>, vector<2x256xf32> -> vector<2x256xf32>
    %93 = vector.extract_strided_slice %5 {offsets = [4, 0], sizes = [2, 128], strides = [1, 1]} : vector<16x256xf32> to vector<2x128xf32>
    %94 = vector.extract_strided_slice %92 {offsets = [0, 0], sizes = [2, 128], strides = [1, 1]} : vector<2x256xf32> to vector<2x128xf32>
    %95 = arith.addf %93, %94 : vector<2x128xf32>
    %96 = vector.extract_strided_slice %5 {offsets = [10, 128], sizes = [2, 128], strides = [1, 1]} : vector<16x256xf32> to vector<2x128xf32>
    %97 = vector.extract_strided_slice %92 {offsets = [0, 128], sizes = [2, 128], strides = [1, 1]} : vector<2x256xf32> to vector<2x128xf32>
    %98 = arith.addf %96, %97 : vector<2x128xf32>
    %99 = arith.negf %95 : vector<2x128xf32>
    %100 = math.exp %99 : vector<2x128xf32>
    %cst_19 = arith.constant 1.000000e+00 : f32
    %101 = vector.broadcast %cst_19 : f32 to vector<2x128xf32>
    %102 = arith.addf %101, %100 : vector<2x128xf32>
    %103 = arith.divf %101, %102 : vector<2x128xf32>
    %104 = vector.extract_strided_slice %95 {offsets = [0, 64], sizes = [2, 32], strides = [1, 1]} : vector<2x128xf32> to vector<2x32xf32>
    %105 = math.tanh %104 : vector<2x32xf32>
    %106 = vector.extract_strided_slice %103 {offsets = [0, 32], sizes = [2, 32], strides = [1, 1]} : vector<2x128xf32> to vector<2x32xf32>
    %107 = arith.mulf %106, %69 : vector<2x32xf32>
    %108 = vector.extract_strided_slice %103 {offsets = [0, 0], sizes = [2, 32], strides = [1, 1]} : vector<2x128xf32> to vector<2x32xf32>
    %109 = arith.mulf %108, %105 : vector<2x32xf32>
    %110 = arith.addf %107, %109 : vector<2x32xf32>
    %111 = vector.extract_strided_slice %103 {offsets = [0, 96], sizes = [2, 32], strides = [1, 1]} : vector<2x128xf32> to vector<2x32xf32>
    %112 = math.tanh %110 : vector<2x32xf32>
    %113 = arith.mulf %111, %112 : vector<2x32xf32>
    %114 = arith.negf %98 : vector<2x128xf32>
    %115 = math.exp %114 : vector<2x128xf32>
    %cst_20 = arith.constant 1.000000e+00 : f32
    %116 = vector.broadcast %cst_20 : f32 to vector<2x128xf32>
    %117 = arith.addf %116, %115 : vector<2x128xf32>
    %118 = arith.divf %116, %117 : vector<2x128xf32>
    %119 = vector.extract_strided_slice %98 {offsets = [0, 64], sizes = [2, 32], strides = [1, 1]} : vector<2x128xf32> to vector<2x32xf32>
    %120 = math.tanh %119 : vector<2x32xf32>
    %121 = vector.extract_strided_slice %118 {offsets = [0, 32], sizes = [2, 32], strides = [1, 1]} : vector<2x128xf32> to vector<2x32xf32>
    %122 = arith.mulf %121, %84 : vector<2x32xf32>
    %123 = vector.extract_strided_slice %118 {offsets = [0, 0], sizes = [2, 32], strides = [1, 1]} : vector<2x128xf32> to vector<2x32xf32>
    %124 = arith.mulf %123, %120 : vector<2x32xf32>
    %125 = arith.addf %122, %124 : vector<2x32xf32>
    %126 = vector.extract_strided_slice %118 {offsets = [0, 96], sizes = [2, 32], strides = [1, 1]} : vector<2x128xf32> to vector<2x32xf32>
    %127 = math.tanh %125 : vector<2x32xf32>
    %128 = arith.mulf %126, %127 : vector<2x32xf32>
    %c4 = arith.constant 4 : index
    %c0_21 = arith.constant 0 : index
    %129 = vector.load %arg26[%c4, %c0_21] : memref<16x64xf32, #tpu.memory_space<vmem>>, vector<2x32xf32>
    tpu.vector_store %arg26[%c4, %c0_21], %113 {strides = array<i32>} : memref<16x64xf32, #tpu.memory_space<vmem>>, vector<2x32xf32>,
    %c10 = arith.constant 10 : index
    %c32_22 = arith.constant 32 : index
    %130 = vector.load %arg26[%c10, %c32_22] : memref<16x64xf32, #tpu.memory_space<vmem>>, vector<2x32xf32>
    tpu.vector_store %arg26[%c10, %c32_22], %128 {strides = array<i32>} : memref<16x64xf32, #tpu.memory_space<vmem>>, vector<2x32xf32>,
    %131 = tpu.concatenate %113, %128 in 1 : vector<2x32xf32>, vector<2x32xf32> -> vector<2x64xf32>
    %132 = arith.truncf %131 : vector<2x64xf32> to vector<2x64xbf16>
    %cst_23 = arith.constant dense<0.000000e+00> : vector<2x256xf32>
    %133 = tpu.matmul %132, %6, %cst_23 {dimension_numbers = #tpu.dot_dimension_numbers<[1], [0], [0], [1], [0, 0, 1, 1], [], []>} : vector<2x64xbf16>, vector<64x256xbf16>, vector<2x256xf32> -> vector<2x256xf32>
    %134 = vector.extract_strided_slice %5 {offsets = [6, 0], sizes = [2, 128], strides = [1, 1]} : vector<16x256xf32> to vector<2x128xf32>
    %135 = vector.extract_strided_slice %133 {offsets = [0, 0], sizes = [2, 128], strides = [1, 1]} : vector<2x256xf32> to vector<2x128xf32>
    %136 = arith.addf %134, %135 : vector<2x128xf32>
    %137 = vector.extract_strided_slice %5 {offsets = [8, 128], sizes = [2, 128], strides = [1, 1]} : vector<16x256xf32> to vector<2x128xf32>
    %138 = vector.extract_strided_slice %133 {offsets = [0, 128], sizes = [2, 128], strides = [1, 1]} : vector<2x256xf32> to vector<2x128xf32>
    %139 = arith.addf %137, %138 : vector<2x128xf32>
    %140 = arith.negf %136 : vector<2x128xf32>
    %141 = math.exp %140 : vector<2x128xf32>
    %cst_24 = arith.constant 1.000000e+00 : f32
    %142 = vector.broadcast %cst_24 : f32 to vector<2x128xf32>
    %143 = arith.addf %142, %141 : vector<2x128xf32>
    %144 = arith.divf %142, %143 : vector<2x128xf32>
    %145 = vector.extract_strided_slice %136 {offsets = [0, 64], sizes = [2, 32], strides = [1, 1]} : vector<2x128xf32> to vector<2x32xf32>
    %146 = math.tanh %145 : vector<2x32xf32>
    %147 = vector.extract_strided_slice %144 {offsets = [0, 32], sizes = [2, 32], strides = [1, 1]} : vector<2x128xf32> to vector<2x32xf32>
    %148 = arith.mulf %147, %110 : vector<2x32xf32>
    %149 = vector.extract_strided_slice %144 {offsets = [0, 0], sizes = [2, 32], strides = [1, 1]} : vector<2x128xf32> to vector<2x32xf32>
    %150 = arith.mulf %149, %146 : vector<2x32xf32>
    %151 = arith.addf %148, %150 : vector<2x32xf32>
    %152 = vector.extract_strided_slice %144 {offsets = [0, 96], sizes = [2, 32], strides = [1, 1]} : vector<2x128xf32> to vector<2x32xf32>
    %153 = math.tanh %151 : vector<2x32xf32>
    %154 = arith.mulf %152, %153 : vector<2x32xf32>
    %155 = arith.negf %139 : vector<2x128xf32>
    %156 = math.exp %155 : vector<2x128xf32>
    %cst_25 = arith.constant 1.000000e+00 : f32
    %157 = vector.broadcast %cst_25 : f32 to vector<2x128xf32>
    %158 = arith.addf %157, %156 : vector<2x128xf32>
    %159 = arith.divf %157, %158 : vector<2x128xf32>
    %160 = vector.extract_strided_slice %139 {offsets = [0, 64], sizes = [2, 32], strides = [1, 1]} : vector<2x128xf32> to vector<2x32xf32>
    %161 = math.tanh %160 : vector<2x32xf32>
    %162 = vector.extract_strided_slice %159 {offsets = [0, 32], sizes = [2, 32], strides = [1, 1]} : vector<2x128xf32> to vector<2x32xf32>
    %163 = arith.mulf %162, %125 : vector<2x32xf32>
    %164 = vector.extract_strided_slice %159 {offsets = [0, 0], sizes = [2, 32], strides = [1, 1]} : vector<2x128xf32> to vector<2x32xf32>
    %165 = arith.mulf %164, %161 : vector<2x32xf32>
    %166 = arith.addf %163, %165 : vector<2x32xf32>
    %167 = vector.extract_strided_slice %159 {offsets = [0, 96], sizes = [2, 32], strides = [1, 1]} : vector<2x128xf32> to vector<2x32xf32>
    %168 = math.tanh %166 : vector<2x32xf32>
    %169 = arith.mulf %167, %168 : vector<2x32xf32>
    %c6 = arith.constant 6 : index
    %c0_26 = arith.constant 0 : index
    %170 = vector.load %arg26[%c6, %c0_26] : memref<16x64xf32, #tpu.memory_space<vmem>>, vector<2x32xf32>
    tpu.vector_store %arg26[%c6, %c0_26], %154 {strides = array<i32>} : memref<16x64xf32, #tpu.memory_space<vmem>>, vector<2x32xf32>,
    %c8 = arith.constant 8 : index
    %c32_27 = arith.constant 32 : index
    %171 = vector.load %arg26[%c8, %c32_27] : memref<16x64xf32, #tpu.memory_space<vmem>>, vector<2x32xf32>
    tpu.vector_store %arg26[%c8, %c32_27], %169 {strides = array<i32>} : memref<16x64xf32, #tpu.memory_space<vmem>>, vector<2x32xf32>,
    %172 = tpu.concatenate %154, %169 in 1 : vector<2x32xf32>, vector<2x32xf32> -> vector<2x64xf32>
    %173 = arith.truncf %172 : vector<2x64xf32> to vector<2x64xbf16>
    %cst_28 = arith.constant dense<0.000000e+00> : vector<2x256xf32>
    %174 = tpu.matmul %173, %6, %cst_28 {dimension_numbers = #tpu.dot_dimension_numbers<[1], [0], [0], [1], [0, 0, 1, 1], [], []>} : vector<2x64xbf16>, vector<64x256xbf16>, vector<2x256xf32> -> vector<2x256xf32>
    %175 = vector.extract_strided_slice %5 {offsets = [8, 0], sizes = [2, 128], strides = [1, 1]} : vector<16x256xf32> to vector<2x128xf32>
    %176 = vector.extract_strided_slice %174 {offsets = [0, 0], sizes = [2, 128], strides = [1, 1]} : vector<2x256xf32> to vector<2x128xf32>
    %177 = arith.addf %175, %176 : vector<2x128xf32>
    %178 = vector.extract_strided_slice %5 {offsets = [6, 128], sizes = [2, 128], strides = [1, 1]} : vector<16x256xf32> to vector<2x128xf32>
    %179 = vector.extract_strided_slice %174 {offsets = [0, 128], sizes = [2, 128], strides = [1, 1]} : vector<2x256xf32> to vector<2x128xf32>
    %180 = arith.addf %178, %179 : vector<2x128xf32>
    %181 = arith.negf %177 : vector<2x128xf32>
    %182 = math.exp %181 : vector<2x128xf32>
    %cst_29 = arith.constant 1.000000e+00 : f32
    %183 = vector.broadcast %cst_29 : f32 to vector<2x128xf32>
    %184 = arith.addf %183, %182 : vector<2x128xf32>
    %185 = arith.divf %183, %184 : vector<2x128xf32>
    %186 = vector.extract_strided_slice %177 {offsets = [0, 64], sizes = [2, 32], strides = [1, 1]} : vector<2x128xf32> to vector<2x32xf32>
    %187 = math.tanh %186 : vector<2x32xf32>
    %188 = vector.extract_strided_slice %185 {offsets = [0, 32], sizes = [2, 32], strides = [1, 1]} : vector<2x128xf32> to vector<2x32xf32>
    %189 = arith.mulf %188, %151 : vector<2x32xf32>
    %190 = vector.extract_strided_slice %185 {offsets = [0, 0], sizes = [2, 32], strides = [1, 1]} : vector<2x128xf32> to vector<2x32xf32>
    %191 = arith.mulf %190, %187 : vector<2x32xf32>
    %192 = arith.addf %189, %191 : vector<2x32xf32>
    %193 = vector.extract_strided_slice %185 {offsets = [0, 96], sizes = [2, 32], strides = [1, 1]} : vector<2x128xf32> to vector<2x32xf32>
    %194 = math.tanh %192 : vector<2x32xf32>
    %195 = arith.mulf %193, %194 : vector<2x32xf32>
    %196 = arith.negf %180 : vector<2x128xf32>
    %197 = math.exp %196 : vector<2x128xf32>
    %cst_30 = arith.constant 1.000000e+00 : f32
    %198 = vector.broadcast %cst_30 : f32 to vector<2x128xf32>
    %199 = arith.addf %198, %197 : vector<2x128xf32>
    %200 = arith.divf %198, %199 : vector<2x128xf32>
    %201 = vector.extract_strided_slice %180 {offsets = [0, 64], sizes = [2, 32], strides = [1, 1]} : vector<2x128xf32> to vector<2x32xf32>
    %202 = math.tanh %201 : vector<2x32xf32>
    %203 = vector.extract_strided_slice %200 {offsets = [0, 32], sizes = [2, 32], strides = [1, 1]} : vector<2x128xf32> to vector<2x32xf32>
    %204 = arith.mulf %203, %166 : vector<2x32xf32>
    %205 = vector.extract_strided_slice %200 {offsets = [0, 0], sizes = [2, 32], strides = [1, 1]} : vector<2x128xf32> to vector<2x32xf32>
    %206 = arith.mulf %205, %202 : vector<2x32xf32>
    %207 = arith.addf %204, %206 : vector<2x32xf32>
    %208 = vector.extract_strided_slice %200 {offsets = [0, 96], sizes = [2, 32], strides = [1, 1]} : vector<2x128xf32> to vector<2x32xf32>
    %209 = math.tanh %207 : vector<2x32xf32>
    %210 = arith.mulf %208, %209 : vector<2x32xf32>
    %c8_31 = arith.constant 8 : index
    %c0_32 = arith.constant 0 : index
    %211 = vector.load %arg26[%c8_31, %c0_32] : memref<16x64xf32, #tpu.memory_space<vmem>>, vector<2x32xf32>
    tpu.vector_store %arg26[%c8_31, %c0_32], %195 {strides = array<i32>} : memref<16x64xf32, #tpu.memory_space<vmem>>, vector<2x32xf32>,
    %c6_33 = arith.constant 6 : index
    %c32_34 = arith.constant 32 : index
    %212 = vector.load %arg26[%c6_33, %c32_34] : memref<16x64xf32, #tpu.memory_space<vmem>>, vector<2x32xf32>
    tpu.vector_store %arg26[%c6_33, %c32_34], %210 {strides = array<i32>} : memref<16x64xf32, #tpu.memory_space<vmem>>, vector<2x32xf32>,
    %213 = tpu.concatenate %195, %210 in 1 : vector<2x32xf32>, vector<2x32xf32> -> vector<2x64xf32>
    %214 = arith.truncf %213 : vector<2x64xf32> to vector<2x64xbf16>
    %cst_35 = arith.constant dense<0.000000e+00> : vector<2x256xf32>
    %215 = tpu.matmul %214, %6, %cst_35 {dimension_numbers = #tpu.dot_dimension_numbers<[1], [0], [0], [1], [0, 0, 1, 1], [], []>} : vector<2x64xbf16>, vector<64x256xbf16>, vector<2x256xf32> -> vector<2x256xf32>
    %216 = vector.extract_strided_slice %5 {offsets = [10, 0], sizes = [2, 128], strides = [1, 1]} : vector<16x256xf32> to vector<2x128xf32>
    %217 = vector.extract_strided_slice %215 {offsets = [0, 0], sizes = [2, 128], strides = [1, 1]} : vector<2x256xf32> to vector<2x128xf32>
    %218 = arith.addf %216, %217 : vector<2x128xf32>
    %219 = vector.extract_strided_slice %5 {offsets = [4, 128], sizes = [2, 128], strides = [1, 1]} : vector<16x256xf32> to vector<2x128xf32>
    %220 = vector.extract_strided_slice %215 {offsets = [0, 128], sizes = [2, 128], strides = [1, 1]} : vector<2x256xf32> to vector<2x128xf32>
    %221 = arith.addf %219, %220 : vector<2x128xf32>
    %222 = arith.negf %218 : vector<2x128xf32>
    %223 = math.exp %222 : vector<2x128xf32>
    %cst_36 = arith.constant 1.000000e+00 : f32
    %224 = vector.broadcast %cst_36 : f32 to vector<2x128xf32>
    %225 = arith.addf %224, %223 : vector<2x128xf32>
    %226 = arith.divf %224, %225 : vector<2x128xf32>
    %227 = vector.extract_strided_slice %218 {offsets = [0, 64], sizes = [2, 32], strides = [1, 1]} : vector<2x128xf32> to vector<2x32xf32>
    %228 = math.tanh %227 : vector<2x32xf32>
    %229 = vector.extract_strided_slice %226 {offsets = [0, 32], sizes = [2, 32], strides = [1, 1]} : vector<2x128xf32> to vector<2x32xf32>
    %230 = arith.mulf %229, %192 : vector<2x32xf32>
    %231 = vector.extract_strided_slice %226 {offsets = [0, 0], sizes = [2, 32], strides = [1, 1]} : vector<2x128xf32> to vector<2x32xf32>
    %232 = arith.mulf %231, %228 : vector<2x32xf32>
    %233 = arith.addf %230, %232 : vector<2x32xf32>
    %234 = vector.extract_strided_slice %226 {offsets = [0, 96], sizes = [2, 32], strides = [1, 1]} : vector<2x128xf32> to vector<2x32xf32>
    %235 = math.tanh %233 : vector<2x32xf32>
    %236 = arith.mulf %234, %235 : vector<2x32xf32>
    %237 = arith.negf %221 : vector<2x128xf32>
    %238 = math.exp %237 : vector<2x128xf32>
    %cst_37 = arith.constant 1.000000e+00 : f32
    %239 = vector.broadcast %cst_37 : f32 to vector<2x128xf32>
    %240 = arith.addf %239, %238 : vector<2x128xf32>
    %241 = arith.divf %239, %240 : vector<2x128xf32>
    %242 = vector.extract_strided_slice %221 {offsets = [0, 64], sizes = [2, 32], strides = [1, 1]} : vector<2x128xf32> to vector<2x32xf32>
    %243 = math.tanh %242 : vector<2x32xf32>
    %244 = vector.extract_strided_slice %241 {offsets = [0, 32], sizes = [2, 32], strides = [1, 1]} : vector<2x128xf32> to vector<2x32xf32>
    %245 = arith.mulf %244, %207 : vector<2x32xf32>
    %246 = vector.extract_strided_slice %241 {offsets = [0, 0], sizes = [2, 32], strides = [1, 1]} : vector<2x128xf32> to vector<2x32xf32>
    %247 = arith.mulf %246, %243 : vector<2x32xf32>
    %248 = arith.addf %245, %247 : vector<2x32xf32>
    %249 = vector.extract_strided_slice %241 {offsets = [0, 96], sizes = [2, 32], strides = [1, 1]} : vector<2x128xf32> to vector<2x32xf32>
    %250 = math.tanh %248 : vector<2x32xf32>
    %251 = arith.mulf %249, %250 : vector<2x32xf32>
    %c10_38 = arith.constant 10 : index
    %c0_39 = arith.constant 0 : index
    %252 = vector.load %arg26[%c10_38, %c0_39] : memref<16x64xf32, #tpu.memory_space<vmem>>, vector<2x32xf32>
    tpu.vector_store %arg26[%c10_38, %c0_39], %236 {strides = array<i32>} : memref<16x64xf32, #tpu.memory_space<vmem>>, vector<2x32xf32>,
    %c4_40 = arith.constant 4 : index
    %c32_41 = arith.constant 32 : index
    %253 = vector.load %arg26[%c4_40, %c32_41] : memref<16x64xf32, #tpu.memory_space<vmem>>, vector<2x32xf32>
    tpu.vector_store %arg26[%c4_40, %c32_41], %251 {strides = array<i32>} : memref<16x64xf32, #tpu.memory_space<vmem>>, vector<2x32xf32>,
    %254 = tpu.concatenate %236, %251 in 1 : vector<2x32xf32>, vector<2x32xf32> -> vector<2x64xf32>
    %255 = arith.truncf %254 : vector<2x64xf32> to vector<2x64xbf16>
    %cst_42 = arith.constant dense<0.000000e+00> : vector<2x256xf32>
    %256 = tpu.matmul %255, %6, %cst_42 {dimension_numbers = #tpu.dot_dimension_numbers<[1], [0], [0], [1], [0, 0, 1, 1], [], []>} : vector<2x64xbf16>, vector<64x256xbf16>, vector<2x256xf32> -> vector<2x256xf32>
    %257 = vector.extract_strided_slice %5 {offsets = [12, 0], sizes = [2, 128], strides = [1, 1]} : vector<16x256xf32> to vector<2x128xf32>
    %258 = vector.extract_strided_slice %256 {offsets = [0, 0], sizes = [2, 128], strides = [1, 1]} : vector<2x256xf32> to vector<2x128xf32>
    %259 = arith.addf %257, %258 : vector<2x128xf32>
    %260 = vector.extract_strided_slice %5 {offsets = [2, 128], sizes = [2, 128], strides = [1, 1]} : vector<16x256xf32> to vector<2x128xf32>
    %261 = vector.extract_strided_slice %256 {offsets = [0, 128], sizes = [2, 128], strides = [1, 1]} : vector<2x256xf32> to vector<2x128xf32>
    %262 = arith.addf %260, %261 : vector<2x128xf32>
    %263 = arith.negf %259 : vector<2x128xf32>
    %264 = math.exp %263 : vector<2x128xf32>
    %cst_43 = arith.constant 1.000000e+00 : f32
    %265 = vector.broadcast %cst_43 : f32 to vector<2x128xf32>
    %266 = arith.addf %265, %264 : vector<2x128xf32>
    %267 = arith.divf %265, %266 : vector<2x128xf32>
    %268 = vector.extract_strided_slice %259 {offsets = [0, 64], sizes = [2, 32], strides = [1, 1]} : vector<2x128xf32> to vector<2x32xf32>
    %269 = math.tanh %268 : vector<2x32xf32>
    %270 = vector.extract_strided_slice %267 {offsets = [0, 32], sizes = [2, 32], strides = [1, 1]} : vector<2x128xf32> to vector<2x32xf32>
    %271 = arith.mulf %270, %233 : vector<2x32xf32>
    %272 = vector.extract_strided_slice %267 {offsets = [0, 0], sizes = [2, 32], strides = [1, 1]} : vector<2x128xf32> to vector<2x32xf32>
    %273 = arith.mulf %272, %269 : vector<2x32xf32>
    %274 = arith.addf %271, %273 : vector<2x32xf32>
    %275 = vector.extract_strided_slice %267 {offsets = [0, 96], sizes = [2, 32], strides = [1, 1]} : vector<2x128xf32> to vector<2x32xf32>
    %276 = math.tanh %274 : vector<2x32xf32>
    %277 = arith.mulf %275, %276 : vector<2x32xf32>
    %278 = arith.negf %262 : vector<2x128xf32>
    %279 = math.exp %278 : vector<2x128xf32>
    %cst_44 = arith.constant 1.000000e+00 : f32
    %280 = vector.broadcast %cst_44 : f32 to vector<2x128xf32>
    %281 = arith.addf %280, %279 : vector<2x128xf32>
    %282 = arith.divf %280, %281 : vector<2x128xf32>
    %283 = vector.extract_strided_slice %262 {offsets = [0, 64], sizes = [2, 32], strides = [1, 1]} : vector<2x128xf32> to vector<2x32xf32>
    %284 = math.tanh %283 : vector<2x32xf32>
    %285 = vector.extract_strided_slice %282 {offsets = [0, 32], sizes = [2, 32], strides = [1, 1]} : vector<2x128xf32> to vector<2x32xf32>
    %286 = arith.mulf %285, %248 : vector<2x32xf32>
    %287 = vector.extract_strided_slice %282 {offsets = [0, 0], sizes = [2, 32], strides = [1, 1]} : vector<2x128xf32> to vector<2x32xf32>
    %288 = arith.mulf %287, %284 : vector<2x32xf32>
    %289 = arith.addf %286, %288 : vector<2x32xf32>
    %290 = vector.extract_strided_slice %282 {offsets = [0, 96], sizes = [2, 32], strides = [1, 1]} : vector<2x128xf32> to vector<2x32xf32>
    %291 = math.tanh %289 : vector<2x32xf32>
    %292 = arith.mulf %290, %291 : vector<2x32xf32>
    %c12_45 = arith.constant 12 : index
    %c0_46 = arith.constant 0 : index
    %293 = vector.load %arg26[%c12_45, %c0_46] : memref<16x64xf32, #tpu.memory_space<vmem>>, vector<2x32xf32>
    tpu.vector_store %arg26[%c12_45, %c0_46], %277 {strides = array<i32>} : memref<16x64xf32, #tpu.memory_space<vmem>>, vector<2x32xf32>,
    %c2_47 = arith.constant 2 : index
    %c32_48 = arith.constant 32 : index
    %294 = vector.load %arg26[%c2_47, %c32_48] : memref<16x64xf32, #tpu.memory_space<vmem>>, vector<2x32xf32>
    tpu.vector_store %arg26[%c2_47, %c32_48], %292 {strides = array<i32>} : memref<16x64xf32, #tpu.memory_space<vmem>>, vector<2x32xf32>,
    %295 = tpu.concatenate %277, %292 in 1 : vector<2x32xf32>, vector<2x32xf32> -> vector<2x64xf32>
    %296 = arith.truncf %295 : vector<2x64xf32> to vector<2x64xbf16>
    %cst_49 = arith.constant dense<0.000000e+00> : vector<2x256xf32>
    %297 = tpu.matmul %296, %6, %cst_49 {dimension_numbers = #tpu.dot_dimension_numbers<[1], [0], [0], [1], [0, 0, 1, 1], [], []>} : vector<2x64xbf16>, vector<64x256xbf16>, vector<2x256xf32> -> vector<2x256xf32>
    %298 = vector.extract_strided_slice %5 {offsets = [14, 0], sizes = [2, 128], strides = [1, 1]} : vector<16x256xf32> to vector<2x128xf32>
    %299 = vector.extract_strided_slice %297 {offsets = [0, 0], sizes = [2, 128], strides = [1, 1]} : vector<2x256xf32> to vector<2x128xf32>
    %300 = arith.addf %298, %299 : vector<2x128xf32>
    %301 = vector.extract_strided_slice %5 {offsets = [0, 128], sizes = [2, 128], strides = [1, 1]} : vector<16x256xf32> to vector<2x128xf32>
    %302 = vector.extract_strided_slice %297 {offsets = [0, 128], sizes = [2, 128], strides = [1, 1]} : vector<2x256xf32> to vector<2x128xf32>
    %303 = arith.addf %301, %302 : vector<2x128xf32>
    %304 = arith.negf %300 : vector<2x128xf32>
    %305 = math.exp %304 : vector<2x128xf32>
    %cst_50 = arith.constant 1.000000e+00 : f32
    %306 = vector.broadcast %cst_50 : f32 to vector<2x128xf32>
    %307 = arith.addf %306, %305 : vector<2x128xf32>
    %308 = arith.divf %306, %307 : vector<2x128xf32>
    %309 = vector.extract_strided_slice %300 {offsets = [0, 64], sizes = [2, 32], strides = [1, 1]} : vector<2x128xf32> to vector<2x32xf32>
    %310 = math.tanh %309 : vector<2x32xf32>
    %311 = vector.extract_strided_slice %308 {offsets = [0, 32], sizes = [2, 32], strides = [1, 1]} : vector<2x128xf32> to vector<2x32xf32>
    %312 = arith.mulf %311, %274 : vector<2x32xf32>
    %313 = vector.extract_strided_slice %308 {offsets = [0, 0], sizes = [2, 32], strides = [1, 1]} : vector<2x128xf32> to vector<2x32xf32>
    %314 = arith.mulf %313, %310 : vector<2x32xf32>
    %315 = arith.addf %312, %314 : vector<2x32xf32>
    %316 = vector.extract_strided_slice %308 {offsets = [0, 96], sizes = [2, 32], strides = [1, 1]} : vector<2x128xf32> to vector<2x32xf32>
    %317 = math.tanh %315 : vector<2x32xf32>
    %318 = arith.mulf %316, %317 : vector<2x32xf32>
    %319 = arith.negf %303 : vector<2x128xf32>
    %320 = math.exp %319 : vector<2x128xf32>
    %cst_51 = arith.constant 1.000000e+00 : f32
    %321 = vector.broadcast %cst_51 : f32 to vector<2x128xf32>
    %322 = arith.addf %321, %320 : vector<2x128xf32>
    %323 = arith.divf %321, %322 : vector<2x128xf32>
    %324 = vector.extract_strided_slice %303 {offsets = [0, 64], sizes = [2, 32], strides = [1, 1]} : vector<2x128xf32> to vector<2x32xf32>
    %325 = math.tanh %324 : vector<2x32xf32>
    %326 = vector.extract_strided_slice %323 {offsets = [0, 32], sizes = [2, 32], strides = [1, 1]} : vector<2x128xf32> to vector<2x32xf32>
    %327 = arith.mulf %326, %289 : vector<2x32xf32>
    %328 = vector.extract_strided_slice %323 {offsets = [0, 0], sizes = [2, 32], strides = [1, 1]} : vector<2x128xf32> to vector<2x32xf32>
    %329 = arith.mulf %328, %325 : vector<2x32xf32>
    %330 = arith.addf %327, %329 : vector<2x32xf32>
    %331 = vector.extract_strided_slice %323 {offsets = [0, 96], sizes = [2, 32], strides = [1, 1]} : vector<2x128xf32> to vector<2x32xf32>
    %332 = math.tanh %330 : vector<2x32xf32>
    %333 = arith.mulf %331, %332 : vector<2x32xf32>
    %c14_52 = arith.constant 14 : index
    %c0_53 = arith.constant 0 : index
    %334 = vector.load %arg26[%c14_52, %c0_53] : memref<16x64xf32, #tpu.memory_space<vmem>>, vector<2x32xf32>
    tpu.vector_store %arg26[%c14_52, %c0_53], %318 {strides = array<i32>} : memref<16x64xf32, #tpu.memory_space<vmem>>, vector<2x32xf32>,
    %c0_54 = arith.constant 0 : index
    %c32_55 = arith.constant 32 : index
    %335 = vector.load %arg26[%c0_54, %c32_55] : memref<16x64xf32, #tpu.memory_space<vmem>>, vector<2x32xf32>
    tpu.vector_store %arg26[%c0_54, %c32_55], %333 {strides = array<i32>} : memref<16x64xf32, #tpu.memory_space<vmem>>, vector<2x32xf32>,
    %c0_56 = arith.constant 0 : index
    %c0_57 = arith.constant 0 : index
    %336 = vector.load %arg26[%c0_56, %c0_57] : memref<16x64xf32, #tpu.memory_space<vmem>>, vector<16x64xf32>
    %337 = arith.truncf %336 : vector<16x64xf32> to vector<16x64xbf16>
    %c0_58 = arith.constant 0 : index
    %c0_59 = arith.constant 0 : index
    %338 = vector.load %arg5[%c0_58, %c0_59] : memref<64x256xbf16, #tpu.memory_space<vmem>>, vector<64x256xbf16>
    %cst_60 = arith.constant dense<0.000000e+00> : vector<16x256xf32>
    %339 = tpu.matmul %337, %338, %cst_60 {dimension_numbers = #tpu.dot_dimension_numbers<[1], [0], [0], [1], [0, 0, 1, 1], [], []>} : vector<16x64xbf16>, vector<64x256xbf16>, vector<16x256xf32> -> vector<16x256xf32>
    %c0_61 = arith.constant 0 : index
    %c0_62 = arith.constant 0 : index
    %340 = vector.load %arg7[%c0_61, %c0_62] : memref<1x256xf32, #tpu.memory_space<vmem>>, vector<1x256xf32>
    %341 = vector.broadcast %340 : vector<1x256xf32> to vector<16x256xf32>
    %342 = arith.addf %339, %341 : vector<16x256xf32>
    %c0_63 = arith.constant 0 : index
    %c0_64 = arith.constant 0 : index
    %343 = vector.load %arg6[%c0_63, %c0_64] : memref<64x256xbf16, #tpu.memory_space<vmem>>, vector<64x256xbf16>
    %cst_65 = arith.constant 0.000000e+00 : f32
    %344 = vector.broadcast %cst_65 : f32 to vector<2x32xf32>
    %345 = tpu.concatenate %344, %344 in 1 : vector<2x32xf32>, vector<2x32xf32> -> vector<2x64xf32>
    %346 = arith.truncf %345 : vector<2x64xf32> to vector<2x64xbf16>
    %cst_66 = arith.constant dense<0.000000e+00> : vector<2x256xf32>
    %347 = tpu.matmul %346, %343, %cst_66 {dimension_numbers = #tpu.dot_dimension_numbers<[1], [0], [0], [1], [0, 0, 1, 1], [], []>} : vector<2x64xbf16>, vector<64x256xbf16>, vector<2x256xf32> -> vector<2x256xf32>
    %348 = vector.extract_strided_slice %342 {offsets = [0, 0], sizes = [2, 128], strides = [1, 1]} : vector<16x256xf32> to vector<2x128xf32>
    %349 = vector.extract_strided_slice %347 {offsets = [0, 0], sizes = [2, 128], strides = [1, 1]} : vector<2x256xf32> to vector<2x128xf32>
    %350 = arith.addf %348, %349 : vector<2x128xf32>
    %351 = vector.extract_strided_slice %342 {offsets = [14, 128], sizes = [2, 128], strides = [1, 1]} : vector<16x256xf32> to vector<2x128xf32>
    %352 = vector.extract_strided_slice %347 {offsets = [0, 128], sizes = [2, 128], strides = [1, 1]} : vector<2x256xf32> to vector<2x128xf32>
    %353 = arith.addf %351, %352 : vector<2x128xf32>
    %354 = arith.negf %350 : vector<2x128xf32>
    %355 = math.exp %354 : vector<2x128xf32>
    %cst_67 = arith.constant 1.000000e+00 : f32
    %356 = vector.broadcast %cst_67 : f32 to vector<2x128xf32>
    %357 = arith.addf %356, %355 : vector<2x128xf32>
    %358 = arith.divf %356, %357 : vector<2x128xf32>
    %359 = vector.extract_strided_slice %350 {offsets = [0, 64], sizes = [2, 32], strides = [1, 1]} : vector<2x128xf32> to vector<2x32xf32>
    %360 = math.tanh %359 : vector<2x32xf32>
    %361 = vector.extract_strided_slice %358 {offsets = [0, 32], sizes = [2, 32], strides = [1, 1]} : vector<2x128xf32> to vector<2x32xf32>
    %362 = arith.mulf %361, %344 : vector<2x32xf32>
    %363 = vector.extract_strided_slice %358 {offsets = [0, 0], sizes = [2, 32], strides = [1, 1]} : vector<2x128xf32> to vector<2x32xf32>
    %364 = arith.mulf %363, %360 : vector<2x32xf32>
    %365 = arith.addf %362, %364 : vector<2x32xf32>
    %366 = vector.extract_strided_slice %358 {offsets = [0, 96], sizes = [2, 32], strides = [1, 1]} : vector<2x128xf32> to vector<2x32xf32>
    %367 = math.tanh %365 : vector<2x32xf32>
    %368 = arith.mulf %366, %367 : vector<2x32xf32>
    %369 = arith.negf %353 : vector<2x128xf32>
    %370 = math.exp %369 : vector<2x128xf32>
    %cst_68 = arith.constant 1.000000e+00 : f32
    %371 = vector.broadcast %cst_68 : f32 to vector<2x128xf32>
    %372 = arith.addf %371, %370 : vector<2x128xf32>
    %373 = arith.divf %371, %372 : vector<2x128xf32>
    %374 = vector.extract_strided_slice %353 {offsets = [0, 64], sizes = [2, 32], strides = [1, 1]} : vector<2x128xf32> to vector<2x32xf32>
    %375 = math.tanh %374 : vector<2x32xf32>
    %376 = vector.extract_strided_slice %373 {offsets = [0, 32], sizes = [2, 32], strides = [1, 1]} : vector<2x128xf32> to vector<2x32xf32>
    %377 = arith.mulf %376, %344 : vector<2x32xf32>
    %378 = vector.extract_strided_slice %373 {offsets = [0, 0], sizes = [2, 32], strides = [1, 1]} : vector<2x128xf32> to vector<2x32xf32>
    %379 = arith.mulf %378, %375 : vector<2x32xf32>
    %380 = arith.addf %377, %379 : vector<2x32xf32>
    %381 = vector.extract_strided_slice %373 {offsets = [0, 96], sizes = [2, 32], strides = [1, 1]} : vector<2x128xf32> to vector<2x32xf32>
    %382 = math.tanh %380 : vector<2x32xf32>
    %383 = arith.mulf %381, %382 : vector<2x32xf32>
    %c0_69 = arith.constant 0 : index
    %c0_70 = arith.constant 0 : index
    %384 = vector.load %arg27[%c0_69, %c0_70] : memref<16x64xf32, #tpu.memory_space<vmem>>, vector<2x32xf32>
    tpu.vector_store %arg27[%c0_69, %c0_70], %368 {strides = array<i32>} : memref<16x64xf32, #tpu.memory_space<vmem>>, vector<2x32xf32>,
    %c14_71 = arith.constant 14 : index
    %c32_72 = arith.constant 32 : index
    %385 = vector.load %arg27[%c14_71, %c32_72] : memref<16x64xf32, #tpu.memory_space<vmem>>, vector<2x32xf32>
    tpu.vector_store %arg27[%c14_71, %c32_72], %383 {strides = array<i32>} : memref<16x64xf32, #tpu.memory_space<vmem>>, vector<2x32xf32>,
    %386 = tpu.concatenate %368, %383 in 1 : vector<2x32xf32>, vector<2x32xf32> -> vector<2x64xf32>
    %387 = arith.truncf %386 : vector<2x64xf32> to vector<2x64xbf16>
    %cst_73 = arith.constant dense<0.000000e+00> : vector<2x256xf32>
    %388 = tpu.matmul %387, %343, %cst_73 {dimension_numbers = #tpu.dot_dimension_numbers<[1], [0], [0], [1], [0, 0, 1, 1], [], []>} : vector<2x64xbf16>, vector<64x256xbf16>, vector<2x256xf32> -> vector<2x256xf32>
    %389 = vector.extract_strided_slice %342 {offsets = [2, 0], sizes = [2, 128], strides = [1, 1]} : vector<16x256xf32> to vector<2x128xf32>
    %390 = vector.extract_strided_slice %388 {offsets = [0, 0], sizes = [2, 128], strides = [1, 1]} : vector<2x256xf32> to vector<2x128xf32>
    %391 = arith.addf %389, %390 : vector<2x128xf32>
    %392 = vector.extract_strided_slice %342 {offsets = [12, 128], sizes = [2, 128], strides = [1, 1]} : vector<16x256xf32> to vector<2x128xf32>
    %393 = vector.extract_strided_slice %388 {offsets = [0, 128], sizes = [2, 128], strides = [1, 1]} : vector<2x256xf32> to vector<2x128xf32>
    %394 = arith.addf %392, %393 : vector<2x128xf32>
    %395 = arith.negf %391 : vector<2x128xf32>
    %396 = math.exp %395 : vector<2x128xf32>
    %cst_74 = arith.constant 1.000000e+00 : f32
    %397 = vector.broadcast %cst_74 : f32 to vector<2x128xf32>
    %398 = arith.addf %397, %396 : vector<2x128xf32>
    %399 = arith.divf %397, %398 : vector<2x128xf32>
    %400 = vector.extract_strided_slice %391 {offsets = [0, 64], sizes = [2, 32], strides = [1, 1]} : vector<2x128xf32> to vector<2x32xf32>
    %401 = math.tanh %400 : vector<2x32xf32>
    %402 = vector.extract_strided_slice %399 {offsets = [0, 32], sizes = [2, 32], strides = [1, 1]} : vector<2x128xf32> to vector<2x32xf32>
    %403 = arith.mulf %402, %365 : vector<2x32xf32>
    %404 = vector.extract_strided_slice %399 {offsets = [0, 0], sizes = [2, 32], strides = [1, 1]} : vector<2x128xf32> to vector<2x32xf32>
    %405 = arith.mulf %404, %401 : vector<2x32xf32>
    %406 = arith.addf %403, %405 : vector<2x32xf32>
    %407 = vector.extract_strided_slice %399 {offsets = [0, 96], sizes = [2, 32], strides = [1, 1]} : vector<2x128xf32> to vector<2x32xf32>
    %408 = math.tanh %406 : vector<2x32xf32>
    %409 = arith.mulf %407, %408 : vector<2x32xf32>
    %410 = arith.negf %394 : vector<2x128xf32>
    %411 = math.exp %410 : vector<2x128xf32>
    %cst_75 = arith.constant 1.000000e+00 : f32
    %412 = vector.broadcast %cst_75 : f32 to vector<2x128xf32>
    %413 = arith.addf %412, %411 : vector<2x128xf32>
    %414 = arith.divf %412, %413 : vector<2x128xf32>
    %415 = vector.extract_strided_slice %394 {offsets = [0, 64], sizes = [2, 32], strides = [1, 1]} : vector<2x128xf32> to vector<2x32xf32>
    %416 = math.tanh %415 : vector<2x32xf32>
    %417 = vector.extract_strided_slice %414 {offsets = [0, 32], sizes = [2, 32], strides = [1, 1]} : vector<2x128xf32> to vector<2x32xf32>
    %418 = arith.mulf %417, %380 : vector<2x32xf32>
    %419 = vector.extract_strided_slice %414 {offsets = [0, 0], sizes = [2, 32], strides = [1, 1]} : vector<2x128xf32> to vector<2x32xf32>
    %420 = arith.mulf %419, %416 : vector<2x32xf32>
    %421 = arith.addf %418, %420 : vector<2x32xf32>
    %422 = vector.extract_strided_slice %414 {offsets = [0, 96], sizes = [2, 32], strides = [1, 1]} : vector<2x128xf32> to vector<2x32xf32>
    %423 = math.tanh %421 : vector<2x32xf32>
    %424 = arith.mulf %422, %423 : vector<2x32xf32>
    %c2_76 = arith.constant 2 : index
    %c0_77 = arith.constant 0 : index
    %425 = vector.load %arg27[%c2_76, %c0_77] : memref<16x64xf32, #tpu.memory_space<vmem>>, vector<2x32xf32>
    tpu.vector_store %arg27[%c2_76, %c0_77], %409 {strides = array<i32>} : memref<16x64xf32, #tpu.memory_space<vmem>>, vector<2x32xf32>,
    %c12_78 = arith.constant 12 : index
    %c32_79 = arith.constant 32 : index
    %426 = vector.load %arg27[%c12_78, %c32_79] : memref<16x64xf32, #tpu.memory_space<vmem>>, vector<2x32xf32>
    tpu.vector_store %arg27[%c12_78, %c32_79], %424 {strides = array<i32>} : memref<16x64xf32, #tpu.memory_space<vmem>>, vector<2x32xf32>,
    %427 = tpu.concatenate %409, %424 in 1 : vector<2x32xf32>, vector<2x32xf32> -> vector<2x64xf32>
    %428 = arith.truncf %427 : vector<2x64xf32> to vector<2x64xbf16>
    %cst_80 = arith.constant dense<0.000000e+00> : vector<2x256xf32>
    %429 = tpu.matmul %428, %343, %cst_80 {dimension_numbers = #tpu.dot_dimension_numbers<[1], [0], [0], [1], [0, 0, 1, 1], [], []>} : vector<2x64xbf16>, vector<64x256xbf16>, vector<2x256xf32> -> vector<2x256xf32>
    %430 = vector.extract_strided_slice %342 {offsets = [4, 0], sizes = [2, 128], strides = [1, 1]} : vector<16x256xf32> to vector<2x128xf32>
    %431 = vector.extract_strided_slice %429 {offsets = [0, 0], sizes = [2, 128], strides = [1, 1]} : vector<2x256xf32> to vector<2x128xf32>
    %432 = arith.addf %430, %431 : vector<2x128xf32>
    %433 = vector.extract_strided_slice %342 {offsets = [10, 128], sizes = [2, 128], strides = [1, 1]} : vector<16x256xf32> to vector<2x128xf32>
    %434 = vector.extract_strided_slice %429 {offsets = [0, 128], sizes = [2, 128], strides = [1, 1]} : vector<2x256xf32> to vector<2x128xf32>
    %435 = arith.addf %433, %434 : vector<2x128xf32>
    %436 = arith.negf %432 : vector<2x128xf32>
    %437 = math.exp %436 : vector<2x128xf32>
    %cst_81 = arith.constant 1.000000e+00 : f32
    %438 = vector.broadcast %cst_81 : f32 to vector<2x128xf32>
    %439 = arith.addf %438, %437 : vector<2x128xf32>
    %440 = arith.divf %438, %439 : vector<2x128xf32>
    %441 = vector.extract_strided_slice %432 {offsets = [0, 64], sizes = [2, 32], strides = [1, 1]} : vector<2x128xf32> to vector<2x32xf32>
    %442 = math.tanh %441 : vector<2x32xf32>
    %443 = vector.extract_strided_slice %440 {offsets = [0, 32], sizes = [2, 32], strides = [1, 1]} : vector<2x128xf32> to vector<2x32xf32>
    %444 = arith.mulf %443, %406 : vector<2x32xf32>
    %445 = vector.extract_strided_slice %440 {offsets = [0, 0], sizes = [2, 32], strides = [1, 1]} : vector<2x128xf32> to vector<2x32xf32>
    %446 = arith.mulf %445, %442 : vector<2x32xf32>
    %447 = arith.addf %444, %446 : vector<2x32xf32>
    %448 = vector.extract_strided_slice %440 {offsets = [0, 96], sizes = [2, 32], strides = [1, 1]} : vector<2x128xf32> to vector<2x32xf32>
    %449 = math.tanh %447 : vector<2x32xf32>
    %450 = arith.mulf %448, %449 : vector<2x32xf32>
    %451 = arith.negf %435 : vector<2x128xf32>
    %452 = math.exp %451 : vector<2x128xf32>
    %cst_82 = arith.constant 1.000000e+00 : f32
    %453 = vector.broadcast %cst_82 : f32 to vector<2x128xf32>
    %454 = arith.addf %453, %452 : vector<2x128xf32>
    %455 = arith.divf %453, %454 : vector<2x128xf32>
    %456 = vector.extract_strided_slice %435 {offsets = [0, 64], sizes = [2, 32], strides = [1, 1]} : vector<2x128xf32> to vector<2x32xf32>
    %457 = math.tanh %456 : vector<2x32xf32>
    %458 = vector.extract_strided_slice %455 {offsets = [0, 32], sizes = [2, 32], strides = [1, 1]} : vector<2x128xf32> to vector<2x32xf32>
    %459 = arith.mulf %458, %421 : vector<2x32xf32>
    %460 = vector.extract_strided_slice %455 {offsets = [0, 0], sizes = [2, 32], strides = [1, 1]} : vector<2x128xf32> to vector<2x32xf32>
    %461 = arith.mulf %460, %457 : vector<2x32xf32>
    %462 = arith.addf %459, %461 : vector<2x32xf32>
    %463 = vector.extract_strided_slice %455 {offsets = [0, 96], sizes = [2, 32], strides = [1, 1]} : vector<2x128xf32> to vector<2x32xf32>
    %464 = math.tanh %462 : vector<2x32xf32>
    %465 = arith.mulf %463, %464 : vector<2x32xf32>
    %c4_83 = arith.constant 4 : index
    %c0_84 = arith.constant 0 : index
    %466 = vector.load %arg27[%c4_83, %c0_84] : memref<16x64xf32, #tpu.memory_space<vmem>>, vector<2x32xf32>
    tpu.vector_store %arg27[%c4_83, %c0_84], %450 {strides = array<i32>} : memref<16x64xf32, #tpu.memory_space<vmem>>, vector<2x32xf32>,
    %c10_85 = arith.constant 10 : index
    %c32_86 = arith.constant 32 : index
    %467 = vector.load %arg27[%c10_85, %c32_86] : memref<16x64xf32, #tpu.memory_space<vmem>>, vector<2x32xf32>
    tpu.vector_store %arg27[%c10_85, %c32_86], %465 {strides = array<i32>} : memref<16x64xf32, #tpu.memory_space<vmem>>, vector<2x32xf32>,
    %468 = tpu.concatenate %450, %465 in 1 : vector<2x32xf32>, vector<2x32xf32> -> vector<2x64xf32>
    %469 = arith.truncf %468 : vector<2x64xf32> to vector<2x64xbf16>
    %cst_87 = arith.constant dense<0.000000e+00> : vector<2x256xf32>
    %470 = tpu.matmul %469, %343, %cst_87 {dimension_numbers = #tpu.dot_dimension_numbers<[1], [0], [0], [1], [0, 0, 1, 1], [], []>} : vector<2x64xbf16>, vector<64x256xbf16>, vector<2x256xf32> -> vector<2x256xf32>
    %471 = vector.extract_strided_slice %342 {offsets = [6, 0], sizes = [2, 128], strides = [1, 1]} : vector<16x256xf32> to vector<2x128xf32>
    %472 = vector.extract_strided_slice %470 {offsets = [0, 0], sizes = [2, 128], strides = [1, 1]} : vector<2x256xf32> to vector<2x128xf32>
    %473 = arith.addf %471, %472 : vector<2x128xf32>
    %474 = vector.extract_strided_slice %342 {offsets = [8, 128], sizes = [2, 128], strides = [1, 1]} : vector<16x256xf32> to vector<2x128xf32>
    %475 = vector.extract_strided_slice %470 {offsets = [0, 128], sizes = [2, 128], strides = [1, 1]} : vector<2x256xf32> to vector<2x128xf32>
    %476 = arith.addf %474, %475 : vector<2x128xf32>
    %477 = arith.negf %473 : vector<2x128xf32>
    %478 = math.exp %477 : vector<2x128xf32>
    %cst_88 = arith.constant 1.000000e+00 : f32
    %479 = vector.broadcast %cst_88 : f32 to vector<2x128xf32>
    %480 = arith.addf %479, %478 : vector<2x128xf32>
    %481 = arith.divf %479, %480 : vector<2x128xf32>
    %482 = vector.extract_strided_slice %473 {offsets = [0, 64], sizes = [2, 32], strides = [1, 1]} : vector<2x128xf32> to vector<2x32xf32>
    %483 = math.tanh %482 : vector<2x32xf32>
    %484 = vector.extract_strided_slice %481 {offsets = [0, 32], sizes = [2, 32], strides = [1, 1]} : vector<2x128xf32> to vector<2x32xf32>
    %485 = arith.mulf %484, %447 : vector<2x32xf32>
    %486 = vector.extract_strided_slice %481 {offsets = [0, 0], sizes = [2, 32], strides = [1, 1]} : vector<2x128xf32> to vector<2x32xf32>
    %487 = arith.mulf %486, %483 : vector<2x32xf32>
    %488 = arith.addf %485, %487 : vector<2x32xf32>
    %489 = vector.extract_strided_slice %481 {offsets = [0, 96], sizes = [2, 32], strides = [1, 1]} : vector<2x128xf32> to vector<2x32xf32>
    %490 = math.tanh %488 : vector<2x32xf32>
    %491 = arith.mulf %489, %490 : vector<2x32xf32>
    %492 = arith.negf %476 : vector<2x128xf32>
    %493 = math.exp %492 : vector<2x128xf32>
    %cst_89 = arith.constant 1.000000e+00 : f32
    %494 = vector.broadcast %cst_89 : f32 to vector<2x128xf32>
    %495 = arith.addf %494, %493 : vector<2x128xf32>
    %496 = arith.divf %494, %495 : vector<2x128xf32>
    %497 = vector.extract_strided_slice %476 {offsets = [0, 64], sizes = [2, 32], strides = [1, 1]} : vector<2x128xf32> to vector<2x32xf32>
    %498 = math.tanh %497 : vector<2x32xf32>
    %499 = vector.extract_strided_slice %496 {offsets = [0, 32], sizes = [2, 32], strides = [1, 1]} : vector<2x128xf32> to vector<2x32xf32>
    %500 = arith.mulf %499, %462 : vector<2x32xf32>
    %501 = vector.extract_strided_slice %496 {offsets = [0, 0], sizes = [2, 32], strides = [1, 1]} : vector<2x128xf32> to vector<2x32xf32>
    %502 = arith.mulf %501, %498 : vector<2x32xf32>
    %503 = arith.addf %500, %502 : vector<2x32xf32>
    %504 = vector.extract_strided_slice %496 {offsets = [0, 96], sizes = [2, 32], strides = [1, 1]} : vector<2x128xf32> to vector<2x32xf32>
    %505 = math.tanh %503 : vector<2x32xf32>
    %506 = arith.mulf %504, %505 : vector<2x32xf32>
    %c6_90 = arith.constant 6 : index
    %c0_91 = arith.constant 0 : index
    %507 = vector.load %arg27[%c6_90, %c0_91] : memref<16x64xf32, #tpu.memory_space<vmem>>, vector<2x32xf32>
    tpu.vector_store %arg27[%c6_90, %c0_91], %491 {strides = array<i32>} : memref<16x64xf32, #tpu.memory_space<vmem>>, vector<2x32xf32>,
    %c8_92 = arith.constant 8 : index
    %c32_93 = arith.constant 32 : index
    %508 = vector.load %arg27[%c8_92, %c32_93] : memref<16x64xf32, #tpu.memory_space<vmem>>, vector<2x32xf32>
    tpu.vector_store %arg27[%c8_92, %c32_93], %506 {strides = array<i32>} : memref<16x64xf32, #tpu.memory_space<vmem>>, vector<2x32xf32>,
    %509 = tpu.concatenate %491, %506 in 1 : vector<2x32xf32>, vector<2x32xf32> -> vector<2x64xf32>
    %510 = arith.truncf %509 : vector<2x64xf32> to vector<2x64xbf16>
    %cst_94 = arith.constant dense<0.000000e+00> : vector<2x256xf32>
    %511 = tpu.matmul %510, %343, %cst_94 {dimension_numbers = #tpu.dot_dimension_numbers<[1], [0], [0], [1], [0, 0, 1, 1], [], []>} : vector<2x64xbf16>, vector<64x256xbf16>, vector<2x256xf32> -> vector<2x256xf32>
    %512 = vector.extract_strided_slice %342 {offsets = [8, 0], sizes = [2, 128], strides = [1, 1]} : vector<16x256xf32> to vector<2x128xf32>
    %513 = vector.extract_strided_slice %511 {offsets = [0, 0], sizes = [2, 128], strides = [1, 1]} : vector<2x256xf32> to vector<2x128xf32>
    %514 = arith.addf %512, %513 : vector<2x128xf32>
    %515 = vector.extract_strided_slice %342 {offsets = [6, 128], sizes = [2, 128], strides = [1, 1]} : vector<16x256xf32> to vector<2x128xf32>
    %516 = vector.extract_strided_slice %511 {offsets = [0, 128], sizes = [2, 128], strides = [1, 1]} : vector<2x256xf32> to vector<2x128xf32>
    %517 = arith.addf %515, %516 : vector<2x128xf32>
    %518 = arith.negf %514 : vector<2x128xf32>
    %519 = math.exp %518 : vector<2x128xf32>
    %cst_95 = arith.constant 1.000000e+00 : f32
    %520 = vector.broadcast %cst_95 : f32 to vector<2x128xf32>
    %521 = arith.addf %520, %519 : vector<2x128xf32>
    %522 = arith.divf %520, %521 : vector<2x128xf32>
    %523 = vector.extract_strided_slice %514 {offsets = [0, 64], sizes = [2, 32], strides = [1, 1]} : vector<2x128xf32> to vector<2x32xf32>
    %524 = math.tanh %523 : vector<2x32xf32>
    %525 = vector.extract_strided_slice %522 {offsets = [0, 32], sizes = [2, 32], strides = [1, 1]} : vector<2x128xf32> to vector<2x32xf32>
    %526 = arith.mulf %525, %488 : vector<2x32xf32>
    %527 = vector.extract_strided_slice %522 {offsets = [0, 0], sizes = [2, 32], strides = [1, 1]} : vector<2x128xf32> to vector<2x32xf32>
    %528 = arith.mulf %527, %524 : vector<2x32xf32>
    %529 = arith.addf %526, %528 : vector<2x32xf32>
    %530 = vector.extract_strided_slice %522 {offsets = [0, 96], sizes = [2, 32], strides = [1, 1]} : vector<2x128xf32> to vector<2x32xf32>
    %531 = math.tanh %529 : vector<2x32xf32>
    %532 = arith.mulf %530, %531 : vector<2x32xf32>
    %533 = arith.negf %517 : vector<2x128xf32>
    %534 = math.exp %533 : vector<2x128xf32>
    %cst_96 = arith.constant 1.000000e+00 : f32
    %535 = vector.broadcast %cst_96 : f32 to vector<2x128xf32>
    %536 = arith.addf %535, %534 : vector<2x128xf32>
    %537 = arith.divf %535, %536 : vector<2x128xf32>
    %538 = vector.extract_strided_slice %517 {offsets = [0, 64], sizes = [2, 32], strides = [1, 1]} : vector<2x128xf32> to vector<2x32xf32>
    %539 = math.tanh %538 : vector<2x32xf32>
    %540 = vector.extract_strided_slice %537 {offsets = [0, 32], sizes = [2, 32], strides = [1, 1]} : vector<2x128xf32> to vector<2x32xf32>
    %541 = arith.mulf %540, %503 : vector<2x32xf32>
    %542 = vector.extract_strided_slice %537 {offsets = [0, 0], sizes = [2, 32], strides = [1, 1]} : vector<2x128xf32> to vector<2x32xf32>
    %543 = arith.mulf %542, %539 : vector<2x32xf32>
    %544 = arith.addf %541, %543 : vector<2x32xf32>
    %545 = vector.extract_strided_slice %537 {offsets = [0, 96], sizes = [2, 32], strides = [1, 1]} : vector<2x128xf32> to vector<2x32xf32>
    %546 = math.tanh %544 : vector<2x32xf32>
    %547 = arith.mulf %545, %546 : vector<2x32xf32>
    %c8_97 = arith.constant 8 : index
    %c0_98 = arith.constant 0 : index
    %548 = vector.load %arg27[%c8_97, %c0_98] : memref<16x64xf32, #tpu.memory_space<vmem>>, vector<2x32xf32>
    tpu.vector_store %arg27[%c8_97, %c0_98], %532 {strides = array<i32>} : memref<16x64xf32, #tpu.memory_space<vmem>>, vector<2x32xf32>,
    %c6_99 = arith.constant 6 : index
    %c32_100 = arith.constant 32 : index
    %549 = vector.load %arg27[%c6_99, %c32_100] : memref<16x64xf32, #tpu.memory_space<vmem>>, vector<2x32xf32>
    tpu.vector_store %arg27[%c6_99, %c32_100], %547 {strides = array<i32>} : memref<16x64xf32, #tpu.memory_space<vmem>>, vector<2x32xf32>,
    %550 = tpu.concatenate %532, %547 in 1 : vector<2x32xf32>, vector<2x32xf32> -> vector<2x64xf32>
    %551 = arith.truncf %550 : vector<2x64xf32> to vector<2x64xbf16>
    %cst_101 = arith.constant dense<0.000000e+00> : vector<2x256xf32>
    %552 = tpu.matmul %551, %343, %cst_101 {dimension_numbers = #tpu.dot_dimension_numbers<[1], [0], [0], [1], [0, 0, 1, 1], [], []>} : vector<2x64xbf16>, vector<64x256xbf16>, vector<2x256xf32> -> vector<2x256xf32>
    %553 = vector.extract_strided_slice %342 {offsets = [10, 0], sizes = [2, 128], strides = [1, 1]} : vector<16x256xf32> to vector<2x128xf32>
    %554 = vector.extract_strided_slice %552 {offsets = [0, 0], sizes = [2, 128], strides = [1, 1]} : vector<2x256xf32> to vector<2x128xf32>
    %555 = arith.addf %553, %554 : vector<2x128xf32>
    %556 = vector.extract_strided_slice %342 {offsets = [4, 128], sizes = [2, 128], strides = [1, 1]} : vector<16x256xf32> to vector<2x128xf32>
    %557 = vector.extract_strided_slice %552 {offsets = [0, 128], sizes = [2, 128], strides = [1, 1]} : vector<2x256xf32> to vector<2x128xf32>
    %558 = arith.addf %556, %557 : vector<2x128xf32>
    %559 = arith.negf %555 : vector<2x128xf32>
    %560 = math.exp %559 : vector<2x128xf32>
    %cst_102 = arith.constant 1.000000e+00 : f32
    %561 = vector.broadcast %cst_102 : f32 to vector<2x128xf32>
    %562 = arith.addf %561, %560 : vector<2x128xf32>
    %563 = arith.divf %561, %562 : vector<2x128xf32>
    %564 = vector.extract_strided_slice %555 {offsets = [0, 64], sizes = [2, 32], strides = [1, 1]} : vector<2x128xf32> to vector<2x32xf32>
    %565 = math.tanh %564 : vector<2x32xf32>
    %566 = vector.extract_strided_slice %563 {offsets = [0, 32], sizes = [2, 32], strides = [1, 1]} : vector<2x128xf32> to vector<2x32xf32>
    %567 = arith.mulf %566, %529 : vector<2x32xf32>
    %568 = vector.extract_strided_slice %563 {offsets = [0, 0], sizes = [2, 32], strides = [1, 1]} : vector<2x128xf32> to vector<2x32xf32>
    %569 = arith.mulf %568, %565 : vector<2x32xf32>
    %570 = arith.addf %567, %569 : vector<2x32xf32>
    %571 = vector.extract_strided_slice %563 {offsets = [0, 96], sizes = [2, 32], strides = [1, 1]} : vector<2x128xf32> to vector<2x32xf32>
    %572 = math.tanh %570 : vector<2x32xf32>
    %573 = arith.mulf %571, %572 : vector<2x32xf32>
    %574 = arith.negf %558 : vector<2x128xf32>
    %575 = math.exp %574 : vector<2x128xf32>
    %cst_103 = arith.constant 1.000000e+00 : f32
    %576 = vector.broadcast %cst_103 : f32 to vector<2x128xf32>
    %577 = arith.addf %576, %575 : vector<2x128xf32>
    %578 = arith.divf %576, %577 : vector<2x128xf32>
    %579 = vector.extract_strided_slice %558 {offsets = [0, 64], sizes = [2, 32], strides = [1, 1]} : vector<2x128xf32> to vector<2x32xf32>
    %580 = math.tanh %579 : vector<2x32xf32>
    %581 = vector.extract_strided_slice %578 {offsets = [0, 32], sizes = [2, 32], strides = [1, 1]} : vector<2x128xf32> to vector<2x32xf32>
    %582 = arith.mulf %581, %544 : vector<2x32xf32>
    %583 = vector.extract_strided_slice %578 {offsets = [0, 0], sizes = [2, 32], strides = [1, 1]} : vector<2x128xf32> to vector<2x32xf32>
    %584 = arith.mulf %583, %580 : vector<2x32xf32>
    %585 = arith.addf %582, %584 : vector<2x32xf32>
    %586 = vector.extract_strided_slice %578 {offsets = [0, 96], sizes = [2, 32], strides = [1, 1]} : vector<2x128xf32> to vector<2x32xf32>
    %587 = math.tanh %585 : vector<2x32xf32>
    %588 = arith.mulf %586, %587 : vector<2x32xf32>
    %c10_104 = arith.constant 10 : index
    %c0_105 = arith.constant 0 : index
    %589 = vector.load %arg27[%c10_104, %c0_105] : memref<16x64xf32, #tpu.memory_space<vmem>>, vector<2x32xf32>
    tpu.vector_store %arg27[%c10_104, %c0_105], %573 {strides = array<i32>} : memref<16x64xf32, #tpu.memory_space<vmem>>, vector<2x32xf32>,
    %c4_106 = arith.constant 4 : index
    %c32_107 = arith.constant 32 : index
    %590 = vector.load %arg27[%c4_106, %c32_107] : memref<16x64xf32, #tpu.memory_space<vmem>>, vector<2x32xf32>
    tpu.vector_store %arg27[%c4_106, %c32_107], %588 {strides = array<i32>} : memref<16x64xf32, #tpu.memory_space<vmem>>, vector<2x32xf32>,
    %591 = tpu.concatenate %573, %588 in 1 : vector<2x32xf32>, vector<2x32xf32> -> vector<2x64xf32>
    %592 = arith.truncf %591 : vector<2x64xf32> to vector<2x64xbf16>
    %cst_108 = arith.constant dense<0.000000e+00> : vector<2x256xf32>
    %593 = tpu.matmul %592, %343, %cst_108 {dimension_numbers = #tpu.dot_dimension_numbers<[1], [0], [0], [1], [0, 0, 1, 1], [], []>} : vector<2x64xbf16>, vector<64x256xbf16>, vector<2x256xf32> -> vector<2x256xf32>
    %594 = vector.extract_strided_slice %342 {offsets = [12, 0], sizes = [2, 128], strides = [1, 1]} : vector<16x256xf32> to vector<2x128xf32>
    %595 = vector.extract_strided_slice %593 {offsets = [0, 0], sizes = [2, 128], strides = [1, 1]} : vector<2x256xf32> to vector<2x128xf32>
    %596 = arith.addf %594, %595 : vector<2x128xf32>
    %597 = vector.extract_strided_slice %342 {offsets = [2, 128], sizes = [2, 128], strides = [1, 1]} : vector<16x256xf32> to vector<2x128xf32>
    %598 = vector.extract_strided_slice %593 {offsets = [0, 128], sizes = [2, 128], strides = [1, 1]} : vector<2x256xf32> to vector<2x128xf32>
    %599 = arith.addf %597, %598 : vector<2x128xf32>
    %600 = arith.negf %596 : vector<2x128xf32>
    %601 = math.exp %600 : vector<2x128xf32>
    %cst_109 = arith.constant 1.000000e+00 : f32
    %602 = vector.broadcast %cst_109 : f32 to vector<2x128xf32>
    %603 = arith.addf %602, %601 : vector<2x128xf32>
    %604 = arith.divf %602, %603 : vector<2x128xf32>
    %605 = vector.extract_strided_slice %596 {offsets = [0, 64], sizes = [2, 32], strides = [1, 1]} : vector<2x128xf32> to vector<2x32xf32>
    %606 = math.tanh %605 : vector<2x32xf32>
    %607 = vector.extract_strided_slice %604 {offsets = [0, 32], sizes = [2, 32], strides = [1, 1]} : vector<2x128xf32> to vector<2x32xf32>
    %608 = arith.mulf %607, %570 : vector<2x32xf32>
    %609 = vector.extract_strided_slice %604 {offsets = [0, 0], sizes = [2, 32], strides = [1, 1]} : vector<2x128xf32> to vector<2x32xf32>
    %610 = arith.mulf %609, %606 : vector<2x32xf32>
    %611 = arith.addf %608, %610 : vector<2x32xf32>
    %612 = vector.extract_strided_slice %604 {offsets = [0, 96], sizes = [2, 32], strides = [1, 1]} : vector<2x128xf32> to vector<2x32xf32>
    %613 = math.tanh %611 : vector<2x32xf32>
    %614 = arith.mulf %612, %613 : vector<2x32xf32>
    %615 = arith.negf %599 : vector<2x128xf32>
    %616 = math.exp %615 : vector<2x128xf32>
    %cst_110 = arith.constant 1.000000e+00 : f32
    %617 = vector.broadcast %cst_110 : f32 to vector<2x128xf32>
    %618 = arith.addf %617, %616 : vector<2x128xf32>
    %619 = arith.divf %617, %618 : vector<2x128xf32>
    %620 = vector.extract_strided_slice %599 {offsets = [0, 64], sizes = [2, 32], strides = [1, 1]} : vector<2x128xf32> to vector<2x32xf32>
    %621 = math.tanh %620 : vector<2x32xf32>
    %622 = vector.extract_strided_slice %619 {offsets = [0, 32], sizes = [2, 32], strides = [1, 1]} : vector<2x128xf32> to vector<2x32xf32>
    %623 = arith.mulf %622, %585 : vector<2x32xf32>
    %624 = vector.extract_strided_slice %619 {offsets = [0, 0], sizes = [2, 32], strides = [1, 1]} : vector<2x128xf32> to vector<2x32xf32>
    %625 = arith.mulf %624, %621 : vector<2x32xf32>
    %626 = arith.addf %623, %625 : vector<2x32xf32>
    %627 = vector.extract_strided_slice %619 {offsets = [0, 96], sizes = [2, 32], strides = [1, 1]} : vector<2x128xf32> to vector<2x32xf32>
    %628 = math.tanh %626 : vector<2x32xf32>
    %629 = arith.mulf %627, %628 : vector<2x32xf32>
    %c12_111 = arith.constant 12 : index
    %c0_112 = arith.constant 0 : index
    %630 = vector.load %arg27[%c12_111, %c0_112] : memref<16x64xf32, #tpu.memory_space<vmem>>, vector<2x32xf32>
    tpu.vector_store %arg27[%c12_111, %c0_112], %614 {strides = array<i32>} : memref<16x64xf32, #tpu.memory_space<vmem>>, vector<2x32xf32>,
    %c2_113 = arith.constant 2 : index
    %c32_114 = arith.constant 32 : index
    %631 = vector.load %arg27[%c2_113, %c32_114] : memref<16x64xf32, #tpu.memory_space<vmem>>, vector<2x32xf32>
    tpu.vector_store %arg27[%c2_113, %c32_114], %629 {strides = array<i32>} : memref<16x64xf32, #tpu.memory_space<vmem>>, vector<2x32xf32>,
    %632 = tpu.concatenate %614, %629 in 1 : vector<2x32xf32>, vector<2x32xf32> -> vector<2x64xf32>
    %633 = arith.truncf %632 : vector<2x64xf32> to vector<2x64xbf16>
    %cst_115 = arith.constant dense<0.000000e+00> : vector<2x256xf32>
    %634 = tpu.matmul %633, %343, %cst_115 {dimension_numbers = #tpu.dot_dimension_numbers<[1], [0], [0], [1], [0, 0, 1, 1], [], []>} : vector<2x64xbf16>, vector<64x256xbf16>, vector<2x256xf32> -> vector<2x256xf32>
    %635 = vector.extract_strided_slice %342 {offsets = [14, 0], sizes = [2, 128], strides = [1, 1]} : vector<16x256xf32> to vector<2x128xf32>
    %636 = vector.extract_strided_slice %634 {offsets = [0, 0], sizes = [2, 128], strides = [1, 1]} : vector<2x256xf32> to vector<2x128xf32>
    %637 = arith.addf %635, %636 : vector<2x128xf32>
    %638 = vector.extract_strided_slice %342 {offsets = [0, 128], sizes = [2, 128], strides = [1, 1]} : vector<16x256xf32> to vector<2x128xf32>
    %639 = vector.extract_strided_slice %634 {offsets = [0, 128], sizes = [2, 128], strides = [1, 1]} : vector<2x256xf32> to vector<2x128xf32>
    %640 = arith.addf %638, %639 : vector<2x128xf32>
    %641 = arith.negf %637 : vector<2x128xf32>
    %642 = math.exp %641 : vector<2x128xf32>
    %cst_116 = arith.constant 1.000000e+00 : f32
    %643 = vector.broadcast %cst_116 : f32 to vector<2x128xf32>
    %644 = arith.addf %643, %642 : vector<2x128xf32>
    %645 = arith.divf %643, %644 : vector<2x128xf32>
    %646 = vector.extract_strided_slice %637 {offsets = [0, 64], sizes = [2, 32], strides = [1, 1]} : vector<2x128xf32> to vector<2x32xf32>
    %647 = math.tanh %646 : vector<2x32xf32>
    %648 = vector.extract_strided_slice %645 {offsets = [0, 32], sizes = [2, 32], strides = [1, 1]} : vector<2x128xf32> to vector<2x32xf32>
    %649 = arith.mulf %648, %611 : vector<2x32xf32>
    %650 = vector.extract_strided_slice %645 {offsets = [0, 0], sizes = [2, 32], strides = [1, 1]} : vector<2x128xf32> to vector<2x32xf32>
    %651 = arith.mulf %650, %647 : vector<2x32xf32>
    %652 = arith.addf %649, %651 : vector<2x32xf32>
    %653 = vector.extract_strided_slice %645 {offsets = [0, 96], sizes = [2, 32], strides = [1, 1]} : vector<2x128xf32> to vector<2x32xf32>
    %654 = math.tanh %652 : vector<2x32xf32>
    %655 = arith.mulf %653, %654 : vector<2x32xf32>
    %656 = arith.negf %640 : vector<2x128xf32>
    %657 = math.exp %656 : vector<2x128xf32>
    %cst_117 = arith.constant 1.000000e+00 : f32
    %658 = vector.broadcast %cst_117 : f32 to vector<2x128xf32>
    %659 = arith.addf %658, %657 : vector<2x128xf32>
    %660 = arith.divf %658, %659 : vector<2x128xf32>
    %661 = vector.extract_strided_slice %640 {offsets = [0, 64], sizes = [2, 32], strides = [1, 1]} : vector<2x128xf32> to vector<2x32xf32>
    %662 = math.tanh %661 : vector<2x32xf32>
    %663 = vector.extract_strided_slice %660 {offsets = [0, 32], sizes = [2, 32], strides = [1, 1]} : vector<2x128xf32> to vector<2x32xf32>
    %664 = arith.mulf %663, %626 : vector<2x32xf32>
    %665 = vector.extract_strided_slice %660 {offsets = [0, 0], sizes = [2, 32], strides = [1, 1]} : vector<2x128xf32> to vector<2x32xf32>
    %666 = arith.mulf %665, %662 : vector<2x32xf32>
    %667 = arith.addf %664, %666 : vector<2x32xf32>
    %668 = vector.extract_strided_slice %660 {offsets = [0, 96], sizes = [2, 32], strides = [1, 1]} : vector<2x128xf32> to vector<2x32xf32>
    %669 = math.tanh %667 : vector<2x32xf32>
    %670 = arith.mulf %668, %669 : vector<2x32xf32>
    %c14_118 = arith.constant 14 : index
    %c0_119 = arith.constant 0 : index
    %671 = vector.load %arg27[%c14_118, %c0_119] : memref<16x64xf32, #tpu.memory_space<vmem>>, vector<2x32xf32>
    tpu.vector_store %arg27[%c14_118, %c0_119], %655 {strides = array<i32>} : memref<16x64xf32, #tpu.memory_space<vmem>>, vector<2x32xf32>,
    %c0_120 = arith.constant 0 : index
    %c32_121 = arith.constant 32 : index
    %672 = vector.load %arg27[%c0_120, %c32_121] : memref<16x64xf32, #tpu.memory_space<vmem>>, vector<2x32xf32>
    tpu.vector_store %arg27[%c0_120, %c32_121], %670 {strides = array<i32>} : memref<16x64xf32, #tpu.memory_space<vmem>>, vector<2x32xf32>,
    %c0_122 = arith.constant 0 : index
    %c0_123 = arith.constant 0 : index
    %673 = vector.load %arg27[%c0_122, %c0_123] : memref<16x64xf32, #tpu.memory_space<vmem>>, vector<16x64xf32>
    %674 = arith.truncf %673 : vector<16x64xf32> to vector<16x64xbf16>
    %c0_124 = arith.constant 0 : index
    %c0_125 = arith.constant 0 : index
    %675 = vector.load %arg8[%c0_124, %c0_125] : memref<64x256xbf16, #tpu.memory_space<vmem>>, vector<64x256xbf16>
    %cst_126 = arith.constant dense<0.000000e+00> : vector<16x256xf32>
    %676 = tpu.matmul %674, %675, %cst_126 {dimension_numbers = #tpu.dot_dimension_numbers<[1], [0], [0], [1], [0, 0, 1, 1], [], []>} : vector<16x64xbf16>, vector<64x256xbf16>, vector<16x256xf32> -> vector<16x256xf32>
    %c0_127 = arith.constant 0 : index
    %c0_128 = arith.constant 0 : index
    %677 = vector.load %arg10[%c0_127, %c0_128] : memref<1x256xf32, #tpu.memory_space<vmem>>, vector<1x256xf32>
    %678 = vector.broadcast %677 : vector<1x256xf32> to vector<16x256xf32>
    %679 = arith.addf %676, %678 : vector<16x256xf32>
    %c0_129 = arith.constant 0 : index
    %c0_130 = arith.constant 0 : index
    %680 = vector.load %arg9[%c0_129, %c0_130] : memref<64x256xbf16, #tpu.memory_space<vmem>>, vector<64x256xbf16>
    %cst_131 = arith.constant 0.000000e+00 : f32
    %681 = vector.broadcast %cst_131 : f32 to vector<2x32xf32>
    %682 = tpu.concatenate %681, %681 in 1 : vector<2x32xf32>, vector<2x32xf32> -> vector<2x64xf32>
    %683 = arith.truncf %682 : vector<2x64xf32> to vector<2x64xbf16>
    %cst_132 = arith.constant dense<0.000000e+00> : vector<2x256xf32>
    %684 = tpu.matmul %683, %680, %cst_132 {dimension_numbers = #tpu.dot_dimension_numbers<[1], [0], [0], [1], [0, 0, 1, 1], [], []>} : vector<2x64xbf16>, vector<64x256xbf16>, vector<2x256xf32> -> vector<2x256xf32>
    %685 = vector.extract_strided_slice %679 {offsets = [0, 0], sizes = [2, 128], strides = [1, 1]} : vector<16x256xf32> to vector<2x128xf32>
    %686 = vector.extract_strided_slice %684 {offsets = [0, 0], sizes = [2, 128], strides = [1, 1]} : vector<2x256xf32> to vector<2x128xf32>
    %687 = arith.addf %685, %686 : vector<2x128xf32>
    %688 = vector.extract_strided_slice %679 {offsets = [14, 128], sizes = [2, 128], strides = [1, 1]} : vector<16x256xf32> to vector<2x128xf32>
    %689 = vector.extract_strided_slice %684 {offsets = [0, 128], sizes = [2, 128], strides = [1, 1]} : vector<2x256xf32> to vector<2x128xf32>
    %690 = arith.addf %688, %689 : vector<2x128xf32>
    %691 = arith.negf %687 : vector<2x128xf32>
    %692 = math.exp %691 : vector<2x128xf32>
    %cst_133 = arith.constant 1.000000e+00 : f32
    %693 = vector.broadcast %cst_133 : f32 to vector<2x128xf32>
    %694 = arith.addf %693, %692 : vector<2x128xf32>
    %695 = arith.divf %693, %694 : vector<2x128xf32>
    %696 = vector.extract_strided_slice %687 {offsets = [0, 64], sizes = [2, 32], strides = [1, 1]} : vector<2x128xf32> to vector<2x32xf32>
    %697 = math.tanh %696 : vector<2x32xf32>
    %698 = vector.extract_strided_slice %695 {offsets = [0, 32], sizes = [2, 32], strides = [1, 1]} : vector<2x128xf32> to vector<2x32xf32>
    %699 = arith.mulf %698, %681 : vector<2x32xf32>
    %700 = vector.extract_strided_slice %695 {offsets = [0, 0], sizes = [2, 32], strides = [1, 1]} : vector<2x128xf32> to vector<2x32xf32>
    %701 = arith.mulf %700, %697 : vector<2x32xf32>
    %702 = arith.addf %699, %701 : vector<2x32xf32>
    %703 = vector.extract_strided_slice %695 {offsets = [0, 96], sizes = [2, 32], strides = [1, 1]} : vector<2x128xf32> to vector<2x32xf32>
    %704 = math.tanh %702 : vector<2x32xf32>
    %705 = arith.mulf %703, %704 : vector<2x32xf32>
    %706 = arith.negf %690 : vector<2x128xf32>
    %707 = math.exp %706 : vector<2x128xf32>
    %cst_134 = arith.constant 1.000000e+00 : f32
    %708 = vector.broadcast %cst_134 : f32 to vector<2x128xf32>
    %709 = arith.addf %708, %707 : vector<2x128xf32>
    %710 = arith.divf %708, %709 : vector<2x128xf32>
    %711 = vector.extract_strided_slice %690 {offsets = [0, 64], sizes = [2, 32], strides = [1, 1]} : vector<2x128xf32> to vector<2x32xf32>
    %712 = math.tanh %711 : vector<2x32xf32>
    %713 = vector.extract_strided_slice %710 {offsets = [0, 32], sizes = [2, 32], strides = [1, 1]} : vector<2x128xf32> to vector<2x32xf32>
    %714 = arith.mulf %713, %681 : vector<2x32xf32>
    %715 = vector.extract_strided_slice %710 {offsets = [0, 0], sizes = [2, 32], strides = [1, 1]} : vector<2x128xf32> to vector<2x32xf32>
    %716 = arith.mulf %715, %712 : vector<2x32xf32>
    %717 = arith.addf %714, %716 : vector<2x32xf32>
    %718 = vector.extract_strided_slice %710 {offsets = [0, 96], sizes = [2, 32], strides = [1, 1]} : vector<2x128xf32> to vector<2x32xf32>
    %719 = math.tanh %717 : vector<2x32xf32>
    %720 = arith.mulf %718, %719 : vector<2x32xf32>
    %721 = tpu.concatenate %705, %720 in 1 : vector<2x32xf32>, vector<2x32xf32> -> vector<2x64xf32>
    %722 = arith.truncf %721 : vector<2x64xf32> to vector<2x64xbf16>
    %cst_135 = arith.constant dense<0.000000e+00> : vector<2x256xf32>
    %723 = tpu.matmul %722, %680, %cst_135 {dimension_numbers = #tpu.dot_dimension_numbers<[1], [0], [0], [1], [0, 0, 1, 1], [], []>} : vector<2x64xbf16>, vector<64x256xbf16>, vector<2x256xf32> -> vector<2x256xf32>
    %724 = vector.extract_strided_slice %679 {offsets = [2, 0], sizes = [2, 128], strides = [1, 1]} : vector<16x256xf32> to vector<2x128xf32>
    %725 = vector.extract_strided_slice %723 {offsets = [0, 0], sizes = [2, 128], strides = [1, 1]} : vector<2x256xf32> to vector<2x128xf32>
    %726 = arith.addf %724, %725 : vector<2x128xf32>
    %727 = vector.extract_strided_slice %679 {offsets = [12, 128], sizes = [2, 128], strides = [1, 1]} : vector<16x256xf32> to vector<2x128xf32>
    %728 = vector.extract_strided_slice %723 {offsets = [0, 128], sizes = [2, 128], strides = [1, 1]} : vector<2x256xf32> to vector<2x128xf32>
    %729 = arith.addf %727, %728 : vector<2x128xf32>
    %730 = arith.negf %726 : vector<2x128xf32>
    %731 = math.exp %730 : vector<2x128xf32>
    %cst_136 = arith.constant 1.000000e+00 : f32
    %732 = vector.broadcast %cst_136 : f32 to vector<2x128xf32>
    %733 = arith.addf %732, %731 : vector<2x128xf32>
    %734 = arith.divf %732, %733 : vector<2x128xf32>
    %735 = vector.extract_strided_slice %726 {offsets = [0, 64], sizes = [2, 32], strides = [1, 1]} : vector<2x128xf32> to vector<2x32xf32>
    %736 = math.tanh %735 : vector<2x32xf32>
    %737 = vector.extract_strided_slice %734 {offsets = [0, 32], sizes = [2, 32], strides = [1, 1]} : vector<2x128xf32> to vector<2x32xf32>
    %738 = arith.mulf %737, %702 : vector<2x32xf32>
    %739 = vector.extract_strided_slice %734 {offsets = [0, 0], sizes = [2, 32], strides = [1, 1]} : vector<2x128xf32> to vector<2x32xf32>
    %740 = arith.mulf %739, %736 : vector<2x32xf32>
    %741 = arith.addf %738, %740 : vector<2x32xf32>
    %742 = vector.extract_strided_slice %734 {offsets = [0, 96], sizes = [2, 32], strides = [1, 1]} : vector<2x128xf32> to vector<2x32xf32>
    %743 = math.tanh %741 : vector<2x32xf32>
    %744 = arith.mulf %742, %743 : vector<2x32xf32>
    %745 = arith.negf %729 : vector<2x128xf32>
    %746 = math.exp %745 : vector<2x128xf32>
    %cst_137 = arith.constant 1.000000e+00 : f32
    %747 = vector.broadcast %cst_137 : f32 to vector<2x128xf32>
    %748 = arith.addf %747, %746 : vector<2x128xf32>
    %749 = arith.divf %747, %748 : vector<2x128xf32>
    %750 = vector.extract_strided_slice %729 {offsets = [0, 64], sizes = [2, 32], strides = [1, 1]} : vector<2x128xf32> to vector<2x32xf32>
    %751 = math.tanh %750 : vector<2x32xf32>
    %752 = vector.extract_strided_slice %749 {offsets = [0, 32], sizes = [2, 32], strides = [1, 1]} : vector<2x128xf32> to vector<2x32xf32>
    %753 = arith.mulf %752, %717 : vector<2x32xf32>
    %754 = vector.extract_strided_slice %749 {offsets = [0, 0], sizes = [2, 32], strides = [1, 1]} : vector<2x128xf32> to vector<2x32xf32>
    %755 = arith.mulf %754, %751 : vector<2x32xf32>
    %756 = arith.addf %753, %755 : vector<2x32xf32>
    %757 = vector.extract_strided_slice %749 {offsets = [0, 96], sizes = [2, 32], strides = [1, 1]} : vector<2x128xf32> to vector<2x32xf32>
    %758 = math.tanh %756 : vector<2x32xf32>
    %759 = arith.mulf %757, %758 : vector<2x32xf32>
    %760 = tpu.concatenate %744, %759 in 1 : vector<2x32xf32>, vector<2x32xf32> -> vector<2x64xf32>
    %761 = arith.truncf %760 : vector<2x64xf32> to vector<2x64xbf16>
    %cst_138 = arith.constant dense<0.000000e+00> : vector<2x256xf32>
    %762 = tpu.matmul %761, %680, %cst_138 {dimension_numbers = #tpu.dot_dimension_numbers<[1], [0], [0], [1], [0, 0, 1, 1], [], []>} : vector<2x64xbf16>, vector<64x256xbf16>, vector<2x256xf32> -> vector<2x256xf32>
    %763 = vector.extract_strided_slice %679 {offsets = [4, 0], sizes = [2, 128], strides = [1, 1]} : vector<16x256xf32> to vector<2x128xf32>
    %764 = vector.extract_strided_slice %762 {offsets = [0, 0], sizes = [2, 128], strides = [1, 1]} : vector<2x256xf32> to vector<2x128xf32>
    %765 = arith.addf %763, %764 : vector<2x128xf32>
    %766 = vector.extract_strided_slice %679 {offsets = [10, 128], sizes = [2, 128], strides = [1, 1]} : vector<16x256xf32> to vector<2x128xf32>
    %767 = vector.extract_strided_slice %762 {offsets = [0, 128], sizes = [2, 128], strides = [1, 1]} : vector<2x256xf32> to vector<2x128xf32>
    %768 = arith.addf %766, %767 : vector<2x128xf32>
    %769 = arith.negf %765 : vector<2x128xf32>
    %770 = math.exp %769 : vector<2x128xf32>
    %cst_139 = arith.constant 1.000000e+00 : f32
    %771 = vector.broadcast %cst_139 : f32 to vector<2x128xf32>
    %772 = arith.addf %771, %770 : vector<2x128xf32>
    %773 = arith.divf %771, %772 : vector<2x128xf32>
    %774 = vector.extract_strided_slice %765 {offsets = [0, 64], sizes = [2, 32], strides = [1, 1]} : vector<2x128xf32> to vector<2x32xf32>
    %775 = math.tanh %774 : vector<2x32xf32>
    %776 = vector.extract_strided_slice %773 {offsets = [0, 32], sizes = [2, 32], strides = [1, 1]} : vector<2x128xf32> to vector<2x32xf32>
    %777 = arith.mulf %776, %741 : vector<2x32xf32>
    %778 = vector.extract_strided_slice %773 {offsets = [0, 0], sizes = [2, 32], strides = [1, 1]} : vector<2x128xf32> to vector<2x32xf32>
    %779 = arith.mulf %778, %775 : vector<2x32xf32>
    %780 = arith.addf %777, %779 : vector<2x32xf32>
    %781 = vector.extract_strided_slice %773 {offsets = [0, 96], sizes = [2, 32], strides = [1, 1]} : vector<2x128xf32> to vector<2x32xf32>
    %782 = math.tanh %780 : vector<2x32xf32>
    %783 = arith.mulf %781, %782 : vector<2x32xf32>
    %784 = arith.negf %768 : vector<2x128xf32>
    %785 = math.exp %784 : vector<2x128xf32>
    %cst_140 = arith.constant 1.000000e+00 : f32
    %786 = vector.broadcast %cst_140 : f32 to vector<2x128xf32>
    %787 = arith.addf %786, %785 : vector<2x128xf32>
    %788 = arith.divf %786, %787 : vector<2x128xf32>
    %789 = vector.extract_strided_slice %768 {offsets = [0, 64], sizes = [2, 32], strides = [1, 1]} : vector<2x128xf32> to vector<2x32xf32>
    %790 = math.tanh %789 : vector<2x32xf32>
    %791 = vector.extract_strided_slice %788 {offsets = [0, 32], sizes = [2, 32], strides = [1, 1]} : vector<2x128xf32> to vector<2x32xf32>
    %792 = arith.mulf %791, %756 : vector<2x32xf32>
    %793 = vector.extract_strided_slice %788 {offsets = [0, 0], sizes = [2, 32], strides = [1, 1]} : vector<2x128xf32> to vector<2x32xf32>
    %794 = arith.mulf %793, %790 : vector<2x32xf32>
    %795 = arith.addf %792, %794 : vector<2x32xf32>
    %796 = vector.extract_strided_slice %788 {offsets = [0, 96], sizes = [2, 32], strides = [1, 1]} : vector<2x128xf32> to vector<2x32xf32>
    %797 = math.tanh %795 : vector<2x32xf32>
    %798 = arith.mulf %796, %797 : vector<2x32xf32>
    %799 = tpu.concatenate %783, %798 in 1 : vector<2x32xf32>, vector<2x32xf32> -> vector<2x64xf32>
    %800 = arith.truncf %799 : vector<2x64xf32> to vector<2x64xbf16>
    %cst_141 = arith.constant dense<0.000000e+00> : vector<2x256xf32>
    %801 = tpu.matmul %800, %680, %cst_141 {dimension_numbers = #tpu.dot_dimension_numbers<[1], [0], [0], [1], [0, 0, 1, 1], [], []>} : vector<2x64xbf16>, vector<64x256xbf16>, vector<2x256xf32> -> vector<2x256xf32>
    %802 = vector.extract_strided_slice %679 {offsets = [6, 0], sizes = [2, 128], strides = [1, 1]} : vector<16x256xf32> to vector<2x128xf32>
    %803 = vector.extract_strided_slice %801 {offsets = [0, 0], sizes = [2, 128], strides = [1, 1]} : vector<2x256xf32> to vector<2x128xf32>
    %804 = arith.addf %802, %803 : vector<2x128xf32>
    %805 = vector.extract_strided_slice %679 {offsets = [8, 128], sizes = [2, 128], strides = [1, 1]} : vector<16x256xf32> to vector<2x128xf32>
    %806 = vector.extract_strided_slice %801 {offsets = [0, 128], sizes = [2, 128], strides = [1, 1]} : vector<2x256xf32> to vector<2x128xf32>
    %807 = arith.addf %805, %806 : vector<2x128xf32>
    %808 = arith.negf %804 : vector<2x128xf32>
    %809 = math.exp %808 : vector<2x128xf32>
    %cst_142 = arith.constant 1.000000e+00 : f32
    %810 = vector.broadcast %cst_142 : f32 to vector<2x128xf32>
    %811 = arith.addf %810, %809 : vector<2x128xf32>
    %812 = arith.divf %810, %811 : vector<2x128xf32>
    %813 = vector.extract_strided_slice %804 {offsets = [0, 64], sizes = [2, 32], strides = [1, 1]} : vector<2x128xf32> to vector<2x32xf32>
    %814 = math.tanh %813 : vector<2x32xf32>
    %815 = vector.extract_strided_slice %812 {offsets = [0, 32], sizes = [2, 32], strides = [1, 1]} : vector<2x128xf32> to vector<2x32xf32>
    %816 = arith.mulf %815, %780 : vector<2x32xf32>
    %817 = vector.extract_strided_slice %812 {offsets = [0, 0], sizes = [2, 32], strides = [1, 1]} : vector<2x128xf32> to vector<2x32xf32>
    %818 = arith.mulf %817, %814 : vector<2x32xf32>
    %819 = arith.addf %816, %818 : vector<2x32xf32>
    %820 = vector.extract_strided_slice %812 {offsets = [0, 96], sizes = [2, 32], strides = [1, 1]} : vector<2x128xf32> to vector<2x32xf32>
    %821 = math.tanh %819 : vector<2x32xf32>
    %822 = arith.mulf %820, %821 : vector<2x32xf32>
    %823 = arith.negf %807 : vector<2x128xf32>
    %824 = math.exp %823 : vector<2x128xf32>
    %cst_143 = arith.constant 1.000000e+00 : f32
    %825 = vector.broadcast %cst_143 : f32 to vector<2x128xf32>
    %826 = arith.addf %825, %824 : vector<2x128xf32>
    %827 = arith.divf %825, %826 : vector<2x128xf32>
    %828 = vector.extract_strided_slice %807 {offsets = [0, 64], sizes = [2, 32], strides = [1, 1]} : vector<2x128xf32> to vector<2x32xf32>
    %829 = math.tanh %828 : vector<2x32xf32>
    %830 = vector.extract_strided_slice %827 {offsets = [0, 32], sizes = [2, 32], strides = [1, 1]} : vector<2x128xf32> to vector<2x32xf32>
    %831 = arith.mulf %830, %795 : vector<2x32xf32>
    %832 = vector.extract_strided_slice %827 {offsets = [0, 0], sizes = [2, 32], strides = [1, 1]} : vector<2x128xf32> to vector<2x32xf32>
    %833 = arith.mulf %832, %829 : vector<2x32xf32>
    %834 = arith.addf %831, %833 : vector<2x32xf32>
    %835 = vector.extract_strided_slice %827 {offsets = [0, 96], sizes = [2, 32], strides = [1, 1]} : vector<2x128xf32> to vector<2x32xf32>
    %836 = math.tanh %834 : vector<2x32xf32>
    %837 = arith.mulf %835, %836 : vector<2x32xf32>
    %838 = tpu.concatenate %822, %837 in 1 : vector<2x32xf32>, vector<2x32xf32> -> vector<2x64xf32>
    %839 = arith.truncf %838 : vector<2x64xf32> to vector<2x64xbf16>
    %cst_144 = arith.constant dense<0.000000e+00> : vector<2x256xf32>
    %840 = tpu.matmul %839, %680, %cst_144 {dimension_numbers = #tpu.dot_dimension_numbers<[1], [0], [0], [1], [0, 0, 1, 1], [], []>} : vector<2x64xbf16>, vector<64x256xbf16>, vector<2x256xf32> -> vector<2x256xf32>
    %841 = vector.extract_strided_slice %679 {offsets = [8, 0], sizes = [2, 128], strides = [1, 1]} : vector<16x256xf32> to vector<2x128xf32>
    %842 = vector.extract_strided_slice %840 {offsets = [0, 0], sizes = [2, 128], strides = [1, 1]} : vector<2x256xf32> to vector<2x128xf32>
    %843 = arith.addf %841, %842 : vector<2x128xf32>
    %844 = vector.extract_strided_slice %679 {offsets = [6, 128], sizes = [2, 128], strides = [1, 1]} : vector<16x256xf32> to vector<2x128xf32>
    %845 = vector.extract_strided_slice %840 {offsets = [0, 128], sizes = [2, 128], strides = [1, 1]} : vector<2x256xf32> to vector<2x128xf32>
    %846 = arith.addf %844, %845 : vector<2x128xf32>
    %847 = arith.negf %843 : vector<2x128xf32>
    %848 = math.exp %847 : vector<2x128xf32>
    %cst_145 = arith.constant 1.000000e+00 : f32
    %849 = vector.broadcast %cst_145 : f32 to vector<2x128xf32>
    %850 = arith.addf %849, %848 : vector<2x128xf32>
    %851 = arith.divf %849, %850 : vector<2x128xf32>
    %852 = vector.extract_strided_slice %843 {offsets = [0, 64], sizes = [2, 32], strides = [1, 1]} : vector<2x128xf32> to vector<2x32xf32>
    %853 = math.tanh %852 : vector<2x32xf32>
    %854 = vector.extract_strided_slice %851 {offsets = [0, 32], sizes = [2, 32], strides = [1, 1]} : vector<2x128xf32> to vector<2x32xf32>
    %855 = arith.mulf %854, %819 : vector<2x32xf32>
    %856 = vector.extract_strided_slice %851 {offsets = [0, 0], sizes = [2, 32], strides = [1, 1]} : vector<2x128xf32> to vector<2x32xf32>
    %857 = arith.mulf %856, %853 : vector<2x32xf32>
    %858 = arith.addf %855, %857 : vector<2x32xf32>
    %859 = vector.extract_strided_slice %851 {offsets = [0, 96], sizes = [2, 32], strides = [1, 1]} : vector<2x128xf32> to vector<2x32xf32>
    %860 = math.tanh %858 : vector<2x32xf32>
    %861 = arith.mulf %859, %860 : vector<2x32xf32>
    %862 = arith.negf %846 : vector<2x128xf32>
    %863 = math.exp %862 : vector<2x128xf32>
    %cst_146 = arith.constant 1.000000e+00 : f32
    %864 = vector.broadcast %cst_146 : f32 to vector<2x128xf32>
    %865 = arith.addf %864, %863 : vector<2x128xf32>
    %866 = arith.divf %864, %865 : vector<2x128xf32>
    %867 = vector.extract_strided_slice %846 {offsets = [0, 64], sizes = [2, 32], strides = [1, 1]} : vector<2x128xf32> to vector<2x32xf32>
    %868 = math.tanh %867 : vector<2x32xf32>
    %869 = vector.extract_strided_slice %866 {offsets = [0, 32], sizes = [2, 32], strides = [1, 1]} : vector<2x128xf32> to vector<2x32xf32>
    %870 = arith.mulf %869, %834 : vector<2x32xf32>
    %871 = vector.extract_strided_slice %866 {offsets = [0, 0], sizes = [2, 32], strides = [1, 1]} : vector<2x128xf32> to vector<2x32xf32>
    %872 = arith.mulf %871, %868 : vector<2x32xf32>
    %873 = arith.addf %870, %872 : vector<2x32xf32>
    %874 = vector.extract_strided_slice %866 {offsets = [0, 96], sizes = [2, 32], strides = [1, 1]} : vector<2x128xf32> to vector<2x32xf32>
    %875 = math.tanh %873 : vector<2x32xf32>
    %876 = arith.mulf %874, %875 : vector<2x32xf32>
    %877 = tpu.concatenate %861, %876 in 1 : vector<2x32xf32>, vector<2x32xf32> -> vector<2x64xf32>
    %878 = arith.truncf %877 : vector<2x64xf32> to vector<2x64xbf16>
    %cst_147 = arith.constant dense<0.000000e+00> : vector<2x256xf32>
    %879 = tpu.matmul %878, %680, %cst_147 {dimension_numbers = #tpu.dot_dimension_numbers<[1], [0], [0], [1], [0, 0, 1, 1], [], []>} : vector<2x64xbf16>, vector<64x256xbf16>, vector<2x256xf32> -> vector<2x256xf32>
    %880 = vector.extract_strided_slice %679 {offsets = [10, 0], sizes = [2, 128], strides = [1, 1]} : vector<16x256xf32> to vector<2x128xf32>
    %881 = vector.extract_strided_slice %879 {offsets = [0, 0], sizes = [2, 128], strides = [1, 1]} : vector<2x256xf32> to vector<2x128xf32>
    %882 = arith.addf %880, %881 : vector<2x128xf32>
    %883 = vector.extract_strided_slice %679 {offsets = [4, 128], sizes = [2, 128], strides = [1, 1]} : vector<16x256xf32> to vector<2x128xf32>
    %884 = vector.extract_strided_slice %879 {offsets = [0, 128], sizes = [2, 128], strides = [1, 1]} : vector<2x256xf32> to vector<2x128xf32>
    %885 = arith.addf %883, %884 : vector<2x128xf32>
    %886 = arith.negf %882 : vector<2x128xf32>
    %887 = math.exp %886 : vector<2x128xf32>
    %cst_148 = arith.constant 1.000000e+00 : f32
    %888 = vector.broadcast %cst_148 : f32 to vector<2x128xf32>
    %889 = arith.addf %888, %887 : vector<2x128xf32>
    %890 = arith.divf %888, %889 : vector<2x128xf32>
    %891 = vector.extract_strided_slice %882 {offsets = [0, 64], sizes = [2, 32], strides = [1, 1]} : vector<2x128xf32> to vector<2x32xf32>
    %892 = math.tanh %891 : vector<2x32xf32>
    %893 = vector.extract_strided_slice %890 {offsets = [0, 32], sizes = [2, 32], strides = [1, 1]} : vector<2x128xf32> to vector<2x32xf32>
    %894 = arith.mulf %893, %858 : vector<2x32xf32>
    %895 = vector.extract_strided_slice %890 {offsets = [0, 0], sizes = [2, 32], strides = [1, 1]} : vector<2x128xf32> to vector<2x32xf32>
    %896 = arith.mulf %895, %892 : vector<2x32xf32>
    %897 = arith.addf %894, %896 : vector<2x32xf32>
    %898 = vector.extract_strided_slice %890 {offsets = [0, 96], sizes = [2, 32], strides = [1, 1]} : vector<2x128xf32> to vector<2x32xf32>
    %899 = math.tanh %897 : vector<2x32xf32>
    %900 = arith.mulf %898, %899 : vector<2x32xf32>
    %901 = arith.negf %885 : vector<2x128xf32>
    %902 = math.exp %901 : vector<2x128xf32>
    %cst_149 = arith.constant 1.000000e+00 : f32
    %903 = vector.broadcast %cst_149 : f32 to vector<2x128xf32>
    %904 = arith.addf %903, %902 : vector<2x128xf32>
    %905 = arith.divf %903, %904 : vector<2x128xf32>
    %906 = vector.extract_strided_slice %885 {offsets = [0, 64], sizes = [2, 32], strides = [1, 1]} : vector<2x128xf32> to vector<2x32xf32>
    %907 = math.tanh %906 : vector<2x32xf32>
    %908 = vector.extract_strided_slice %905 {offsets = [0, 32], sizes = [2, 32], strides = [1, 1]} : vector<2x128xf32> to vector<2x32xf32>
    %909 = arith.mulf %908, %873 : vector<2x32xf32>
    %910 = vector.extract_strided_slice %905 {offsets = [0, 0], sizes = [2, 32], strides = [1, 1]} : vector<2x128xf32> to vector<2x32xf32>
    %911 = arith.mulf %910, %907 : vector<2x32xf32>
    %912 = arith.addf %909, %911 : vector<2x32xf32>
    %913 = vector.extract_strided_slice %905 {offsets = [0, 96], sizes = [2, 32], strides = [1, 1]} : vector<2x128xf32> to vector<2x32xf32>
    %914 = math.tanh %912 : vector<2x32xf32>
    %915 = arith.mulf %913, %914 : vector<2x32xf32>
    %916 = tpu.concatenate %900, %915 in 1 : vector<2x32xf32>, vector<2x32xf32> -> vector<2x64xf32>
    %917 = arith.truncf %916 : vector<2x64xf32> to vector<2x64xbf16>
    %cst_150 = arith.constant dense<0.000000e+00> : vector<2x256xf32>
    %918 = tpu.matmul %917, %680, %cst_150 {dimension_numbers = #tpu.dot_dimension_numbers<[1], [0], [0], [1], [0, 0, 1, 1], [], []>} : vector<2x64xbf16>, vector<64x256xbf16>, vector<2x256xf32> -> vector<2x256xf32>
    %919 = vector.extract_strided_slice %679 {offsets = [12, 0], sizes = [2, 128], strides = [1, 1]} : vector<16x256xf32> to vector<2x128xf32>
    %920 = vector.extract_strided_slice %918 {offsets = [0, 0], sizes = [2, 128], strides = [1, 1]} : vector<2x256xf32> to vector<2x128xf32>
    %921 = arith.addf %919, %920 : vector<2x128xf32>
    %922 = vector.extract_strided_slice %679 {offsets = [2, 128], sizes = [2, 128], strides = [1, 1]} : vector<16x256xf32> to vector<2x128xf32>
    %923 = vector.extract_strided_slice %918 {offsets = [0, 128], sizes = [2, 128], strides = [1, 1]} : vector<2x256xf32> to vector<2x128xf32>
    %924 = arith.addf %922, %923 : vector<2x128xf32>
    %925 = arith.negf %921 : vector<2x128xf32>
    %926 = math.exp %925 : vector<2x128xf32>
    %cst_151 = arith.constant 1.000000e+00 : f32
    %927 = vector.broadcast %cst_151 : f32 to vector<2x128xf32>
    %928 = arith.addf %927, %926 : vector<2x128xf32>
    %929 = arith.divf %927, %928 : vector<2x128xf32>
    %930 = vector.extract_strided_slice %921 {offsets = [0, 64], sizes = [2, 32], strides = [1, 1]} : vector<2x128xf32> to vector<2x32xf32>
    %931 = math.tanh %930 : vector<2x32xf32>
    %932 = vector.extract_strided_slice %929 {offsets = [0, 32], sizes = [2, 32], strides = [1, 1]} : vector<2x128xf32> to vector<2x32xf32>
    %933 = arith.mulf %932, %897 : vector<2x32xf32>
    %934 = vector.extract_strided_slice %929 {offsets = [0, 0], sizes = [2, 32], strides = [1, 1]} : vector<2x128xf32> to vector<2x32xf32>
    %935 = arith.mulf %934, %931 : vector<2x32xf32>
    %936 = arith.addf %933, %935 : vector<2x32xf32>
    %937 = vector.extract_strided_slice %929 {offsets = [0, 96], sizes = [2, 32], strides = [1, 1]} : vector<2x128xf32> to vector<2x32xf32>
    %938 = math.tanh %936 : vector<2x32xf32>
    %939 = arith.mulf %937, %938 : vector<2x32xf32>
    %940 = arith.negf %924 : vector<2x128xf32>
    %941 = math.exp %940 : vector<2x128xf32>
    %cst_152 = arith.constant 1.000000e+00 : f32
    %942 = vector.broadcast %cst_152 : f32 to vector<2x128xf32>
    %943 = arith.addf %942, %941 : vector<2x128xf32>
    %944 = arith.divf %942, %943 : vector<2x128xf32>
    %945 = vector.extract_strided_slice %924 {offsets = [0, 64], sizes = [2, 32], strides = [1, 1]} : vector<2x128xf32> to vector<2x32xf32>
    %946 = math.tanh %945 : vector<2x32xf32>
    %947 = vector.extract_strided_slice %944 {offsets = [0, 32], sizes = [2, 32], strides = [1, 1]} : vector<2x128xf32> to vector<2x32xf32>
    %948 = arith.mulf %947, %912 : vector<2x32xf32>
    %949 = vector.extract_strided_slice %944 {offsets = [0, 0], sizes = [2, 32], strides = [1, 1]} : vector<2x128xf32> to vector<2x32xf32>
    %950 = arith.mulf %949, %946 : vector<2x32xf32>
    %951 = arith.addf %948, %950 : vector<2x32xf32>
    %952 = vector.extract_strided_slice %944 {offsets = [0, 96], sizes = [2, 32], strides = [1, 1]} : vector<2x128xf32> to vector<2x32xf32>
    %953 = math.tanh %951 : vector<2x32xf32>
    %954 = arith.mulf %952, %953 : vector<2x32xf32>
    %955 = tpu.concatenate %939, %954 in 1 : vector<2x32xf32>, vector<2x32xf32> -> vector<2x64xf32>
    %956 = arith.truncf %955 : vector<2x64xf32> to vector<2x64xbf16>
    %cst_153 = arith.constant dense<0.000000e+00> : vector<2x256xf32>
    %957 = tpu.matmul %956, %680, %cst_153 {dimension_numbers = #tpu.dot_dimension_numbers<[1], [0], [0], [1], [0, 0, 1, 1], [], []>} : vector<2x64xbf16>, vector<64x256xbf16>, vector<2x256xf32> -> vector<2x256xf32>
    %958 = vector.extract_strided_slice %679 {offsets = [14, 0], sizes = [2, 128], strides = [1, 1]} : vector<16x256xf32> to vector<2x128xf32>
    %959 = vector.extract_strided_slice %957 {offsets = [0, 0], sizes = [2, 128], strides = [1, 1]} : vector<2x256xf32> to vector<2x128xf32>
    %960 = arith.addf %958, %959 : vector<2x128xf32>
    %961 = vector.extract_strided_slice %679 {offsets = [0, 128], sizes = [2, 128], strides = [1, 1]} : vector<16x256xf32> to vector<2x128xf32>
    %962 = vector.extract_strided_slice %957 {offsets = [0, 128], sizes = [2, 128], strides = [1, 1]} : vector<2x256xf32> to vector<2x128xf32>
    %963 = arith.addf %961, %962 : vector<2x128xf32>
    %964 = arith.negf %960 : vector<2x128xf32>
    %965 = math.exp %964 : vector<2x128xf32>
    %cst_154 = arith.constant 1.000000e+00 : f32
    %966 = vector.broadcast %cst_154 : f32 to vector<2x128xf32>
    %967 = arith.addf %966, %965 : vector<2x128xf32>
    %968 = arith.divf %966, %967 : vector<2x128xf32>
    %969 = vector.extract_strided_slice %960 {offsets = [0, 64], sizes = [2, 32], strides = [1, 1]} : vector<2x128xf32> to vector<2x32xf32>
    %970 = math.tanh %969 : vector<2x32xf32>
    %971 = vector.extract_strided_slice %968 {offsets = [0, 32], sizes = [2, 32], strides = [1, 1]} : vector<2x128xf32> to vector<2x32xf32>
    %972 = arith.mulf %971, %936 : vector<2x32xf32>
    %973 = vector.extract_strided_slice %968 {offsets = [0, 0], sizes = [2, 32], strides = [1, 1]} : vector<2x128xf32> to vector<2x32xf32>
    %974 = arith.mulf %973, %970 : vector<2x32xf32>
    %975 = arith.addf %972, %974 : vector<2x32xf32>
    %976 = vector.extract_strided_slice %968 {offsets = [0, 96], sizes = [2, 32], strides = [1, 1]} : vector<2x128xf32> to vector<2x32xf32>
    %977 = math.tanh %975 : vector<2x32xf32>
    %978 = arith.mulf %976, %977 : vector<2x32xf32>
    %979 = arith.negf %963 : vector<2x128xf32>
    %980 = math.exp %979 : vector<2x128xf32>
    %cst_155 = arith.constant 1.000000e+00 : f32
    %981 = vector.broadcast %cst_155 : f32 to vector<2x128xf32>
    %982 = arith.addf %981, %980 : vector<2x128xf32>
    %983 = arith.divf %981, %982 : vector<2x128xf32>
    %984 = vector.extract_strided_slice %963 {offsets = [0, 64], sizes = [2, 32], strides = [1, 1]} : vector<2x128xf32> to vector<2x32xf32>
    %985 = math.tanh %984 : vector<2x32xf32>
    %986 = vector.extract_strided_slice %983 {offsets = [0, 32], sizes = [2, 32], strides = [1, 1]} : vector<2x128xf32> to vector<2x32xf32>
    %987 = arith.mulf %986, %951 : vector<2x32xf32>
    %988 = vector.extract_strided_slice %983 {offsets = [0, 0], sizes = [2, 32], strides = [1, 1]} : vector<2x128xf32> to vector<2x32xf32>
    %989 = arith.mulf %988, %985 : vector<2x32xf32>
    %990 = arith.addf %987, %989 : vector<2x32xf32>
    %991 = vector.extract_strided_slice %983 {offsets = [0, 96], sizes = [2, 32], strides = [1, 1]} : vector<2x128xf32> to vector<2x32xf32>
    %992 = math.tanh %990 : vector<2x32xf32>
    %993 = arith.mulf %991, %992 : vector<2x32xf32>
    %c0_156 = arith.constant 0 : index
    %c0_157 = arith.constant 0 : index
    %994 = vector.load %arg1[%c0_156, %c0_157] : memref<2x64xf32, #tpu.memory_space<vmem>>, vector<2x64xf32>
    %995 = tpu.concatenate %978, %993, %994 in 1 : vector<2x32xf32>, vector<2x32xf32>, vector<2x64xf32> -> vector<2x128xf32>
    %996 = arith.truncf %995 : vector<2x128xf32> to vector<2x128xbf16>
    %c0_158 = arith.constant 0 : index
    %c0_159 = arith.constant 0 : index
    %c0_160 = arith.constant 0 : index
    %997 = vector.load %arg11[%c0_158, %c0_159, %c0_160] : memref<2x128x128xbf16, #tpu.memory_space<vmem>>, vector<1x128x128xbf16>
    %998 = vector.shape_cast %997 : vector<1x128x128xbf16> to vector<128x128xbf16>
    %cst_161 = arith.constant dense<0.000000e+00> : vector<2x128xf32>
    %999 = tpu.matmul %996, %998, %cst_161 {dimension_numbers = #tpu.dot_dimension_numbers<[1], [0], [0], [1], [0, 0, 1, 1], [], []>} : vector<2x128xbf16>, vector<128x128xbf16>, vector<2x128xf32> -> vector<2x128xf32>
    %c0_162 = arith.constant 0 : index
    %c0_163 = arith.constant 0 : index
    %1000 = vector.load %arg12[%c0_162, %c0_163] : memref<2x128xf32, #tpu.memory_space<vmem>>, vector<1x128xf32>
    %1001 = vector.shape_cast %1000 : vector<1x128xf32> to vector<128xf32>
    %1002 = vector.shape_cast %1001 : vector<128xf32> to vector<1x128xf32>
    %1003 = vector.broadcast %1002 : vector<1x128xf32> to vector<2x128xf32>
    %1004 = arith.addf %999, %1003 : vector<2x128xf32>
    %1005 = arith.truncf %1004 : vector<2x128xf32> to vector<2x128xbf16>
    %c0_164 = arith.constant 0 : index
    %c0_165 = arith.constant 0 : index
    %c0_166 = arith.constant 0 : index
    %1006 = vector.load %arg13[%c0_164, %c0_165, %c0_166] : memref<2x128x128xbf16, #tpu.memory_space<vmem>>, vector<1x128x128xbf16>
    %1007 = vector.shape_cast %1006 : vector<1x128x128xbf16> to vector<128x128xbf16>
    %cst_167 = arith.constant dense<0.000000e+00> : vector<2x128xf32>
    %1008 = tpu.matmul %1005, %1007, %cst_167 {dimension_numbers = #tpu.dot_dimension_numbers<[1], [0], [0], [1], [0, 0, 1, 1], [], []>} : vector<2x128xbf16>, vector<128x128xbf16>, vector<2x128xf32> -> vector<2x128xf32>
    %c0_168 = arith.constant 0 : index
    %c0_169 = arith.constant 0 : index
    %1009 = vector.load %arg14[%c0_168, %c0_169] : memref<2x128xf32, #tpu.memory_space<vmem>>, vector<1x128xf32>
    %1010 = vector.shape_cast %1009 : vector<1x128xf32> to vector<128xf32>
    %1011 = vector.shape_cast %1010 : vector<128xf32> to vector<1x128xf32>
    %1012 = vector.broadcast %1011 : vector<1x128xf32> to vector<2x128xf32>
    %1013 = arith.addf %1008, %1012 : vector<2x128xf32>
    %1014 = arith.addf %995, %1013 : vector<2x128xf32>
    %c0_170 = arith.constant 0 : index
    %c0_171 = arith.constant 0 : index
    %1015 = vector.load %arg19[%c0_170, %c0_171] : memref<2x128xf32, #tpu.memory_space<vmem>>, vector<1x128xf32>
    %1016 = vector.shape_cast %1015 : vector<1x128xf32> to vector<128xf32>
    %c0_172 = arith.constant 0 : index
    %c0_173 = arith.constant 0 : index
    %1017 = vector.load %arg20[%c0_172, %c0_173] : memref<2x128xf32, #tpu.memory_space<vmem>>, vector<1x128xf32>
    %1018 = vector.shape_cast %1017 : vector<1x128xf32> to vector<128xf32>
    %cst_174 = arith.constant dense<0.000000e+00> : vector<2xf32>
    %1019 = vector.multi_reduction <add>, %1014, %cst_174 [1] : vector<2x128xf32> to vector<2xf32>
    %1020 = vector.shape_cast %1019 : vector<2xf32> to vector<2x1xf32>
    %cst_175 = arith.constant 0.013888889 : f32
    %1021 = vector.broadcast %cst_175 : f32 to vector<2x1xf32>
    %1022 = arith.mulf %1020, %1021 : vector<2x1xf32>
    %1023 = arith.mulf %1014, %1014 : vector<2x128xf32>
    %cst_176 = arith.constant dense<0.000000e+00> : vector<2xf32>
    %1024 = vector.multi_reduction <add>, %1023, %cst_176 [1] : vector<2x128xf32> to vector<2xf32>
    %1025 = vector.shape_cast %1024 : vector<2xf32> to vector<2x1xf32>
    %cst_177 = arith.constant 0.013888889 : f32
    %1026 = vector.broadcast %cst_177 : f32 to vector<2x1xf32>
    %1027 = arith.mulf %1025, %1026 : vector<2x1xf32>
    %1028 = arith.mulf %1022, %1022 : vector<2x1xf32>
    %1029 = arith.subf %1027, %1028 : vector<2x1xf32>
    %1030 = vector.broadcast %1022 : vector<2x1xf32> to vector<2x128xf32>
    %1031 = arith.subf %1014, %1030 : vector<2x128xf32>
    %cst_178 = arith.constant 9.99999974E-6 : f32
    %1032 = vector.broadcast %cst_178 : f32 to vector<2x1xf32>
    %1033 = arith.addf %1029, %1032 : vector<2x1xf32>
    %1034 = math.rsqrt %1033 : vector<2x1xf32>
    %1035 = vector.broadcast %1034 : vector<2x1xf32> to vector<2x128xf32>
    %1036 = arith.mulf %1031, %1035 : vector<2x128xf32>
    %1037 = vector.shape_cast %1016 : vector<128xf32> to vector<1x128xf32>
    %1038 = vector.broadcast %1037 : vector<1x128xf32> to vector<2x128xf32>
    %1039 = arith.mulf %1036, %1038 : vector<2x128xf32>
    %1040 = vector.shape_cast %1018 : vector<128xf32> to vector<1x128xf32>
    %1041 = vector.broadcast %1040 : vector<1x128xf32> to vector<2x128xf32>
    %1042 = arith.addf %1039, %1041 : vector<2x128xf32>
    %1043 = arith.truncf %1042 : vector<2x128xf32> to vector<2x128xbf16>
    %c0_179 = arith.constant 0 : index
    %c0_180 = arith.constant 0 : index
    %c0_181 = arith.constant 0 : index
    %1044 = vector.load %arg15[%c0_179, %c0_180, %c0_181] : memref<2x128x2048xbf16, #tpu.memory_space<vmem>>, vector<1x128x2048xbf16>
    %1045 = vector.shape_cast %1044 : vector<1x128x2048xbf16> to vector<128x2048xbf16>
    %cst_182 = arith.constant dense<0.000000e+00> : vector<2x2048xf32>
    %1046 = tpu.matmul %1043, %1045, %cst_182 {dimension_numbers = #tpu.dot_dimension_numbers<[1], [0], [0], [1], [0, 0, 1, 1], [], []>} : vector<2x128xbf16>, vector<128x2048xbf16>, vector<2x2048xf32> -> vector<2x2048xf32>
    %c0_183 = arith.constant 0 : index
    %c0_184 = arith.constant 0 : index
    %1047 = vector.load %arg16[%c0_183, %c0_184] : memref<2x2048xf32, #tpu.memory_space<vmem>>, vector<1x2048xf32>
    %1048 = vector.shape_cast %1047 : vector<1x2048xf32> to vector<2048xf32>
    %1049 = vector.shape_cast %1048 : vector<2048xf32> to vector<1x2048xf32>
    %1050 = vector.broadcast %1049 : vector<1x2048xf32> to vector<2x2048xf32>
    %1051 = arith.addf %1046, %1050 : vector<2x2048xf32>
    %cst_185 = arith.constant 0.000000e+00 : f32
    %1052 = vector.broadcast %cst_185 : f32 to vector<2x2048xf32>
    %1053 = arith.maximumf %1051, %1052 : vector<2x2048xf32>
    %1054 = arith.truncf %1053 : vector<2x2048xf32> to vector<2x2048xbf16>
    %c0_186 = arith.constant 0 : index
    %c0_187 = arith.constant 0 : index
    %c0_188 = arith.constant 0 : index
    %1055 = vector.load %arg17[%c0_186, %c0_187, %c0_188] : memref<2x2048x128xbf16, #tpu.memory_space<vmem>>, vector<1x2048x128xbf16>
    %1056 = vector.shape_cast %1055 : vector<1x2048x128xbf16> to vector<2048x128xbf16>
    %cst_189 = arith.constant dense<0.000000e+00> : vector<2x128xf32>
    %1057 = tpu.matmul %1054, %1056, %cst_189 {dimension_numbers = #tpu.dot_dimension_numbers<[1], [0], [0], [1], [0, 0, 1, 1], [], []>} : vector<2x2048xbf16>, vector<2048x128xbf16>, vector<2x128xf32> -> vector<2x128xf32>
    %c0_190 = arith.constant 0 : index
    %c0_191 = arith.constant 0 : index
    %1058 = vector.load %arg18[%c0_190, %c0_191] : memref<2x128xf32, #tpu.memory_space<vmem>>, vector<1x128xf32>
    %1059 = vector.shape_cast %1058 : vector<1x128xf32> to vector<128xf32>
    %1060 = vector.shape_cast %1059 : vector<128xf32> to vector<1x128xf32>
    %1061 = vector.broadcast %1060 : vector<1x128xf32> to vector<2x128xf32>
    %1062 = arith.addf %1057, %1061 : vector<2x128xf32>
    %1063 = arith.addf %1042, %1062 : vector<2x128xf32>
    %c0_192 = arith.constant 0 : index
    %c0_193 = arith.constant 0 : index
    %1064 = vector.load %arg21[%c0_192, %c0_193] : memref<2x128xf32, #tpu.memory_space<vmem>>, vector<1x128xf32>
    %1065 = vector.shape_cast %1064 : vector<1x128xf32> to vector<128xf32>
    %c0_194 = arith.constant 0 : index
    %c0_195 = arith.constant 0 : index
    %1066 = vector.load %arg22[%c0_194, %c0_195] : memref<2x128xf32, #tpu.memory_space<vmem>>, vector<1x128xf32>
    %1067 = vector.shape_cast %1066 : vector<1x128xf32> to vector<128xf32>
    %cst_196 = arith.constant dense<0.000000e+00> : vector<2xf32>
    %1068 = vector.multi_reduction <add>, %1063, %cst_196 [1] : vector<2x128xf32> to vector<2xf32>
    %1069 = vector.shape_cast %1068 : vector<2xf32> to vector<2x1xf32>
    %cst_197 = arith.constant 0.013888889 : f32
    %1070 = vector.broadcast %cst_197 : f32 to vector<2x1xf32>
    %1071 = arith.mulf %1069, %1070 : vector<2x1xf32>
    %1072 = arith.mulf %1063, %1063 : vector<2x128xf32>
    %cst_198 = arith.constant dense<0.000000e+00> : vector<2xf32>
    %1073 = vector.multi_reduction <add>, %1072, %cst_198 [1] : vector<2x128xf32> to vector<2xf32>
    %1074 = vector.shape_cast %1073 : vector<2xf32> to vector<2x1xf32>
    %cst_199 = arith.constant 0.013888889 : f32
    %1075 = vector.broadcast %cst_199 : f32 to vector<2x1xf32>
    %1076 = arith.mulf %1074, %1075 : vector<2x1xf32>
    %1077 = arith.mulf %1071, %1071 : vector<2x1xf32>
    %1078 = arith.subf %1076, %1077 : vector<2x1xf32>
    %1079 = vector.broadcast %1071 : vector<2x1xf32> to vector<2x128xf32>
    %1080 = arith.subf %1063, %1079 : vector<2x128xf32>
    %cst_200 = arith.constant 9.99999974E-6 : f32
    %1081 = vector.broadcast %cst_200 : f32 to vector<2x1xf32>
    %1082 = arith.addf %1078, %1081 : vector<2x1xf32>
    %1083 = math.rsqrt %1082 : vector<2x1xf32>
    %1084 = vector.broadcast %1083 : vector<2x1xf32> to vector<2x128xf32>
    %1085 = arith.mulf %1080, %1084 : vector<2x128xf32>
    %1086 = vector.shape_cast %1065 : vector<128xf32> to vector<1x128xf32>
    %1087 = vector.broadcast %1086 : vector<1x128xf32> to vector<2x128xf32>
    %1088 = arith.mulf %1085, %1087 : vector<2x128xf32>
    %1089 = vector.shape_cast %1067 : vector<128xf32> to vector<1x128xf32>
    %1090 = vector.broadcast %1089 : vector<1x128xf32> to vector<2x128xf32>
    %1091 = arith.addf %1088, %1090 : vector<2x128xf32>
    %1092 = arith.truncf %1091 : vector<2x128xf32> to vector<2x128xbf16>
    %c1 = arith.constant 1 : index
    %c0_201 = arith.constant 0 : index
    %c0_202 = arith.constant 0 : index
    %1093 = vector.load %arg11[%c1, %c0_201, %c0_202] : memref<2x128x128xbf16, #tpu.memory_space<vmem>>, vector<1x128x128xbf16>
    %1094 = vector.shape_cast %1093 : vector<1x128x128xbf16> to vector<128x128xbf16>
    %cst_203 = arith.constant dense<0.000000e+00> : vector<2x128xf32>
    %1095 = tpu.matmul %1092, %1094, %cst_203 {dimension_numbers = #tpu.dot_dimension_numbers<[1], [0], [0], [1], [0, 0, 1, 1], [], []>} : vector<2x128xbf16>, vector<128x128xbf16>, vector<2x128xf32> -> vector<2x128xf32>
    %c1_204 = arith.constant 1 : index
    %c0_205 = arith.constant 0 : index
    %1096 = vector.load %arg12[%c1_204, %c0_205] : memref<2x128xf32, #tpu.memory_space<vmem>>, vector<1x128xf32>
    %1097 = vector.shape_cast %1096 : vector<1x128xf32> to vector<128xf32>
    %1098 = vector.shape_cast %1097 : vector<128xf32> to vector<1x128xf32>
    %1099 = vector.broadcast %1098 : vector<1x128xf32> to vector<2x128xf32>
    %1100 = arith.addf %1095, %1099 : vector<2x128xf32>
    %1101 = arith.truncf %1100 : vector<2x128xf32> to vector<2x128xbf16>
    %c1_206 = arith.constant 1 : index
    %c0_207 = arith.constant 0 : index
    %c0_208 = arith.constant 0 : index
    %1102 = vector.load %arg13[%c1_206, %c0_207, %c0_208] : memref<2x128x128xbf16, #tpu.memory_space<vmem>>, vector<1x128x128xbf16>
    %1103 = vector.shape_cast %1102 : vector<1x128x128xbf16> to vector<128x128xbf16>
    %cst_209 = arith.constant dense<0.000000e+00> : vector<2x128xf32>
    %1104 = tpu.matmul %1101, %1103, %cst_209 {dimension_numbers = #tpu.dot_dimension_numbers<[1], [0], [0], [1], [0, 0, 1, 1], [], []>} : vector<2x128xbf16>, vector<128x128xbf16>, vector<2x128xf32> -> vector<2x128xf32>
    %c1_210 = arith.constant 1 : index
    %c0_211 = arith.constant 0 : index
    %1105 = vector.load %arg14[%c1_210, %c0_211] : memref<2x128xf32, #tpu.memory_space<vmem>>, vector<1x128xf32>
    %1106 = vector.shape_cast %1105 : vector<1x128xf32> to vector<128xf32>
    %1107 = vector.shape_cast %1106 : vector<128xf32> to vector<1x128xf32>
    %1108 = vector.broadcast %1107 : vector<1x128xf32> to vector<2x128xf32>
    %1109 = arith.addf %1104, %1108 : vector<2x128xf32>
    %1110 = arith.addf %1091, %1109 : vector<2x128xf32>
    %c1_212 = arith.constant 1 : index
    %c0_213 = arith.constant 0 : index
    %1111 = vector.load %arg19[%c1_212, %c0_213] : memref<2x128xf32, #tpu.memory_space<vmem>>, vector<1x128xf32>
    %1112 = vector.shape_cast %1111 : vector<1x128xf32> to vector<128xf32>
    %c1_214 = arith.constant 1 : index
    %c0_215 = arith.constant 0 : index
    %1113 = vector.load %arg20[%c1_214, %c0_215] : memref<2x128xf32, #tpu.memory_space<vmem>>, vector<1x128xf32>
    %1114 = vector.shape_cast %1113 : vector<1x128xf32> to vector<128xf32>
    %cst_216 = arith.constant dense<0.000000e+00> : vector<2xf32>
    %1115 = vector.multi_reduction <add>, %1110, %cst_216 [1] : vector<2x128xf32> to vector<2xf32>
    %1116 = vector.shape_cast %1115 : vector<2xf32> to vector<2x1xf32>
    %cst_217 = arith.constant 0.013888889 : f32
    %1117 = vector.broadcast %cst_217 : f32 to vector<2x1xf32>
    %1118 = arith.mulf %1116, %1117 : vector<2x1xf32>
    %1119 = arith.mulf %1110, %1110 : vector<2x128xf32>
    %cst_218 = arith.constant dense<0.000000e+00> : vector<2xf32>
    %1120 = vector.multi_reduction <add>, %1119, %cst_218 [1] : vector<2x128xf32> to vector<2xf32>
    %1121 = vector.shape_cast %1120 : vector<2xf32> to vector<2x1xf32>
    %cst_219 = arith.constant 0.013888889 : f32
    %1122 = vector.broadcast %cst_219 : f32 to vector<2x1xf32>
    %1123 = arith.mulf %1121, %1122 : vector<2x1xf32>
    %1124 = arith.mulf %1118, %1118 : vector<2x1xf32>
    %1125 = arith.subf %1123, %1124 : vector<2x1xf32>
    %1126 = vector.broadcast %1118 : vector<2x1xf32> to vector<2x128xf32>
    %1127 = arith.subf %1110, %1126 : vector<2x128xf32>
    %cst_220 = arith.constant 9.99999974E-6 : f32
    %1128 = vector.broadcast %cst_220 : f32 to vector<2x1xf32>
    %1129 = arith.addf %1125, %1128 : vector<2x1xf32>
    %1130 = math.rsqrt %1129 : vector<2x1xf32>
    %1131 = vector.broadcast %1130 : vector<2x1xf32> to vector<2x128xf32>
    %1132 = arith.mulf %1127, %1131 : vector<2x128xf32>
    %1133 = vector.shape_cast %1112 : vector<128xf32> to vector<1x128xf32>
    %1134 = vector.broadcast %1133 : vector<1x128xf32> to vector<2x128xf32>
    %1135 = arith.mulf %1132, %1134 : vector<2x128xf32>
    %1136 = vector.shape_cast %1114 : vector<128xf32> to vector<1x128xf32>
    %1137 = vector.broadcast %1136 : vector<1x128xf32> to vector<2x128xf32>
    %1138 = arith.addf %1135, %1137 : vector<2x128xf32>
    %1139 = arith.truncf %1138 : vector<2x128xf32> to vector<2x128xbf16>
    %c1_221 = arith.constant 1 : index
    %c0_222 = arith.constant 0 : index
    %c0_223 = arith.constant 0 : index
    %1140 = vector.load %arg15[%c1_221, %c0_222, %c0_223] : memref<2x128x2048xbf16, #tpu.memory_space<vmem>>, vector<1x128x2048xbf16>
    %1141 = vector.shape_cast %1140 : vector<1x128x2048xbf16> to vector<128x2048xbf16>
    %cst_224 = arith.constant dense<0.000000e+00> : vector<2x2048xf32>
    %1142 = tpu.matmul %1139, %1141, %cst_224 {dimension_numbers = #tpu.dot_dimension_numbers<[1], [0], [0], [1], [0, 0, 1, 1], [], []>} : vector<2x128xbf16>, vector<128x2048xbf16>, vector<2x2048xf32> -> vector<2x2048xf32>
    %c1_225 = arith.constant 1 : index
    %c0_226 = arith.constant 0 : index
    %1143 = vector.load %arg16[%c1_225, %c0_226] : memref<2x2048xf32, #tpu.memory_space<vmem>>, vector<1x2048xf32>
    %1144 = vector.shape_cast %1143 : vector<1x2048xf32> to vector<2048xf32>
    %1145 = vector.shape_cast %1144 : vector<2048xf32> to vector<1x2048xf32>
    %1146 = vector.broadcast %1145 : vector<1x2048xf32> to vector<2x2048xf32>
    %1147 = arith.addf %1142, %1146 : vector<2x2048xf32>
    %cst_227 = arith.constant 0.000000e+00 : f32
    %1148 = vector.broadcast %cst_227 : f32 to vector<2x2048xf32>
    %1149 = arith.maximumf %1147, %1148 : vector<2x2048xf32>
    %1150 = arith.truncf %1149 : vector<2x2048xf32> to vector<2x2048xbf16>
    %c1_228 = arith.constant 1 : index
    %c0_229 = arith.constant 0 : index
    %c0_230 = arith.constant 0 : index
    %1151 = vector.load %arg17[%c1_228, %c0_229, %c0_230] : memref<2x2048x128xbf16, #tpu.memory_space<vmem>>, vector<1x2048x128xbf16>
    %1152 = vector.shape_cast %1151 : vector<1x2048x128xbf16> to vector<2048x128xbf16>
    %cst_231 = arith.constant dense<0.000000e+00> : vector<2x128xf32>
    %1153 = tpu.matmul %1150, %1152, %cst_231 {dimension_numbers = #tpu.dot_dimension_numbers<[1], [0], [0], [1], [0, 0, 1, 1], [], []>} : vector<2x2048xbf16>, vector<2048x128xbf16>, vector<2x128xf32> -> vector<2x128xf32>
    %c1_232 = arith.constant 1 : index
    %c0_233 = arith.constant 0 : index
    %1154 = vector.load %arg18[%c1_232, %c0_233] : memref<2x128xf32, #tpu.memory_space<vmem>>, vector<1x128xf32>
    %1155 = vector.shape_cast %1154 : vector<1x128xf32> to vector<128xf32>
    %1156 = vector.shape_cast %1155 : vector<128xf32> to vector<1x128xf32>
    %1157 = vector.broadcast %1156 : vector<1x128xf32> to vector<2x128xf32>
    %1158 = arith.addf %1153, %1157 : vector<2x128xf32>
    %1159 = arith.addf %1138, %1158 : vector<2x128xf32>
    %c1_234 = arith.constant 1 : index
    %c0_235 = arith.constant 0 : index
    %1160 = vector.load %arg21[%c1_234, %c0_235] : memref<2x128xf32, #tpu.memory_space<vmem>>, vector<1x128xf32>
    %1161 = vector.shape_cast %1160 : vector<1x128xf32> to vector<128xf32>
    %c1_236 = arith.constant 1 : index
    %c0_237 = arith.constant 0 : index
    %1162 = vector.load %arg22[%c1_236, %c0_237] : memref<2x128xf32, #tpu.memory_space<vmem>>, vector<1x128xf32>
    %1163 = vector.shape_cast %1162 : vector<1x128xf32> to vector<128xf32>
    %cst_238 = arith.constant dense<0.000000e+00> : vector<2xf32>
    %1164 = vector.multi_reduction <add>, %1159, %cst_238 [1] : vector<2x128xf32> to vector<2xf32>
    %1165 = vector.shape_cast %1164 : vector<2xf32> to vector<2x1xf32>
    %cst_239 = arith.constant 0.013888889 : f32
    %1166 = vector.broadcast %cst_239 : f32 to vector<2x1xf32>
    %1167 = arith.mulf %1165, %1166 : vector<2x1xf32>
    %1168 = arith.mulf %1159, %1159 : vector<2x128xf32>
    %cst_240 = arith.constant dense<0.000000e+00> : vector<2xf32>
    %1169 = vector.multi_reduction <add>, %1168, %cst_240 [1] : vector<2x128xf32> to vector<2xf32>
    %1170 = vector.shape_cast %1169 : vector<2xf32> to vector<2x1xf32>
    %cst_241 = arith.constant 0.013888889 : f32
    %1171 = vector.broadcast %cst_241 : f32 to vector<2x1xf32>
    %1172 = arith.mulf %1170, %1171 : vector<2x1xf32>
    %1173 = arith.mulf %1167, %1167 : vector<2x1xf32>
    %1174 = arith.subf %1172, %1173 : vector<2x1xf32>
    %1175 = vector.broadcast %1167 : vector<2x1xf32> to vector<2x128xf32>
    %1176 = arith.subf %1159, %1175 : vector<2x128xf32>
    %cst_242 = arith.constant 9.99999974E-6 : f32
    %1177 = vector.broadcast %cst_242 : f32 to vector<2x1xf32>
    %1178 = arith.addf %1174, %1177 : vector<2x1xf32>
    %1179 = math.rsqrt %1178 : vector<2x1xf32>
    %1180 = vector.broadcast %1179 : vector<2x1xf32> to vector<2x128xf32>
    %1181 = arith.mulf %1176, %1180 : vector<2x128xf32>
    %1182 = vector.shape_cast %1161 : vector<128xf32> to vector<1x128xf32>
    %1183 = vector.broadcast %1182 : vector<1x128xf32> to vector<2x128xf32>
    %1184 = arith.mulf %1181, %1183 : vector<2x128xf32>
    %1185 = vector.shape_cast %1163 : vector<128xf32> to vector<1x128xf32>
    %1186 = vector.broadcast %1185 : vector<1x128xf32> to vector<2x128xf32>
    %1187 = arith.addf %1184, %1186 : vector<2x128xf32>
    %1188 = arith.truncf %1187 : vector<2x128xf32> to vector<2x128xbf16>
    %c0_243 = arith.constant 0 : index
    %c0_244 = arith.constant 0 : index
    %1189 = vector.load %arg23[%c0_243, %c0_244] : memref<128x64xbf16, #tpu.memory_space<vmem>>, vector<128x64xbf16>
    %cst_245 = arith.constant dense<0.000000e+00> : vector<2x64xf32>
    %1190 = tpu.matmul %1188, %1189, %cst_245 {dimension_numbers = #tpu.dot_dimension_numbers<[1], [0], [0], [1], [0, 0, 1, 1], [], []>} : vector<2x128xbf16>, vector<128x64xbf16>, vector<2x64xf32> -> vector<2x64xf32>
    %c0_246 = arith.constant 0 : index
    %c0_247 = arith.constant 0 : index
    %1191 = vector.load %arg24[%c0_246, %c0_247] : memref<1x64xf32, #tpu.memory_space<vmem>>, vector<1x64xf32>
    %1192 = vector.broadcast %1191 : vector<1x64xf32> to vector<2x64xf32>
    %1193 = arith.addf %1190, %1192 : vector<2x64xf32>
    %c0_248 = arith.constant 0 : index
    %c0_249 = arith.constant 0 : index
    %1194 = vector.load %arg25[%c0_248, %c0_249] : memref<2x64xf32, #tpu.memory_space<vmem>>, vector<2x64xf32>
    tpu.vector_store %arg25[%c0_248, %c0_249], %1193 {strides = array<i32>} : memref<2x64xf32, #tpu.memory_space<vmem>>, vector<2x64xf32>,
    return
  }
}

</mosaic_0001>

<bundles_post_ra>
// kernel: branchnet_forward.1
= control target key start
LH: loop header
LB: loop body
LE: loop exit
PB: predicated region body
PF: predicated region fallthrough
CT: control target
= control target key end

     0   :  { %s14673_s0 = inlined_call_operand.vmem [shape: bf16[16,16], index: 0, kind: input, shape index: {}]   ;;  %s14674_s1 = inlined_call_operand.vmem [shape: f32[2,64], index: 1, kind: input, shape index: {}]   ;;  %s14675_s2 = inlined_call_operand.vmem [shape: bf16[16,256], index: 2, kind: input, shape index: {}]   ;;  %s14676_s3 = inlined_call_operand.vmem [shape: bf16[64,256], index: 3, kind: input, shape index: {}]   ;;  %s14677_s4 = inlined_call_operand.vmem [shape: f32[1,256], index: 4, kind: input, shape index: {}]   ;;  %s14678_s5 = inlined_call_operand.vmem [shape: bf16[64,256], index: 5, kind: input, shape index: {}]   ;;  %s14679_s6 = inlined_call_operand.vmem [shape: bf16[64,256], index: 6, kind: input, shape index: {}]   ;;  %s14680_s7 = inlined_call_operand.vmem [shape: f32[1,256], index: 7, kind: input, shape index: {}]   ;;  %s14681_s8 = inlined_call_operand.vmem [shape: bf16[64,256], index: 8, kind: input, shape index: {}]   ;;  %s14682_s9 = inlined_call_operand.vmem [shape: bf16[64,256], index: 9, kind: input, shape index: {}]   ;;  %s14683_s10 = inlined_call_operand.vmem [shape: f32[1,256], index: 10, kind: input, shape index: {}]   ;;  %s14684_s11 = inlined_call_operand.vmem [shape: bf16[2,128,128], index: 11, kind: input, shape index: {}]   ;;  %s14685_s12 = inlined_call_operand.vmem [shape: f32[2,128], index: 12, kind: input, shape index: {}]   ;;  %s14686_s13 = inlined_call_operand.vmem [shape: bf16[2,128,128], index: 13, kind: input, shape index: {}]   ;;  %s14687_s14 = inlined_call_operand.vmem [shape: f32[2,128], index: 14, kind: input, shape index: {}]   ;;  %s14688_s15 = inlined_call_operand.vmem [shape: bf16[2,128,2048], index: 15, kind: input, shape index: {}]   ;;  %s14689_s16 = inlined_call_operand.vmem [shape: f32[2,2048], index: 16, kind: input, shape index: {}]   ;;  %s14690_s17 = inlined_call_operand.vmem [shape: bf16[2,2048,128], index: 17, kind: input, shape index: {}]   ;;  %s14691_s18 = inlined_call_operand.vmem [shape: f32[2,128], index: 18, kind: input, shape index: {}]   ;;  %s14692_s19 = inlined_call_operand.vmem [shape: f32[2,128], index: 19, kind: input, shape index: {}]   ;;  %s14693_s20 = inlined_call_operand.vmem [shape: f32[2,128], index: 20, kind: input, shape index: {}]   ;;  %s14694_s21 = inlined_call_operand.vmem [shape: f32[2,128], index: 21, kind: input, shape index: {}]   ;;  %s14695_s22 = inlined_call_operand.vmem [shape: f32[2,128], index: 22, kind: input, shape index: {}]   ;;  %s14696_s23 = inlined_call_operand.vmem [shape: bf16[128,64], index: 23, kind: input, shape index: {}]   ;;  %s14697_s24 = inlined_call_operand.vmem [shape: f32[1,64], index: 24, kind: input, shape index: {}]   ;;  %s14698_s25 = inlined_call_operand.hbm [shape: f32[2,64], index: 25, kind: output, shape index: {}]  }
   0x1   :  { %14705 = sst [smem:[#allocation7_spill]] %s14673_s0 }
   0x2   :  { %14706 = sst [smem:[#allocation8_spill]] %s14674_s1 }
   0x3   :  { %14707 = sst [smem:[#allocation9_spill]] %s14675_s2 }
   0x4   :  { %14708 = sst [smem:[#allocation10_spill]] %s14676_s3 }
   0x5   :  { %14709 = sst [smem:[#allocation11_spill]] %s14677_s4 }
   0x6   :  { %14710 = sst [smem:[#allocation12_spill]] %s14678_s5 }
   0x7   :  { %14711 = sst [smem:[#allocation13_spill]] %s14679_s6 }
   0x8   :  { %14712 = sst [smem:[#allocation14_spill]] %s14680_s7 }
   0x9   :  { %14713 = sst [smem:[#allocation15_spill]] %s14681_s8 }
   0xa   :  { %14714 = sst [smem:[#allocation16_spill]] %s14682_s9 }
   0xb   :  { %s14715_s6 = sld [smem:[#allocation9_spill]]  ;;  %v11613_v2 = vmov 0   ;;  %s14716_s1 = sld [smem:[#allocation7_spill]]  ;;  %vm113_vm0 = vcmask 130048   ;;  %v11614_v12 = vmov 0.0|0.0   ;;  %v88_v13 = vlaneseq }
   0xc   :  { %149 = vmatprep.mubr.bf16.mxu0 %v11613_v2  ;;  %487 = vmatprep.mubr.bf16.mxu1 %v11613_v2  ;;  %s14717_s4 = sld [smem:[#allocation10_spill]]  ;;  %s14718_s5 = sld [smem:[#allocation11_spill]] }
   0xd   :  { %v11788_v14 = vshrl.u32 %v88_v13, 7 }
   0xf   :  { %v11791_v15 = vsub.s32 0, %v11788_v14  ;;  %v11794_v16 = vsub.s32 1, %v11788_v14 }
  0x11   :  { %v10829_v0 = vld [vmem:[%s14715_s6 + $0x4] ss:$8 sps:$4 sm:$0xff]   ;;  %v10831_v1 = vld [vmem:[%s14715_s6] ss:$8 sps:$4 sm:$0xff]  }
  0x12   :  { %117 = vmatprep.subr.bf16.mxu0 %v10829_v0  ;;  %v10832_v3 = vld [vmem:[%s14716_s1] sm:$0xff]   ;;  %v10836_v6 = vld [vmem:[%s14717_s4 + $0x14] ss:$8 sps:$4 sm:$0xff]   ;;  %v10838_v7 = vld [vmem:[%s14717_s4 + $0x10] ss:$8 sps:$4 sm:$0xff]  }
  0x13   :  { %118 = vmatpush1.bf16.msra.mxu0 %v10831_v1  ;;  %v10833_v4 = vld [vmem:[%s14717_s4 + $0x4] ss:$8 sps:$4 sm:$0xff]   ;;  %v10835_v5 = vld [vmem:[%s14717_s4] ss:$8 sps:$4 sm:$0xff]   ;;  %v10842_v10 = vld [vmem:[%s14717_s4 + $0x34] ss:$8 sps:$4 sm:$0xff]  }
  0x14   :  { %213 = vmatprep.subr.bf16.mxu0 %v10833_v4  ;;  %455 = vmatprep.subr.bf16.mxu1 %v10833_v4  ;;  %v10839_v8 = vld [vmem:[%s14717_s4 + $0x24] ss:$8 sps:$4 sm:$0xff]   ;;  %v10841_v9 = vld [vmem:[%s14717_s4 + $0x20] ss:$8 sps:$4 sm:$0xff]   ;;  %v10844_v11 = vld [vmem:[%s14717_s4 + $0x30] ss:$8 sps:$4 sm:$0xff]  }
  0x15   :  { %456 = vmatpush1.bf16.msra.mxu1 %v10835_v5  ;;  %v86_v17 = vld [vmem:[%s14718_s5] sm:$0x3] }
  0x16   :  { %9227 = vmatmul.mubr.msk.bf16.vlgmr.msra.gmra.mrb[0].mxu0 %vm113_vm0, %v10832_v3  ;;  %457 = vmatprep.subr.bf16.mxu1 %v10836_v6  ;;  %v95_v18 = vrot.slane %v86_v17, %v11794_v16  ;;  %v91_v19 = vrot.slane %v86_v17, %v11791_v15 }
  0x17   :  { %214 = vmatpush1.bf16.msra.mxu0 %v10835_v5  ;;  %245 = vmatprep.mubr.bf16.mxu0 %v11613_v2 }
  0x18   :  { %215 = vmatprep.subr.bf16.mxu0 %v10836_v6 }
  0x19   :  { %458 = vmatpush1.bf16.msra.mxu1 %v10838_v7 }
  0x1a   :  { %459 = vmatprep.subr.bf16.mxu1 %v10839_v8 }
  0x1b   :  { %216 = vmatpush1.bf16.msra.mxu0 %v10838_v7 }
  0x1c   :  { %217 = vmatprep.subr.bf16.mxu0 %v10839_v8 }
  0x1d   :  { %460 = vmatpush1.bf16.msra.mxu1 %v10841_v9 }
  0x1e   :  { %461 = vmatprep.subr.bf16.mxu1 %v10842_v10 }
  0x1f   :  { %218 = vmatpush1.bf16.msra.mxu0 %v10841_v9 }
  0x20   :  { %219 = vmatprep.subr.bf16.mxu0 %v10842_v10 }
  0x21   :  { %462 = vmatpush1.bf16.msra.mxu1 %v10844_v11 }
  0x22   :  { %704 = vmatprep.subr.bf16.mxu1 %v10833_v4 }
  0x23   :  { %220 = vmatpush1.bf16.msra.mxu0 %v10844_v11 }
  0x24   :  { %329 = vmatprep.subr.bf16.mxu0 %v10833_v4 }
  0x26   :  { %246 = vmatmul.mubr.bf16.vlgmr.msra.gmra.mrb[4].mxu0 %v11614_v12 }
  0x27   :  { %330 = vmatpush1.bf16.msra.mxu0 %v10835_v5  ;;  %361 = vmatprep.mubr.bf16.mxu0 %v11613_v2 }
  0x28   :  { %331 = vmatprep.subr.bf16.mxu0 %v10836_v6 }
  0x2b   :  { %332 = vmatpush1.bf16.msra.mxu0 %v10838_v7 }
  0x2c   :  { %333 = vmatprep.subr.bf16.mxu0 %v10839_v8 }
  0x2f   :  { %334 = vmatpush1.bf16.msra.mxu0 %v10841_v9 }
  0x30   :  { %335 = vmatprep.subr.bf16.mxu0 %v10842_v10 }
  0x33   :  { %336 = vmatpush1.bf16.msra.mxu0 %v10844_v11 }
  0x34   :  { %581 = vmatprep.subr.bf16.mxu0 %v10833_v4 }
  0x35   :  { %30 = vsyncpa [#allocation5], 0  ;;  %s11615_s0 = smov 64   ;;  %s11616_s29 = smov 32   ;;  %vm311_vm1 = vcmask 254976   ;;  %vm323_vm2 = vcmask 261120  }
  0x36   :  { %vm209_vm3 = vcmask 523264   ;;  %v11834_v3 = vld [vmem:[%s14717_s4] ss:$8 sps:$4 sm:$0xff]   ;;  %v11841_v4 = vld [vmem:[%s14717_s4 + $0x14] ss:$8 sps:$4 sm:$0xff]   ;;  %vm436_vm4 = vcmask 257026  }
  0x37   :  { %v11847_v5 = vld [vmem:[%s14717_s4 + $0x10] ss:$8 sps:$4 sm:$0xff]   ;;  %v11853_v6 = vld [vmem:[%s14717_s4 + $0x24] ss:$8 sps:$4 sm:$0xff]   ;;  %v11859_v7 = vld [vmem:[%s14717_s4 + $0x20] ss:$8 sps:$4 sm:$0xff]  }
  0x38   :  { %v11865_v8 = vld [vmem:[%s14717_s4 + $0x34] ss:$8 sps:$4 sm:$0xff]   ;;  %v11871_v9 = vld [vmem:[%s14717_s4 + $0x30] ss:$8 sps:$4 sm:$0xff]   ;;  %v11877_v10 = vld [vmem:[%s14717_s4 + $0x4] ss:$8 sps:$4 sm:$0xff]  }
  0x39   :  { %vm562_vm5 = vcmask 259076   ;;  %vm685_vm6 = vcmask 261126   ;;  %s14719_s26 = sld [smem:[#allocation13_spill]]  ;;  %s14720_s27 = sld [smem:[#allocation12_spill]]  ;;  %vm442_vm7 = vcmask 521476   ;;  %vm317_vm8 = vcmask 523526  }
  0x3a   :  { %vm691_vm9 = vcmask 517376   ;;  %vm568_vm10 = vcmask 519426   ;;  %s14721_s7 = sld [smem:[#allocation14_spill]]  ;;  %s14722_s1 = sld [smem:[#allocation16_spill]]  ;;  %vm11618_vm11 = vmmov 0   ;;  %vm3614_vm12 = vcmask 1047558  }
  0x3b   :  { %s14723_s9 = sld [smem:[#allocation15_spill]]  ;;  %s14724_s5 = sld [smem:[#allocation8_spill]]  ;;  %vm9208_vm13 = vcmask 517120  }
  0xe9   :  { %v151_v20 = vpop.f32.mrb[0].mxu0 }
  0xea   :  { %v153_v21 = vpop.f32.mrb[1].mxu0  ;;  %v11807_v32 = vadd.f32 %v151_v20, %v91_v19 }
  0xeb   :  { %v11801_v22 = vadd.f32 %v153_v21, %v95_v18  ;;  %v155_v23 = vpop.f32.mrb[2].mxu0 }
  0xec   :  { %v11803_v24 = vadd.f32 %v155_v23, %v91_v19  ;;  %v157_v25 = vpop.f32.mrb[3].mxu0 }
  0xed   :  { %v11805_v28 = vadd.f32 %v157_v25, %v95_v18 }
  0xf9   :  { %v247_v26 = vpop.f32.mrb[4].mxu0 }
  0xfa   :  { %v249_v27 = vpop.f32.mrb[5].mxu0  ;;  %v254_v34 = vadd.f32 %v247_v26, %v11807_v32 }
  0xfb   :  { %v256_v29 = vrot.slane %v249_v27, 2  ;;  %v251_v30 = vpop.f32.mrb[6].mxu0 }
  0xfc   :  { %v252_v31 = vpop.f32.mrb[7].mxu0  ;;  %v9236_v38 = vmul.f32 -1.442695, %v254_v34 }
  0xfd   :  { %v258_v33 = vadd.f32 %v256_v29, %v11805_v28 }
  0xff   :  { %11189 = vtanh.f32 %v258_v33  ;;  %v9237_v37 = vmul.f32 -1.442695, %v258_v33 }
 0x100   :  { %11191 = vtanh.f32 %v254_v34 }
 0x101   :  { %11193 = vpow2.f32 %v9237_v37 }
 0x102   :  { %11195 = vpow2.f32 %v9236_v38 }
 0x109   :  { %v11190_v35 = vpop.eup %11189 }
 0x10a   :  { %292 = vrot.lane.b32.xlu0 %v11190_v35, %s11615_s0  ;;  %v11192_v36 = vpop.eup %11191 }
 0x10b   :  { %v11194_v39 = vpop.eup %11193 }
 0x10c   :  { %v286_v40 = vadd.f32 1.0, %v11194_v39  ;;  %v11196_v41 = vpop.eup %11195 }
 0x10d   :  { %v262_v42 = vadd.f32 1.0, %v11196_v41 }
 0x10e   :  { %268 = vrot.lane.b32.xlu0 %v11192_v36, %s11615_s0  ;;  %11197 = vrcp.f32 %v286_v40 }
 0x10f   :  { %11199 = vrcp.f32 %v262_v42 }
 0x118   :  { %v11198_v43 = vpop.eup %11197 }
 0x119   :  { %v11200_v46 = vpop.eup %11199  ;;  %v290_v49 = vmul.f32 0.0, %v11198_v43 }
 0x11a   :  { %v266_v52 = vmul.f32 0.0, %v11200_v46 }
 0x17c   :  { %v293_v44 = vpop.permute.xlu0 %292 }
 0x17d   :  { %v295_v45 = vmul.f32 %v11198_v43, %v293_v44 }
 0x17f   :  { %297 = vrot.lane.b32.xlu1 %v295_v45, %s11616_s29 }
 0x180   :  { %v269_v47 = vpop.permute.xlu0 %268 }
 0x181   :  { %v271_v48 = vmul.f32 %v11200_v46, %v269_v47 }
 0x183   :  { %273 = vrot.lane.b32.xlu1 %v271_v48, %s11616_s29 }
 0x1f1   :  { %v298_v50 = vpop.permute.xlu1 %297 }
 0x1f2   :  { %v11815_v51 = vadd.f32 %v298_v50, %v290_v49 }
 0x1f4   :  { %11201 = vtanh.f32 %v11815_v51  ;;  %v413_v42 = vrot.slane %v11815_v51, 2 }
 0x1f5   :  { %v274_v53 = vpop.permute.xlu1 %273 }
 0x1f6   :  { %v11818_v54 = vadd.f32 %v274_v53, %v266_v52 }
 0x1f8   :  { %11203 = vtanh.f32 %v11818_v54  ;;  %v386_v41 = vrot.slane %v11818_v54, 6 }
 0x1fe   :  { %v11202_v55 = vpop.eup %11201 }
 0x1ff   :  { %303 = vrot.lane.b32.xlu0 %v11202_v55, %s11615_s0 }
 0x202   :  { %v11204_v56 = vpop.eup %11203 }
 0x203   :  { %279 = vrot.lane.b32.xlu1 %v11204_v56, %s11615_s0 }
 0x271   :  { %v304_v57 = vpop.permute.xlu0 %303 }
 0x272   :  { %v11823_v58 = vmul.f32 %v11198_v43, %v304_v57 }
 0x274   :  { %v319_v59 = vrot.slane %v11823_v58, 6 }
 0x275   :  { %v280_v60 = vpop.permute.xlu1 %279 }
 0x276   :  { %v282_v61 = vmul.f32 %v11200_v46, %v280_v60  ;;  %320 = vrot.lane.b32.xlu1 %v319_v59, %s11615_s0 }
 0x278   :  { %308 = vrot.lane.b32.xlu0 %v282_v61, %s11616_s29 }
 0x2e8   :  { %v321_v62 = vpop.permute.xlu1 %320 }
 0x2ea   :  { %v309_v63 = vpop.permute.xlu0 %308 }
 0x2eb   :  { %312 = vst.msk [vmem:[#allocation2] sm:$0x3] %vm311_vm1, %v309_v63  ;;  %v324_v0 = vsel %vm323_vm2, %v309_v63, %v321_v62 }
 0x2ec   :  { %v325_v1 = vpack.c.bf16 %v324_v0, %v324_v0 }
 0x2ee   :  { %9238 = vmatmul.mubr.msk.bf16.vlgmr.msra.gmra.mrb[8].mxu0 %vm209_vm3, %v325_v1 }
 0x2ef   :  { %582 = vmatpush1.bf16.msra.mxu0 %v11834_v3  ;;  %613 = vmatprep.mubr.bf16.mxu0 %v11613_v2 }
 0x2f0   :  { %583 = vmatprep.subr.bf16.mxu0 %v11841_v4 }
 0x2f3   :  { %584 = vmatpush1.bf16.msra.mxu0 %v11847_v5 }
 0x2f4   :  { %585 = vmatprep.subr.bf16.mxu0 %v11853_v6 }
 0x2f7   :  { %586 = vmatpush1.bf16.msra.mxu0 %v11859_v7 }
 0x2f8   :  { %587 = vmatprep.subr.bf16.mxu0 %v11865_v8 }
 0x2fb   :  { %588 = vmatpush1.bf16.msra.mxu0 %v11871_v9 }
 0x2fc   :  { %823 = vmatprep.subr.bf16.mxu0 %v11877_v10 }
 0x3c1   :  { %v363_v11 = vpop.f32.mrb[8].mxu0 }
 0x3c2   :  { %v371_v13 = vrot.slane %v363_v11, 6  ;;  %v365_v17 = vpop.f32.mrb[9].mxu0 }
 0x3c3   :  { %v375_v18 = vrot.slane %v365_v17, 4  ;;  %v367_v19 = vpop.f32.mrb[10].mxu0 }
 0x3c4   :  { %v373_v20 = vadd.f32 %v371_v13, %v11807_v32  ;;  %v368_v21 = vpop.f32.mrb[11].mxu0 }
 0x3c5   :  { %v377_v23 = vadd.f32 %v375_v18, %v11805_v28 }
 0x3c6   :  { %11205 = vtanh.f32 %v373_v20  ;;  %v9239_v27 = vmul.f32 -1.442695, %v373_v20 }
 0x3c7   :  { %11207 = vtanh.f32 %v377_v23  ;;  %v9240_v29 = vmul.f32 -1.442695, %v377_v23 }
 0x3c8   :  { %11209 = vpow2.f32 %v9239_v27 }
 0x3c9   :  { %11211 = vpow2.f32 %v9240_v29 }
 0x3d0   :  { %v11206_v25 = vpop.eup %11205 }
 0x3d1   :  { %v11208_v26 = vpop.eup %11207  ;;  %390 = vrot.lane.b32.xlu1 %v11206_v25, %s11615_s0 }
 0x3d2   :  { %417 = vrot.lane.b32.xlu0 %v11208_v26, %s11615_s0  ;;  %v11210_v30 = vpop.eup %11209 }
 0x3d3   :  { %v11212_v31 = vpop.eup %11211  ;;  %v381_v33 = vadd.f32 1.0, %v11210_v30 }
 0x3d4   :  { %v408_v34 = vadd.f32 1.0, %v11212_v31 }
 0x3d5   :  { %11213 = vrcp.f32 %v381_v33 }
 0x3d6   :  { %11215 = vrcp.f32 %v408_v34 }
 0x3df   :  { %v11214_v35 = vpop.eup %11213 }
 0x3e0   :  { %v11216_v37 = vpop.eup %11215  ;;  %v388_v43 = vmul.f32 %v11214_v35, %v386_v41 }
 0x3e1   :  { %v415_v45 = vmul.f32 %v11216_v37, %v413_v42 }
 0x443   :  { %v391_v36 = vpop.permute.xlu1 %390 }
 0x444   :  { %v393_v38 = vmul.f32 %v11214_v35, %v391_v36  ;;  %v418_v39 = vpop.permute.xlu0 %417 }
 0x445   :  { %v420_v40 = vmul.f32 %v11216_v37, %v418_v39 }
 0x446   :  { %395 = vrot.lane.b32.xlu1 %v393_v38, %s11616_s29 }
 0x447   :  { %422 = vrot.lane.b32.xlu0 %v420_v40, %s11616_s29 }
 0x4b8   :  { %v396_v44 = vpop.permute.xlu1 %395 }
 0x4b9   :  { %v11888_v46 = vadd.f32 %v396_v44, %v388_v43  ;;  %v423_v47 = vpop.permute.xlu0 %422 }
 0x4ba   :  { %v11890_v48 = vadd.f32 %v423_v47, %v415_v45 }
 0x4bb   :  { %11217 = vtanh.f32 %v11888_v46 }
 0x4bc   :  { %11219 = vtanh.f32 %v11890_v48  ;;  %v539_v38 = vrot.slane %v11890_v48, 2 }
 0x4c5   :  { %v11218_v49 = vpop.eup %11217 }
 0x4c6   :  { %v11220_v50 = vpop.eup %11219  ;;  %401 = vrot.lane.b32.xlu1 %v11218_v49, %s11615_s0 }
 0x4c7   :  { %428 = vrot.lane.b32.xlu0 %v11220_v50, %s11615_s0 }
 0x538   :  { %v402_v52 = vpop.permute.xlu1 %401 }
 0x539   :  { %v404_v51 = vmul.f32 %v11214_v35, %v402_v52  ;;  %v429_v53 = vpop.permute.xlu0 %428 }
 0x53a   :  { %v11896_v54 = vmul.f32 %v11216_v37, %v429_v53  ;;  %v512_v37 = vrot.slane %v11888_v46, 6 }
 0x53b   :  { %433 = vrot.lane.b32.xlu0 %v404_v51, %s11616_s29 }
 0x53c   :  { %v444_v55 = vrot.slane %v11896_v54, 2 }
 0x53e   :  { %445 = vrot.lane.b32.xlu1 %v444_v55, %s11615_s0 }
 0x5ad   :  { %v434_v56 = vpop.permute.xlu0 %433 }
 0x5ae   :  { %437 = vst.msk [vmem:[#allocation2] sm:$0xc] %vm436_vm4, %v434_v56 }
 0x5b0   :  { %v446_v57 = vpop.permute.xlu1 %445 }
 0x5b1   :  { %v448_v59 = vsel %vm323_vm2, %v434_v56, %v446_v57 }
 0x5b2   :  { %v449_v60 = vpack.c.bf16 %v448_v59, %v448_v59 }
 0x5b4   :  { %v451_v61 = vrot.slane %v449_v60, 1 }
 0x5b6   :  { %9241 = vmatmul.mubr.msk.bf16.vlgmr.msra.gmra.mrb[0].mxu1 %vm209_vm3, %v451_v61 }
 0x5b7   :  { %705 = vmatpush1.bf16.msra.mxu1 %v11834_v3  ;;  %736 = vmatprep.mubr.bf16.mxu1 %v11613_v2 }
 0x5b8   :  { %706 = vmatprep.subr.bf16.mxu1 %v11841_v4 }
 0x5bb   :  { %707 = vmatpush1.bf16.msra.mxu1 %v11847_v5 }
 0x5bc   :  { %708 = vmatprep.subr.bf16.mxu1 %v11853_v6 }
 0x5bf   :  { %709 = vmatpush1.bf16.msra.mxu1 %v11859_v7 }
 0x5c0   :  { %710 = vmatprep.subr.bf16.mxu1 %v11865_v8 }
 0x5c3   :  { %711 = vmatpush1.bf16.msra.mxu1 %v11871_v9 }
 0x5c4   :  { %947 = vmatprep.subr.bf16.mxu1 %v11877_v10 }
 0x689   :  { %v489_v62 = vpop.f32.mrb[0].mxu1 }
 0x68a   :  { %v497_v63 = vrot.slane %v489_v62, 4  ;;  %v491_v0 = vpop.f32.mrb[1].mxu1 }
 0x68b   :  { %v501_v1 = vrot.slane %v491_v0, 6  ;;  %v493_v11 = vpop.f32.mrb[2].mxu1 }
 0x68c   :  { %v499_v13 = vadd.f32 %v497_v63, %v11807_v32  ;;  %v494_v17 = vpop.f32.mrb[3].mxu1 }
 0x68d   :  { %v503_v18 = vadd.f32 %v501_v1, %v11805_v28 }
 0x68e   :  { %11221 = vtanh.f32 %v499_v13  ;;  %v9242_v21 = vmul.f32 -1.442695, %v499_v13 }
 0x68f   :  { %11223 = vtanh.f32 %v503_v18  ;;  %v9243_v23 = vmul.f32 -1.442695, %v503_v18 }
 0x690   :  { %11225 = vpow2.f32 %v9242_v21 }
 0x691   :  { %11227 = vpow2.f32 %v9243_v23 }
 0x698   :  { %v11222_v19 = vpop.eup %11221 }
 0x699   :  { %v11224_v20 = vpop.eup %11223  ;;  %516 = vrot.lane.b32.xlu1 %v11222_v19, %s11615_s0 }
 0x69a   :  { %543 = vrot.lane.b32.xlu0 %v11224_v20, %s11615_s0  ;;  %v11226_v25 = vpop.eup %11225 }
 0x69b   :  { %v11228_v26 = vpop.eup %11227  ;;  %v507_v27 = vadd.f32 1.0, %v11226_v25 }
 0x69c   :  { %v534_v29 = vadd.f32 1.0, %v11228_v26 }
 0x69d   :  { %11229 = vrcp.f32 %v507_v27 }
 0x69e   :  { %11231 = vrcp.f32 %v534_v29 }
 0x6a7   :  { %v11230_v30 = vpop.eup %11229 }
 0x6a8   :  { %v11232_v33 = vpop.eup %11231  ;;  %v514_v39 = vmul.f32 %v11230_v30, %v512_v37 }
 0x6a9   :  { %v541_v41 = vmul.f32 %v11232_v33, %v539_v38 }
 0x70b   :  { %v517_v31 = vpop.permute.xlu1 %516 }
 0x70c   :  { %v519_v34 = vmul.f32 %v11230_v30, %v517_v31  ;;  %v544_v35 = vpop.permute.xlu0 %543 }
 0x70d   :  { %v546_v36 = vmul.f32 %v11232_v33, %v544_v35 }
 0x70e   :  { %521 = vrot.lane.b32.xlu1 %v519_v34, %s11616_s29 }
 0x70f   :  { %548 = vrot.lane.b32.xlu0 %v546_v36, %s11616_s29 }
 0x780   :  { %v522_v40 = vpop.permute.xlu1 %521 }
 0x781   :  { %v11921_v42 = vadd.f32 %v522_v40, %v514_v39  ;;  %v549_v43 = vpop.permute.xlu0 %548 }
 0x782   :  { %v11923_v44 = vadd.f32 %v549_v43, %v541_v41 }
 0x783   :  { %11233 = vtanh.f32 %v11921_v42 }
 0x784   :  { %11235 = vtanh.f32 %v11923_v44  ;;  %v662_v29 = vrot.slane %v11923_v44, 2 }
 0x78d   :  { %v11234_v45 = vpop.eup %11233 }
 0x78e   :  { %v11236_v47 = vpop.eup %11235  ;;  %527 = vrot.lane.b32.xlu1 %v11234_v45, %s11615_s0 }
 0x78f   :  { %554 = vrot.lane.b32.xlu0 %v11236_v47, %s11615_s0 }
 0x800   :  { %v528_v46 = vpop.permute.xlu1 %527 }
 0x801   :  { %v530_v48 = vmul.f32 %v11230_v30, %v528_v46  ;;  %v555_v49 = vpop.permute.xlu0 %554  ;;  %v635_v30 = vrot.slane %v11921_v42, 6 }
 0x802   :  { %v11929_v50 = vmul.f32 %v11232_v33, %v555_v49 }
 0x803   :  { %559 = vrot.lane.b32.xlu0 %v530_v48, %s11616_s29 }
 0x804   :  { %v570_v52 = vrot.slane %v11929_v50, 6 }
 0x806   :  { %571 = vrot.lane.b32.xlu1 %v570_v52, %s11615_s0 }
 0x875   :  { %v560_v51 = vpop.permute.xlu0 %559 }
 0x876   :  { %563 = vst.msk [vmem:[#allocation2] sm:$0x30] %vm562_vm5, %v560_v51 }
 0x878   :  { %v572_v53 = vpop.permute.xlu1 %571 }
 0x879   :  { %v574_v55 = vsel %vm323_vm2, %v560_v51, %v572_v53 }
 0x87a   :  { %v575_v56 = vpack.c.bf16 %v574_v55, %v574_v55 }
 0x87c   :  { %v577_v57 = vrot.slane %v575_v56, 2 }
 0x87e   :  { %9244 = vmatmul.mubr.msk.bf16.vlgmr.msra.gmra.mrb[12].mxu0 %vm209_vm3, %v577_v57 }
 0x87f   :  { %824 = vmatpush1.bf16.msra.mxu0 %v11834_v3  ;;  %855 = vmatprep.mubr.bf16.mxu0 %v11613_v2 }
 0x880   :  { %825 = vmatprep.subr.bf16.mxu0 %v11841_v4 }
 0x883   :  { %826 = vmatpush1.bf16.msra.mxu0 %v11847_v5 }
 0x884   :  { %827 = vmatprep.subr.bf16.mxu0 %v11853_v6 }
 0x887   :  { %828 = vmatpush1.bf16.msra.mxu0 %v11859_v7 }
 0x888   :  { %829 = vmatprep.subr.bf16.mxu0 %v11865_v8 }
 0x88b   :  { %830 = vmatpush1.bf16.msra.mxu0 %v11871_v9 }
 0x88c   :  { %1071 = vmatprep.subr.bf16.mxu0 %v11877_v10 }
 0x951   :  { %v615_v59 = vpop.f32.mrb[12].mxu0 }
 0x952   :  { %v623_v60 = vrot.slane %v615_v59, 2  ;;  %v617_v61 = vpop.f32.mrb[13].mxu0 }
 0x953   :  { %v626_v62 = vadd.f32 %v617_v61, %v11805_v28  ;;  %v619_v63 = vpop.f32.mrb[14].mxu0 }
 0x954   :  { %v625_v0 = vadd.f32 %v623_v60, %v11807_v32  ;;  %v620_v1 = vpop.f32.mrb[15].mxu0 }
 0x955   :  { %11237 = vtanh.f32 %v626_v62  ;;  %v9246_v17 = vmul.f32 -1.442695, %v626_v62 }
 0x956   :  { %11239 = vtanh.f32 %v625_v0  ;;  %v9245_v18 = vmul.f32 -1.442695, %v625_v0 }
 0x957   :  { %11241 = vpow2.f32 %v9246_v17 }
 0x958   :  { %11243 = vpow2.f32 %v9245_v18 }
 0x95f   :  { %v11238_v11 = vpop.eup %11237 }
 0x960   :  { %v11240_v13 = vpop.eup %11239  ;;  %666 = vrot.lane.b32.xlu0 %v11238_v11, %s11615_s0 }
 0x961   :  { %639 = vrot.lane.b32.xlu1 %v11240_v13, %s11615_s0  ;;  %v11242_v10 = vpop.eup %11241 }
 0x962   :  { %v11244_v19 = vpop.eup %11243  ;;  %v657_v20 = vadd.f32 1.0, %v11242_v10 }
 0x963   :  { %v630_v28 = vadd.f32 1.0, %v11244_v19 }
 0x964   :  { %11245 = vrcp.f32 %v657_v20 }
 0x965   :  { %11247 = vrcp.f32 %v630_v28 }
 0x96e   :  { %v11246_v32 = vpop.eup %11245 }
 0x96f   :  { %v11248_v23 = vpop.eup %11247  ;;  %v664_v31 = vmul.f32 %v11246_v32, %v662_v29 }
 0x970   :  { %v637_v34 = vmul.f32 %v11248_v23, %v635_v30 }
 0x9d2   :  { %v667_v21 = vpop.permute.xlu0 %666 }
 0x9d3   :  { %v669_v25 = vmul.f32 %v11246_v32, %v667_v21  ;;  %v640_v26 = vpop.permute.xlu1 %639 }
 0x9d4   :  { %v642_v27 = vmul.f32 %v11248_v23, %v640_v26 }
 0x9d5   :  { %671 = vrot.lane.b32.xlu0 %v669_v25, %s11616_s29 }
 0x9d6   :  { %644 = vrot.lane.b32.xlu1 %v642_v27, %s11616_s29 }
 0xa47   :  { %v672_v33 = vpop.permute.xlu0 %671 }
 0xa48   :  { %v11954_v35 = vadd.f32 %v672_v33, %v664_v31  ;;  %v645_v36 = vpop.permute.xlu1 %644 }
 0xa49   :  { %v11956_v37 = vadd.f32 %v645_v36, %v637_v34 }
 0xa4a   :  { %11249 = vtanh.f32 %v11954_v35 }
 0xa4b   :  { %11251 = vtanh.f32 %v11956_v37 }
 0xa54   :  { %v11250_v38 = vpop.eup %11249 }
 0xa55   :  { %v11252_v39 = vpop.eup %11251  ;;  %677 = vrot.lane.b32.xlu0 %v11250_v38, %s11615_s0 }
 0xa56   :  { %650 = vrot.lane.b32.xlu1 %v11252_v39, %s11615_s0 }
 0xac7   :  { %v678_v40 = vpop.permute.xlu0 %677 }
 0xac8   :  { %v11962_v41 = vmul.f32 %v11246_v32, %v678_v40  ;;  %v651_v42 = vpop.permute.xlu1 %650  ;;  %v758_v32 = vrot.slane %v11956_v37, 6 }
 0xac9   :  { %v653_v43 = vmul.f32 %v11248_v23, %v651_v42  ;;  %v785_v23 = vrot.slane %v11954_v35, 2 }
 0xaca   :  { %v693_v44 = vrot.slane %v11962_v41, 2 }
 0xacb   :  { %682 = vrot.lane.b32.xlu0 %v653_v43, %s11616_s29 }
 0xacc   :  { %694 = vrot.lane.b32.xlu1 %v693_v44, %s11615_s0 }
 0xb3d   :  { %v683_v45 = vpop.permute.xlu0 %682 }
 0xb3e   :  { %686 = vst.msk [vmem:[#allocation2] sm:$0xc0] %vm685_vm6, %v683_v45  ;;  %v695_v47 = vpop.permute.xlu1 %694 }
 0xb3f   :  { %v697_v46 = vsel %vm323_vm2, %v683_v45, %v695_v47 }
 0xb40   :  { %v698_v48 = vpack.c.bf16 %v697_v46, %v697_v46 }
 0xb42   :  { %v700_v49 = vrot.slane %v698_v48, 3 }
 0xb44   :  { %9247 = vmatmul.mubr.msk.bf16.vlgmr.msra.gmra.mrb[4].mxu1 %vm209_vm3, %v700_v49 }
 0xb45   :  { %948 = vmatpush1.bf16.msra.mxu1 %v11834_v3  ;;  %979 = vmatprep.mubr.bf16.mxu1 %v11613_v2 }
 0xb46   :  { %949 = vmatprep.subr.bf16.mxu1 %v11841_v4 }
 0xb49   :  { %950 = vmatpush1.bf16.msra.mxu1 %v11847_v5 }
 0xb4a   :  { %951 = vmatprep.subr.bf16.mxu1 %v11853_v6 }
 0xb4d   :  { %952 = vmatpush1.bf16.msra.mxu1 %v11859_v7 }
 0xb4e   :  { %953 = vmatprep.subr.bf16.mxu1 %v11865_v8 }
 0xb51   :  { %954 = vmatpush1.bf16.msra.mxu1 %v11871_v9 }
 0xc17   :  { %v738_v52 = vpop.f32.mrb[4].mxu1 }
 0xc18   :  { %v745_v51 = vadd.f32 %v738_v52, %v11803_v24  ;;  %v740_v53 = vpop.f32.mrb[5].mxu1 }
 0xc19   :  { %v747_v55 = vrot.slane %v740_v53, 2  ;;  %v742_v56 = vpop.f32.mrb[6].mxu1 }
 0xc1a   :  { %11253 = vtanh.f32 %v745_v51  ;;  %v743_v57 = vpop.f32.mrb[7].mxu1  ;;  %v9248_v62 = vmul.f32 -1.442695, %v745_v51 }
 0xc1b   :  { %v749_v59 = vadd.f32 %v747_v55, %v11801_v22 }
 0xc1d   :  { %11255 = vtanh.f32 %v749_v59  ;;  %v9249_v63 = vmul.f32 -1.442695, %v749_v59 }
 0xc1e   :  { %11257 = vpow2.f32 %v9248_v62 }
 0xc1f   :  { %11259 = vpow2.f32 %v9249_v63 }
 0xc24   :  { %v11254_v60 = vpop.eup %11253 }
 0xc25   :  { %762 = vrot.lane.b32.xlu1 %v11254_v60, %s11615_s0 }
 0xc27   :  { %v11256_v61 = vpop.eup %11255 }
 0xc28   :  { %789 = vrot.lane.b32.xlu0 %v11256_v61, %s11615_s0  ;;  %v11258_v0 = vpop.eup %11257 }
 0xc29   :  { %v11260_v1 = vpop.eup %11259  ;;  %v753_v11 = vadd.f32 1.0, %v11258_v0 }
 0xc2a   :  { %v780_v13 = vadd.f32 1.0, %v11260_v1 }
 0xc2b   :  { %11261 = vrcp.f32 %v753_v11 }
 0xc2c   :  { %11263 = vrcp.f32 %v780_v13 }
 0xc35   :  { %v11262_v17 = vpop.eup %11261 }
 0xc36   :  { %v11264_v19 = vpop.eup %11263  ;;  %v760_v21 = vmul.f32 %v11262_v17, %v758_v32 }
 0xc37   :  { %v787_v27 = vmul.f32 %v11264_v19, %v785_v23 }
 0xc97   :  { %v763_v18 = vpop.permute.xlu1 %762 }
 0xc98   :  { %v765_v10 = vmul.f32 %v11262_v17, %v763_v18 }
 0xc9a   :  { %767 = vrot.lane.b32.xlu1 %v765_v10, %s11616_s29  ;;  %v790_v20 = vpop.permute.xlu0 %789 }
 0xc9b   :  { %v792_v28 = vmul.f32 %v11264_v19, %v790_v20 }
 0xc9d   :  { %794 = vrot.lane.b32.xlu0 %v792_v28, %s11616_s29 }
 0xd0c   :  { %v768_v25 = vpop.permute.xlu1 %767 }
 0xd0d   :  { %v11986_v26 = vadd.f32 %v768_v25, %v760_v21 }
 0xd0f   :  { %11265 = vtanh.f32 %v11986_v26  ;;  %v795_v29 = vpop.permute.xlu0 %794  ;;  %v880_v62 = vrot.slane %v11986_v26, 6 }
 0xd10   :  { %v11989_v30 = vadd.f32 %v795_v29, %v787_v27 }
 0xd12   :  { %11267 = vtanh.f32 %v11989_v30  ;;  %v907_v63 = vrot.slane %v11989_v30, 2 }
 0xd19   :  { %v11266_v31 = vpop.eup %11265 }
 0xd1a   :  { %773 = vrot.lane.b32.xlu1 %v11266_v31, %s11615_s0 }
 0xd1c   :  { %v11268_v33 = vpop.eup %11267 }
 0xd1d   :  { %800 = vrot.lane.b32.xlu0 %v11268_v33, %s11615_s0 }
 0xd8c   :  { %v774_v34 = vpop.permute.xlu1 %773 }
 0xd8d   :  { %v776_v36 = vmul.f32 %v11262_v17, %v774_v34 }
 0xd8f   :  { %805 = vrot.lane.b32.xlu0 %v776_v36, %s11616_s29  ;;  %v801_v35 = vpop.permute.xlu0 %800 }
 0xd90   :  { %v11995_v37 = vmul.f32 %v11264_v19, %v801_v35 }
 0xd92   :  { %v814_v38 = vrot.slane %v11995_v37, 6 }
 0xd94   :  { %815 = vrot.lane.b32.xlu1 %v814_v38, %s11615_s0 }
 0xe01   :  { %v11999_v39 = vpop.permute.xlu0 %805 }
 0xe06   :  { %v816_v40 = vpop.permute.xlu1 %815 }
 0xe07   :  { %v818_v42 = vsel %vm323_vm2, %v11999_v39, %v816_v40 }
 0xe08   :  { %v819_v43 = vpack.c.bf16 %v818_v42, %v818_v42 }
 0xe0a   :  { %9250 = vmatmul.mubr.msk.bf16.vlgmr.msra.gmra.mrb[16].mxu0 %vm209_vm3, %v819_v43 }
 0xe0b   :  { %1072 = vmatpush1.bf16.msra.mxu0 %v11834_v3  ;;  %1103 = vmatprep.mubr.bf16.mxu0 %v11613_v2 }
 0xe0c   :  { %1073 = vmatprep.subr.bf16.mxu0 %v11841_v4 }
 0xe0f   :  { %1074 = vmatpush1.bf16.msra.mxu0 %v11847_v5 }
 0xe10   :  { %1075 = vmatprep.subr.bf16.mxu0 %v11853_v6 }
 0xe13   :  { %1076 = vmatpush1.bf16.msra.mxu0 %v11859_v7 }
 0xe14   :  { %1077 = vmatprep.subr.bf16.mxu0 %v11865_v8 }
 0xe17   :  { %1078 = vmatpush1.bf16.msra.mxu0 %v11871_v9 }
 0xedd   :  { %v857_v44 = vpop.f32.mrb[16].mxu0 }
 0xede   :  { %v865_v45 = vrot.slane %v857_v44, 6  ;;  %v859_v47 = vpop.f32.mrb[17].mxu0 }
 0xedf   :  { %v869_v46 = vrot.slane %v859_v47, 4  ;;  %v861_v48 = vpop.f32.mrb[18].mxu0 }
 0xee0   :  { %v867_v3 = vadd.f32 %v865_v45, %v11803_v24  ;;  %v862_v49 = vpop.f32.mrb[19].mxu0 }
 0xee1   :  { %v871_v4 = vadd.f32 %v869_v46, %v11801_v22 }
 0xee2   :  { %11269 = vtanh.f32 %v867_v3  ;;  %v9251_v7 = vmul.f32 -1.442695, %v867_v3 }
 0xee3   :  { %11271 = vtanh.f32 %v871_v4  ;;  %v9252_v8 = vmul.f32 -1.442695, %v871_v4 }
 0xee4   :  { %11273 = vpow2.f32 %v9251_v7 }
 0xee5   :  { %11275 = vpow2.f32 %v9252_v8 }
 0xeec   :  { %v11270_v5 = vpop.eup %11269 }
 0xeed   :  { %v11272_v6 = vpop.eup %11271  ;;  %884 = vrot.lane.b32.xlu1 %v11270_v5, %s11615_s0 }
 0xeee   :  { %911 = vrot.lane.b32.xlu0 %v11272_v6, %s11615_s0  ;;  %v11274_v9 = vpop.eup %11273 }
 0xeef   :  { %v11276_v52 = vpop.eup %11275  ;;  %v875_v51 = vadd.f32 1.0, %v11274_v9 }
 0xef0   :  { %v902_v53 = vadd.f32 1.0, %v11276_v52 }
 0xef1   :  { %11277 = vrcp.f32 %v875_v51 }
 0xef2   :  { %11279 = vrcp.f32 %v902_v53 }
 0xefb   :  { %v11278_v55 = vpop.eup %11277 }
 0xefc   :  { %v11280_v57 = vpop.eup %11279  ;;  %v882_v0 = vmul.f32 %v11278_v55, %v880_v62 }
 0xefd   :  { %v909_v11 = vmul.f32 %v11280_v57, %v907_v63 }
 0xf5f   :  { %v885_v56 = vpop.permute.xlu1 %884 }
 0xf60   :  { %v887_v59 = vmul.f32 %v11278_v55, %v885_v56  ;;  %v912_v60 = vpop.permute.xlu0 %911 }
 0xf61   :  { %v914_v61 = vmul.f32 %v11280_v57, %v912_v60 }
 0xf62   :  { %889 = vrot.lane.b32.xlu1 %v887_v59, %s11616_s29 }
 0xf63   :  { %916 = vrot.lane.b32.xlu0 %v914_v61, %s11616_s29 }
 0xfd4   :  { %v890_v1 = vpop.permute.xlu1 %889 }
 0xfd5   :  { %v892_v13 = vadd.f32 %v890_v1, %v882_v0  ;;  %v917_v17 = vpop.permute.xlu0 %916 }
 0xfd6   :  { %v919_v18 = vadd.f32 %v917_v17, %v909_v11 }
 0xfd7   :  { %11281 = vtanh.f32 %v892_v13  ;;  %v1004_v52 = vrot.slane %v892_v13, 6 }
 0xfd8   :  { %11283 = vtanh.f32 %v919_v18  ;;  %v1031_v51 = vrot.slane %v919_v18, 2 }
 0xfe1   :  { %v11282_v10 = vpop.eup %11281 }
 0xfe2   :  { %v11284_v19 = vpop.eup %11283  ;;  %895 = vrot.lane.b32.xlu1 %v11282_v10, %s11615_s0 }
 0xfe3   :  { %922 = vrot.lane.b32.xlu0 %v11284_v19, %s11615_s0 }
0x1054   :  { %v896_v20 = vpop.permute.xlu1 %895 }
0x1055   :  { %v898_v28 = vmul.f32 %v11278_v55, %v896_v20  ;;  %v923_v32 = vpop.permute.xlu0 %922 }
0x1056   :  { %v12022_v21 = vmul.f32 %v11280_v57, %v923_v32 }
0x1057   :  { %927 = vrot.lane.b32.xlu0 %v898_v28, %s11616_s29 }
0x1058   :  { %v936_v23 = vrot.slane %v12022_v21, 2 }
0x105a   :  { %937 = vrot.lane.b32.xlu1 %v936_v23, %s11615_s0 }
0x10c9   :  { %v12027_v25 = vpop.permute.xlu0 %927 }
0x10cc   :  { %v938_v26 = vpop.permute.xlu1 %937 }
0x10cd   :  { %v940_v27 = vsel %vm323_vm2, %v12027_v25, %v938_v26 }
0x10ce   :  { %v941_v29 = vpack.c.bf16 %v940_v27, %v940_v27 }
0x10d0   :  { %v943_v30 = vrot.slane %v941_v29, 1 }
0x10d2   :  { %9253 = vmatmul.mubr.msk.bf16.vlgmr.msra.gmra.mrb[8].mxu1 %vm209_vm3, %v943_v30 }
0x10d3   :  { %1279 = vmatprep.mubr.bf16.mxu1 %v11613_v2 }
0x11a5   :  { %v981_v31 = vpop.f32.mrb[8].mxu1 }
0x11a6   :  { %v989_v33 = vrot.slane %v981_v31, 4  ;;  %v983_v34 = vpop.f32.mrb[9].mxu1 }
0x11a7   :  { %v993_v36 = vrot.slane %v983_v34, 6  ;;  %v985_v35 = vpop.f32.mrb[10].mxu1 }
0x11a8   :  { %v991_v38 = vadd.f32 %v989_v33, %v11803_v24  ;;  %v986_v40 = vpop.f32.mrb[11].mxu1 }
0x11a9   :  { %v995_v42 = vadd.f32 %v993_v36, %v11801_v22 }
0x11aa   :  { %11285 = vtanh.f32 %v991_v38  ;;  %v9254_v45 = vmul.f32 -1.442695, %v991_v38 }
0x11ab   :  { %11287 = vtanh.f32 %v995_v42  ;;  %v9255_v47 = vmul.f32 -1.442695, %v995_v42 }
0x11ac   :  { %11289 = vpow2.f32 %v9254_v45 }
0x11ad   :  { %11291 = vpow2.f32 %v9255_v47 }
0x11b4   :  { %v11286_v43 = vpop.eup %11285 }
0x11b5   :  { %v11288_v44 = vpop.eup %11287  ;;  %1008 = vrot.lane.b32.xlu1 %v11286_v43, %s11615_s0 }
0x11b6   :  { %1035 = vrot.lane.b32.xlu0 %v11288_v44, %s11615_s0  ;;  %v11290_v46 = vpop.eup %11289 }
0x11b7   :  { %v11292_v48 = vpop.eup %11291  ;;  %v999_v3 = vadd.f32 1.0, %v11290_v46 }
0x11b8   :  { %v1026_v49 = vadd.f32 1.0, %v11292_v48 }
0x11b9   :  { %11293 = vrcp.f32 %v999_v3 }
0x11ba   :  { %11295 = vrcp.f32 %v1026_v49 }
0x11c3   :  { %v11294_v4 = vpop.eup %11293 }
0x11c4   :  { %v11296_v6 = vpop.eup %11295  ;;  %v1006_v53 = vmul.f32 %v11294_v4, %v1004_v52  ;;  %v12073_v52 = vld [vmem:[%s14719_s26 + $0x4] ss:$8 sps:$4 sm:$0xff]  }
0x11c5   :  { %v1033_v56 = vmul.f32 %v11296_v6, %v1031_v51  ;;  %v10847_v51 = vld [vmem:[%s14720_s27] ss:$8 sps:$4 sm:$0xff]   ;;  %1338 = vmatprep.subr.bf16.mxu0 %v12073_v52 }
0x1227   :  { %v1009_v5 = vpop.permute.xlu1 %1008 }
0x1228   :  { %v1011_v7 = vmul.f32 %v11294_v4, %v1009_v5  ;;  %v1036_v8 = vpop.permute.xlu0 %1035 }
0x1229   :  { %v1038_v9 = vmul.f32 %v11296_v6, %v1036_v8 }
0x122a   :  { %1013 = vrot.lane.b32.xlu1 %v1011_v7, %s11616_s29 }
0x122b   :  { %1040 = vrot.lane.b32.xlu0 %v1038_v9, %s11616_s29 }
0x129c   :  { %v1014_v55 = vpop.permute.xlu1 %1013 }
0x129d   :  { %v1016_v57 = vadd.f32 %v1014_v55, %v1006_v53  ;;  %v1041_v59 = vpop.permute.xlu0 %1040  ;;  %v10849_v53 = vld [vmem:[%s14720_s27 + $0x4] ss:$8 sps:$4 sm:$0xff]   ;;  %v12091_v55 = vld [vmem:[%s14719_s26 + $0x14] ss:$8 sps:$4 sm:$0xff]  }
0x129e   :  { %v1043_v60 = vadd.f32 %v1041_v59, %v1033_v56  ;;  %1247 = vmatprep.subr.bf16.mxu1 %v10849_v53  ;;  %v10855_v56 = vld [vmem:[%s14720_s27 + $0x14] ss:$8 sps:$4 sm:$0xff]   ;;  %v10861_v59 = vld [vmem:[%s14720_s27 + $0x24] ss:$8 sps:$4 sm:$0xff]  }
0x129f   :  { %11297 = vtanh.f32 %v1016_v57  ;;  %v1125_v48 = vrot.slane %v1016_v57, 6  ;;  %1248 = vmatpush1.bf16.msra.mxu1 %v10847_v51  ;;  %v12104_v57 = vld [vmem:[%s14719_s26 + $0x10] ss:$8 sps:$4 sm:$0xff]  }
0x12a0   :  { %11299 = vtanh.f32 %v1043_v60  ;;  %v1152_v46 = vrot.slane %v1043_v60, 2  ;;  %1249 = vmatprep.subr.bf16.mxu1 %v10855_v56  ;;  %v10867_v60 = vld [vmem:[%s14720_s27 + $0x34] ss:$8 sps:$4 sm:$0xff]  }
0x12a9   :  { %v11298_v61 = vpop.eup %11297 }
0x12aa   :  { %v11300_v62 = vpop.eup %11299  ;;  %1019 = vrot.lane.b32.xlu1 %v11298_v61, %s11615_s0  ;;  %v12147_v61 = vld [vmem:[%s14719_s26 + $0x30] ss:$8 sps:$4 sm:$0xff]  }
0x12ab   :  { %1046 = vrot.lane.b32.xlu0 %v11300_v62, %s11615_s0  ;;  %v10865_v62 = vld [vmem:[%s14720_s27 + $0x30] ss:$8 sps:$4 sm:$0xff]  }
0x131c   :  { %v1020_v63 = vpop.permute.xlu1 %1019 }
0x131d   :  { %v1022_v0 = vmul.f32 %v11294_v4, %v1020_v63  ;;  %v1047_v1 = vpop.permute.xlu0 %1046 }
0x131e   :  { %v12041_v11 = vmul.f32 %v11296_v6, %v1047_v1 }
0x131f   :  { %1051 = vrot.lane.b32.xlu0 %v1022_v0, %s11616_s29 }
0x1320   :  { %v1060_v13 = vrot.slane %v12041_v11, 6 }
0x1322   :  { %1061 = vrot.lane.b32.xlu1 %v1060_v13, %s11615_s0 }
0x1391   :  { %v12046_v17 = vpop.permute.xlu0 %1051 }
0x1394   :  { %v1062_v18 = vpop.permute.xlu1 %1061 }
0x1395   :  { %v1064_v10 = vsel %vm323_vm2, %v12046_v17, %v1062_v18 }
0x1396   :  { %v1065_v19 = vpack.c.bf16 %v1064_v10, %v1064_v10 }
0x1398   :  { %v1067_v20 = vrot.slane %v1065_v19, 2 }
0x139a   :  { %9256 = vmatmul.mubr.msk.bf16.vlgmr.msra.gmra.mrb[20].mxu0 %vm209_vm3, %v1067_v20 }
0x139b   :  { %1370 = vmatprep.mubr.bf16.mxu0 %v11613_v2 }
0x146d   :  { %v1105_v28 = vpop.f32.mrb[20].mxu0 }
0x146e   :  { %v1113_v32 = vrot.slane %v1105_v28, 2  ;;  %v1107_v23 = vpop.f32.mrb[21].mxu0 }
0x146f   :  { %v1116_v26 = vadd.f32 %v1107_v23, %v11801_v22  ;;  %v1109_v27 = vpop.f32.mrb[22].mxu0 }
0x1470   :  { %v1115_v29 = vadd.f32 %v1113_v32, %v11803_v24  ;;  %v1110_v30 = vpop.f32.mrb[23].mxu0 }
0x1471   :  { %11301 = vtanh.f32 %v1116_v26  ;;  %v9258_v34 = vmul.f32 -1.442695, %v1116_v26 }
0x1472   :  { %11303 = vtanh.f32 %v1115_v29  ;;  %v9257_v36 = vmul.f32 -1.442695, %v1115_v29 }
0x1473   :  { %11305 = vpow2.f32 %v9258_v34 }
0x1474   :  { %11307 = vpow2.f32 %v9257_v36 }
0x147b   :  { %v11302_v31 = vpop.eup %11301 }
0x147c   :  { %v11304_v33 = vpop.eup %11303  ;;  %1156 = vrot.lane.b32.xlu1 %v11302_v31, %s11615_s0 }
0x147d   :  { %1129 = vrot.lane.b32.xlu0 %v11304_v33, %s11615_s0  ;;  %v11306_v35 = vpop.eup %11305  ;;  %v1192_v33 = vld [vmem:[%s14721_s7] sm:$0x3] }
0x147e   :  { %v11308_v38 = vpop.eup %11307  ;;  %v1147_v40 = vadd.f32 1.0, %v11306_v35  ;;  %v1197_v34 = vrot.slane %v1192_v33, %v11791_v15  ;;  %v1201_v36 = vrot.slane %v1192_v33, %v11794_v16 }
0x147f   :  { %v1120_v22 = vadd.f32 1.0, %v11308_v38 }
0x1480   :  { %11309 = vrcp.f32 %v1147_v40 }
0x1481   :  { %11311 = vrcp.f32 %v1120_v22 }
0x148a   :  { %v12056_v24 = vpop.eup %11309 }
0x148b   :  { %v12058_v43 = vpop.eup %11311  ;;  %v1154_v3 = vmul.f32 %v12056_v24, %v1152_v46 }
0x148c   :  { %v1127_v4 = vmul.f32 %v12058_v43, %v1125_v48 }
0x14ee   :  { %v1157_v42 = vpop.permute.xlu1 %1156 }
0x14ef   :  { %v1159_v44 = vmul.f32 %v12056_v24, %v1157_v42  ;;  %v1130_v45 = vpop.permute.xlu0 %1129 }
0x14f0   :  { %v1132_v47 = vmul.f32 %v12058_v43, %v1130_v45 }
0x14f1   :  { %1161 = vrot.lane.b32.xlu1 %v1159_v44, %s11616_s29 }
0x14f2   :  { %1134 = vrot.lane.b32.xlu0 %v1132_v47, %s11616_s29 }
0x1563   :  { %v1162_v49 = vpop.permute.xlu1 %1161 }
0x1564   :  { %v1164_v5 = vadd.f32 %v1162_v49, %v1154_v3  ;;  %v1135_v6 = vpop.permute.xlu0 %1134 }
0x1565   :  { %v1137_v7 = vadd.f32 %v1135_v6, %v1127_v4 }
0x1566   :  { %11313 = vtanh.f32 %v1164_v5 }
0x1567   :  { %11315 = vtanh.f32 %v1137_v7 }
0x1570   :  { %v11314_v8 = vpop.eup %11313 }
0x1571   :  { %v11316_v9 = vpop.eup %11315  ;;  %1167 = vrot.lane.b32.xlu1 %v11314_v8, %s11615_s0 }
0x1572   :  { %1140 = vrot.lane.b32.xlu0 %v11316_v9, %s11615_s0 }
0x1575   :  { %439 = vrot.lane.b32.xlu1 %v11896_v54, %s11615_s0  ;;  %v12086_v54 = vld [vmem:[%s14719_s26] ss:$8 sps:$4 sm:$0xff]  }
0x1576   :  { %314 = vrot.lane.b32.xlu0 %v11823_v58, %s11615_s0  ;;  %1339 = vmatpush1.bf16.msra.mxu0 %v12086_v54  ;;  %v10853_v58 = vld [vmem:[%s14720_s27 + $0x10] ss:$8 sps:$4 sm:$0xff]  }
0x1577   :  { %1340 = vmatprep.subr.bf16.mxu0 %v12091_v55  ;;  %1250 = vmatpush1.bf16.msra.mxu1 %v10853_v58 }
0x1578   :  { %1251 = vmatprep.subr.bf16.mxu1 %v10861_v59 }
0x1579   :  { %688 = vrot.lane.b32.xlu1 %v11962_v41, %s11615_s0  ;;  %v12121_v41 = vld [vmem:[%s14719_s26 + $0x24] ss:$8 sps:$4 sm:$0xff]  }
0x157a   :  { %565 = vrot.lane.b32.xlu0 %v11929_v50, %s11615_s0  ;;  %1341 = vmatpush1.bf16.msra.mxu0 %v12104_v57  ;;  %v10859_v50 = vld [vmem:[%s14720_s27 + $0x20] ss:$8 sps:$4 sm:$0xff]  }
0x157b   :  { %1342 = vmatprep.subr.bf16.mxu0 %v12121_v41  ;;  %1252 = vmatpush1.bf16.msra.mxu1 %v10859_v50 }
0x157c   :  { %1253 = vmatprep.subr.bf16.mxu1 %v10867_v60 }
0x157d   :  { %932 = vrot.lane.b32.xlu1 %v12022_v21, %s11615_s0  ;;  %v12138_v21 = vld [vmem:[%s14719_s26 + $0x34] ss:$8 sps:$4 sm:$0xff]  }
0x157e   :  { %810 = vrot.lane.b32.xlu0 %v11995_v37, %s11615_s0  ;;  %v12132_v37 = vld [vmem:[%s14719_s26 + $0x20] ss:$8 sps:$4 sm:$0xff]  }
0x157f   :  { %1343 = vmatpush1.bf16.msra.mxu0 %v12132_v37  ;;  %1254 = vmatpush1.bf16.msra.mxu1 %v10865_v62 }
0x1580   :  { %1344 = vmatprep.subr.bf16.mxu0 %v12138_v21  ;;  %1451 = vmatprep.subr.bf16.mxu1 %v12073_v52 }
0x1582   :  { %1056 = vrot.lane.b32.xlu0 %v12041_v11, %s11615_s0 }
0x1583   :  { %1345 = vmatpush1.bf16.msra.mxu0 %v12147_v61 }
0x1584   :  { %1575 = vmatprep.subr.bf16.mxu0 %v12073_v52 }
0x1586   :  { %1371 = vmatmul.mubr.bf16.vlgmr.msra.gmra.mrb[24].mxu0 %v11614_v12 }
0x1587   :  { %1576 = vmatpush1.bf16.msra.mxu0 %v12086_v54  ;;  %1607 = vmatprep.mubr.bf16.mxu0 %v11613_v2 }
0x1588   :  { %1577 = vmatprep.subr.bf16.mxu0 %v12091_v55 }
0x158b   :  { %1578 = vmatpush1.bf16.msra.mxu0 %v12104_v57 }
0x158c   :  { %1579 = vmatprep.subr.bf16.mxu0 %v12121_v41 }
0x158f   :  { %1580 = vmatpush1.bf16.msra.mxu0 %v12132_v37 }
0x1590   :  { %1581 = vmatprep.subr.bf16.mxu0 %v12138_v21 }
0x1593   :  { %1582 = vmatpush1.bf16.msra.mxu0 %v12147_v61 }
0x1594   :  { %1820 = vmatprep.subr.bf16.mxu0 %v12073_v52 }
0x15e3   :  { %v1168_v63 = vpop.permute.xlu1 %1167 }
0x15e4   :  { %v1170_v0 = vmul.f32 %v12056_v24, %v1168_v63  ;;  %v1141_v1 = vpop.permute.xlu0 %1140 }
0x15e5   :  { %v1143_v11 = vmul.f32 %v12058_v43, %v1141_v1 }
0x15e6   :  { %1177 = vrot.lane.b32.xlu0 %v1170_v0, %s11615_s0 }
0x15e7   :  { %1172 = vrot.lane.b32.xlu1 %v1143_v11, %s11616_s29  ;;  %v440_v13 = vpop.permute.xlu1 %439 }
0x15e8   :  { %443 = vst.msk [vmem:[#allocation2 + $0x8] sm:$0x30] %vm442_vm7, %v440_v13  ;;  %v315_v18 = vpop.permute.xlu0 %314 }
0x15e9   :  { %1054 = vst.msk [vmem:[#allocation2 + $0x8] sm:$0x30] %vm562_vm5, %v12046_v17 }
0x15ea   :  { %318 = vst.msk [vmem:[#allocation2 + $0x8] sm:$0xc0] %vm317_vm8, %v315_v18 }
0x15eb   :  { %v689_v10 = vpop.permute.xlu1 %688 }
0x15ec   :  { %692 = vst.msk [vmem:[#allocation2 + $0x8] sm:$0x3] %vm691_vm9, %v689_v10  ;;  %v566_v19 = vpop.permute.xlu0 %565 }
0x15ed   :  { %808 = vst.msk [vmem:[#allocation2 + $0x8] sm:$0x3] %vm311_vm1, %v11999_v39 }
0x15ee   :  { %569 = vst.msk [vmem:[#allocation2 + $0x8] sm:$0xc] %vm568_vm10, %v566_v19 }
0x15ef   :  { %930 = vst.msk [vmem:[#allocation2 + $0x8] sm:$0xc] %vm436_vm4, %v12027_v25  ;;  %v933_v17 = vpop.permute.xlu1 %932 }
0x15f0   :  { %935 = vst.msk [vmem:[#allocation2] sm:$0x30] %vm442_vm7, %v933_v17  ;;  %v811_v20 = vpop.permute.xlu0 %810 }
0x15f1   :  { %813 = vst.msk [vmem:[#allocation2] sm:$0xc0] %vm317_vm8, %v811_v20 }
0x15f4   :  { %v1057_v28 = vpop.permute.xlu0 %1056 }
0x15f5   :  { %1059 = vst.msk [vmem:[#allocation2] sm:$0xc] %vm568_vm10, %v1057_v28 }
0x1658   :  { %v1178_v39 = vpop.permute.xlu0 %1177 }
0x1659   :  { %1180 = vst.msk [vmem:[#allocation2] sm:$0x3] %vm691_vm9, %v1178_v39  ;;  %v1173_v32 = vpop.permute.xlu1 %1172  ;;  %v1372_v27 = vpop.f32.mrb[24].mxu0 }
0x165a   :  { %1175 = vst.msk [vmem:[#allocation2 + $0x8] sm:$0xc0] %vm685_vm6, %v1173_v32  ;;  %v1374_v29 = vpop.f32.mrb[25].mxu0 }
0x165b   :  { %v1376_v30 = vpop.f32.mrb[26].mxu0  ;;  %v1381_v22 = vrot.slane %v1374_v29, 2 }
0x165c   :  { %v1377_v31 = vpop.f32.mrb[27].mxu0 }
0x1660   :  { %v1181_v25 = vld [vmem:[#allocation2] sm:$0xff] }
0x1661   :  { %v1182_v23 = vld [vmem:[#allocation2 + $0x8] sm:$0xff] }
0x1662   :  { %v1183_v26 = vpack.c.bf16 %v1182_v23, %v1181_v25 }
0x1664   :  { %9267 = vmatmul.mubr.msk.bf16.vlgmr.msra.gmra.mrb[12].mxu1 %vm209_vm3, %v1183_v26 }
0x1665   :  { %1452 = vmatpush1.bf16.msra.mxu1 %v12086_v54  ;;  %1483 = vmatprep.mubr.bf16.mxu1 %v11613_v2 }
0x1666   :  { %1453 = vmatprep.subr.bf16.mxu1 %v12091_v55 }
0x1669   :  { %1454 = vmatpush1.bf16.msra.mxu1 %v12104_v57 }
0x166a   :  { %1455 = vmatprep.subr.bf16.mxu1 %v12121_v41 }
0x166d   :  { %1456 = vmatpush1.bf16.msra.mxu1 %v12132_v37 }
0x166e   :  { %1457 = vmatprep.subr.bf16.mxu1 %v12138_v21 }
0x1671   :  { %1458 = vmatpush1.bf16.msra.mxu1 %v12147_v61 }
0x1672   :  { %1699 = vmatprep.subr.bf16.mxu1 %v12073_v52 }
0x1737   :  { %v1281_v35 = vpop.f32.mrb[12].mxu1 }
0x1738   :  { %v12200_v38 = vadd.f32 %v1281_v35, %v1197_v34  ;;  %v1283_v40 = vpop.f32.mrb[13].mxu1 }
0x1739   :  { %v12202_v24 = vadd.f32 %v1283_v40, %v1201_v36  ;;  %v1285_v42 = vpop.f32.mrb[14].mxu1 }
0x173a   :  { %v1379_v43 = vadd.f32 %v1372_v27, %v12200_v38  ;;  %v12205_v44 = vadd.f32 %v1285_v42, %v1197_v34  ;;  %v1287_v45 = vpop.f32.mrb[15].mxu1 }
0x173b   :  { %v12207_v47 = vadd.f32 %v1287_v45, %v1201_v36 }
0x173c   :  { %11317 = vtanh.f32 %v1379_v43  ;;  %v9276_v49 = vmul.f32 -1.442695, %v1379_v43 }
0x173d   :  { %v1383_v46 = vadd.f32 %v1381_v22, %v12207_v47 }
0x173f   :  { %11319 = vtanh.f32 %v1383_v46  ;;  %v9277_v4 = vmul.f32 -1.442695, %v1383_v46 }
0x1740   :  { %11321 = vpow2.f32 %v9276_v49 }
0x1741   :  { %11323 = vpow2.f32 %v9277_v4 }
0x1746   :  { %v11318_v48 = vpop.eup %11317 }
0x1747   :  { %1393 = vrot.lane.b32.xlu0 %v11318_v48, %s11615_s0 }
0x1749   :  { %v11320_v3 = vpop.eup %11319 }
0x174a   :  { %1417 = vrot.lane.b32.xlu1 %v11320_v3, %s11615_s0  ;;  %v11322_v5 = vpop.eup %11321 }
0x174b   :  { %v11324_v6 = vpop.eup %11323  ;;  %v1387_v7 = vadd.f32 1.0, %v11322_v5 }
0x174c   :  { %v1411_v8 = vadd.f32 1.0, %v11324_v6 }
0x174d   :  { %11325 = vrcp.f32 %v1387_v7 }
0x174e   :  { %11327 = vrcp.f32 %v1411_v8 }
0x1757   :  { %v11326_v9 = vpop.eup %11325 }
0x1758   :  { %v11328_v56 = vpop.eup %11327  ;;  %v1391_v59 = vmul.f32 0.0, %v11326_v9 }
0x1759   :  { %v1415_v63 = vmul.f32 0.0, %v11328_v56 }
0x17b9   :  { %v1394_v51 = vpop.permute.xlu0 %1393 }
0x17ba   :  { %v1396_v53 = vmul.f32 %v11326_v9, %v1394_v51 }
0x17bc   :  { %1398 = vrot.lane.b32.xlu0 %v1396_v53, %s11616_s29  ;;  %v1418_v58 = vpop.permute.xlu1 %1417 }
0x17bd   :  { %v1420_v50 = vmul.f32 %v11328_v56, %v1418_v58 }
0x17bf   :  { %1422 = vrot.lane.b32.xlu1 %v1420_v50, %s11616_s29 }
0x182e   :  { %v1399_v60 = vpop.permute.xlu0 %1398 }
0x182f   :  { %v12214_v62 = vadd.f32 %v1399_v60, %v1391_v59 }
0x1831   :  { %11329 = vtanh.f32 %v12214_v62  ;;  %v1423_v0 = vpop.permute.xlu1 %1422  ;;  %v1508_v7 = vrot.slane %v12214_v62, 6 }
0x1832   :  { %v12217_v1 = vadd.f32 %v1423_v0, %v1415_v63 }
0x1834   :  { %11331 = vtanh.f32 %v12217_v1  ;;  %v1535_v8 = vrot.slane %v12217_v1, 2 }
0x183b   :  { %v11330_v11 = vpop.eup %11329 }
0x183c   :  { %1404 = vrot.lane.b32.xlu0 %v11330_v11, %s11615_s0 }
0x183e   :  { %v11332_v13 = vpop.eup %11331 }
0x183f   :  { %1428 = vrot.lane.b32.xlu1 %v11332_v13, %s11615_s0 }
0x18ae   :  { %v1405_v18 = vpop.permute.xlu0 %1404 }
0x18af   :  { %v1407_v10 = vmul.f32 %v11326_v9, %v1405_v18 }
0x18b1   :  { %1433 = vrot.lane.b32.xlu1 %v1407_v10, %s11616_s29  ;;  %v1429_v19 = vpop.permute.xlu1 %1428 }
0x18b2   :  { %v12223_v17 = vmul.f32 %v11328_v56, %v1429_v19 }
0x18b4   :  { %v1442_v20 = vrot.slane %v12223_v17, 6 }
0x18b6   :  { %1443 = vrot.lane.b32.xlu0 %v1442_v20, %s11615_s0 }
0x1923   :  { %v1434_v28 = vpop.permute.xlu1 %1433 }
0x1924   :  { %1436 = vst.msk [vmem:[#allocation3] sm:$0x3] %vm311_vm1, %v1434_v28 }
0x1928   :  { %v1444_v39 = vpop.permute.xlu0 %1443 }
0x1929   :  { %v1446_v32 = vsel %vm323_vm2, %v1434_v28, %v1444_v39 }
0x192a   :  { %v1447_v25 = vpack.c.bf16 %v1446_v32, %v1446_v32 }
0x192c   :  { %9278 = vmatmul.mubr.msk.bf16.vlgmr.msra.gmra.mrb[16].mxu1 %vm209_vm3, %v1447_v25 }
0x192d   :  { %1700 = vmatpush1.bf16.msra.mxu1 %v12086_v54  ;;  %1731 = vmatprep.mubr.bf16.mxu1 %v11613_v2 }
0x192e   :  { %1701 = vmatprep.subr.bf16.mxu1 %v12091_v55 }
0x1931   :  { %1702 = vmatpush1.bf16.msra.mxu1 %v12104_v57 }
0x1932   :  { %1703 = vmatprep.subr.bf16.mxu1 %v12121_v41 }
0x1935   :  { %1704 = vmatpush1.bf16.msra.mxu1 %v12132_v37 }
0x1936   :  { %1705 = vmatprep.subr.bf16.mxu1 %v12138_v21 }
0x1939   :  { %1706 = vmatpush1.bf16.msra.mxu1 %v12147_v61 }
0x193a   :  { %1939 = vmatprep.subr.bf16.mxu1 %v12073_v52 }
0x19ff   :  { %v1485_v23 = vpop.f32.mrb[16].mxu1 }
0x1a00   :  { %v1493_v26 = vrot.slane %v1485_v23, 6  ;;  %v1487_v27 = vpop.f32.mrb[17].mxu1 }
0x1a01   :  { %v1497_v29 = vrot.slane %v1487_v27, 4  ;;  %v1489_v30 = vpop.f32.mrb[18].mxu1 }
0x1a02   :  { %v1495_v31 = vadd.f32 %v1493_v26, %v12200_v38  ;;  %v1490_v33 = vpop.f32.mrb[19].mxu1 }
0x1a03   :  { %v1499_v34 = vadd.f32 %v1497_v29, %v12207_v47 }
0x1a04   :  { %11333 = vtanh.f32 %v1495_v31  ;;  %v9279_v40 = vmul.f32 -1.442695, %v1495_v31 }
0x1a05   :  { %11335 = vtanh.f32 %v1499_v34  ;;  %v9280_v22 = vmul.f32 -1.442695, %v1499_v34 }
0x1a06   :  { %11337 = vpow2.f32 %v9279_v40 }
0x1a07   :  { %11339 = vpow2.f32 %v9280_v22 }
0x1a0e   :  { %v11334_v36 = vpop.eup %11333 }
0x1a0f   :  { %v11336_v35 = vpop.eup %11335  ;;  %1512 = vrot.lane.b32.xlu0 %v11334_v36, %s11615_s0 }
0x1a10   :  { %1539 = vrot.lane.b32.xlu1 %v11336_v35, %s11615_s0  ;;  %v11338_v42 = vpop.eup %11337 }
0x1a11   :  { %v11340_v43 = vpop.eup %11339  ;;  %v1503_v45 = vadd.f32 1.0, %v11338_v42 }
0x1a12   :  { %v1530_v46 = vadd.f32 1.0, %v11340_v43 }
0x1a13   :  { %11341 = vrcp.f32 %v1503_v45 }
0x1a14   :  { %11343 = vrcp.f32 %v1530_v46 }
0x1a1d   :  { %v11342_v48 = vpop.eup %11341 }
0x1a1e   :  { %v11344_v49 = vpop.eup %11343  ;;  %v1510_v9 = vmul.f32 %v11342_v48, %v1508_v7 }
0x1a1f   :  { %v1537_v53 = vmul.f32 %v11344_v49, %v1535_v8 }
0x1a81   :  { %v1513_v3 = vpop.permute.xlu0 %1512 }
0x1a82   :  { %v1515_v4 = vmul.f32 %v11342_v48, %v1513_v3  ;;  %v1540_v5 = vpop.permute.xlu1 %1539 }
0x1a83   :  { %v1542_v6 = vmul.f32 %v11344_v49, %v1540_v5 }
0x1a84   :  { %1517 = vrot.lane.b32.xlu0 %v1515_v4, %s11616_s29 }
0x1a85   :  { %1544 = vrot.lane.b32.xlu1 %v1542_v6, %s11616_s29 }
0x1af6   :  { %v1518_v51 = vpop.permute.xlu0 %1517 }
0x1af7   :  { %v12247_v56 = vadd.f32 %v1518_v51, %v1510_v9  ;;  %v1545_v58 = vpop.permute.xlu1 %1544 }
0x1af8   :  { %v12249_v50 = vadd.f32 %v1545_v58, %v1537_v53 }
0x1af9   :  { %11345 = vtanh.f32 %v12247_v56 }
0x1afa   :  { %11347 = vtanh.f32 %v12249_v50  ;;  %v1659_v4 = vrot.slane %v12249_v50, 2 }
0x1b03   :  { %v11346_v59 = vpop.eup %11345 }
0x1b04   :  { %v11348_v60 = vpop.eup %11347  ;;  %1523 = vrot.lane.b32.xlu0 %v11346_v59, %s11615_s0 }
0x1b05   :  { %1550 = vrot.lane.b32.xlu1 %v11348_v60, %s11615_s0 }
0x1b76   :  { %v1524_v62 = vpop.permute.xlu0 %1523 }
0x1b77   :  { %v1526_v63 = vmul.f32 %v11342_v48, %v1524_v62  ;;  %v1551_v0 = vpop.permute.xlu1 %1550 }
0x1b78   :  { %v12255_v1 = vmul.f32 %v11344_v49, %v1551_v0  ;;  %v1632_v49 = vrot.slane %v12247_v56, 6 }
0x1b79   :  { %1555 = vrot.lane.b32.xlu1 %v1526_v63, %s11616_s29 }
0x1b7a   :  { %v1564_v11 = vrot.slane %v12255_v1, 2 }
0x1b7c   :  { %1565 = vrot.lane.b32.xlu0 %v1564_v11, %s11615_s0 }
0x1beb   :  { %v1556_v13 = vpop.permute.xlu1 %1555 }
0x1bec   :  { %1558 = vst.msk [vmem:[#allocation3] sm:$0xc] %vm436_vm4, %v1556_v13 }
0x1bee   :  { %v1566_v18 = vpop.permute.xlu0 %1565 }
0x1bef   :  { %v1568_v10 = vsel %vm323_vm2, %v1556_v13, %v1566_v18 }
0x1bf0   :  { %v1569_v19 = vpack.c.bf16 %v1568_v10, %v1568_v10 }
0x1bf2   :  { %v1571_v20 = vrot.slane %v1569_v19, 1 }
0x1bf4   :  { %9281 = vmatmul.mubr.msk.bf16.vlgmr.msra.gmra.mrb[28].mxu0 %vm209_vm3, %v1571_v20 }
0x1bf5   :  { %1821 = vmatpush1.bf16.msra.mxu0 %v12086_v54  ;;  %1852 = vmatprep.mubr.bf16.mxu0 %v11613_v2 }
0x1bf6   :  { %1822 = vmatprep.subr.bf16.mxu0 %v12091_v55 }
0x1bf9   :  { %1823 = vmatpush1.bf16.msra.mxu0 %v12104_v57 }
0x1bfa   :  { %1824 = vmatprep.subr.bf16.mxu0 %v12121_v41 }
0x1bfd   :  { %1825 = vmatpush1.bf16.msra.mxu0 %v12132_v37 }
0x1bfe   :  { %1826 = vmatprep.subr.bf16.mxu0 %v12138_v21 }
0x1c01   :  { %1827 = vmatpush1.bf16.msra.mxu0 %v12147_v61 }
0x1c02   :  { %2063 = vmatprep.subr.bf16.mxu0 %v12073_v52 }
0x1cc7   :  { %v1609_v28 = vpop.f32.mrb[28].mxu0 }
0x1cc8   :  { %v1617_v39 = vrot.slane %v1609_v28, 4  ;;  %v1611_v32 = vpop.f32.mrb[29].mxu0 }
0x1cc9   :  { %v1621_v25 = vrot.slane %v1611_v32, 6  ;;  %v1613_v23 = vpop.f32.mrb[30].mxu0 }
0x1cca   :  { %v1619_v26 = vadd.f32 %v1617_v39, %v12200_v38  ;;  %v1614_v27 = vpop.f32.mrb[31].mxu0 }
0x1ccb   :  { %v1623_v29 = vadd.f32 %v1621_v25, %v12207_v47 }
0x1ccc   :  { %11349 = vtanh.f32 %v1619_v26  ;;  %v9282_v33 = vmul.f32 -1.442695, %v1619_v26 }
0x1ccd   :  { %11351 = vtanh.f32 %v1623_v29  ;;  %v9283_v34 = vmul.f32 -1.442695, %v1623_v29 }
0x1cce   :  { %11353 = vpow2.f32 %v9282_v33 }
0x1ccf   :  { %11355 = vpow2.f32 %v9283_v34 }
0x1cd6   :  { %v11350_v30 = vpop.eup %11349 }
0x1cd7   :  { %v11352_v31 = vpop.eup %11351  ;;  %1636 = vrot.lane.b32.xlu0 %v11350_v30, %s11615_s0 }
0x1cd8   :  { %1663 = vrot.lane.b32.xlu1 %v11352_v31, %s11615_s0  ;;  %v11354_v36 = vpop.eup %11353 }
0x1cd9   :  { %v11356_v35 = vpop.eup %11355  ;;  %v1627_v40 = vadd.f32 1.0, %v11354_v36 }
0x1cda   :  { %v1654_v22 = vadd.f32 1.0, %v11356_v35 }
0x1cdb   :  { %11357 = vrcp.f32 %v1627_v40 }
0x1cdc   :  { %11359 = vrcp.f32 %v1654_v22 }
0x1ce5   :  { %v11358_v42 = vpop.eup %11357 }
0x1ce6   :  { %v11360_v45 = vpop.eup %11359  ;;  %v1634_v5 = vmul.f32 %v11358_v42, %v1632_v49 }
0x1ce7   :  { %v1661_v7 = vmul.f32 %v11360_v45, %v1659_v4 }
0x1d49   :  { %v1637_v43 = vpop.permute.xlu0 %1636 }
0x1d4a   :  { %v1639_v46 = vmul.f32 %v11358_v42, %v1637_v43  ;;  %v1664_v48 = vpop.permute.xlu1 %1663 }
0x1d4b   :  { %v1666_v3 = vmul.f32 %v11360_v45, %v1664_v48 }
0x1d4c   :  { %1641 = vrot.lane.b32.xlu0 %v1639_v46, %s11616_s29 }
0x1d4d   :  { %1668 = vrot.lane.b32.xlu1 %v1666_v3, %s11616_s29 }
0x1dbe   :  { %v1642_v6 = vpop.permute.xlu0 %1641 }
0x1dbf   :  { %v12280_v8 = vadd.f32 %v1642_v6, %v1634_v5  ;;  %v1669_v9 = vpop.permute.xlu1 %1668 }
0x1dc0   :  { %v12282_v51 = vadd.f32 %v1669_v9, %v1661_v7 }
0x1dc1   :  { %11361 = vtanh.f32 %v12280_v8 }
0x1dc2   :  { %11363 = vtanh.f32 %v12282_v51  ;;  %v1780_v22 = vrot.slane %v12282_v51, 2 }
0x1dcb   :  { %v11362_v53 = vpop.eup %11361 }
0x1dcc   :  { %v11364_v58 = vpop.eup %11363  ;;  %1647 = vrot.lane.b32.xlu0 %v11362_v53, %s11615_s0 }
0x1dcd   :  { %1674 = vrot.lane.b32.xlu1 %v11364_v58, %s11615_s0 }
0x1e3e   :  { %v1648_v56 = vpop.permute.xlu0 %1647 }
0x1e3f   :  { %v1650_v50 = vmul.f32 %v11358_v42, %v1648_v56  ;;  %v1675_v59 = vpop.permute.xlu1 %1674  ;;  %v1753_v42 = vrot.slane %v12280_v8, 6 }
0x1e40   :  { %v12288_v60 = vmul.f32 %v11360_v45, %v1675_v59 }
0x1e41   :  { %1679 = vrot.lane.b32.xlu1 %v1650_v50, %s11616_s29 }
0x1e42   :  { %v1688_v62 = vrot.slane %v12288_v60, 6 }
0x1e44   :  { %1689 = vrot.lane.b32.xlu0 %v1688_v62, %s11615_s0 }
0x1eb3   :  { %v1680_v63 = vpop.permute.xlu1 %1679 }
0x1eb4   :  { %1682 = vst.msk [vmem:[#allocation3] sm:$0x30] %vm562_vm5, %v1680_v63 }
0x1eb6   :  { %v1690_v0 = vpop.permute.xlu0 %1689 }
0x1eb7   :  { %v1692_v11 = vsel %vm323_vm2, %v1680_v63, %v1690_v0 }
0x1eb8   :  { %v1693_v13 = vpack.c.bf16 %v1692_v11, %v1692_v11 }
0x1eba   :  { %v1695_v18 = vrot.slane %v1693_v13, 2 }
0x1ebc   :  { %9284 = vmatmul.mubr.msk.bf16.vlgmr.msra.gmra.mrb[20].mxu1 %vm209_vm3, %v1695_v18 }
0x1ebd   :  { %1940 = vmatpush1.bf16.msra.mxu1 %v12086_v54  ;;  %1971 = vmatprep.mubr.bf16.mxu1 %v11613_v2 }
0x1ebe   :  { %1941 = vmatprep.subr.bf16.mxu1 %v12091_v55 }
0x1ec1   :  { %1942 = vmatpush1.bf16.msra.mxu1 %v12104_v57 }
0x1ec2   :  { %1943 = vmatprep.subr.bf16.mxu1 %v12121_v41 }
0x1ec5   :  { %1944 = vmatpush1.bf16.msra.mxu1 %v12132_v37 }
0x1ec6   :  { %1945 = vmatprep.subr.bf16.mxu1 %v12138_v21 }
0x1ec9   :  { %1946 = vmatpush1.bf16.msra.mxu1 %v12147_v61 }
0x1eca   :  { %2187 = vmatprep.subr.bf16.mxu1 %v12073_v52 }
0x1f8f   :  { %v1733_v10 = vpop.f32.mrb[20].mxu1 }
0x1f90   :  { %v1741_v19 = vrot.slane %v1733_v10, 2  ;;  %v1735_v20 = vpop.f32.mrb[21].mxu1 }
0x1f91   :  { %v1744_v28 = vadd.f32 %v1735_v20, %v12207_v47  ;;  %v1737_v39 = vpop.f32.mrb[22].mxu1 }
0x1f92   :  { %v1743_v32 = vadd.f32 %v1741_v19, %v12200_v38  ;;  %v1738_v25 = vpop.f32.mrb[23].mxu1 }
0x1f93   :  { %11365 = vtanh.f32 %v1744_v28  ;;  %v9286_v27 = vmul.f32 -1.442695, %v1744_v28 }
0x1f94   :  { %11367 = vtanh.f32 %v1743_v32  ;;  %v9285_v29 = vmul.f32 -1.442695, %v1743_v32 }
0x1f95   :  { %11369 = vpow2.f32 %v9286_v27 }
0x1f96   :  { %11371 = vpow2.f32 %v9285_v29 }
0x1f9d   :  { %v11366_v23 = vpop.eup %11365 }
0x1f9e   :  { %v11368_v26 = vpop.eup %11367  ;;  %1784 = vrot.lane.b32.xlu1 %v11366_v23, %s11615_s0 }
0x1f9f   :  { %1757 = vrot.lane.b32.xlu0 %v11368_v26, %s11615_s0  ;;  %v11370_v52 = vpop.eup %11369 }
0x1fa0   :  { %v11372_v30 = vpop.eup %11371  ;;  %v1775_v31 = vadd.f32 1.0, %v11370_v52 }
0x1fa1   :  { %v1748_v47 = vadd.f32 1.0, %v11372_v30 }
0x1fa2   :  { %11373 = vrcp.f32 %v1775_v31 }
0x1fa3   :  { %11375 = vrcp.f32 %v1748_v47 }
0x1fac   :  { %v11374_v38 = vpop.eup %11373 }
0x1fad   :  { %v11376_v34 = vpop.eup %11375  ;;  %v1782_v43 = vmul.f32 %v11374_v38, %v1780_v22 }
0x1fae   :  { %v1755_v46 = vmul.f32 %v11376_v34, %v1753_v42 }
0x2010   :  { %v1785_v33 = vpop.permute.xlu1 %1784 }
0x2011   :  { %v1787_v36 = vmul.f32 %v11374_v38, %v1785_v33  ;;  %v1758_v35 = vpop.permute.xlu0 %1757 }
0x2012   :  { %v1760_v40 = vmul.f32 %v11376_v34, %v1758_v35 }
0x2013   :  { %1789 = vrot.lane.b32.xlu1 %v1787_v36, %s11616_s29 }
0x2014   :  { %1762 = vrot.lane.b32.xlu0 %v1760_v40, %s11616_s29 }
0x2085   :  { %v1790_v45 = vpop.permute.xlu1 %1789 }
0x2086   :  { %v12313_v48 = vadd.f32 %v1790_v45, %v1782_v43  ;;  %v1763_v3 = vpop.permute.xlu0 %1762 }
0x2087   :  { %v1765_v49 = vadd.f32 %v1763_v3, %v1755_v46 }
0x2088   :  { %11377 = vtanh.f32 %v12313_v48 }
0x2089   :  { %11379 = vtanh.f32 %v1765_v49 }
0x2092   :  { %v11378_v4 = vpop.eup %11377 }
0x2093   :  { %v11380_v5 = vpop.eup %11379  ;;  %1795 = vrot.lane.b32.xlu1 %v11378_v4, %s11615_s0 }
0x2094   :  { %1768 = vrot.lane.b32.xlu0 %v11380_v5, %s11615_s0 }
0x2105   :  { %v1796_v6 = vpop.permute.xlu1 %1795 }
0x2106   :  { %v12318_v7 = vmul.f32 %v11374_v38, %v1796_v6  ;;  %v1769_v8 = vpop.permute.xlu0 %1768  ;;  %v1874_v38 = vrot.slane %v1765_v49, 6 }
0x2107   :  { %v1771_v9 = vmul.f32 %v11376_v34, %v1769_v8  ;;  %v1901_v34 = vrot.slane %v12313_v48, 2 }
0x2108   :  { %v1809_v51 = vrot.slane %v12318_v7, 2 }
0x2109   :  { %1800 = vrot.lane.b32.xlu1 %v1771_v9, %s11616_s29 }
0x210a   :  { %1810 = vrot.lane.b32.xlu0 %v1809_v51, %s11615_s0 }
0x217b   :  { %v1801_v53 = vpop.permute.xlu1 %1800 }
0x217c   :  { %1803 = vst.msk [vmem:[#allocation3] sm:$0xc0] %vm685_vm6, %v1801_v53  ;;  %v1811_v58 = vpop.permute.xlu0 %1810 }
0x217d   :  { %v1813_v56 = vsel %vm323_vm2, %v1801_v53, %v1811_v58 }
0x217e   :  { %v1814_v50 = vpack.c.bf16 %v1813_v56, %v1813_v56 }
0x2180   :  { %v1816_v59 = vrot.slane %v1814_v50, 3 }
0x2182   :  { %9287 = vmatmul.mubr.msk.bf16.vlgmr.msra.gmra.mrb[32].mxu0 %vm209_vm3, %v1816_v59 }
0x2183   :  { %2064 = vmatpush1.bf16.msra.mxu0 %v12086_v54  ;;  %2095 = vmatprep.mubr.bf16.mxu0 %v11613_v2 }
0x2184   :  { %2065 = vmatprep.subr.bf16.mxu0 %v12091_v55 }
0x2187   :  { %2066 = vmatpush1.bf16.msra.mxu0 %v12104_v57 }
0x2188   :  { %2067 = vmatprep.subr.bf16.mxu0 %v12121_v41 }
0x218b   :  { %2068 = vmatpush1.bf16.msra.mxu0 %v12132_v37 }
0x218c   :  { %2069 = vmatprep.subr.bf16.mxu0 %v12138_v21 }
0x218f   :  { %2070 = vmatpush1.bf16.msra.mxu0 %v12147_v61 }
0x2255   :  { %v1854_v62 = vpop.f32.mrb[32].mxu0 }
0x2256   :  { %v1861_v63 = vadd.f32 %v1854_v62, %v12205_v44  ;;  %v1856_v0 = vpop.f32.mrb[33].mxu0 }
0x2257   :  { %v1863_v11 = vrot.slane %v1856_v0, 2  ;;  %v1858_v13 = vpop.f32.mrb[34].mxu0 }
0x2258   :  { %11381 = vtanh.f32 %v1861_v63  ;;  %v1859_v18 = vpop.f32.mrb[35].mxu0  ;;  %v9288_v28 = vmul.f32 -1.442695, %v1861_v63 }
0x2259   :  { %v1865_v10 = vadd.f32 %v1863_v11, %v12202_v24 }
0x225b   :  { %11383 = vtanh.f32 %v1865_v10  ;;  %v9289_v39 = vmul.f32 -1.442695, %v1865_v10 }
0x225c   :  { %11385 = vpow2.f32 %v9288_v28 }
0x225d   :  { %11387 = vpow2.f32 %v9289_v39 }
0x2262   :  { %v11382_v19 = vpop.eup %11381 }
0x2263   :  { %1878 = vrot.lane.b32.xlu0 %v11382_v19, %s11615_s0 }
0x2265   :  { %v11384_v20 = vpop.eup %11383 }
0x2266   :  { %1905 = vrot.lane.b32.xlu1 %v11384_v20, %s11615_s0  ;;  %v11386_v32 = vpop.eup %11385 }
0x2267   :  { %v11388_v25 = vpop.eup %11387  ;;  %v1869_v23 = vadd.f32 1.0, %v11386_v32 }
0x2268   :  { %v1896_v26 = vadd.f32 1.0, %v11388_v25 }
0x2269   :  { %11389 = vrcp.f32 %v1869_v23 }
0x226a   :  { %11391 = vrcp.f32 %v1896_v26 }
0x2273   :  { %v11390_v27 = vpop.eup %11389 }
0x2274   :  { %v11392_v30 = vpop.eup %11391  ;;  %v1876_v33 = vmul.f32 %v11390_v27, %v1874_v38 }
0x2275   :  { %v1903_v40 = vmul.f32 %v11392_v30, %v1901_v34 }
0x22d5   :  { %v1879_v29 = vpop.permute.xlu0 %1878 }
0x22d6   :  { %v1881_v52 = vmul.f32 %v11390_v27, %v1879_v29 }
0x22d8   :  { %1883 = vrot.lane.b32.xlu0 %v1881_v52, %s11616_s29  ;;  %v1906_v31 = vpop.permute.xlu1 %1905 }
0x22d9   :  { %v1908_v47 = vmul.f32 %v11392_v30, %v1906_v31 }
0x22db   :  { %1910 = vrot.lane.b32.xlu1 %v1908_v47, %s11616_s29 }
0x234a   :  { %v1884_v36 = vpop.permute.xlu0 %1883 }
0x234b   :  { %v12341_v35 = vadd.f32 %v1884_v36, %v1876_v33 }
0x234d   :  { %11393 = vtanh.f32 %v12341_v35  ;;  %v1911_v22 = vpop.permute.xlu1 %1910  ;;  %v1996_v28 = vrot.slane %v12341_v35, 6 }
0x234e   :  { %v12344_v42 = vadd.f32 %v1911_v22, %v1903_v40 }
0x2350   :  { %11395 = vtanh.f32 %v12344_v42  ;;  %v2023_v39 = vrot.slane %v12344_v42, 2 }
0x2357   :  { %v11394_v43 = vpop.eup %11393 }
0x2358   :  { %1889 = vrot.lane.b32.xlu0 %v11394_v43, %s11615_s0 }
0x235a   :  { %v11396_v45 = vpop.eup %11395 }
0x235b   :  { %1916 = vrot.lane.b32.xlu1 %v11396_v45, %s11615_s0 }
0x23ca   :  { %v1890_v46 = vpop.permute.xlu0 %1889 }
0x23cb   :  { %v1892_v3 = vmul.f32 %v11390_v27, %v1890_v46 }
0x23cd   :  { %1921 = vrot.lane.b32.xlu1 %v1892_v3, %s11616_s29  ;;  %v1917_v48 = vpop.permute.xlu1 %1916 }
0x23ce   :  { %v12350_v49 = vmul.f32 %v11392_v30, %v1917_v48 }
0x23d0   :  { %v1930_v4 = vrot.slane %v12350_v49, 6 }
0x23d2   :  { %1931 = vrot.lane.b32.xlu0 %v1930_v4, %s11615_s0 }
0x243f   :  { %v12354_v5 = vpop.permute.xlu1 %1921 }
0x2444   :  { %v1932_v6 = vpop.permute.xlu0 %1931 }
0x2445   :  { %v1934_v8 = vsel %vm323_vm2, %v12354_v5, %v1932_v6 }
0x2446   :  { %v1935_v9 = vpack.c.bf16 %v1934_v8, %v1934_v8 }
0x2448   :  { %9290 = vmatmul.mubr.msk.bf16.vlgmr.msra.gmra.mrb[24].mxu1 %vm209_vm3, %v1935_v9 }
0x2449   :  { %2188 = vmatpush1.bf16.msra.mxu1 %v12086_v54  ;;  %2219 = vmatprep.mubr.bf16.mxu1 %v11613_v2 }
0x244a   :  { %2189 = vmatprep.subr.bf16.mxu1 %v12091_v55 }
0x244d   :  { %2190 = vmatpush1.bf16.msra.mxu1 %v12104_v57 }
0x244e   :  { %2191 = vmatprep.subr.bf16.mxu1 %v12121_v41 }
0x2451   :  { %2192 = vmatpush1.bf16.msra.mxu1 %v12132_v37 }
0x2452   :  { %2193 = vmatprep.subr.bf16.mxu1 %v12138_v21 }
0x2455   :  { %2194 = vmatpush1.bf16.msra.mxu1 %v12147_v61 }
0x251b   :  { %v1973_v51 = vpop.f32.mrb[24].mxu1 }
0x251c   :  { %v1981_v53 = vrot.slane %v1973_v51, 6  ;;  %v1975_v58 = vpop.f32.mrb[25].mxu1 }
0x251d   :  { %v1985_v56 = vrot.slane %v1975_v58, 4  ;;  %v1977_v50 = vpop.f32.mrb[26].mxu1 }
0x251e   :  { %v1983_v54 = vadd.f32 %v1981_v53, %v12205_v44  ;;  %v1978_v59 = vpop.f32.mrb[27].mxu1 }
0x251f   :  { %v1987_v55 = vadd.f32 %v1985_v56, %v12202_v24 }
0x2520   :  { %11397 = vtanh.f32 %v1983_v54  ;;  %v9291_v37 = vmul.f32 -1.442695, %v1983_v54 }
0x2521   :  { %11399 = vtanh.f32 %v1987_v55  ;;  %v9292_v21 = vmul.f32 -1.442695, %v1987_v55 }
0x2522   :  { %11401 = vpow2.f32 %v9291_v37 }
0x2523   :  { %11403 = vpow2.f32 %v9292_v21 }
0x252a   :  { %v11398_v57 = vpop.eup %11397 }
0x252b   :  { %v11400_v41 = vpop.eup %11399  ;;  %2000 = vrot.lane.b32.xlu0 %v11398_v57, %s11615_s0 }
0x252c   :  { %2027 = vrot.lane.b32.xlu1 %v11400_v41, %s11615_s0  ;;  %v11402_v61 = vpop.eup %11401 }
0x252d   :  { %v11404_v62 = vpop.eup %11403  ;;  %v1991_v63 = vadd.f32 1.0, %v11402_v61 }
0x252e   :  { %v2018_v0 = vadd.f32 1.0, %v11404_v62 }
0x252f   :  { %11405 = vrcp.f32 %v1991_v63 }
0x2530   :  { %11407 = vrcp.f32 %v2018_v0 }
0x2539   :  { %v11406_v11 = vpop.eup %11405 }
0x253a   :  { %v11408_v18 = vpop.eup %11407  ;;  %v1998_v32 = vmul.f32 %v11406_v11, %v1996_v28 }
0x253b   :  { %v2025_v23 = vmul.f32 %v11408_v18, %v2023_v39 }
0x259d   :  { %v2001_v13 = vpop.permute.xlu0 %2000 }
0x259e   :  { %v2003_v10 = vmul.f32 %v11406_v11, %v2001_v13  ;;  %v2028_v19 = vpop.permute.xlu1 %2027 }
0x259f   :  { %v2030_v20 = vmul.f32 %v11408_v18, %v2028_v19 }
0x25a0   :  { %2005 = vrot.lane.b32.xlu0 %v2003_v10, %s11616_s29 }
0x25a1   :  { %2032 = vrot.lane.b32.xlu1 %v2030_v20, %s11616_s29 }
0x2612   :  { %v2006_v25 = vpop.permute.xlu0 %2005 }
0x2613   :  { %v2008_v26 = vadd.f32 %v2006_v25, %v1998_v32  ;;  %v2033_v27 = vpop.permute.xlu1 %2032 }
0x2614   :  { %v2035_v29 = vadd.f32 %v2033_v27, %v2025_v23 }
0x2615   :  { %11409 = vtanh.f32 %v2008_v26  ;;  %v2120_v62 = vrot.slane %v2008_v26, 6 }
0x2616   :  { %11411 = vtanh.f32 %v2035_v29  ;;  %v2147_v63 = vrot.slane %v2035_v29, 2 }
0x261f   :  { %v11410_v52 = vpop.eup %11409 }
0x2620   :  { %v11412_v30 = vpop.eup %11411  ;;  %2011 = vrot.lane.b32.xlu0 %v11410_v52, %s11615_s0 }
0x2621   :  { %2038 = vrot.lane.b32.xlu1 %v11412_v30, %s11615_s0 }
0x2692   :  { %v2012_v31 = vpop.permute.xlu0 %2011 }
0x2693   :  { %v2014_v47 = vmul.f32 %v11406_v11, %v2012_v31  ;;  %v2039_v38 = vpop.permute.xlu1 %2038 }
0x2694   :  { %v12377_v33 = vmul.f32 %v11408_v18, %v2039_v38 }
0x2695   :  { %2043 = vrot.lane.b32.xlu1 %v2014_v47, %s11616_s29 }
0x2696   :  { %v2052_v34 = vrot.slane %v12377_v33, 2 }
0x2698   :  { %2053 = vrot.lane.b32.xlu0 %v2052_v34, %s11615_s0 }
0x2707   :  { %v12382_v36 = vpop.permute.xlu1 %2043 }
0x270a   :  { %v2054_v35 = vpop.permute.xlu0 %2053 }
0x270b   :  { %v2056_v40 = vsel %vm323_vm2, %v12382_v36, %v2054_v35 }
0x270c   :  { %v2057_v22 = vpack.c.bf16 %v2056_v40, %v2056_v40 }
0x270e   :  { %v2059_v42 = vrot.slane %v2057_v22, 1 }
0x2710   :  { %9293 = vmatmul.mubr.msk.bf16.vlgmr.msra.gmra.mrb[36].mxu0 %vm209_vm3, %v2059_v42 }
0x2711   :  { %2395 = vmatprep.mubr.bf16.mxu0 %v11613_v2 }
0x27e3   :  { %v2097_v43 = vpop.f32.mrb[36].mxu0 }
0x27e4   :  { %v2105_v45 = vrot.slane %v2097_v43, 4  ;;  %v2099_v46 = vpop.f32.mrb[37].mxu0 }
0x27e5   :  { %v2109_v3 = vrot.slane %v2099_v46, 6  ;;  %v2101_v48 = vpop.f32.mrb[38].mxu0 }
0x27e6   :  { %v2107_v4 = vadd.f32 %v2105_v45, %v12205_v44  ;;  %v2102_v6 = vpop.f32.mrb[39].mxu0 }
0x27e7   :  { %v2111_v8 = vadd.f32 %v2109_v3, %v12202_v24 }
0x27e8   :  { %11413 = vtanh.f32 %v2107_v4  ;;  %v9294_v53 = vmul.f32 -1.442695, %v2107_v4 }
0x27e9   :  { %11415 = vtanh.f32 %v2111_v8  ;;  %v9295_v58 = vmul.f32 -1.442695, %v2111_v8 }
0x27ea   :  { %11417 = vpow2.f32 %v9294_v53 }
0x27eb   :  { %11419 = vpow2.f32 %v9295_v58 }
0x27f2   :  { %v11414_v9 = vpop.eup %11413 }
0x27f3   :  { %v11416_v51 = vpop.eup %11415  ;;  %2124 = vrot.lane.b32.xlu0 %v11414_v9, %s11615_s0 }
0x27f4   :  { %2151 = vrot.lane.b32.xlu1 %v11416_v51, %s11615_s0  ;;  %v11418_v56 = vpop.eup %11417 }
0x27f5   :  { %v11420_v50 = vpop.eup %11419  ;;  %v2115_v54 = vadd.f32 1.0, %v11418_v56 }
0x27f6   :  { %v2142_v59 = vadd.f32 1.0, %v11420_v50 }
0x27f7   :  { %11421 = vrcp.f32 %v2115_v54 }
0x27f8   :  { %11423 = vrcp.f32 %v2142_v59 }
0x2801   :  { %v11422_v55 = vpop.eup %11421 }
0x2802   :  { %v11424_v41 = vpop.eup %11423  ;;  %v2122_v0 = vmul.f32 %v11422_v55, %v2120_v62  ;;  %v12428_v62 = vld [vmem:[%s14722_s1 + $0x4] ss:$8 sps:$4 sm:$0xff]  }
0x2803   :  { %v2149_v13 = vmul.f32 %v11424_v41, %v2147_v63  ;;  %v10871_v63 = vld [vmem:[%s14723_s9] ss:$8 sps:$4 sm:$0xff]   ;;  %2454 = vmatprep.subr.bf16.mxu1 %v12428_v62 }
0x2865   :  { %v2125_v57 = vpop.permute.xlu0 %2124 }
0x2866   :  { %v2127_v37 = vmul.f32 %v11422_v55, %v2125_v57  ;;  %v2152_v21 = vpop.permute.xlu1 %2151 }
0x2867   :  { %v2154_v61 = vmul.f32 %v11424_v41, %v2152_v21 }
0x2868   :  { %2129 = vrot.lane.b32.xlu0 %v2127_v37, %s11616_s29 }
0x2869   :  { %2156 = vrot.lane.b32.xlu1 %v2154_v61, %s11616_s29 }
0x28da   :  { %v2130_v11 = vpop.permute.xlu0 %2129 }
0x28db   :  { %v2132_v18 = vadd.f32 %v2130_v11, %v2122_v0  ;;  %v2157_v10 = vpop.permute.xlu1 %2156  ;;  %v10873_v0 = vld [vmem:[%s14723_s9 + $0x4] ss:$8 sps:$4 sm:$0xff]   ;;  %v12446_v11 = vld [vmem:[%s14722_s1 + $0x14] ss:$8 sps:$4 sm:$0xff]  }
0x28dc   :  { %v2159_v19 = vadd.f32 %v2157_v10, %v2149_v13  ;;  %2363 = vmatprep.subr.bf16.mxu0 %v10873_v0  ;;  %v10879_v13 = vld [vmem:[%s14723_s9 + $0x14] ss:$8 sps:$4 sm:$0xff]   ;;  %v10885_v10 = vld [vmem:[%s14723_s9 + $0x24] ss:$8 sps:$4 sm:$0xff]  }
0x28dd   :  { %11425 = vtanh.f32 %v2132_v18  ;;  %v2241_v50 = vrot.slane %v2132_v18, 6  ;;  %2364 = vmatpush1.bf16.msra.mxu0 %v10871_v63  ;;  %v12459_v18 = vld [vmem:[%s14722_s1 + $0x10] ss:$8 sps:$4 sm:$0xff]  }
0x28de   :  { %11427 = vtanh.f32 %v2159_v19  ;;  %v2268_v56 = vrot.slane %v2159_v19, 2  ;;  %2365 = vmatprep.subr.bf16.mxu0 %v10879_v13  ;;  %v10891_v19 = vld [vmem:[%s14723_s9 + $0x34] ss:$8 sps:$4 sm:$0xff]  }
0x28e7   :  { %v11426_v20 = vpop.eup %11425 }
0x28e8   :  { %v11428_v28 = vpop.eup %11427  ;;  %2135 = vrot.lane.b32.xlu0 %v11426_v20, %s11615_s0  ;;  %v12502_v20 = vld [vmem:[%s14722_s1 + $0x30] ss:$8 sps:$4 sm:$0xff]  }
0x28e9   :  { %2162 = vrot.lane.b32.xlu1 %v11428_v28, %s11615_s0  ;;  %v10889_v28 = vld [vmem:[%s14723_s9 + $0x30] ss:$8 sps:$4 sm:$0xff]  }
0x295a   :  { %v2136_v39 = vpop.permute.xlu0 %2135 }
0x295b   :  { %v2138_v32 = vmul.f32 %v11422_v55, %v2136_v39  ;;  %v2163_v25 = vpop.permute.xlu1 %2162 }
0x295c   :  { %v12396_v23 = vmul.f32 %v11424_v41, %v2163_v25 }
0x295d   :  { %2167 = vrot.lane.b32.xlu1 %v2138_v32, %s11616_s29 }
0x295e   :  { %v2176_v26 = vrot.slane %v12396_v23, 6 }
0x2960   :  { %2177 = vrot.lane.b32.xlu0 %v2176_v26, %s11615_s0 }
0x29cf   :  { %v12401_v27 = vpop.permute.xlu1 %2167 }
0x29d2   :  { %v2178_v29 = vpop.permute.xlu0 %2177 }
0x29d3   :  { %v2180_v52 = vsel %vm323_vm2, %v12401_v27, %v2178_v29 }
0x29d4   :  { %v2181_v30 = vpack.c.bf16 %v2180_v52, %v2180_v52 }
0x29d6   :  { %v2183_v31 = vrot.slane %v2181_v30, 2 }
0x29d8   :  { %9296 = vmatmul.mubr.msk.bf16.vlgmr.msra.gmra.mrb[28].mxu1 %vm209_vm3, %v2183_v31 }
0x29d9   :  { %2486 = vmatprep.mubr.bf16.mxu1 %v11613_v2 }
0x2aab   :  { %v2221_v47 = vpop.f32.mrb[28].mxu1 }
0x2aac   :  { %v2229_v38 = vrot.slane %v2221_v47, 2  ;;  %v2223_v34 = vpop.f32.mrb[29].mxu1 }
0x2aad   :  { %v2232_v35 = vadd.f32 %v2223_v34, %v12202_v24  ;;  %v2225_v40 = vpop.f32.mrb[30].mxu1 }
0x2aae   :  { %v2231_v22 = vadd.f32 %v2229_v38, %v12205_v44  ;;  %v2226_v42 = vpop.f32.mrb[31].mxu1 }
0x2aaf   :  { %11429 = vtanh.f32 %v2232_v35  ;;  %v9298_v46 = vmul.f32 -1.442695, %v2232_v35 }
0x2ab0   :  { %11431 = vtanh.f32 %v2231_v22  ;;  %v9297_v3 = vmul.f32 -1.442695, %v2231_v22 }
0x2ab1   :  { %11433 = vpow2.f32 %v9298_v46 }
0x2ab2   :  { %11435 = vpow2.f32 %v9297_v3 }
0x2ab9   :  { %v11430_v43 = vpop.eup %11429 }
0x2aba   :  { %v11432_v45 = vpop.eup %11431  ;;  %2272 = vrot.lane.b32.xlu0 %v11430_v43, %s11615_s0  ;;  %v2308_v43 = vld [vmem:[%s14683_s10] sm:$0x3] }
0x2abb   :  { %2245 = vrot.lane.b32.xlu1 %v11432_v45, %s11615_s0  ;;  %v11434_v48 = vpop.eup %11433  ;;  %v2313_v45 = vrot.slane %v2308_v43, %v11791_v15  ;;  %v2317_v46 = vrot.slane %v2308_v43, %v11794_v16 }
0x2abc   :  { %v11436_v4 = vpop.eup %11435  ;;  %v2263_v6 = vadd.f32 1.0, %v11434_v48 }
0x2abd   :  { %v2236_v24 = vadd.f32 1.0, %v11436_v4 }
0x2abe   :  { %11437 = vrcp.f32 %v2263_v6 }
0x2abf   :  { %11439 = vrcp.f32 %v2236_v24 }
0x2ac8   :  { %v12411_v44 = vpop.eup %11437 }
0x2ac9   :  { %v12413_v9 = vpop.eup %11439  ;;  %v2270_v54 = vmul.f32 %v12411_v44, %v2268_v56 }
0x2aca   :  { %v2243_v55 = vmul.f32 %v12413_v9, %v2241_v50 }
0x2b2c   :  { %v2273_v8 = vpop.permute.xlu0 %2272 }
0x2b2d   :  { %v2275_v51 = vmul.f32 %v12411_v44, %v2273_v8  ;;  %v2246_v53 = vpop.permute.xlu1 %2245 }
0x2b2e   :  { %v2248_v58 = vmul.f32 %v12413_v9, %v2246_v53 }
0x2b2f   :  { %2277 = vrot.lane.b32.xlu0 %v2275_v51, %s11616_s29 }
0x2b30   :  { %2250 = vrot.lane.b32.xlu1 %v2248_v58, %s11616_s29 }
0x2ba1   :  { %v2278_v59 = vpop.permute.xlu0 %2277 }
0x2ba2   :  { %v2280_v57 = vadd.f32 %v2278_v59, %v2270_v54  ;;  %v2251_v41 = vpop.permute.xlu1 %2250 }
0x2ba3   :  { %v2253_v37 = vadd.f32 %v2251_v41, %v2243_v55 }
0x2ba4   :  { %11441 = vtanh.f32 %v2280_v57 }
0x2ba5   :  { %11443 = vtanh.f32 %v2253_v37 }
0x2bae   :  { %v11442_v21 = vpop.eup %11441 }
0x2baf   :  { %v11444_v61 = vpop.eup %11443  ;;  %2283 = vrot.lane.b32.xlu0 %v11442_v21, %s11615_s0 }
0x2bb0   :  { %2256 = vrot.lane.b32.xlu1 %v11444_v61, %s11615_s0 }
0x2bb3   :  { %1560 = vrot.lane.b32.xlu0 %v12255_v1, %s11615_s0  ;;  %v12441_v1 = vld [vmem:[%s14722_s1] ss:$8 sps:$4 sm:$0xff]  }
0x2bb4   :  { %1438 = vrot.lane.b32.xlu1 %v12223_v17, %s11615_s0  ;;  %2455 = vmatpush1.bf16.msra.mxu1 %v12441_v1  ;;  %v10877_v17 = vld [vmem:[%s14723_s9 + $0x10] ss:$8 sps:$4 sm:$0xff]  }
0x2bb5   :  { %2456 = vmatprep.subr.bf16.mxu1 %v12446_v11  ;;  %2366 = vmatpush1.bf16.msra.mxu0 %v10877_v17 }
0x2bb6   :  { %2367 = vmatprep.subr.bf16.mxu0 %v10885_v10 }
0x2bb7   :  { %1805 = vrot.lane.b32.xlu0 %v12318_v7, %s11615_s0  ;;  %v12476_v7 = vld [vmem:[%s14722_s1 + $0x24] ss:$8 sps:$4 sm:$0xff]  }
0x2bb8   :  { %1684 = vrot.lane.b32.xlu1 %v12288_v60, %s11615_s0  ;;  %2457 = vmatpush1.bf16.msra.mxu1 %v12459_v18  ;;  %v10883_v60 = vld [vmem:[%s14723_s9 + $0x20] ss:$8 sps:$4 sm:$0xff]  }
0x2bb9   :  { %2458 = vmatprep.subr.bf16.mxu1 %v12476_v7  ;;  %2368 = vmatpush1.bf16.msra.mxu0 %v10883_v60 }
0x2bba   :  { %2369 = vmatprep.subr.bf16.mxu0 %v10891_v19 }
0x2bbb   :  { %2048 = vrot.lane.b32.xlu0 %v12377_v33, %s11615_s0  ;;  %v12493_v33 = vld [vmem:[%s14722_s1 + $0x34] ss:$8 sps:$4 sm:$0xff]  }
0x2bbc   :  { %1926 = vrot.lane.b32.xlu1 %v12350_v49, %s11615_s0  ;;  %v12487_v49 = vld [vmem:[%s14722_s1 + $0x20] ss:$8 sps:$4 sm:$0xff]  }
0x2bbd   :  { %2459 = vmatpush1.bf16.msra.mxu1 %v12487_v49  ;;  %2370 = vmatpush1.bf16.msra.mxu0 %v10889_v28 }
0x2bbe   :  { %2460 = vmatprep.subr.bf16.mxu1 %v12493_v33  ;;  %2562 = vmatprep.subr.bf16.mxu0 %v12428_v62 }
0x2bc0   :  { %2172 = vrot.lane.b32.xlu1 %v12396_v23, %s11615_s0 }
0x2bc1   :  { %2461 = vmatpush1.bf16.msra.mxu1 %v12502_v20 }
0x2bc2   :  { %2681 = vmatprep.subr.bf16.mxu1 %v12428_v62 }
0x2bc4   :  { %2487 = vmatmul.mubr.bf16.vlgmr.msra.gmra.mrb[32].mxu1 %v11614_v12 }
0x2bc5   :  { %2682 = vmatpush1.bf16.msra.mxu1 %v12441_v1  ;;  %2713 = vmatprep.mubr.bf16.mxu1 %v11613_v2 }
0x2bc6   :  { %2683 = vmatprep.subr.bf16.mxu1 %v12446_v11 }
0x2bc9   :  { %2684 = vmatpush1.bf16.msra.mxu1 %v12459_v18 }
0x2bca   :  { %2685 = vmatprep.subr.bf16.mxu1 %v12476_v7 }
0x2bcd   :  { %2686 = vmatpush1.bf16.msra.mxu1 %v12487_v49 }
0x2bce   :  { %2687 = vmatprep.subr.bf16.mxu1 %v12493_v33 }
0x2bd1   :  { %2688 = vmatpush1.bf16.msra.mxu1 %v12502_v20 }
0x2bd2   :  { %2916 = vmatprep.subr.bf16.mxu1 %v12428_v62 }
0x2c21   :  { %v2284_v39 = vpop.permute.xlu0 %2283 }
0x2c22   :  { %v2286_v32 = vmul.f32 %v12411_v44, %v2284_v39  ;;  %v2257_v25 = vpop.permute.xlu1 %2256 }
0x2c23   :  { %v2259_v23 = vmul.f32 %v12413_v9, %v2257_v25 }
0x2c24   :  { %2293 = vrot.lane.b32.xlu1 %v2286_v32, %s11615_s0 }
0x2c25   :  { %2288 = vrot.lane.b32.xlu0 %v2259_v23, %s11616_s29  ;;  %v1561_v26 = vpop.permute.xlu0 %1560 }
0x2c26   :  { %1563 = vst.msk [vmem:[#allocation3 + $0x8] sm:$0x30] %vm442_vm7, %v1561_v26  ;;  %v1439_v29 = vpop.permute.xlu1 %1438 }
0x2c27   :  { %2170 = vst.msk [vmem:[#allocation3 + $0x8] sm:$0x30] %vm562_vm5, %v12401_v27 }
0x2c28   :  { %1441 = vst.msk [vmem:[#allocation3 + $0x8] sm:$0xc0] %vm317_vm8, %v1439_v29 }
0x2c29   :  { %v1806_v12 = vpop.permute.xlu0 %1805 }
0x2c2a   :  { %1808 = vst.msk [vmem:[#allocation3 + $0x8] sm:$0x3] %vm691_vm9, %v1806_v12  ;;  %v1685_v52 = vpop.permute.xlu1 %1684 }
0x2c2b   :  { %1924 = vst.msk [vmem:[#allocation3 + $0x8] sm:$0x3] %vm311_vm1, %v12354_v5 }
0x2c2c   :  { %1687 = vst.msk [vmem:[#allocation3 + $0x8] sm:$0xc] %vm568_vm10, %v1685_v52 }
0x2c2d   :  { %2046 = vst.msk [vmem:[#allocation3 + $0x8] sm:$0xc] %vm436_vm4, %v12382_v36  ;;  %v2049_v27 = vpop.permute.xlu0 %2048 }
0x2c2e   :  { %2051 = vst.msk [vmem:[#allocation3] sm:$0x30] %vm442_vm7, %v2049_v27  ;;  %v1927_v30 = vpop.permute.xlu1 %1926 }
0x2c2f   :  { %1929 = vst.msk [vmem:[#allocation3] sm:$0xc0] %vm317_vm8, %v1927_v30 }
0x2c32   :  { %v2173_v31 = vpop.permute.xlu1 %2172 }
0x2c33   :  { %2175 = vst.msk [vmem:[#allocation3] sm:$0xc] %vm568_vm10, %v2173_v31 }
0x2c96   :  { %v2294_v5 = vpop.permute.xlu1 %2293 }
0x2c97   :  { %2296 = vst.msk [vmem:[#allocation3] sm:$0x3] %vm691_vm9, %v2294_v5  ;;  %v2289_v47 = vpop.permute.xlu0 %2288  ;;  %v2488_v35 = vpop.f32.mrb[32].mxu1 }
0x2c98   :  { %2291 = vst.msk [vmem:[#allocation3 + $0x8] sm:$0xc0] %vm685_vm6, %v2289_v47  ;;  %v2490_v40 = vpop.f32.mrb[33].mxu1 }
0x2c99   :  { %v2492_v22 = vpop.f32.mrb[34].mxu1  ;;  %v2497_v6 = vrot.slane %v2490_v40, 2 }
0x2c9a   :  { %v2493_v42 = vpop.f32.mrb[35].mxu1 }
0x2c9e   :  { %v2297_v36 = vld [vmem:[#allocation3] sm:$0xff] }
0x2c9f   :  { %v2298_v38 = vld [vmem:[#allocation3 + $0x8] sm:$0xff] }
0x2ca0   :  { %v2299_v34 = vpack.c.bf16 %v2298_v38, %v2297_v36 }
0x2ca2   :  { %9307 = vmatmul.mubr.msk.bf16.vlgmr.msra.gmra.mrb[40].mxu0 %vm209_vm3, %v2299_v34 }
0x2ca3   :  { %2563 = vmatpush1.bf16.msra.mxu0 %v12441_v1  ;;  %2594 = vmatprep.mubr.bf16.mxu0 %v11613_v2 }
0x2ca4   :  { %2564 = vmatprep.subr.bf16.mxu0 %v12446_v11 }
0x2ca7   :  { %2565 = vmatpush1.bf16.msra.mxu0 %v12459_v18 }
0x2ca8   :  { %2566 = vmatprep.subr.bf16.mxu0 %v12476_v7 }
0x2cab   :  { %2567 = vmatpush1.bf16.msra.mxu0 %v12487_v49 }
0x2cac   :  { %2568 = vmatprep.subr.bf16.mxu0 %v12493_v33 }
0x2caf   :  { %2569 = vmatpush1.bf16.msra.mxu0 %v12502_v20 }
0x2cb0   :  { %2800 = vmatprep.subr.bf16.mxu0 %v12428_v62 }
0x2d75   :  { %v2397_v3 = vpop.f32.mrb[40].mxu0 }
0x2d76   :  { %v12555_v48 = vadd.f32 %v2397_v3, %v2313_v45  ;;  %v2399_v4 = vpop.f32.mrb[41].mxu0 }
0x2d77   :  { %v12557_v24 = vadd.f32 %v2399_v4, %v2317_v46  ;;  %v2401_v44 = vpop.f32.mrb[42].mxu0 }
0x2d78   :  { %v2495_v8 = vadd.f32 %v2488_v35, %v12555_v48  ;;  %v12560_v9 = vadd.f32 %v2401_v44, %v2313_v45  ;;  %v2403_v51 = vpop.f32.mrb[43].mxu0 }
0x2d79   :  { %v12562_v53 = vadd.f32 %v2403_v51, %v2317_v46 }
0x2d7a   :  { %11445 = vtanh.f32 %v2495_v8  ;;  %v9316_v54 = vmul.f32 -1.442695, %v2495_v8 }
0x2d7b   :  { %v2499_v58 = vadd.f32 %v2497_v6, %v12562_v53 }
0x2d7d   :  { %11447 = vtanh.f32 %v2499_v58  ;;  %v9317_v59 = vmul.f32 -1.442695, %v2499_v58 }
0x2d7e   :  { %11449 = vpow2.f32 %v9316_v54 }
0x2d7f   :  { %11451 = vpow2.f32 %v9317_v59 }
0x2d84   :  { %v11446_v56 = vpop.eup %11445 }
0x2d85   :  { %2509 = vrot.lane.b32.xlu1 %v11446_v56, %s11615_s0 }
0x2d87   :  { %v11448_v50 = vpop.eup %11447 }
0x2d88   :  { %2533 = vrot.lane.b32.xlu0 %v11448_v50, %s11615_s0  ;;  %v11450_v55 = vpop.eup %11449 }
0x2d89   :  { %v11452_v57 = vpop.eup %11451  ;;  %v2503_v41 = vadd.f32 1.0, %v11450_v55 }
0x2d8a   :  { %v2527_v37 = vadd.f32 1.0, %v11452_v57 }
0x2d8b   :  { %11453 = vrcp.f32 %v2503_v41 }
0x2d8c   :  { %11455 = vrcp.f32 %v2527_v37 }
0x2d95   :  { %v11454_v21 = vpop.eup %11453 }
0x2d96   :  { %v11456_v0 = vpop.eup %11455  ;;  %v2507_v60 = vmul.f32 0.0, %v11454_v21 }
0x2d97   :  { %v2531_v28 = vmul.f32 0.0, %v11456_v0 }
0x2df7   :  { %v2510_v61 = vpop.permute.xlu1 %2509 }
0x2df8   :  { %v2512_v63 = vmul.f32 %v11454_v21, %v2510_v61 }
0x2dfa   :  { %v2534_v13 = vpop.permute.xlu0 %2533  ;;  %2514 = vrot.lane.b32.xlu1 %v2512_v63, %s11616_s29 }
0x2dfb   :  { %v2536_v17 = vmul.f32 %v11456_v0, %v2534_v13 }
0x2dfd   :  { %2538 = vrot.lane.b32.xlu0 %v2536_v17, %s11616_s29 }
0x2e6c   :  { %v2515_v10 = vpop.permute.xlu1 %2514 }
0x2e6d   :  { %v12569_v19 = vadd.f32 %v2515_v10, %v2507_v60 }
0x2e6f   :  { %11457 = vtanh.f32 %v12569_v19  ;;  %v2539_v39 = vpop.permute.xlu0 %2538  ;;  %v2619_v57 = vrot.slane %v12569_v19, 6 }
0x2e70   :  { %v12572_v32 = vadd.f32 %v2539_v39, %v2531_v28 }
0x2e72   :  { %11459 = vtanh.f32 %v12572_v32  ;;  %v2646_v41 = vrot.slane %v12572_v32, 2 }
0x2e79   :  { %v11458_v25 = vpop.eup %11457 }
0x2e7a   :  { %2520 = vrot.lane.b32.xlu1 %v11458_v25, %s11615_s0 }
0x2e7c   :  { %v11460_v23 = vpop.eup %11459 }
0x2e7d   :  { %2544 = vrot.lane.b32.xlu0 %v11460_v23, %s11615_s0 }
0x2eec   :  { %v2521_v26 = vpop.permute.xlu1 %2520 }
0x2eed   :  { %v2523_v29 = vmul.f32 %v11454_v21, %v2521_v26 }
0x2eef   :  { %v2545_v12 = vpop.permute.xlu0 %2544  ;;  %2549 = vrot.lane.b32.xlu0 %v2523_v29, %s11616_s29 }
0x2ef0   :  { %v2547_v52 = vmul.f32 %v11456_v0, %v2545_v12 }
0x2ef2   :  { %v2553_v27 = vrot.slane %v2547_v52, 6 }
0x2ef4   :  { %2554 = vrot.lane.b32.xlu1 %v2553_v27, %s11615_s0 }
0x2f61   :  { %v2550_v30 = vpop.permute.xlu0 %2549 }
0x2f66   :  { %v2555_v31 = vpop.permute.xlu1 %2554 }
0x2f67   :  { %v2557_v5 = vsel %vm323_vm2, %v2550_v30, %v2555_v31 }
0x2f68   :  { %v2558_v47 = vpack.c.bf16 %v2557_v5, %v2557_v5 }
0x2f6a   :  { %9318 = vmatmul.mubr.msk.bf16.vlgmr.msra.gmra.mrb[44].mxu0 %vm209_vm3, %v2558_v47 }
0x2f6b   :  { %2801 = vmatpush1.bf16.msra.mxu0 %v12441_v1  ;;  %2832 = vmatprep.mubr.bf16.mxu0 %v11613_v2 }
0x2f6c   :  { %2802 = vmatprep.subr.bf16.mxu0 %v12446_v11 }
0x2f6f   :  { %2803 = vmatpush1.bf16.msra.mxu0 %v12459_v18 }
0x2f70   :  { %2804 = vmatprep.subr.bf16.mxu0 %v12476_v7 }
0x2f73   :  { %2805 = vmatpush1.bf16.msra.mxu0 %v12487_v49 }
0x2f74   :  { %2806 = vmatprep.subr.bf16.mxu0 %v12493_v33 }
0x2f77   :  { %2807 = vmatpush1.bf16.msra.mxu0 %v12502_v20 }
0x2f78   :  { %3030 = vmatprep.subr.bf16.mxu0 %v12428_v62 }
0x303d   :  { %v2596_v36 = vpop.f32.mrb[44].mxu0 }
0x303e   :  { %v2604_v38 = vrot.slane %v2596_v36, 6  ;;  %v2598_v34 = vpop.f32.mrb[45].mxu0 }
0x303f   :  { %v2608_v35 = vrot.slane %v2598_v34, 4  ;;  %v2600_v40 = vpop.f32.mrb[46].mxu0 }
0x3040   :  { %v2606_v22 = vadd.f32 %v2604_v38, %v12555_v48  ;;  %v2601_v42 = vpop.f32.mrb[47].mxu0 }
0x3041   :  { %v2610_v43 = vadd.f32 %v2608_v35, %v12562_v53 }
0x3042   :  { %11461 = vtanh.f32 %v2606_v22  ;;  %v9319_v3 = vmul.f32 -1.442695, %v2606_v22 }
0x3043   :  { %11463 = vtanh.f32 %v2610_v43  ;;  %v9320_v4 = vmul.f32 -1.442695, %v2610_v43 }
0x3044   :  { %11465 = vpow2.f32 %v9319_v3 }
0x3045   :  { %11467 = vpow2.f32 %v9320_v4 }
0x304c   :  { %v11462_v45 = vpop.eup %11461 }
0x304d   :  { %v11464_v46 = vpop.eup %11463  ;;  %2623 = vrot.lane.b32.xlu1 %v11462_v45, %s11615_s0 }
0x304e   :  { %2650 = vrot.lane.b32.xlu0 %v11464_v46, %s11615_s0  ;;  %v11466_v6 = vpop.eup %11465 }
0x304f   :  { %v11468_v44 = vpop.eup %11467  ;;  %v2614_v8 = vadd.f32 1.0, %v11466_v6 }
0x3050   :  { %v2641_v51 = vadd.f32 1.0, %v11468_v44 }
0x3051   :  { %11469 = vrcp.f32 %v2614_v8 }
0x3052   :  { %11471 = vrcp.f32 %v2641_v51 }
0x305b   :  { %v11470_v58 = vpop.eup %11469 }
0x305c   :  { %v11472_v50 = vpop.eup %11471  ;;  %v2621_v37 = vmul.f32 %v11470_v58, %v2619_v57 }
0x305d   :  { %v2648_v61 = vmul.f32 %v11472_v50, %v2646_v41 }
0x30bf   :  { %v2624_v56 = vpop.permute.xlu1 %2623 }
0x30c0   :  { %v2626_v54 = vmul.f32 %v11470_v58, %v2624_v56  ;;  %v2651_v59 = vpop.permute.xlu0 %2650 }
0x30c1   :  { %v2653_v55 = vmul.f32 %v11472_v50, %v2651_v59 }
0x30c2   :  { %2628 = vrot.lane.b32.xlu1 %v2626_v54, %s11616_s29 }
0x30c3   :  { %2655 = vrot.lane.b32.xlu0 %v2653_v55, %s11616_s29 }
0x3134   :  { %v2629_v21 = vpop.permute.xlu1 %2628 }
0x3135   :  { %v12598_v63 = vadd.f32 %v2629_v21, %v2621_v37  ;;  %v2656_v0 = vpop.permute.xlu0 %2655 }
0x3136   :  { %v12600_v13 = vadd.f32 %v2656_v0, %v2648_v61 }
0x3137   :  { %11473 = vtanh.f32 %v12598_v63 }
0x3138   :  { %11475 = vtanh.f32 %v12600_v13  ;;  %v2765_v56 = vrot.slane %v12600_v13, 2 }
0x3141   :  { %v11474_v17 = vpop.eup %11473 }
0x3142   :  { %v11476_v60 = vpop.eup %11475  ;;  %2634 = vrot.lane.b32.xlu1 %v11474_v17, %s11615_s0 }
0x3143   :  { %2661 = vrot.lane.b32.xlu0 %v11476_v60, %s11615_s0 }
0x31b4   :  { %v2635_v10 = vpop.permute.xlu1 %2634 }
0x31b5   :  { %v2637_v19 = vmul.f32 %v11470_v58, %v2635_v10  ;;  %v2662_v28 = vpop.permute.xlu0 %2661  ;;  %v2738_v58 = vrot.slane %v12598_v63, 6 }
0x31b6   :  { %v2664_v39 = vmul.f32 %v11472_v50, %v2662_v28 }
0x31b7   :  { %2666 = vrot.lane.b32.xlu0 %v2637_v19, %s11616_s29 }
0x31b8   :  { %v2670_v32 = vrot.slane %v2664_v39, 2 }
0x31ba   :  { %2671 = vrot.lane.b32.xlu1 %v2670_v32, %s11615_s0 }
0x3229   :  { %v2667_v25 = vpop.permute.xlu0 %2666 }
0x322c   :  { %v2672_v23 = vpop.permute.xlu1 %2671 }
0x322d   :  { %v2674_v26 = vsel %vm323_vm2, %v2667_v25, %v2672_v23 }
0x322e   :  { %v2675_v29 = vpack.c.bf16 %v2674_v26, %v2674_v26 }
0x3230   :  { %v2677_v12 = vrot.slane %v2675_v29, 1 }
0x3232   :  { %9321 = vmatmul.mubr.msk.bf16.vlgmr.msra.gmra.mrb[36].mxu1 %vm209_vm3, %v2677_v12 }
0x3233   :  { %2917 = vmatpush1.bf16.msra.mxu1 %v12441_v1  ;;  %2948 = vmatprep.mubr.bf16.mxu1 %v11613_v2 }
0x3234   :  { %2918 = vmatprep.subr.bf16.mxu1 %v12446_v11 }
0x3237   :  { %2919 = vmatpush1.bf16.msra.mxu1 %v12459_v18 }
0x3238   :  { %2920 = vmatprep.subr.bf16.mxu1 %v12476_v7 }
0x323b   :  { %2921 = vmatpush1.bf16.msra.mxu1 %v12487_v49 }
0x323c   :  { %2922 = vmatprep.subr.bf16.mxu1 %v12493_v33 }
0x323f   :  { %2923 = vmatpush1.bf16.msra.mxu1 %v12502_v20 }
0x3240   :  { %3149 = vmatprep.subr.bf16.mxu1 %v12428_v62 }
0x3305   :  { %v2715_v52 = vpop.f32.mrb[36].mxu1 }
0x3306   :  { %v2723_v27 = vrot.slane %v2715_v52, 4  ;;  %v2717_v30 = vpop.f32.mrb[37].mxu1 }
0x3307   :  { %v2727_v31 = vrot.slane %v2717_v30, 6  ;;  %v2719_v5 = vpop.f32.mrb[38].mxu1 }
0x3308   :  { %v2725_v47 = vadd.f32 %v2723_v27, %v12555_v48  ;;  %v2720_v36 = vpop.f32.mrb[39].mxu1 }
0x3309   :  { %v2729_v38 = vadd.f32 %v2727_v31, %v12562_v53 }
0x330a   :  { %11477 = vtanh.f32 %v2725_v47  ;;  %v9322_v40 = vmul.f32 -1.442695, %v2725_v47 }
0x330b   :  { %11479 = vtanh.f32 %v2729_v38  ;;  %v9323_v22 = vmul.f32 -1.442695, %v2729_v38 }
0x330c   :  { %11481 = vpow2.f32 %v9322_v40 }
0x330d   :  { %11483 = vpow2.f32 %v9323_v22 }
0x3314   :  { %v11478_v34 = vpop.eup %11477 }
0x3315   :  { %v11480_v35 = vpop.eup %11479  ;;  %2742 = vrot.lane.b32.xlu1 %v11478_v34, %s11615_s0 }
0x3316   :  { %2769 = vrot.lane.b32.xlu0 %v11480_v35, %s11615_s0  ;;  %v11482_v42 = vpop.eup %11481 }
0x3317   :  { %v11484_v43 = vpop.eup %11483  ;;  %v2733_v45 = vadd.f32 1.0, %v11482_v42 }
0x3318   :  { %v2760_v46 = vadd.f32 1.0, %v11484_v43 }
0x3319   :  { %11485 = vrcp.f32 %v2733_v45 }
0x331a   :  { %11487 = vrcp.f32 %v2760_v46 }
0x3323   :  { %v11486_v3 = vpop.eup %11485 }
0x3324   :  { %v11488_v6 = vpop.eup %11487  ;;  %v2740_v50 = vmul.f32 %v11486_v3, %v2738_v58 }
0x3325   :  { %v2767_v59 = vmul.f32 %v11488_v6, %v2765_v56 }
0x3387   :  { %v2743_v4 = vpop.permute.xlu1 %2742 }
0x3388   :  { %v2745_v44 = vmul.f32 %v11486_v3, %v2743_v4  ;;  %v2770_v8 = vpop.permute.xlu0 %2769 }
0x3389   :  { %v2772_v51 = vmul.f32 %v11488_v6, %v2770_v8 }
0x338a   :  { %2747 = vrot.lane.b32.xlu1 %v2745_v44, %s11616_s29 }
0x338b   :  { %2774 = vrot.lane.b32.xlu0 %v2772_v51, %s11616_s29 }
0x33fc   :  { %v2748_v54 = vpop.permute.xlu1 %2747 }
0x33fd   :  { %v12627_v55 = vadd.f32 %v2748_v54, %v2740_v50  ;;  %v2775_v57 = vpop.permute.xlu0 %2774 }
0x33fe   :  { %v12629_v41 = vadd.f32 %v2775_v57, %v2767_v59 }
0x33ff   :  { %11489 = vtanh.f32 %v12627_v55  ;;  %v2854_v43 = vrot.slane %v12627_v55, 6 }
0x3400   :  { %11491 = vtanh.f32 %v12629_v41  ;;  %v2881_v42 = vrot.slane %v12629_v41, 2 }
0x3409   :  { %v11490_v37 = vpop.eup %11489 }
0x340a   :  { %v11492_v21 = vpop.eup %11491  ;;  %2753 = vrot.lane.b32.xlu1 %v11490_v37, %s11615_s0 }
0x340b   :  { %2780 = vrot.lane.b32.xlu0 %v11492_v21, %s11615_s0 }
0x347c   :  { %v2754_v61 = vpop.permute.xlu1 %2753 }
0x347d   :  { %v2756_v63 = vmul.f32 %v11486_v3, %v2754_v61  ;;  %v2781_v0 = vpop.permute.xlu0 %2780 }
0x347e   :  { %v2783_v13 = vmul.f32 %v11488_v6, %v2781_v0 }
0x347f   :  { %2785 = vrot.lane.b32.xlu0 %v2756_v63, %s11616_s29 }
0x3480   :  { %v2789_v17 = vrot.slane %v2783_v13, 6 }
0x3482   :  { %2790 = vrot.lane.b32.xlu1 %v2789_v17, %s11615_s0 }
0x34f1   :  { %v2786_v60 = vpop.permute.xlu0 %2785 }
0x34f4   :  { %v2791_v10 = vpop.permute.xlu1 %2790 }
0x34f5   :  { %v2793_v19 = vsel %vm323_vm2, %v2786_v60, %v2791_v10 }
0x34f6   :  { %v2794_v28 = vpack.c.bf16 %v2793_v19, %v2793_v19 }
0x34f8   :  { %v2796_v39 = vrot.slane %v2794_v28, 2 }
0x34fa   :  { %9324 = vmatmul.mubr.msk.bf16.vlgmr.msra.gmra.mrb[48].mxu0 %vm209_vm3, %v2796_v39 }
0x34fb   :  { %3031 = vmatpush1.bf16.msra.mxu0 %v12441_v1  ;;  %3062 = vmatprep.mubr.bf16.mxu0 %v11613_v2 }
0x34fc   :  { %3032 = vmatprep.subr.bf16.mxu0 %v12446_v11 }
0x34ff   :  { %3033 = vmatpush1.bf16.msra.mxu0 %v12459_v18 }
0x3500   :  { %3034 = vmatprep.subr.bf16.mxu0 %v12476_v7 }
0x3503   :  { %3035 = vmatpush1.bf16.msra.mxu0 %v12487_v49 }
0x3504   :  { %3036 = vmatprep.subr.bf16.mxu0 %v12493_v33 }
0x3507   :  { %3037 = vmatpush1.bf16.msra.mxu0 %v12502_v20 }
0x3508   :  { %3268 = vmatprep.subr.bf16.mxu0 %v12428_v62 }
0x35cd   :  { %v2834_v32 = vpop.f32.mrb[48].mxu0 }
0x35ce   :  { %v2842_v25 = vrot.slane %v2834_v32, 2  ;;  %v2836_v23 = vpop.f32.mrb[49].mxu0 }
0x35cf   :  { %v2845_v26 = vadd.f32 %v2836_v23, %v12562_v53  ;;  %v2838_v29 = vpop.f32.mrb[50].mxu0 }
0x35d0   :  { %v2844_v12 = vadd.f32 %v2842_v25, %v12555_v48  ;;  %v2839_v52 = vpop.f32.mrb[51].mxu0 }
0x35d1   :  { %11493 = vtanh.f32 %v2845_v26  ;;  %v9326_v31 = vmul.f32 -1.442695, %v2845_v26 }
0x35d2   :  { %11495 = vtanh.f32 %v2844_v12  ;;  %v9325_v5 = vmul.f32 -1.442695, %v2844_v12 }
0x35d3   :  { %11497 = vpow2.f32 %v9326_v31 }
0x35d4   :  { %11499 = vpow2.f32 %v9325_v5 }
0x35db   :  { %v11494_v27 = vpop.eup %11493 }
0x35dc   :  { %v11496_v30 = vpop.eup %11495  ;;  %2885 = vrot.lane.b32.xlu0 %v11494_v27, %s11615_s0 }
0x35dd   :  { %2858 = vrot.lane.b32.xlu1 %v11496_v30, %s11615_s0  ;;  %v11498_v62 = vpop.eup %11497 }
0x35de   :  { %v11500_v47 = vpop.eup %11499  ;;  %v2876_v36 = vadd.f32 1.0, %v11498_v62 }
0x35df   :  { %v2849_v53 = vadd.f32 1.0, %v11500_v47 }
0x35e0   :  { %11501 = vrcp.f32 %v2876_v36 }
0x35e1   :  { %11503 = vrcp.f32 %v2849_v53 }
0x35ea   :  { %v11502_v48 = vpop.eup %11501 }
0x35eb   :  { %v11504_v34 = vpop.eup %11503  ;;  %v2883_v45 = vmul.f32 %v11502_v48, %v2881_v42 }
0x35ec   :  { %v2856_v3 = vmul.f32 %v11504_v34, %v2854_v43 }
0x364e   :  { %v2886_v38 = vpop.permute.xlu0 %2885 }
0x364f   :  { %v2888_v35 = vmul.f32 %v11502_v48, %v2886_v38  ;;  %v2859_v40 = vpop.permute.xlu1 %2858 }
0x3650   :  { %v2861_v22 = vmul.f32 %v11504_v34, %v2859_v40 }
0x3651   :  { %2890 = vrot.lane.b32.xlu0 %v2888_v35, %s11616_s29 }
0x3652   :  { %2863 = vrot.lane.b32.xlu1 %v2861_v22, %s11616_s29 }
0x36c3   :  { %v2891_v46 = vpop.permute.xlu0 %2890 }
0x36c4   :  { %v12656_v4 = vadd.f32 %v2891_v46, %v2883_v45  ;;  %v2864_v6 = vpop.permute.xlu1 %2863 }
0x36c5   :  { %v2866_v44 = vadd.f32 %v2864_v6, %v2856_v3 }
0x36c6   :  { %11505 = vtanh.f32 %v12656_v4  ;;  %v2997_v36 = vrot.slane %v12656_v4, 2 }
0x36c7   :  { %11507 = vtanh.f32 %v2866_v44  ;;  %v2970_v62 = vrot.slane %v2866_v44, 6 }
0x36d0   :  { %v11506_v8 = vpop.eup %11505 }
0x36d1   :  { %v11508_v51 = vpop.eup %11507  ;;  %2896 = vrot.lane.b32.xlu0 %v11506_v8, %s11615_s0 }
0x36d2   :  { %2869 = vrot.lane.b32.xlu1 %v11508_v51, %s11615_s0 }
0x3743   :  { %v2897_v58 = vpop.permute.xlu0 %2896 }
0x3744   :  { %v2899_v56 = vmul.f32 %v11502_v48, %v2897_v58  ;;  %v2870_v50 = vpop.permute.xlu1 %2869 }
0x3745   :  { %v2872_v54 = vmul.f32 %v11504_v34, %v2870_v50 }
0x3746   :  { %v2905_v59 = vrot.slane %v2899_v56, 2 }
0x3747   :  { %2901 = vrot.lane.b32.xlu0 %v2872_v54, %s11616_s29 }
0x3748   :  { %2906 = vrot.lane.b32.xlu1 %v2905_v59, %s11615_s0 }
0x37b9   :  { %v2902_v55 = vpop.permute.xlu0 %2901 }
0x37ba   :  { %v2907_v57 = vpop.permute.xlu1 %2906 }
0x37bb   :  { %v2909_v41 = vsel %vm323_vm2, %v2902_v55, %v2907_v57 }
0x37bc   :  { %v2910_v37 = vpack.c.bf16 %v2909_v41, %v2909_v41 }
0x37be   :  { %v2912_v21 = vrot.slane %v2910_v37, 3 }
0x37c0   :  { %9327 = vmatmul.mubr.msk.bf16.vlgmr.msra.gmra.mrb[40].mxu1 %vm209_vm3, %v2912_v21 }
0x37c1   :  { %3150 = vmatpush1.bf16.msra.mxu1 %v12441_v1  ;;  %3181 = vmatprep.mubr.bf16.mxu1 %v11613_v2 }
0x37c2   :  { %3151 = vmatprep.subr.bf16.mxu1 %v12446_v11 }
0x37c5   :  { %3152 = vmatpush1.bf16.msra.mxu1 %v12459_v18 }
0x37c6   :  { %3153 = vmatprep.subr.bf16.mxu1 %v12476_v7 }
0x37c9   :  { %3154 = vmatpush1.bf16.msra.mxu1 %v12487_v49 }
0x37ca   :  { %3155 = vmatprep.subr.bf16.mxu1 %v12493_v33 }
0x37cd   :  { %3156 = vmatpush1.bf16.msra.mxu1 %v12502_v20 }
0x3893   :  { %v2950_v61 = vpop.f32.mrb[40].mxu1 }
0x3894   :  { %v2957_v63 = vadd.f32 %v2950_v61, %v12560_v9  ;;  %v2952_v0 = vpop.f32.mrb[41].mxu1 }
0x3895   :  { %v2959_v13 = vrot.slane %v2952_v0, 2  ;;  %v2954_v17 = vpop.f32.mrb[42].mxu1 }
0x3896   :  { %11509 = vtanh.f32 %v2957_v63  ;;  %v2955_v60 = vpop.f32.mrb[43].mxu1  ;;  %v9328_v39 = vmul.f32 -1.442695, %v2957_v63 }
0x3897   :  { %v2961_v10 = vadd.f32 %v2959_v13, %v12557_v24 }
0x3899   :  { %11511 = vtanh.f32 %v2961_v10  ;;  %v9329_v32 = vmul.f32 -1.442695, %v2961_v10 }
0x389a   :  { %11513 = vpow2.f32 %v9328_v39 }
0x389b   :  { %11515 = vpow2.f32 %v9329_v32 }
0x38a0   :  { %v11510_v19 = vpop.eup %11509 }
0x38a1   :  { %2974 = vrot.lane.b32.xlu1 %v11510_v19, %s11615_s0 }
0x38a3   :  { %v11512_v28 = vpop.eup %11511 }
0x38a4   :  { %3001 = vrot.lane.b32.xlu0 %v11512_v28, %s11615_s0  ;;  %v11514_v25 = vpop.eup %11513 }
0x38a5   :  { %v11516_v23 = vpop.eup %11515  ;;  %v2965_v26 = vadd.f32 1.0, %v11514_v25 }
0x38a6   :  { %v2992_v29 = vadd.f32 1.0, %v11516_v23 }
0x38a7   :  { %11517 = vrcp.f32 %v2965_v26 }
0x38a8   :  { %11519 = vrcp.f32 %v2992_v29 }
0x38b1   :  { %v11518_v12 = vpop.eup %11517 }
0x38b2   :  { %v11520_v30 = vpop.eup %11519  ;;  %v2972_v47 = vmul.f32 %v11518_v12, %v2970_v62 }
0x38b3   :  { %v2999_v38 = vmul.f32 %v11520_v30, %v2997_v36 }
0x3913   :  { %v2975_v52 = vpop.permute.xlu1 %2974 }
0x3914   :  { %v2977_v27 = vmul.f32 %v11518_v12, %v2975_v52 }
0x3916   :  { %2979 = vrot.lane.b32.xlu1 %v2977_v27, %s11616_s29  ;;  %v3002_v31 = vpop.permute.xlu0 %3001 }
0x3917   :  { %v3004_v5 = vmul.f32 %v11520_v30, %v3002_v31 }
0x3919   :  { %3006 = vrot.lane.b32.xlu0 %v3004_v5, %s11616_s29 }
0x3988   :  { %v2980_v53 = vpop.permute.xlu1 %2979 }
0x3989   :  { %v12680_v48 = vadd.f32 %v2980_v53, %v2972_v47 }
0x398b   :  { %11521 = vtanh.f32 %v12680_v48  ;;  %v3007_v34 = vpop.permute.xlu0 %3006  ;;  %v3087_v17 = vrot.slane %v12680_v48, 6 }
0x398c   :  { %v12683_v35 = vadd.f32 %v3007_v34, %v2999_v38 }
0x398e   :  { %11523 = vtanh.f32 %v12683_v35  ;;  %v3114_v60 = vrot.slane %v12683_v35, 2 }
0x3995   :  { %v11522_v40 = vpop.eup %11521 }
0x3996   :  { %2985 = vrot.lane.b32.xlu1 %v11522_v40, %s11615_s0 }
0x3998   :  { %v11524_v22 = vpop.eup %11523 }
0x3999   :  { %3012 = vrot.lane.b32.xlu0 %v11524_v22, %s11615_s0 }
0x3a08   :  { %v2986_v42 = vpop.permute.xlu1 %2985 }
0x3a09   :  { %v2988_v43 = vmul.f32 %v11518_v12, %v2986_v42 }
0x3a0b   :  { %3017 = vrot.lane.b32.xlu0 %v2988_v43, %s11616_s29  ;;  %v3013_v45 = vpop.permute.xlu0 %3012 }
0x3a0c   :  { %v3015_v46 = vmul.f32 %v11520_v30, %v3013_v45 }
0x3a0e   :  { %v3021_v3 = vrot.slane %v3015_v46, 6 }
0x3a10   :  { %3022 = vrot.lane.b32.xlu1 %v3021_v3, %s11615_s0 }
0x3a7d   :  { %v3018_v4 = vpop.permute.xlu0 %3017 }
0x3a82   :  { %v3023_v6 = vpop.permute.xlu1 %3022 }
0x3a83   :  { %v3025_v44 = vsel %vm323_vm2, %v3018_v4, %v3023_v6 }
0x3a84   :  { %v3026_v8 = vpack.c.bf16 %v3025_v44, %v3025_v44 }
0x3a86   :  { %9330 = vmatmul.mubr.msk.bf16.vlgmr.msra.gmra.mrb[52].mxu0 %vm209_vm3, %v3026_v8 }
0x3a87   :  { %3269 = vmatpush1.bf16.msra.mxu0 %v12441_v1  ;;  %3300 = vmatprep.mubr.bf16.mxu0 %v11613_v2 }
0x3a88   :  { %3270 = vmatprep.subr.bf16.mxu0 %v12446_v11 }
0x3a8b   :  { %3271 = vmatpush1.bf16.msra.mxu0 %v12459_v18 }
0x3a8c   :  { %3272 = vmatprep.subr.bf16.mxu0 %v12476_v7 }
0x3a8f   :  { %3273 = vmatpush1.bf16.msra.mxu0 %v12487_v49 }
0x3a90   :  { %3274 = vmatprep.subr.bf16.mxu0 %v12493_v33 }
0x3a93   :  { %3275 = vmatpush1.bf16.msra.mxu0 %v12502_v20 }
0x3b59   :  { %v3064_v51 = vpop.f32.mrb[52].mxu0 }
0x3b5a   :  { %v3072_v58 = vrot.slane %v3064_v51, 6  ;;  %v3066_v56 = vpop.f32.mrb[53].mxu0 }
0x3b5b   :  { %v3076_v50 = vrot.slane %v3066_v56, 4  ;;  %v3068_v54 = vpop.f32.mrb[54].mxu0 }
0x3b5c   :  { %v3074_v1 = vadd.f32 %v3072_v58, %v12560_v9  ;;  %v3069_v59 = vpop.f32.mrb[55].mxu0 }
0x3b5d   :  { %v3078_v11 = vadd.f32 %v3076_v50, %v12557_v24 }
0x3b5e   :  { %11525 = vtanh.f32 %v3074_v1  ;;  %v9331_v49 = vmul.f32 -1.442695, %v3074_v1 }
0x3b5f   :  { %11527 = vtanh.f32 %v3078_v11  ;;  %v9332_v33 = vmul.f32 -1.442695, %v3078_v11 }
0x3b60   :  { %11529 = vpow2.f32 %v9331_v49 }
0x3b61   :  { %11531 = vpow2.f32 %v9332_v33 }
0x3b68   :  { %v11526_v18 = vpop.eup %11525 }
0x3b69   :  { %v11528_v7 = vpop.eup %11527  ;;  %3091 = vrot.lane.b32.xlu1 %v11526_v18, %s11615_s0 }
0x3b6a   :  { %3118 = vrot.lane.b32.xlu0 %v11528_v7, %s11615_s0  ;;  %v11530_v20 = vpop.eup %11529 }
0x3b6b   :  { %v11532_v55 = vpop.eup %11531  ;;  %v3082_v57 = vadd.f32 1.0, %v11530_v20 }
0x3b6c   :  { %v3109_v41 = vadd.f32 1.0, %v11532_v55 }
0x3b6d   :  { %11533 = vrcp.f32 %v3082_v57 }
0x3b6e   :  { %11535 = vrcp.f32 %v3109_v41 }
0x3b77   :  { %v11534_v37 = vpop.eup %11533 }
0x3b78   :  { %v11536_v61 = vpop.eup %11535  ;;  %v3089_v10 = vmul.f32 %v11534_v37, %v3087_v17 }
0x3b79   :  { %v3116_v28 = vmul.f32 %v11536_v61, %v3114_v60 }
0x3bdb   :  { %v3092_v21 = vpop.permute.xlu1 %3091 }
0x3bdc   :  { %v3094_v63 = vmul.f32 %v11534_v37, %v3092_v21  ;;  %v3119_v0 = vpop.permute.xlu0 %3118 }
0x3bdd   :  { %v3121_v13 = vmul.f32 %v11536_v61, %v3119_v0 }
0x3bde   :  { %3096 = vrot.lane.b32.xlu1 %v3094_v63, %s11616_s29 }
0x3bdf   :  { %3123 = vrot.lane.b32.xlu0 %v3121_v13, %s11616_s29 }
0x3c50   :  { %v3097_v19 = vpop.permute.xlu1 %3096 }
0x3c51   :  { %v3099_v39 = vadd.f32 %v3097_v19, %v3089_v10  ;;  %v3124_v32 = vpop.permute.xlu0 %3123 }
0x3c52   :  { %v3126_v25 = vadd.f32 %v3124_v32, %v3116_v28 }
0x3c53   :  { %11537 = vtanh.f32 %v3099_v39  ;;  %v3206_v59 = vrot.slane %v3099_v39, 6 }
0x3c54   :  { %11539 = vtanh.f32 %v3126_v25  ;;  %v3233_v11 = vrot.slane %v3126_v25, 2 }
0x3c5d   :  { %v11538_v23 = vpop.eup %11537 }
0x3c5e   :  { %v11540_v26 = vpop.eup %11539  ;;  %3102 = vrot.lane.b32.xlu1 %v11538_v23, %s11615_s0 }
0x3c5f   :  { %3129 = vrot.lane.b32.xlu0 %v11540_v26, %s11615_s0 }
0x3cd0   :  { %v3103_v29 = vpop.permute.xlu1 %3102 }
0x3cd1   :  { %v3105_v12 = vmul.f32 %v11534_v37, %v3103_v29  ;;  %v3130_v52 = vpop.permute.xlu0 %3129 }
0x3cd2   :  { %v3132_v27 = vmul.f32 %v11536_v61, %v3130_v52 }
0x3cd3   :  { %3134 = vrot.lane.b32.xlu0 %v3105_v12, %s11616_s29 }
0x3cd4   :  { %v3138_v30 = vrot.slane %v3132_v27, 2 }
0x3cd6   :  { %3139 = vrot.lane.b32.xlu1 %v3138_v30, %s11615_s0 }
0x3d45   :  { %v3135_v31 = vpop.permute.xlu0 %3134 }
0x3d48   :  { %v3140_v5 = vpop.permute.xlu1 %3139 }
0x3d49   :  { %v3142_v62 = vsel %vm323_vm2, %v3135_v31, %v3140_v5 }
0x3d4a   :  { %v3143_v47 = vpack.c.bf16 %v3142_v62, %v3142_v62 }
0x3d4c   :  { %v3145_v36 = vrot.slane %v3143_v47, 1 }
0x3d4e   :  { %9333 = vmatmul.mubr.msk.bf16.vlgmr.msra.gmra.mrb[44].mxu1 %vm209_vm3, %v3145_v36 }
0x3e21   :  { %v3183_v53 = vpop.f32.mrb[44].mxu1 }
0x3e22   :  { %v3191_v48 = vrot.slane %v3183_v53, 4  ;;  %v3185_v38 = vpop.f32.mrb[45].mxu1 }
0x3e23   :  { %v3195_v34 = vrot.slane %v3185_v38, 6  ;;  %v3187_v35 = vpop.f32.mrb[46].mxu1 }
0x3e24   :  { %v3193_v40 = vadd.f32 %v3191_v48, %v12560_v9  ;;  %v3188_v22 = vpop.f32.mrb[47].mxu1 }
0x3e25   :  { %v3197_v42 = vadd.f32 %v3195_v34, %v12557_v24 }
0x3e26   :  { %11541 = vtanh.f32 %v3193_v40  ;;  %v9334_v46 = vmul.f32 -1.442695, %v3193_v40 }
0x3e27   :  { %11543 = vtanh.f32 %v3197_v42  ;;  %v9335_v3 = vmul.f32 -1.442695, %v3197_v42 }
0x3e28   :  { %11545 = vpow2.f32 %v9334_v46 }
0x3e29   :  { %11547 = vpow2.f32 %v9335_v3  ;;  %v10893_v3 = vld [vmem:[%s14684_s11] sm:$0xff]  }
0x3e30   :  { %v11542_v43 = vpop.eup %11541 }
0x3e31   :  { %v11544_v45 = vpop.eup %11543  ;;  %3210 = vrot.lane.b32.xlu1 %v11542_v43, %s11615_s0 }
0x3e32   :  { %3237 = vrot.lane.b32.xlu0 %v11544_v45, %s11615_s0  ;;  %v11546_v4 = vpop.eup %11545 }
0x3e33   :  { %v11548_v6 = vpop.eup %11547  ;;  %v3201_v44 = vadd.f32 1.0, %v11546_v4  ;;  %v11617_v4 = vmov 0.0  }
0x3e34   :  { %v3228_v8 = vadd.f32 1.0, %v11548_v6  ;;  %10722 = vmatprep.subr.bf16.mxu1 %v11617_v4  ;;  %10742 = vmatprep.subr.bf16.mxu0 %v11617_v4  ;;  %v10894_v6 = vld [vmem:[%s14684_s11 + $0x8] sm:$0xff]  }
0x3e35   :  { %11549 = vrcp.f32 %v3201_v44  ;;  %10723 = vmatpush3.bf16.msra.mxu1 %v10893_v3  ;;  %10738 = vmatprep.mubr.msk.bf16.mxu1 %vm11618_vm11, %v11617_v4  ;;  %v3665_v3 = vld [vmem:[%s14688_s15 + $0xc0] sm:$0xff] }
0x3e36   :  { %11551 = vrcp.f32 %v3228_v8  ;;  %10724 = vmatprep.subr.bf16.mxu1 %v11617_v4 }
0x3e39   :  { %10725 = vmatpush3.bf16.msra.mxu1 %v10894_v6  ;;  %v3658_v6 = vld [vmem:[%s14688_s15 + $0x88] sm:$0xff] }
0x3e3a   :  { %10726 = vmatprep.subr.bf16.mxu1 %v11617_v4 }
0x3e3f   :  { %v11550_v51 = vpop.eup %11549 }
0x3e40   :  { %v11552_v56 = vpop.eup %11551  ;;  %v3208_v18 = vmul.f32 %v11550_v51, %v3206_v59 }
0x3e41   :  { %v3235_v49 = vmul.f32 %v11552_v56, %v3233_v11  ;;  %v10901_v11 = vld [vmem:[%s14686_s13] sm:$0xff]  }
0x3ea3   :  { %v3211_v58 = vpop.permute.xlu1 %3210 }
0x3ea4   :  { %v3213_v50 = vmul.f32 %v11550_v51, %v3211_v58  ;;  %v3238_v54 = vpop.permute.xlu0 %3237  ;;  %v10896_v58 = vld [vmem:[%s14684_s11 + $0x18] sm:$0xff]  }
0x3ea5   :  { %v3240_v1 = vmul.f32 %v11552_v56, %v3238_v54  ;;  %v10899_v54 = vld [vmem:[%s14684_s11 + $0x30] sm:$0xff]  }
0x3ea6   :  { %3215 = vrot.lane.b32.xlu1 %v3213_v50, %s11616_s29  ;;  %v10898_v50 = vld [vmem:[%s14684_s11 + $0x28] sm:$0xff]  }
0x3ea7   :  { %3242 = vrot.lane.b32.xlu0 %v3240_v1, %s11616_s29  ;;  %v10900_v1 = vld [vmem:[%s14684_s11 + $0x38] sm:$0xff]  }
0x3f18   :  { %v3216_v7 = vpop.permute.xlu1 %3215 }
0x3f19   :  { %v3218_v33 = vadd.f32 %v3216_v7, %v3208_v18  ;;  %v3243_v20 = vpop.permute.xlu0 %3242 }
0x3f1a   :  { %v3245_v55 = vadd.f32 %v3243_v20, %v3235_v49  ;;  %v3368_v49 = vld [vmem:[%s14724_s5] sm:$0x3]  ;;  %v10902_v20 = vld [vmem:[%s14686_s13 + $0x8] sm:$0xff]  }
0x3f1b   :  { %11553 = vtanh.f32 %v3218_v33  ;;  %v3322_v35 = vrot.slane %v3218_v33, 6 }
0x3f1c   :  { %11555 = vtanh.f32 %v3245_v55  ;;  %v3349_v34 = vrot.slane %v3245_v55, 2 }
0x3f25   :  { %v11554_v57 = vpop.eup %11553 }
0x3f26   :  { %v11556_v41 = vpop.eup %11555  ;;  %3221 = vrot.lane.b32.xlu1 %v11554_v57, %s11615_s0  ;;  %v3379_v57 = vrot.slane %v3368_v49, 2 }
0x3f27   :  { %3248 = vrot.lane.b32.xlu0 %v11556_v41, %s11615_s0  ;;  %v10903_v41 = vld [vmem:[%s14686_s13 + $0x10] sm:$0xff]  }
0x3f98   :  { %v3222_v37 = vpop.permute.xlu1 %3221 }
0x3f99   :  { %v3224_v21 = vmul.f32 %v11550_v51, %v3222_v37  ;;  %v3249_v61 = vpop.permute.xlu0 %3248  ;;  %v10895_v51 = vld [vmem:[%s14684_s11 + $0x10] sm:$0xff]   ;;  %v10904_v37 = vld [vmem:[%s14686_s13 + $0x18] sm:$0xff]  }
0x3f9a   :  { %v3251_v63 = vmul.f32 %v11552_v56, %v3249_v61  ;;  %10727 = vmatpush3.bf16.msra.mxu1 %v10895_v51  ;;  %v10897_v56 = vld [vmem:[%s14684_s11 + $0x20] sm:$0xff]   ;;  %v10906_v61 = vld [vmem:[%s14686_s13 + $0x28] sm:$0xff]  }
0x3f9b   :  { %3253 = vrot.lane.b32.xlu0 %v3224_v21, %s11616_s29  ;;  %10728 = vmatprep.subr.bf16.mxu1 %v11617_v4  ;;  %v10905_v21 = vld [vmem:[%s14686_s13 + $0x20] sm:$0xff]  }
0x3f9c   :  { %v3257_v0 = vrot.slane %v3251_v63, 6  ;;  %v10907_v63 = vld [vmem:[%s14686_s13 + $0x30] sm:$0xff]  }
0x3f9e   :  { %3258 = vrot.lane.b32.xlu1 %v3257_v0, %s11615_s0  ;;  %10729 = vmatpush3.bf16.msra.mxu1 %v10896_v58 }
0x3f9f   :  { %10730 = vmatprep.subr.bf16.mxu1 %v11617_v4 }
0x3fa2   :  { %10731 = vmatpush3.bf16.msra.mxu1 %v10897_v56 }
0x3fa3   :  { %10732 = vmatprep.subr.bf16.mxu1 %v11617_v4 }
0x3fa6   :  { %10733 = vmatpush3.bf16.msra.mxu1 %v10898_v50  ;;  %v3673_v50 = vld [vmem:[%s14688_s15 + $0x100] sm:$0xff] }
0x3fa7   :  { %10734 = vmatprep.subr.bf16.mxu1 %v11617_v4 }
0x3faa   :  { %10735 = vmatpush3.bf16.msra.mxu1 %v10899_v54  ;;  %v3681_v54 = vld [vmem:[%s14688_s15 + $0x140] sm:$0xff] }
0x3fab   :  { %10736 = vmatprep.subr.bf16.mxu1 %v11617_v4 }
0x3fae   :  { %10737 = vmatpush3.bf16.msra.mxu1 %v10900_v1  ;;  %v3674_v1 = vld [vmem:[%s14688_s15 + $0x108] sm:$0xff] }
0x400d   :  { %v3254_v13 = vpop.permute.xlu0 %3253 }
0x4010   :  { %v3259_v17 = vpop.permute.xlu1 %3258 }
0x4011   :  { %v3261_v60 = vsel %vm323_vm2, %v3254_v13, %v3259_v17 }
0x4012   :  { %v3262_v10 = vpack.c.bf16 %v3261_v60, %v3261_v60 }
0x4014   :  { %v3264_v19 = vrot.slane %v3262_v10, 2 }
0x4016   :  { %9336 = vmatmul.mubr.msk.bf16.vlgmr.msra.gmra.mrb[56].mxu0 %vm209_vm3, %v3264_v19 }
0x4017   :  { %10758 = vmatprep.mubr.msk.bf16.mxu0 %vm11618_vm11, %v11617_v4  ;;  %10743 = vmatpush3.bf16.msra.mxu0 %v10901_v11  ;;  %v3682_v11 = vld [vmem:[%s14688_s15 + $0x148] sm:$0xff] }
0x4018   :  { %10744 = vmatprep.subr.bf16.mxu0 %v11617_v4  ;;  %v9395_v49 = vcombine.high %v3674_v1, %v3682_v11 }
0x401b   :  { %10745 = vmatpush3.bf16.msra.mxu0 %v10902_v20  ;;  %v3697_v20 = vld [vmem:[%s14688_s15 + $0x1c0] sm:$0xff] }
0x401c   :  { %10746 = vmatprep.subr.bf16.mxu0 %v11617_v4 }
0x401f   :  { %10747 = vmatpush3.bf16.msra.mxu0 %v10903_v41  ;;  %v3698_v41 = vld [vmem:[%s14688_s15 + $0x1c8] sm:$0xff] }
0x4020   :  { %10748 = vmatprep.subr.bf16.mxu0 %v11617_v4 }
0x4023   :  { %10749 = vmatpush3.bf16.msra.mxu0 %v10904_v37 }
0x4024   :  { %10750 = vmatprep.subr.bf16.mxu0 %v11617_v4 }
0x4027   :  { %10751 = vmatpush3.bf16.msra.mxu0 %v10905_v21 }
0x4028   :  { %10752 = vmatprep.subr.bf16.mxu0 %v11617_v4 }
0x402b   :  { %10753 = vmatpush3.bf16.msra.mxu0 %v10906_v61 }
0x402c   :  { %10754 = vmatprep.subr.bf16.mxu0 %v11617_v4 }
0x402f   :  { %10755 = vmatpush3.bf16.msra.mxu0 %v10907_v63  ;;  %v3705_v63 = vld [vmem:[%s14688_s15 + $0x200] sm:$0xff] }
0x4030   :  { %10756 = vmatprep.subr.bf16.mxu0 %v11617_v4 }
0x40e9   :  { %v3302_v28 = vpop.f32.mrb[56].mxu0 }
0x40ea   :  { %v3310_v39 = vrot.slane %v3302_v28, 2  ;;  %v3304_v32 = vpop.f32.mrb[57].mxu0 }
0x40eb   :  { %v3313_v25 = vadd.f32 %v3304_v32, %v12557_v24  ;;  %v3306_v23 = vpop.f32.mrb[58].mxu0  ;;  %v9339_v32 = vld [vmem:[%s14685_s12] ss:$0 sm:$0xff] }
0x40ec   :  { %v3312_v26 = vadd.f32 %v3310_v39, %v12560_v9  ;;  %v3307_v29 = vpop.f32.mrb[59].mxu0  ;;  %v10908_v39 = vld [vmem:[%s14686_s13 + $0x38] sm:$0xff]  }
0x40ed   :  { %11557 = vtanh.f32 %v3313_v25  ;;  %v9338_v27 = vmul.f32 -1.442695, %v3313_v25  ;;  %10757 = vmatpush3.bf16.msra.mxu0 %v10908_v39  ;;  %v3721_v39 = vld [vmem:[%s14688_s15 + $0x280] sm:$0xff] }
0x40ee   :  { %11559 = vtanh.f32 %v3312_v26  ;;  %v9337_v30 = vmul.f32 -1.442695, %v3312_v26 }
0x40ef   :  { %11561 = vpow2.f32 %v9338_v27  ;;  %v3641_v27 = vld [vmem:[%s14688_s15] sm:$0xff] }
0x40f0   :  { %11563 = vpow2.f32 %v9337_v30  ;;  %v3649_v30 = vld [vmem:[%s14688_s15 + $0x40] sm:$0xff] }
0x40f7   :  { %v11558_v12 = vpop.eup %11557 }
0x40f8   :  { %v11560_v52 = vpop.eup %11559  ;;  %3353 = vrot.lane.b32.xlu0 %v11558_v12, %s11615_s0 }
0x40f9   :  { %3326 = vrot.lane.b32.xlu1 %v11560_v52, %s11615_s0  ;;  %v11562_v31 = vpop.eup %11561 }
0x40fa   :  { %v11564_v5 = vpop.eup %11563  ;;  %v3344_v62 = vadd.f32 1.0, %v11562_v31  ;;  %v3642_v31 = vld [vmem:[%s14688_s15 + $0x8] sm:$0xff] }
0x40fb   :  { %v3317_v24 = vadd.f32 1.0, %v11564_v5  ;;  %v9360_v5 = vcombine.low %v3641_v27, %v3649_v30 }
0x40fc   :  { %11565 = vrcp.f32 %v3344_v62  ;;  %v9361_v62 = vcombine.high %v3641_v27, %v3649_v30  ;;  %v3737_v27 = vld [vmem:[%s14688_s15 + $0x300] sm:$0xff] }
0x40fd   :  { %11567 = vrcp.f32 %v3317_v24  ;;  %v3650_v24 = vld [vmem:[%s14688_s15 + $0x48] sm:$0xff]  ;;  %v3745_v30 = vld [vmem:[%s14688_s15 + $0x340] sm:$0xff] }
0x40fe   :  { %4497 = vmatprep.subr.bf16.mxu1 %v9361_v62  ;;  %v3746_v62 = vld [vmem:[%s14688_s15 + $0x348] sm:$0xff] }
0x4106   :  { %v11566_v9 = vpop.eup %11565 }
0x4107   :  { %v11568_v36 = vpop.eup %11567  ;;  %v3351_v40 = vmul.f32 %v11566_v9, %v3349_v34 }
0x4108   :  { %v3324_v42 = vmul.f32 %v11568_v36, %v3322_v35 }
0x416a   :  { %v3354_v47 = vpop.permute.xlu0 %3353 }
0x416b   :  { %v3356_v53 = vmul.f32 %v11566_v9, %v3354_v47  ;;  %v3327_v48 = vpop.permute.xlu1 %3326  ;;  %v9363_v47 = vcombine.high %v3642_v31, %v3650_v24 }
0x416c   :  { %v3329_v38 = vmul.f32 %v11568_v36, %v3327_v48 }
0x416d   :  { %3358 = vrot.lane.b32.xlu0 %v3356_v53, %s11616_s29  ;;  %4538 = vmatprep.subr.bf16.mxu0 %v9363_v47 }
0x416e   :  { %3331 = vrot.lane.b32.xlu1 %v3329_v38, %s11616_s29 }
0x41df   :  { %v3359_v22 = vpop.permute.xlu0 %3358 }
0x41e0   :  { %v3361_v43 = vadd.f32 %v3359_v22, %v3351_v40  ;;  %v3332_v45 = vpop.permute.xlu1 %3331 }
0x41e1   :  { %v3334_v46 = vadd.f32 %v3332_v45, %v3324_v42 }
0x41e2   :  { %11569 = vtanh.f32 %v3361_v43 }
0x41e3   :  { %11571 = vtanh.f32 %v3334_v46  ;;  %v3657_v46 = vld [vmem:[%s14688_s15 + $0x80] sm:$0xff] }
0x41e4   :  { %v9376_v51 = vcombine.low %v3657_v46, %v3665_v3 }
0x41ec   :  { %v11570_v44 = vpop.eup %11569 }
0x41ed   :  { %v11572_v8 = vpop.eup %11571  ;;  %3364 = vrot.lane.b32.xlu0 %v11570_v44, %s11615_s0  ;;  %v9377_v44 = vcombine.high %v3657_v46, %v3665_v3  ;;  %v3644_v46 = vld [vmem:[%s14688_s15 + $0x18] sm:$0xff] }
0x41ee   :  { %3337 = vrot.lane.b32.xlu1 %v11572_v8, %s11615_s0  ;;  %v3666_v8 = vld [vmem:[%s14688_s15 + $0xc8] sm:$0xff] }
0x41ef   :  { %v9378_v58 = vcombine.low %v3658_v6, %v3666_v8  ;;  %v9379_v56 = vcombine.high %v3658_v6, %v3666_v8  ;;  %v3652_v6 = vld [vmem:[%s14688_s15 + $0x58] sm:$0xff] }
0x41f0   :  { %v9366_v8 = vcombine.low %v3644_v46, %v3652_v6 }
0x425f   :  { %v3365_v59 = vpop.permute.xlu0 %3364 }
0x4260   :  { %v3367_v18 = vmul.f32 %v11566_v9, %v3365_v59  ;;  %v3338_v7 = vpop.permute.xlu1 %3337  ;;  %v9362_v9 = vcombine.low %v3642_v31, %v3650_v24  ;;  %v9393_v59 = vcombine.high %v3673_v50, %v3681_v54  ;;  %v3738_v31 = vld [vmem:[%s14688_s15 + $0x308] sm:$0xff]  ;;  %v9456_v24 = vcombine.low %v3737_v27, %v3745_v30 }
0x4261   :  { %v3340_v33 = vmul.f32 %v11568_v36, %v3338_v7  ;;  %v9348_v36 = vld [vmem:[%s14687_s14] ss:$0 sm:$0xff]  ;;  %v9394_v7 = vcombine.low %v3674_v1, %v3682_v11  ;;  %v9459_v47 = vcombine.high %v3738_v31, %v3746_v62 }
0x4262   :  { %v3374_v55 = vrot.slane %v3367_v18, 2  ;;  %v9392_v18 = vcombine.low %v3673_v50, %v3681_v54 }
0x4263   :  { %3370 = vrot.lane.b32.xlu0 %v3340_v33, %s11616_s29  ;;  %v3689_v33 = vld [vmem:[%s14688_s15 + $0x180] sm:$0xff] }
0x4264   :  { %3375 = vrot.lane.b32.xlu1 %v3374_v55, %s11615_s0  ;;  %v3690_v55 = vld [vmem:[%s14688_s15 + $0x188] sm:$0xff]  ;;  %v9408_v37 = vcombine.low %v3689_v33, %v3697_v20 }
0x4265   :  { %v9410_v21 = vcombine.low %v3690_v55, %v3698_v41  ;;  %v9411_v61 = vcombine.high %v3690_v55, %v3698_v41  ;;  %v3659_v41 = vld [vmem:[%s14688_s15 + $0x90] sm:$0xff] }
0x4267   :  { %3380 = vrot.lane.b32.xlu0 %v3379_v57, %s11615_s0  ;;  %v9409_v57 = vcombine.high %v3689_v33, %v3697_v20  ;;  %v9358_v20 = vld [vmem:[%s14693_s20] ss:$0 sm:$0xff] }
0x42d5   :  { %v3371_v0 = vpop.permute.xlu0 %3370 }
0x42d6   :  { %v3376_v13 = vpop.permute.xlu1 %3375 }
0x42d7   :  { %v3383_v17 = vsel %vm323_vm2, %v3371_v0, %v3376_v13  ;;  %v3713_v0 = vld [vmem:[%s14688_s15 + $0x240] sm:$0xff]  ;;  %v3706_v13 = vld [vmem:[%s14688_s15 + $0x208] sm:$0xff] }
0x42d9   :  { %v3381_v60 = vpop.permute.xlu0 %3380 }
0x42da   :  { %v3384_v10 = vsel %vm209_vm3, %v3383_v17, %v3381_v60  ;;  %v9425_v17 = vcombine.high %v3705_v63, %v3713_v0  ;;  %v3714_v60 = vld [vmem:[%s14688_s15 + $0x248] sm:$0xff] }
0x42db   :  { %v3385_v19 = vpack.c.bf16 %v3384_v10, %v3384_v10 }
0x42dd   :  { %v3408_v28 = vrot.slane %v3385_v19, 3  ;;  %v9426_v19 = vcombine.low %v3706_v13, %v3714_v60 }
0x42df   :  { %10739 = vmatmul.mubr.bf16.vlgmr.msra.gmra.mrb[48].mxu1 %v3408_v28  ;;  %v9427_v28 = vcombine.high %v3706_v13, %v3714_v60  ;;  %v3683_v60 = vld [vmem:[%s14688_s15 + $0x150] sm:$0xff] }
0x42e0   :  { %4529 = vmatprep.mubr.bf16.mxu1 %v11613_v2  ;;  %4498 = vmatpush1.bf16.msra.mxu1 %v9360_v5  ;;  %v9457_v5 = vcombine.high %v3737_v27, %v3745_v30 }
0x42e1   :  { %4499 = vmatprep.subr.bf16.mxu1 %v9377_v44 }
0x42e4   :  { %4500 = vmatpush1.bf16.msra.mxu1 %v9376_v51  ;;  %v9367_v51 = vcombine.high %v3644_v46, %v3652_v6  ;;  %v3747_v6 = vld [vmem:[%s14688_s15 + $0x350] sm:$0xff] }
0x42e5   :  { %4501 = vmatprep.subr.bf16.mxu1 %v9393_v59 }
0x42e8   :  { %4502 = vmatpush1.bf16.msra.mxu1 %v9392_v18 }
0x42e9   :  { %4503 = vmatprep.subr.bf16.mxu1 %v9409_v57 }
0x42ec   :  { %4504 = vmatpush1.bf16.msra.mxu1 %v9408_v37  ;;  %v3660_v37 = vld [vmem:[%s14688_s15 + $0x98] sm:$0xff] }
0x42ed   :  { %4505 = vmatprep.subr.bf16.mxu1 %v9425_v17  ;;  %v3675_v17 = vld [vmem:[%s14688_s15 + $0x110] sm:$0xff] }
0x43b2   :  { %v3492_v25 = vpop.f32.mrb[48].mxu1 }
0x43b3   :  { %v3493_v23 = vadd.f32 %v9339_v32, %v3492_v25  ;;  %v10740_v26 = vpop.f32.mrb[49].mxu1  ;;  %v3729_v32 = vld [vmem:[%s14688_s15 + $0x2c0] sm:$0xff]  ;;  %v3722_v25 = vld [vmem:[%s14688_s15 + $0x288] sm:$0xff] }
0x43b4   :  { %v3495_v29 = vpop.f32.mrb[50].mxu1  ;;  %v3730_v26 = vld [vmem:[%s14688_s15 + $0x2c8] sm:$0xff] }
0x43b5   :  { %v3498_v12 = vpack.c.bf16 %v3493_v23, %v3493_v23  ;;  %v10741_v52 = vpop.f32.mrb[51].mxu1  ;;  %v9441_v23 = vcombine.high %v3721_v39, %v3729_v32  ;;  %v9440_v29 = vcombine.low %v3721_v39, %v3729_v32  ;;  %v9397_v32 = vcombine.high %v3675_v17, %v3683_v60 }
0x43b6   :  { %v9443_v52 = vcombine.high %v3722_v25, %v3730_v26 }
0x43b7   :  { %10759 = vmatmul.mubr.bf16.vlgmr.msra.gmra.mrb[60].mxu0 %v3498_v12  ;;  %v9442_v12 = vcombine.low %v3722_v25, %v3730_v26  ;;  %v3699_v26 = vld [vmem:[%s14688_s15 + $0x1d0] sm:$0xff] }
0x43b8   :  { %4570 = vmatprep.mubr.bf16.mxu0 %v11613_v2  ;;  %4539 = vmatpush1.bf16.msra.mxu0 %v9362_v9  ;;  %v9458_v9 = vcombine.low %v3738_v31, %v3746_v62  ;;  %v3715_v62 = vld [vmem:[%s14688_s15 + $0x250] sm:$0xff] }
0x43b9   :  { %4540 = vmatprep.subr.bf16.mxu0 %v9379_v56 }
0x43bc   :  { %4541 = vmatpush1.bf16.msra.mxu0 %v9378_v58 }
0x43bd   :  { %4542 = vmatprep.subr.bf16.mxu0 %v9395_v49  ;;  %v9357_v49 = vld [vmem:[%s14692_s19] ss:$0 sm:$0xff] }
0x43c0   :  { %4543 = vmatpush1.bf16.msra.mxu0 %v9394_v7 }
0x43c1   :  { %4544 = vmatprep.subr.bf16.mxu0 %v9411_v61 }
0x43c4   :  { %4545 = vmatpush1.bf16.msra.mxu0 %v9410_v21  ;;  %v3668_v21 = vld [vmem:[%s14688_s15 + $0xd8] sm:$0xff] }
0x43c5   :  { %4546 = vmatprep.subr.bf16.mxu0 %v9427_v28  ;;  %v9383_v13 = vcombine.high %v3660_v37, %v3668_v21  ;;  %v9382_v39 = vcombine.low %v3660_v37, %v3668_v21 }
0x43c8   :  { %4547 = vmatpush1.bf16.msra.mxu0 %v9426_v19  ;;  %v3684_v19 = vld [vmem:[%s14688_s15 + $0x158] sm:$0xff] }
0x43c9   :  { %4548 = vmatprep.subr.bf16.mxu0 %v9443_v52  ;;  %v9396_v52 = vcombine.low %v3675_v17, %v3683_v60  ;;  %v3669_v17 = vld [vmem:[%s14688_s15 + $0xe0] sm:$0xff]  ;;  %v3662_v60 = vld [vmem:[%s14688_s15 + $0xa8] sm:$0xff] }
0x43cc   :  { %4549 = vmatpush1.bf16.msra.mxu0 %v9442_v12  ;;  %v3700_v12 = vld [vmem:[%s14688_s15 + $0x1d8] sm:$0xff] }
0x43cd   :  { %4550 = vmatprep.subr.bf16.mxu0 %v9459_v47 }
0x43d0   :  { %4551 = vmatpush1.bf16.msra.mxu0 %v9458_v9  ;;  %v3716_v9 = vld [vmem:[%s14688_s15 + $0x258] sm:$0xff] }
0x448a   :  { %v3602_v53 = vpop.f32.mrb[60].mxu0 }
0x448b   :  { %v3603_v48 = vadd.f32 %v9348_v36, %v3602_v53  ;;  %v10760_v38 = vpop.f32.mrb[61].mxu0  ;;  %v3753_v36 = vld [vmem:[%s14688_s15 + $0x380] sm:$0xff] }
0x448c   :  { %v3605_v34 = vpop.f32.mrb[62].mxu0  ;;  %v3761_v53 = vld [vmem:[%s14688_s15 + $0x3c0] sm:$0xff] }
0x448d   :  { %v3609_v35 = vrot.slane %v3603_v48, 2  ;;  %v10761_v40 = vpop.f32.mrb[63].mxu0  ;;  %v3754_v48 = vld [vmem:[%s14688_s15 + $0x388] sm:$0xff]  ;;  %v9473_v38 = vcombine.high %v3753_v36, %v3761_v53 }
0x448e   :  { %v3762_v34 = vld [vmem:[%s14688_s15 + $0x3c8] sm:$0xff] }
0x448f   :  { %v12830_v22 = vadd.f32 %v3609_v35, %v3384_v10  ;;  %v9424_v10 = vcombine.low %v3705_v63, %v3713_v0  ;;  %v9472_v35 = vcombine.low %v3753_v36, %v3761_v53  ;;  %v9474_v40 = vcombine.low %v3754_v48, %v3762_v34 }
0x4491   :  { %v3615_v42 = vsel %vm3614_vm12, %v12830_v22, 0.0  ;;  %v3619_v43 = vmul.f32 %v12830_v22, %v12830_v22  ;;  %4506 = vmatpush1.bf16.msra.mxu1 %v9424_v10  ;;  %v3676_v10 = vld [vmem:[%s14688_s15 + $0x118] sm:$0xff] }
0x4492   :  { %3616 = vadd.xlane.f32.xlu1 %v3615_v42  ;;  %4507 = vmatprep.subr.bf16.mxu1 %v9441_v23  ;;  %v9475_v42 = vcombine.high %v3754_v48, %v3762_v34  ;;  %v9399_v25 = vcombine.high %v3676_v10, %v3684_v19  ;;  %v3691_v23 = vld [vmem:[%s14688_s15 + $0x190] sm:$0xff]  ;;  %v9398_v27 = vcombine.low %v3676_v10, %v3684_v19  ;;  %v3670_v10 = vld [vmem:[%s14688_s15 + $0xe8] sm:$0xff] }
0x4493   :  { %v3620_v45 = vsel %vm3614_vm12, %v3619_v43, 0.0  ;;  %v3643_v43 = vld [vmem:[%s14688_s15 + $0x10] sm:$0xff]  ;;  %v9413_v30 = vcombine.high %v3691_v23, %v3699_v26  ;;  %v9412_v47 = vcombine.low %v3691_v23, %v3699_v26  ;;  %v3685_v23 = vld [vmem:[%s14688_s15 + $0x160] sm:$0xff]  ;;  %v3678_v26 = vld [vmem:[%s14688_s15 + $0x128] sm:$0xff] }
0x4494   :  { %3621 = vadd.xlane.f32.xlu0 %v3620_v45  ;;  %4552 = vmatprep.subr.bf16.mxu0 %v9475_v42  ;;  %v3651_v45 = vld [vmem:[%s14688_s15 + $0x50] sm:$0xff] }
0x4495   :  { %4508 = vmatpush1.bf16.msra.mxu1 %v9440_v29  ;;  %4553 = vmatpush1.bf16.msra.mxu0 %v9474_v40  ;;  %v9365_v3 = vcombine.high %v3643_v43, %v3651_v45  ;;  %v9364_v44 = vcombine.low %v3643_v43, %v3651_v45  ;;  %v3692_v29 = vld [vmem:[%s14688_s15 + $0x198] sm:$0xff]  ;;  %v3731_v34 = vld [vmem:[%s14688_s15 + $0x2d0] sm:$0xff] }
0x4496   :  { %4509 = vmatprep.subr.bf16.mxu1 %v9457_v5  ;;  %4620 = vmatprep.subr.bf16.mxu0 %v9367_v51  ;;  %v9415_v31 = vcombine.high %v3692_v29, %v3700_v12  ;;  %v3707_v5 = vld [vmem:[%s14688_s15 + $0x210] sm:$0xff]  ;;  %v9414_v36 = vcombine.low %v3692_v29, %v3700_v12  ;;  %v3732_v40 = vld [vmem:[%s14688_s15 + $0x2d8] sm:$0xff]  ;;  %v3686_v29 = vld [vmem:[%s14688_s15 + $0x168] sm:$0xff] }
0x4497   :  { %v9429_v53 = vcombine.high %v3707_v5, %v3715_v62  ;;  %v9428_v42 = vcombine.low %v3707_v5, %v3715_v62  ;;  %v3701_v5 = vld [vmem:[%s14688_s15 + $0x1e0] sm:$0xff]  ;;  %v3694_v62 = vld [vmem:[%s14688_s15 + $0x1a8] sm:$0xff] }
0x4499   :  { %4510 = vmatpush1.bf16.msra.mxu1 %v9456_v24  ;;  %v3708_v24 = vld [vmem:[%s14688_s15 + $0x218] sm:$0xff] }
0x449a   :  { %4511 = vmatprep.subr.bf16.mxu1 %v9473_v38  ;;  %v9431_v48 = vcombine.high %v3708_v24, %v3716_v9  ;;  %v3723_v38 = vld [vmem:[%s14688_s15 + $0x290] sm:$0xff]  ;;  %v9430_v43 = vcombine.low %v3708_v24, %v3716_v9  ;;  %v3702_v24 = vld [vmem:[%s14688_s15 + $0x1e8] sm:$0xff] }
0x449b   :  { %v9445_v45 = vcombine.high %v3723_v38, %v3731_v34  ;;  %v9444_v51 = vcombine.low %v3723_v38, %v3731_v34  ;;  %v3717_v38 = vld [vmem:[%s14688_s15 + $0x260] sm:$0xff]  ;;  %v3710_v34 = vld [vmem:[%s14688_s15 + $0x228] sm:$0xff] }
0x449d   :  { %4512 = vmatpush1.bf16.msra.mxu1 %v9472_v35  ;;  %v3724_v35 = vld [vmem:[%s14688_s15 + $0x298] sm:$0xff] }
0x449e   :  { %4579 = vmatprep.subr.bf16.mxu1 %v9365_v3  ;;  %v9447_v46 = vcombine.high %v3724_v35, %v3732_v40  ;;  %v3739_v3 = vld [vmem:[%s14688_s15 + $0x310] sm:$0xff] }
0x451f   :  { %v3617_v58 = vpop.xlane.xlu1 %3616 }
0x4520   :  { %v3618_v56 = vmul.f32 0.013888889, %v3617_v58  ;;  %v9446_v58 = vcombine.low %v3724_v35, %v3732_v40  ;;  %v3718_v35 = vld [vmem:[%s14688_s15 + $0x268] sm:$0xff] }
0x4521   :  { %v3622_v50 = vpop.xlane.xlu0 %3621 }
0x4522   :  { %v3624_v54 = vmul.f32 %v3618_v56, %v3618_v56  ;;  %v3623_v1 = vmul.f32 0.013888889, %v3622_v50  ;;  %v3626_v18 = vsub.f32 %v12830_v22, %v3618_v56  ;;  %v3667_v22 = vld [vmem:[%s14688_s15 + $0xd0] sm:$0xff]  ;;  %v9461_v56 = vcombine.high %v3739_v3, %v3747_v6 }
0x4523   :  { %v9381_v0 = vcombine.high %v3659_v41, %v3667_v22  ;;  %v9380_v28 = vcombine.low %v3659_v41, %v3667_v22  ;;  %v3646_v41 = vld [vmem:[%s14688_s15 + $0x28] sm:$0xff] }
0x4524   :  { %v3625_v59 = vsub.f32 %v3623_v1, %v3624_v54  ;;  %v3755_v54 = vld [vmem:[%s14688_s15 + $0x390] sm:$0xff]  ;;  %v3654_v22 = vld [vmem:[%s14688_s15 + $0x68] sm:$0xff] }
0x4525   :  { %v3763_v1 = vld [vmem:[%s14688_s15 + $0x3d0] sm:$0xff] }
0x4526   :  { %v3627_v11 = vadd.f32 1e-05, %v3625_v59  ;;  %v3756_v59 = vld [vmem:[%s14688_s15 + $0x398] sm:$0xff]  ;;  %v9476_v37 = vcombine.low %v3755_v54, %v3763_v1 }
0x4528   :  { %11573 = vrsqrt.f32 %v3627_v11  ;;  %v3764_v11 = vld [vmem:[%s14688_s15 + $0x3d8] sm:$0xff] }
0x4529   :  { %v9478_v21 = vcombine.low %v3756_v59, %v3764_v11 }
0x4532   :  { %v11574_v7 = vpop.eup %11573 }
0x4533   :  { %v3629_v33 = vmul.f32 %v11574_v7, %v3626_v18  ;;  %v9460_v18 = vcombine.low %v3739_v3, %v3747_v6  ;;  %v3733_v3 = vld [vmem:[%s14688_s15 + $0x2e0] sm:$0xff]  ;;  %v3726_v6 = vld [vmem:[%s14688_s15 + $0x2a8] sm:$0xff] }
0x4535   :  { %v3634_v55 = vmul.f32 %v9357_v49, %v3629_v33  ;;  %v9477_v49 = vcombine.high %v3755_v54, %v3763_v1  ;;  %v9479_v33 = vcombine.high %v3756_v59, %v3764_v11  ;;  %v3749_v54 = vld [vmem:[%s14688_s15 + $0x360] sm:$0xff]  ;;  %v3742_v1 = vld [vmem:[%s14688_s15 + $0x328] sm:$0xff] }
0x4536   :  { %v3750_v59 = vld [vmem:[%s14688_s15 + $0x368] sm:$0xff] }
0x4537   :  { %v12940_v57 = vadd.f32 %v9358_v20, %v3634_v55  ;;  %v3645_v20 = vld [vmem:[%s14688_s15 + $0x20] sm:$0xff] }
0x4538   :  { %v3653_v55 = vld [vmem:[%s14688_s15 + $0x60] sm:$0xff] }
0x4539   :  { %v3640_v61 = vpack.c.bf16 %v12940_v57, %v12940_v57  ;;  %v9368_v19 = vcombine.low %v3645_v20, %v3653_v55 }
0x453b   :  { %v12956_v63 = vrot.slane %v3640_v61, 3  ;;  %v9369_v61 = vcombine.high %v3645_v20, %v3653_v55  ;;  %v3765_v20 = vld [vmem:[%s14688_s15 + $0x3e0] sm:$0xff]  ;;  %v3758_v55 = vld [vmem:[%s14688_s15 + $0x3a8] sm:$0xff] }
0x453d   :  { %4530 = vmatmul.mubr.bf16.vlgmr.msra.gmra.mrb[52].mxu1 %v12956_v63  ;;  %4571 = vmatmul.mubr.bf16.vlgmr.msra.gmra.mrb[64].mxu0 %v12956_v63 }
0x453e   :  { %4580 = vmatpush1.bf16.msra.mxu1 %v9364_v44  ;;  %4621 = vmatpush1.bf16.msra.mxu0 %v9366_v8  ;;  %v3740_v44 = vld [vmem:[%s14688_s15 + $0x318] sm:$0xff] }
0x453f   :  { %4581 = vmatprep.subr.bf16.mxu1 %v9381_v0  ;;  %4622 = vmatprep.subr.bf16.mxu0 %v9383_v13  ;;  %v3748_v8 = vld [vmem:[%s14688_s15 + $0x358] sm:$0xff]  ;;  %v9371_v0 = vcombine.high %v3646_v41, %v3654_v22  ;;  %v3661_v13 = vld [vmem:[%s14688_s15 + $0xa0] sm:$0xff] }
0x4540   :  { %4611 = vmatprep.mubr.bf16.mxu1 %v11613_v2  ;;  %4652 = vmatprep.mubr.bf16.mxu0 %v11613_v2  ;;  %v9463_v50 = vcombine.high %v3740_v44, %v3748_v8  ;;  %v9462_v7 = vcombine.low %v3740_v44, %v3748_v8  ;;  %v9384_v12 = vcombine.low %v3661_v13, %v3669_v17  ;;  %v3734_v44 = vld [vmem:[%s14688_s15 + $0x2e8] sm:$0xff] }
0x4542   :  { %4582 = vmatpush1.bf16.msra.mxu1 %v9380_v28  ;;  %4623 = vmatpush1.bf16.msra.mxu0 %v9382_v39  ;;  %v9370_v28 = vcombine.low %v3646_v41, %v3654_v22  ;;  %v9385_v39 = vcombine.high %v3661_v13, %v3669_v17  ;;  %v3766_v41 = vld [vmem:[%s14688_s15 + $0x3e8] sm:$0xff]  ;;  %v3655_v13 = vld [vmem:[%s14688_s15 + $0x70] sm:$0xff]  ;;  %v3648_v17 = vld [vmem:[%s14688_s15 + $0x38] sm:$0xff] }
0x4543   :  { %4583 = vmatprep.subr.bf16.mxu1 %v9397_v32  ;;  %4624 = vmatprep.subr.bf16.mxu0 %v9399_v25  ;;  %v9387_v32 = vcombine.high %v3662_v60, %v3670_v10  ;;  %v3677_v25 = vld [vmem:[%s14688_s15 + $0x120] sm:$0xff] }
0x4544   :  { %v9400_v9 = vcombine.low %v3677_v25, %v3685_v23 }
0x4546   :  { %4584 = vmatpush1.bf16.msra.mxu1 %v9396_v52  ;;  %4625 = vmatpush1.bf16.msra.mxu0 %v9398_v27  ;;  %v9386_v52 = vcombine.low %v3662_v60, %v3670_v10  ;;  %v9401_v27 = vcombine.high %v3677_v25, %v3685_v23  ;;  %v3656_v60 = vld [vmem:[%s14688_s15 + $0x78] sm:$0xff]  ;;  %v3671_v25 = vld [vmem:[%s14688_s15 + $0xf0] sm:$0xff] }
0x4547   :  { %4585 = vmatprep.subr.bf16.mxu1 %v9413_v30  ;;  %4626 = vmatprep.subr.bf16.mxu0 %v9415_v31  ;;  %v9403_v30 = vcombine.high %v3678_v26, %v3686_v29  ;;  %v3693_v31 = vld [vmem:[%s14688_s15 + $0x1a0] sm:$0xff]  ;;  %v3664_v23 = vld [vmem:[%s14688_s15 + $0xb8] sm:$0xff] }
0x4548   :  { %v9416_v40 = vcombine.low %v3693_v31, %v3701_v5 }
0x454a   :  { %4586 = vmatpush1.bf16.msra.mxu1 %v9412_v47  ;;  %4627 = vmatpush1.bf16.msra.mxu0 %v9414_v36  ;;  %v9402_v47 = vcombine.low %v3678_v26, %v3686_v29  ;;  %v9417_v36 = vcombine.high %v3693_v31, %v3701_v5  ;;  %v3672_v26 = vld [vmem:[%s14688_s15 + $0xf8] sm:$0xff]  ;;  %v3687_v31 = vld [vmem:[%s14688_s15 + $0x170] sm:$0xff] }
0x454b   :  { %4587 = vmatprep.subr.bf16.mxu1 %v9429_v53  ;;  %4628 = vmatprep.subr.bf16.mxu0 %v9431_v48  ;;  %v9419_v53 = vcombine.high %v3694_v62, %v3702_v24  ;;  %v3709_v48 = vld [vmem:[%s14688_s15 + $0x220] sm:$0xff]  ;;  %v3680_v5 = vld [vmem:[%s14688_s15 + $0x138] sm:$0xff] }
0x454c   :  { %v9432_v8 = vcombine.low %v3709_v48, %v3717_v38 }
0x454e   :  { %4588 = vmatpush1.bf16.msra.mxu1 %v9428_v42  ;;  %4629 = vmatpush1.bf16.msra.mxu0 %v9430_v43  ;;  %v9418_v42 = vcombine.low %v3694_v62, %v3702_v24  ;;  %v9433_v43 = vcombine.high %v3709_v48, %v3717_v38  ;;  %v3688_v62 = vld [vmem:[%s14688_s15 + $0x178] sm:$0xff]  ;;  %v3703_v48 = vld [vmem:[%s14688_s15 + $0x1f0] sm:$0xff] }
0x454f   :  { %4589 = vmatprep.subr.bf16.mxu1 %v9445_v45  ;;  %4630 = vmatprep.subr.bf16.mxu0 %v9447_v46  ;;  %v9435_v45 = vcombine.high %v3710_v34, %v3718_v35  ;;  %v3725_v46 = vld [vmem:[%s14688_s15 + $0x2a0] sm:$0xff]  ;;  %v3696_v38 = vld [vmem:[%s14688_s15 + $0x1b8] sm:$0xff] }
0x4550   :  { %v9448_v11 = vcombine.low %v3725_v46, %v3733_v3 }
0x4552   :  { %4590 = vmatpush1.bf16.msra.mxu1 %v9444_v51  ;;  %4631 = vmatpush1.bf16.msra.mxu0 %v9446_v58  ;;  %v9434_v51 = vcombine.low %v3710_v34, %v3718_v35  ;;  %v9449_v58 = vcombine.high %v3725_v46, %v3733_v3  ;;  %v3704_v34 = vld [vmem:[%s14688_s15 + $0x1f8] sm:$0xff]  ;;  %v3719_v46 = vld [vmem:[%s14688_s15 + $0x270] sm:$0xff] }
0x4553   :  { %4591 = vmatprep.subr.bf16.mxu1 %v9461_v56  ;;  %4632 = vmatprep.subr.bf16.mxu0 %v9463_v50  ;;  %v9451_v56 = vcombine.high %v3726_v6, %v3734_v44  ;;  %v3741_v50 = vld [vmem:[%s14688_s15 + $0x320] sm:$0xff]  ;;  %v3712_v3 = vld [vmem:[%s14688_s15 + $0x238] sm:$0xff] }
0x4554   :  { %v9464_v22 = vcombine.low %v3741_v50, %v3749_v54 }
0x4556   :  { %4592 = vmatpush1.bf16.msra.mxu1 %v9460_v18  ;;  %4633 = vmatpush1.bf16.msra.mxu0 %v9462_v7  ;;  %v9450_v18 = vcombine.low %v3726_v6, %v3734_v44  ;;  %v9465_v7 = vcombine.high %v3741_v50, %v3749_v54  ;;  %v3720_v6 = vld [vmem:[%s14688_s15 + $0x278] sm:$0xff]  ;;  %v3735_v50 = vld [vmem:[%s14688_s15 + $0x2f0] sm:$0xff] }
0x4557   :  { %4593 = vmatprep.subr.bf16.mxu1 %v9477_v49  ;;  %4634 = vmatprep.subr.bf16.mxu0 %v9479_v33  ;;  %v9467_v49 = vcombine.high %v3742_v1, %v3750_v59  ;;  %v3757_v33 = vld [vmem:[%s14688_s15 + $0x3a0] sm:$0xff]  ;;  %v3728_v54 = vld [vmem:[%s14688_s15 + $0x2b8] sm:$0xff] }
0x4558   :  { %v9480_v10 = vcombine.low %v3757_v33, %v3765_v20 }
0x455a   :  { %4594 = vmatpush1.bf16.msra.mxu1 %v9476_v37  ;;  %4635 = vmatpush1.bf16.msra.mxu0 %v9478_v21  ;;  %v9466_v37 = vcombine.low %v3742_v1, %v3750_v59  ;;  %v9481_v21 = vcombine.high %v3757_v33, %v3765_v20  ;;  %v3736_v1 = vld [vmem:[%s14688_s15 + $0x2f8] sm:$0xff]  ;;  %v3751_v33 = vld [vmem:[%s14688_s15 + $0x370] sm:$0xff] }
0x455b   :  { %4661 = vmatprep.subr.bf16.mxu1 %v9369_v61  ;;  %4702 = vmatprep.subr.bf16.mxu0 %v9371_v0  ;;  %v9483_v61 = vcombine.high %v3758_v55, %v3766_v41  ;;  %v3647_v0 = vld [vmem:[%s14688_s15 + $0x30] sm:$0xff]  ;;  %v3744_v20 = vld [vmem:[%s14688_s15 + $0x338] sm:$0xff] }
0x455c   :  { %v9372_v29 = vcombine.low %v3647_v0, %v3655_v13 }
0x455d   :  { %4612 = vmatmul.mubr.bf16.vlgmr.msra.gmra.mrb[56].mxu1 %v12956_v63  ;;  %4653 = vmatmul.mubr.bf16.vlgmr.msra.gmra.mrb[68].mxu0 %v12956_v63 }
0x455e   :  { %4662 = vmatpush1.bf16.msra.mxu1 %v9368_v19  ;;  %4703 = vmatpush1.bf16.msra.mxu0 %v9370_v28  ;;  %v9482_v19 = vcombine.low %v3758_v55, %v3766_v41  ;;  %v9373_v28 = vcombine.high %v3647_v0, %v3655_v13  ;;  %v3752_v55 = vld [vmem:[%s14688_s15 + $0x378] sm:$0xff]  ;;  %v3767_v0 = vld [vmem:[%s14688_s15 + $0x3f0] sm:$0xff] }
0x455f   :  { %4663 = vmatprep.subr.bf16.mxu1 %v9385_v39  ;;  %4704 = vmatprep.subr.bf16.mxu0 %v9387_v32  ;;  %v9375_v39 = vcombine.high %v3648_v17, %v3656_v60  ;;  %v3663_v32 = vld [vmem:[%s14688_s15 + $0xb0] sm:$0xff]  ;;  %v3760_v13 = vld [vmem:[%s14688_s15 + $0x3b8] sm:$0xff] }
0x4560   :  { %4693 = vmatprep.mubr.bf16.mxu1 %v11613_v2  ;;  %4734 = vmatprep.mubr.bf16.mxu0 %v11613_v2  ;;  %v9388_v24 = vcombine.low %v3663_v32, %v3671_v25 }
0x4562   :  { %4664 = vmatpush1.bf16.msra.mxu1 %v9384_v12  ;;  %4705 = vmatpush1.bf16.msra.mxu0 %v9386_v52  ;;  %v9374_v12 = vcombine.low %v3648_v17, %v3656_v60  ;;  %v9389_v52 = vcombine.high %v3663_v32, %v3671_v25  ;;  %v3768_v17 = vld [vmem:[%s14688_s15 + $0x3f8] sm:$0xff]  ;;  %v10909_v25 = vld [vmem:[%s14690_s17 + $0x40] sm:$0xff]  }
0x4563   :  { %4665 = vmatprep.subr.bf16.mxu1 %v9401_v27  ;;  %4706 = vmatprep.subr.bf16.mxu0 %v9403_v30  ;;  %v9391_v27 = vcombine.high %v3664_v23, %v3672_v26  ;;  %v3679_v30 = vld [vmem:[%s14688_s15 + $0x130] sm:$0xff]  ;;  %v9486_v32 = vcombine.low %v3760_v13, %v3768_v17 }
0x4564   :  { %v9404_v35 = vcombine.low %v3679_v30, %v3687_v31 }
0x4566   :  { %4666 = vmatpush1.bf16.msra.mxu1 %v9400_v9  ;;  %4707 = vmatpush1.bf16.msra.mxu0 %v9402_v47  ;;  %v9390_v9 = vcombine.low %v3664_v23, %v3672_v26  ;;  %v9405_v47 = vcombine.high %v3679_v30, %v3687_v31  ;;  %v10910_v23 = vld [vmem:[%s14690_s17 + $0xc0] sm:$0xff]   ;;  %v10916_v30 = vld [vmem:[%s14690_s17 + $0x88] sm:$0xff]   ;;  %v10917_v31 = vld [vmem:[%s14690_s17 + $0x50] sm:$0xff]  }
0x4567   :  { %4667 = vmatprep.subr.bf16.mxu1 %v9417_v36  ;;  %4708 = vmatprep.subr.bf16.mxu0 %v9419_v53  ;;  %v9407_v36 = vcombine.high %v3680_v5, %v3688_v62  ;;  %v3695_v53 = vld [vmem:[%s14688_s15 + $0x1b0] sm:$0xff]  ;;  %v10911_v26 = vld [vmem:[%s14690_s17] sm:$0xff]  }
0x4568   :  { %v9420_v44 = vcombine.low %v3695_v53, %v3703_v48 }
0x456a   :  { %4668 = vmatpush1.bf16.msra.mxu1 %v9416_v40  ;;  %4709 = vmatpush1.bf16.msra.mxu0 %v9418_v42  ;;  %v9406_v40 = vcombine.low %v3680_v5, %v3688_v62  ;;  %v9421_v42 = vcombine.high %v3695_v53, %v3703_v48  ;;  %v10919_v5 = vld [vmem:[%s14690_s17 + $0x10] sm:$0xff]   ;;  %v10925_v53 = vld [vmem:[%s14690_s17 + $0x60] sm:$0xff]  }
0x456b   :  { %4669 = vmatprep.subr.bf16.mxu1 %v9433_v43  ;;  %4710 = vmatprep.subr.bf16.mxu0 %v9435_v45  ;;  %v9423_v43 = vcombine.high %v3696_v38, %v3704_v34  ;;  %v3711_v45 = vld [vmem:[%s14688_s15 + $0x230] sm:$0xff]  ;;  %v10926_v48 = vld [vmem:[%s14690_s17 + $0xe0] sm:$0xff]  }
0x456c   :  { %v9436_v59 = vcombine.low %v3711_v45, %v3719_v46  ;;  %v10920_v62 = vld [vmem:[%s14690_s17 + $0x90] sm:$0xff]  }
0x456e   :  { %4670 = vmatpush1.bf16.msra.mxu1 %v9432_v8  ;;  %4711 = vmatpush1.bf16.msra.mxu0 %v9434_v51  ;;  %v9422_v8 = vcombine.low %v3696_v38, %v3704_v34  ;;  %v9437_v51 = vcombine.high %v3711_v45, %v3719_v46  ;;  %v10927_v38 = vld [vmem:[%s14690_s17 + $0x20] sm:$0xff]   ;;  %v10933_v45 = vld [vmem:[%s14690_s17 + $0x70] sm:$0xff]  }
0x456f   :  { %4671 = vmatprep.subr.bf16.mxu1 %v9449_v58  ;;  %4712 = vmatprep.subr.bf16.mxu0 %v9451_v56  ;;  %v9439_v58 = vcombine.high %v3712_v3, %v3720_v6  ;;  %v3727_v56 = vld [vmem:[%s14688_s15 + $0x2b0] sm:$0xff]  ;;  %v10928_v34 = vld [vmem:[%s14690_s17 + $0xa0] sm:$0xff]  }
0x4570   :  { %v9452_v41 = vcombine.low %v3727_v56, %v3735_v50  ;;  %v10934_v46 = vld [vmem:[%s14690_s17 + $0xf0] sm:$0xff]  }
0x4572   :  { %4672 = vmatpush1.bf16.msra.mxu1 %v9448_v11  ;;  %4713 = vmatpush1.bf16.msra.mxu0 %v9450_v18  ;;  %v9438_v11 = vcombine.low %v3712_v3, %v3720_v6  ;;  %v9453_v18 = vcombine.high %v3727_v56, %v3735_v50  ;;  %v10935_v3 = vld [vmem:[%s14690_s17 + $0x30] sm:$0xff]   ;;  %v10941_v56 = vld [vmem:[%s14690_s17 + $0x140] sm:$0xff]  }
0x4573   :  { %4673 = vmatprep.subr.bf16.mxu1 %v9465_v7  ;;  %4714 = vmatprep.subr.bf16.mxu0 %v9467_v49  ;;  %v9455_v7 = vcombine.high %v3728_v54, %v3736_v1  ;;  %v3743_v49 = vld [vmem:[%s14688_s15 + $0x330] sm:$0xff]  ;;  %v10942_v50 = vld [vmem:[%s14690_s17 + $0x1c0] sm:$0xff]  }
0x4574   :  { %v9468_v60 = vcombine.low %v3743_v49, %v3751_v33  ;;  %v10936_v6 = vld [vmem:[%s14690_s17 + $0xb0] sm:$0xff]  }
0x4576   :  { %4674 = vmatpush1.bf16.msra.mxu1 %v9464_v22  ;;  %4715 = vmatpush1.bf16.msra.mxu0 %v9466_v37  ;;  %v9454_v22 = vcombine.low %v3728_v54, %v3736_v1  ;;  %v9469_v37 = vcombine.high %v3743_v49, %v3751_v33  ;;  %v13339_v54 = vsub.s32 2, %v11788_v14  ;;  %v13344_v1 = vld [vmem:[%s14689_s16] ss:$2 sm:$0xff] }
0x4577   :  { %4675 = vmatprep.subr.bf16.mxu1 %v9481_v21  ;;  %4716 = vmatprep.subr.bf16.mxu0 %v9483_v61  ;;  %v9471_v21 = vcombine.high %v3744_v20, %v3752_v55  ;;  %v3759_v61 = vld [vmem:[%s14688_s15 + $0x3b0] sm:$0xff] }
0x457a   :  { %4676 = vmatpush1.bf16.msra.mxu1 %v9480_v10  ;;  %4717 = vmatpush1.bf16.msra.mxu0 %v9482_v19  ;;  %v9470_v10 = vcombine.low %v3744_v20, %v3752_v55  ;;  %v9485_v19 = vcombine.high %v3759_v61, %v3767_v0 }
0x457b   :  { %4743 = vmatprep.subr.bf16.mxu1 %v9373_v28  ;;  %4784 = vmatprep.subr.bf16.mxu0 %v9375_v39  ;;  %v9487_v28 = vcombine.high %v3760_v13, %v3768_v17  ;;  %v9484_v39 = vcombine.low %v3759_v61, %v3767_v0 }
0x457d   :  { %4694 = vmatmul.mubr.bf16.vlgmr.msra.gmra.mrb[60].mxu1 %v12956_v63  ;;  %4735 = vmatmul.mubr.bf16.vlgmr.msra.gmra.mrb[72].mxu0 %v12956_v63 }
0x457e   :  { %4744 = vmatpush1.bf16.msra.mxu1 %v9372_v29  ;;  %4785 = vmatpush1.bf16.msra.mxu0 %v9374_v12  ;;  %v10912_v29 = vld [vmem:[%s14690_s17 + $0x80] sm:$0xff]   ;;  %v10913_v12 = vld [vmem:[%s14690_s17 + $0x48] sm:$0xff]  }
0x457f   :  { %4745 = vmatprep.subr.bf16.mxu1 %v9389_v52  ;;  %4786 = vmatprep.subr.bf16.mxu0 %v9391_v27  ;;  %v10914_v52 = vld [vmem:[%s14690_s17 + $0xc8] sm:$0xff]  }
0x4580   :  { %4775 = vmatprep.mubr.bf16.mxu1 %v11613_v2  ;;  %4816 = vmatprep.mubr.bf16.mxu0 %v11613_v2  ;;  %v10915_v27 = vld [vmem:[%s14690_s17 + $0x8] sm:$0xff]  }
0x4582   :  { %4746 = vmatpush1.bf16.msra.mxu1 %v9388_v24  ;;  %4787 = vmatpush1.bf16.msra.mxu0 %v9390_v9  ;;  %v10921_v24 = vld [vmem:[%s14690_s17 + $0x58] sm:$0xff]  }
0x4583   :  { %4747 = vmatprep.subr.bf16.mxu1 %v9405_v47  ;;  %4788 = vmatprep.subr.bf16.mxu0 %v9407_v36  ;;  %v10922_v9 = vld [vmem:[%s14690_s17 + $0xd8] sm:$0xff]  }
0x4584   :  { %v10923_v47 = vld [vmem:[%s14690_s17 + $0x18] sm:$0xff]  }
0x4585   :  { %v10924_v36 = vld [vmem:[%s14690_s17 + $0x98] sm:$0xff]  }
0x4586   :  { %4748 = vmatpush1.bf16.msra.mxu1 %v9404_v35  ;;  %4789 = vmatpush1.bf16.msra.mxu0 %v9406_v40  ;;  %v10929_v35 = vld [vmem:[%s14690_s17 + $0x68] sm:$0xff]  }
0x4587   :  { %4749 = vmatprep.subr.bf16.mxu1 %v9421_v42  ;;  %4790 = vmatprep.subr.bf16.mxu0 %v9423_v43  ;;  %v10930_v40 = vld [vmem:[%s14690_s17 + $0xe8] sm:$0xff]  }
0x4588   :  { %v10931_v42 = vld [vmem:[%s14690_s17 + $0x28] sm:$0xff]  }
0x4589   :  { %v10932_v43 = vld [vmem:[%s14690_s17 + $0xa8] sm:$0xff]  }
0x458a   :  { %4750 = vmatpush1.bf16.msra.mxu1 %v9420_v44  ;;  %4791 = vmatpush1.bf16.msra.mxu0 %v9422_v8  ;;  %v10937_v44 = vld [vmem:[%s14690_s17 + $0x78] sm:$0xff]  }
0x458b   :  { %4751 = vmatprep.subr.bf16.mxu1 %v9437_v51  ;;  %4792 = vmatprep.subr.bf16.mxu0 %v9439_v58  ;;  %v10938_v8 = vld [vmem:[%s14690_s17 + $0xf8] sm:$0xff]  }
0x458c   :  { %v10939_v51 = vld [vmem:[%s14690_s17 + $0x38] sm:$0xff]  }
0x458d   :  { %v10940_v58 = vld [vmem:[%s14690_s17 + $0xb8] sm:$0xff]  }
0x458e   :  { %4752 = vmatpush1.bf16.msra.mxu1 %v9436_v59  ;;  %4793 = vmatpush1.bf16.msra.mxu0 %v9438_v11  ;;  %v13347_v59 = vsub.s32 3, %v11788_v14  ;;  %v3777_v11 = vrot.slane %v13344_v1, %v11791_v15 }
0x458f   :  { %4753 = vmatprep.subr.bf16.mxu1 %v9453_v18  ;;  %4794 = vmatprep.subr.bf16.mxu0 %v9455_v7  ;;  %v3785_v18 = vrot.slane %v13344_v1, %v13339_v54  ;;  %v3781_v7 = vrot.slane %v13344_v1, %v11794_v16 }
0x4590   :  { %v3789_v49 = vrot.slane %v13344_v1, %v13347_v59 }
0x4592   :  { %4754 = vmatpush1.bf16.msra.mxu1 %v9452_v41  ;;  %4795 = vmatpush1.bf16.msra.mxu0 %v9454_v22 }
0x4593   :  { %4755 = vmatprep.subr.bf16.mxu1 %v9469_v37  ;;  %4796 = vmatprep.subr.bf16.mxu0 %v9471_v21 }
0x4596   :  { %4756 = vmatpush1.bf16.msra.mxu1 %v9468_v60  ;;  %4797 = vmatpush1.bf16.msra.mxu0 %v9470_v10 }
0x4597   :  { %4757 = vmatprep.subr.bf16.mxu1 %v9485_v19  ;;  %4798 = vmatprep.subr.bf16.mxu0 %v9487_v28 }
0x459a   :  { %4758 = vmatpush1.bf16.msra.mxu1 %v9484_v39  ;;  %4799 = vmatpush1.bf16.msra.mxu0 %v9486_v32 }
0x459b   :  { %10343 = vmatprep.subr.bf16.mxu1 %v10909_v25  ;;  %10365 = vmatprep.subr.bf16.mxu0 %v10910_v23  ;;  %v10943_v23 = vld [vmem:[%s14690_s17 + $0x100] sm:$0xff]  }
0x459d   :  { %4776 = vmatmul.mubr.bf16.vlgmr.msra.gmra.mrb[64].mxu1 %v12956_v63  ;;  %4817 = vmatmul.mubr.bf16.vlgmr.msra.gmra.mrb[76].mxu0 %v12956_v63  ;;  %v10918_v63 = vld [vmem:[%s14690_s17 + $0xd0] sm:$0xff]  }
0x459e   :  { %10344 = vmatpush3.bf16.msra.mxu1 %v10911_v26  ;;  %10366 = vmatpush3.bf16.msra.mxu0 %v10912_v29  ;;  %v10944_v26 = vld [vmem:[%s14690_s17 + $0x180] sm:$0xff]  }
0x459f   :  { %10345 = vmatprep.subr.bf16.mxu1 %v10913_v12  ;;  %10367 = vmatprep.subr.bf16.mxu0 %v10914_v52  ;;  %v10945_v52 = vld [vmem:[%s14690_s17 + $0x148] sm:$0xff]  }
0x45a2   :  { %10346 = vmatpush3.bf16.msra.mxu1 %v10915_v27  ;;  %10368 = vmatpush3.bf16.msra.mxu0 %v10916_v30  ;;  %v10946_v27 = vld [vmem:[%s14690_s17 + $0x1c8] sm:$0xff]  }
0x45a3   :  { %10347 = vmatprep.subr.bf16.mxu1 %v10917_v31  ;;  %10369 = vmatprep.subr.bf16.mxu0 %v10918_v63  ;;  %v10947_v30 = vld [vmem:[%s14690_s17 + $0x108] sm:$0xff]   ;;  %v10949_v63 = vld [vmem:[%s14690_s17 + $0x150] sm:$0xff]  }
0x45a4   :  { %v10948_v31 = vld [vmem:[%s14690_s17 + $0x188] sm:$0xff]  }
0x45a6   :  { %10348 = vmatpush3.bf16.msra.mxu1 %v10919_v5  ;;  %10370 = vmatpush3.bf16.msra.mxu0 %v10920_v62  ;;  %v10950_v5 = vld [vmem:[%s14690_s17 + $0x1d0] sm:$0xff]  }
0x45a7   :  { %10349 = vmatprep.subr.bf16.mxu1 %v10921_v24  ;;  %10371 = vmatprep.subr.bf16.mxu0 %v10922_v9  ;;  %v10951_v62 = vld [vmem:[%s14690_s17 + $0x110] sm:$0xff]   ;;  %v10953_v9 = vld [vmem:[%s14690_s17 + $0x158] sm:$0xff]  }
0x45a8   :  { %v10952_v24 = vld [vmem:[%s14690_s17 + $0x190] sm:$0xff]  }
0x45aa   :  { %10350 = vmatpush3.bf16.msra.mxu1 %v10923_v47  ;;  %10372 = vmatpush3.bf16.msra.mxu0 %v10924_v36  ;;  %v10954_v47 = vld [vmem:[%s14690_s17 + $0x1d8] sm:$0xff]  }
0x45ab   :  { %10351 = vmatprep.subr.bf16.mxu1 %v10925_v53  ;;  %10373 = vmatprep.subr.bf16.mxu0 %v10926_v48  ;;  %v10955_v36 = vld [vmem:[%s14690_s17 + $0x118] sm:$0xff]   ;;  %v10957_v48 = vld [vmem:[%s14690_s17 + $0x160] sm:$0xff]  }
0x45ac   :  { %v10956_v53 = vld [vmem:[%s14690_s17 + $0x198] sm:$0xff]  }
0x45ae   :  { %10352 = vmatpush3.bf16.msra.mxu1 %v10927_v38  ;;  %10374 = vmatpush3.bf16.msra.mxu0 %v10928_v34  ;;  %v10958_v38 = vld [vmem:[%s14690_s17 + $0x1e0] sm:$0xff]  }
0x45af   :  { %10353 = vmatprep.subr.bf16.mxu1 %v10929_v35  ;;  %10375 = vmatprep.subr.bf16.mxu0 %v10930_v40  ;;  %v10959_v34 = vld [vmem:[%s14690_s17 + $0x120] sm:$0xff]   ;;  %v10961_v40 = vld [vmem:[%s14690_s17 + $0x168] sm:$0xff]  }
0x45b0   :  { %v10960_v35 = vld [vmem:[%s14690_s17 + $0x1a0] sm:$0xff]  }
0x45b2   :  { %10354 = vmatpush3.bf16.msra.mxu1 %v10931_v42  ;;  %10376 = vmatpush3.bf16.msra.mxu0 %v10932_v43  ;;  %v10962_v42 = vld [vmem:[%s14690_s17 + $0x1e8] sm:$0xff]   ;;  %v13418_v43 = vsub.s32 4, %v11788_v14 }
0x45b3   :  { %10355 = vmatprep.subr.bf16.mxu1 %v10933_v45  ;;  %10377 = vmatprep.subr.bf16.mxu0 %v10934_v46  ;;  %v13421_v45 = vsub.s32 6, %v11788_v14  ;;  %v10963_v46 = vld [vmem:[%s14690_s17 + $0x128] sm:$0xff]  }
0x45b6   :  { %10356 = vmatpush3.bf16.msra.mxu1 %v10935_v3  ;;  %10378 = vmatpush3.bf16.msra.mxu0 %v10936_v6  ;;  %v10964_v3 = vld [vmem:[%s14690_s17 + $0x1a8] sm:$0xff]   ;;  %v13430_v6 = vsub.s32 5, %v11788_v14 }
0x45b7   :  { %10357 = vmatprep.subr.bf16.mxu1 %v10937_v44  ;;  %10379 = vmatprep.subr.bf16.mxu0 %v10938_v8  ;;  %v13433_v44 = vsub.s32 7, %v11788_v14  ;;  %v10965_v8 = vld [vmem:[%s14690_s17 + $0x170] sm:$0xff]  }
0x45b8   :  { %v3797_v14 = vrot.slane %v13344_v1, %v13430_v6 }
0x45ba   :  { %10358 = vmatpush3.bf16.msra.mxu1 %v10939_v51  ;;  %10380 = vmatpush3.bf16.msra.mxu0 %v10940_v58  ;;  %v10966_v51 = vld [vmem:[%s14690_s17 + $0x1f0] sm:$0xff]   ;;  %v3793_v58 = vrot.slane %v13344_v1, %v13418_v43 }
0x45bb   :  { %10387 = vmatprep.subr.bf16.mxu1 %v10941_v56  ;;  %10409 = vmatprep.subr.bf16.mxu0 %v10942_v50  ;;  %v3801_v56 = vrot.slane %v13344_v1, %v13421_v45  ;;  %v3805_v50 = vrot.slane %v13344_v1, %v13433_v44 }
0x4610   :  { %v4531_v33 = vpop.f32.mrb[52].mxu1  ;;  %v4572_v20 = vpop.f32.mrb[64].mxu0 }
0x4611   :  { %v4532_v55 = vadd.f32 %v4531_v33, %v3777_v11  ;;  %v4573_v41 = vadd.f32 %v4572_v20, %v3785_v18  ;;  %v4533_v22 = vpop.f32.mrb[53].mxu1  ;;  %v4574_v37 = vpop.f32.mrb[65].mxu0  ;;  %v10967_v11 = vld [vmem:[%s14690_s17 + $0x130] sm:$0xff]  }
0x4612   :  { %v4534_v21 = vadd.f32 %v4533_v22, %v3781_v7  ;;  %v4575_v61 = vadd.f32 %v4574_v37, %v3789_v49  ;;  %v4535_v0 = vpop.f32.mrb[54].mxu1  ;;  %v4576_v13 = vpop.f32.mrb[66].mxu0  ;;  %v10968_v18 = vld [vmem:[%s14690_s17 + $0x1b0] sm:$0xff]   ;;  %v10969_v7 = vld [vmem:[%s14690_s17 + $0x178] sm:$0xff]  }
0x4613   :  { %v4825_v17 = vmax.f32 %v4532_v55, 0.0  ;;  %v4827_v60 = vmax.f32 %v4573_v41, 0.0  ;;  %v4536_v10 = vpop.f32.mrb[55].mxu1  ;;  %v4577_v19 = vpop.f32.mrb[67].mxu0  ;;  %v10970_v49 = vld [vmem:[%s14690_s17 + $0x1f8] sm:$0xff]  }
0x4614   :  { %v4826_v28 = vmax.f32 %v4534_v21, 0.0  ;;  %v4828_v39 = vmax.f32 %v4575_v61, 0.0  ;;  %v10971_v13 = vld [vmem:[%s14690_s17 + $0x138] sm:$0xff]  }
0x4615   :  { %v4841_v29 = vpack.c.bf16 %v4825_v17, %v4825_v17  ;;  %v4843_v12 = vpack.c.bf16 %v4827_v60, %v4827_v60  ;;  %v10972_v17 = vld [vmem:[%s14690_s17 + $0x1b8] sm:$0xff]  }
0x4616   :  { %v4842_v32 = vpack.c.bf16 %v4826_v28, %v4826_v28  ;;  %v4844_v25 = vpack.c.bf16 %v4828_v39, %v4828_v39  ;;  %v10973_v39 = vld [vmem:[%s14690_s17 + $0x240] sm:$0xff]  }
0x4618   :  { %5918 = vmatprep.mubr.bf16.mxu1 %v4842_v32  ;;  %5958 = vmatprep.mubr.bf16.mxu0 %v4844_v25  ;;  %v10974_v32 = vld [vmem:[%s14690_s17 + $0x2c0] sm:$0xff]  }
0x4619   :  { %5919 = vmatmul.mubr.bf16.vlgmr.msra.gmra.mrb[68].mxu1 %v4841_v29  ;;  %5959 = vmatmul.mubr.bf16.vlgmr.msra.gmra.mrb[80].mxu0 %v4843_v12  ;;  %v10975_v12 = vld [vmem:[%s14690_s17 + $0x200] sm:$0xff]  }
0x461a   :  { %10388 = vmatpush3.bf16.msra.mxu1 %v10943_v23  ;;  %10410 = vmatpush3.bf16.msra.mxu0 %v10944_v26 }
0x461b   :  { %10389 = vmatprep.subr.bf16.mxu1 %v10945_v52  ;;  %10411 = vmatprep.subr.bf16.mxu0 %v10946_v27  ;;  %v10976_v52 = vld [vmem:[%s14690_s17 + $0x280] sm:$0xff]  }
0x461e   :  { %10390 = vmatpush3.bf16.msra.mxu1 %v10947_v30  ;;  %10412 = vmatpush3.bf16.msra.mxu0 %v10948_v31  ;;  %v10977_v31 = vld [vmem:[%s14690_s17 + $0x248] sm:$0xff]  }
0x461f   :  { %10391 = vmatprep.subr.bf16.mxu1 %v10949_v63  ;;  %10413 = vmatprep.subr.bf16.mxu0 %v10950_v5  ;;  %v10978_v63 = vld [vmem:[%s14690_s17 + $0x2c8] sm:$0xff]  }
0x4620   :  { %v10979_v5 = vld [vmem:[%s14690_s17 + $0x208] sm:$0xff]  }
0x4622   :  { %10392 = vmatpush3.bf16.msra.mxu1 %v10951_v62  ;;  %10414 = vmatpush3.bf16.msra.mxu0 %v10952_v24  ;;  %v10980_v62 = vld [vmem:[%s14690_s17 + $0x288] sm:$0xff]   ;;  %v10981_v24 = vld [vmem:[%s14690_s17 + $0x250] sm:$0xff]  }
0x4623   :  { %10393 = vmatprep.subr.bf16.mxu1 %v10953_v9  ;;  %10415 = vmatprep.subr.bf16.mxu0 %v10954_v47  ;;  %v10982_v9 = vld [vmem:[%s14690_s17 + $0x2d0] sm:$0xff]  }
0x4624   :  { %v10983_v47 = vld [vmem:[%s14690_s17 + $0x210] sm:$0xff]  }
0x4626   :  { %10394 = vmatpush3.bf16.msra.mxu1 %v10955_v36  ;;  %10416 = vmatpush3.bf16.msra.mxu0 %v10956_v53  ;;  %v10984_v36 = vld [vmem:[%s14690_s17 + $0x290] sm:$0xff]   ;;  %v10985_v53 = vld [vmem:[%s14690_s17 + $0x258] sm:$0xff]  }
0x4627   :  { %10395 = vmatprep.subr.bf16.mxu1 %v10957_v48  ;;  %10417 = vmatprep.subr.bf16.mxu0 %v10958_v38  ;;  %v10986_v48 = vld [vmem:[%s14690_s17 + $0x2d8] sm:$0xff]  }
0x4628   :  { %v10987_v38 = vld [vmem:[%s14690_s17 + $0x218] sm:$0xff]  }
0x462a   :  { %10396 = vmatpush3.bf16.msra.mxu1 %v10959_v34  ;;  %10418 = vmatpush3.bf16.msra.mxu0 %v10960_v35  ;;  %v10988_v34 = vld [vmem:[%s14690_s17 + $0x298] sm:$0xff]   ;;  %v10989_v35 = vld [vmem:[%s14690_s17 + $0x260] sm:$0xff]  }
0x462b   :  { %10397 = vmatprep.subr.bf16.mxu1 %v10961_v40  ;;  %10419 = vmatprep.subr.bf16.mxu0 %v10962_v42  ;;  %v10990_v40 = vld [vmem:[%s14690_s17 + $0x2e0] sm:$0xff]  }
0x462c   :  { %v10991_v42 = vld [vmem:[%s14690_s17 + $0x220] sm:$0xff]  }
0x462e   :  { %10398 = vmatpush3.bf16.msra.mxu1 %v10963_v46  ;;  %10420 = vmatpush3.bf16.msra.mxu0 %v10964_v3  ;;  %v10992_v46 = vld [vmem:[%s14690_s17 + $0x2a0] sm:$0xff]   ;;  %v10993_v3 = vld [vmem:[%s14690_s17 + $0x268] sm:$0xff]  }
0x462f   :  { %10399 = vmatprep.subr.bf16.mxu1 %v10965_v8  ;;  %10421 = vmatprep.subr.bf16.mxu0 %v10966_v51  ;;  %v10994_v8 = vld [vmem:[%s14690_s17 + $0x2e8] sm:$0xff]  }
0x4630   :  { %v4613_v33 = vpop.f32.mrb[56].mxu1  ;;  %v4654_v1 = vpop.f32.mrb[68].mxu0  ;;  %v10995_v51 = vld [vmem:[%s14690_s17 + $0x228] sm:$0xff]  }
0x4631   :  { %v4614_v20 = vadd.f32 %v4613_v33, %v3793_v58  ;;  %v4655_v55 = vadd.f32 %v4654_v1, %v3801_v56  ;;  %v4615_v41 = vpop.f32.mrb[57].mxu1  ;;  %v4656_v22 = vpop.f32.mrb[69].mxu0  ;;  %v10996_v58 = vld [vmem:[%s14690_s17 + $0x2a8] sm:$0xff]   ;;  %v13542_v56 = vld [vmem:[%s14689_s16 + $0x10] ss:$2 sm:$0xff] }
0x4632   :  { %v4616_v37 = vadd.f32 %v4615_v41, %v3797_v14  ;;  %v4657_v21 = vadd.f32 %v4656_v22, %v3805_v50  ;;  %v4617_v61 = vpop.f32.mrb[58].mxu1  ;;  %v4658_v0 = vpop.f32.mrb[70].mxu0  ;;  %10400 = vmatpush3.bf16.msra.mxu1 %v10967_v11  ;;  %10422 = vmatpush3.bf16.msra.mxu0 %v10968_v18  ;;  %v10997_v14 = vld [vmem:[%s14690_s17 + $0x270] sm:$0xff]   ;;  %v3809_v11 = vrot.slane %v13542_v56, %v11791_v15 }
0x4633   :  { %v4829_v60 = vmax.f32 %v4614_v20, 0.0  ;;  %v4831_v10 = vmax.f32 %v4655_v55, 0.0  ;;  %v4618_v19 = vpop.f32.mrb[59].mxu1  ;;  %v4659_v28 = vpop.f32.mrb[71].mxu0  ;;  %10401 = vmatprep.subr.bf16.mxu1 %v10969_v7  ;;  %10423 = vmatprep.subr.bf16.mxu0 %v10970_v49  ;;  %v10998_v50 = vld [vmem:[%s14690_s17 + $0x2f0] sm:$0xff]   ;;  %v3817_v18 = vrot.slane %v13542_v56, %v13339_v54  ;;  %v3813_v7 = vrot.slane %v13542_v56, %v11794_v16  ;;  %v11001_v20 = vld [vmem:[%s14690_s17 + $0x278] sm:$0xff]  }
0x4634   :  { %v4830_v25 = vmax.f32 %v4616_v37, 0.0  ;;  %v4832_v23 = vmax.f32 %v4657_v21, 0.0  ;;  %v3821_v49 = vrot.slane %v13542_v56, %v13347_v59  ;;  %v10999_v33 = vld [vmem:[%s14690_s17 + $0x230] sm:$0xff]   ;;  %v11002_v55 = vld [vmem:[%s14690_s17 + $0x2f8] sm:$0xff]  }
0x4635   :  { %v4845_v27 = vpack.c.bf16 %v4829_v60, %v4829_v60  ;;  %v4847_v30 = vpack.c.bf16 %v4831_v10, %v4831_v10  ;;  %v11000_v1 = vld [vmem:[%s14690_s17 + $0x2b0] sm:$0xff]   ;;  %v11003_v19 = vld [vmem:[%s14690_s17 + $0x238] sm:$0xff]  }
0x4636   :  { %v4846_v26 = vpack.c.bf16 %v4830_v25, %v4830_v25  ;;  %v4848_v29 = vpack.c.bf16 %v4832_v23, %v4832_v23  ;;  %10402 = vmatpush3.bf16.msra.mxu1 %v10971_v13  ;;  %10424 = vmatpush3.bf16.msra.mxu0 %v10972_v17  ;;  %v11004_v28 = vld [vmem:[%s14690_s17 + $0x2b8] sm:$0xff]  }
0x4637   :  { %10431 = vmatprep.subr.bf16.mxu1 %v10973_v39  ;;  %10453 = vmatprep.subr.bf16.mxu0 %v10974_v32 }
0x4638   :  { %5998 = vmatprep.mubr.bf16.mxu1 %v4846_v26  ;;  %6038 = vmatprep.mubr.bf16.mxu0 %v4848_v29  ;;  %v11005_v26 = vld [vmem:[%s14690_s17 + $0x340] sm:$0xff]  }
0x4639   :  { %5999 = vmatmul.mubr.bf16.vlgmr.msra.gmra.mrb[72].mxu1 %v4845_v27  ;;  %6039 = vmatmul.mubr.bf16.vlgmr.msra.gmra.mrb[84].mxu0 %v4847_v30  ;;  %v11006_v29 = vld [vmem:[%s14690_s17 + $0x3c0] sm:$0xff]  }
0x463a   :  { %10432 = vmatpush3.bf16.msra.mxu1 %v10975_v12  ;;  %10454 = vmatpush3.bf16.msra.mxu0 %v10976_v52 }
0x463b   :  { %10433 = vmatprep.subr.bf16.mxu1 %v10977_v31  ;;  %10455 = vmatprep.subr.bf16.mxu0 %v10978_v63  ;;  %v11007_v31 = vld [vmem:[%s14690_s17 + $0x300] sm:$0xff]  }
0x463c   :  { %v11008_v63 = vld [vmem:[%s14690_s17 + $0x380] sm:$0xff]  }
0x463e   :  { %10434 = vmatpush3.bf16.msra.mxu1 %v10979_v5  ;;  %10456 = vmatpush3.bf16.msra.mxu0 %v10980_v62 }
0x463f   :  { %10435 = vmatprep.subr.bf16.mxu1 %v10981_v24  ;;  %10457 = vmatprep.subr.bf16.mxu0 %v10982_v9  ;;  %v11009_v24 = vld [vmem:[%s14690_s17 + $0x348] sm:$0xff]  }
0x4640   :  { %v11010_v9 = vld [vmem:[%s14690_s17 + $0x3c8] sm:$0xff]  }
0x4642   :  { %10436 = vmatpush3.bf16.msra.mxu1 %v10983_v47  ;;  %10458 = vmatpush3.bf16.msra.mxu0 %v10984_v36  ;;  %v11011_v47 = vld [vmem:[%s14690_s17 + $0x308] sm:$0xff]  }
0x4643   :  { %10437 = vmatprep.subr.bf16.mxu1 %v10985_v53  ;;  %10459 = vmatprep.subr.bf16.mxu0 %v10986_v48  ;;  %v11012_v36 = vld [vmem:[%s14690_s17 + $0x388] sm:$0xff]   ;;  %v11013_v53 = vld [vmem:[%s14690_s17 + $0x350] sm:$0xff]  }
0x4644   :  { %v11014_v48 = vld [vmem:[%s14690_s17 + $0x3d0] sm:$0xff]  }
0x4646   :  { %10438 = vmatpush3.bf16.msra.mxu1 %v10987_v38  ;;  %10460 = vmatpush3.bf16.msra.mxu0 %v10988_v34  ;;  %v11015_v38 = vld [vmem:[%s14690_s17 + $0x310] sm:$0xff]  }
0x4647   :  { %10439 = vmatprep.subr.bf16.mxu1 %v10989_v35  ;;  %10461 = vmatprep.subr.bf16.mxu0 %v10990_v40  ;;  %v11016_v34 = vld [vmem:[%s14690_s17 + $0x390] sm:$0xff]   ;;  %v11017_v35 = vld [vmem:[%s14690_s17 + $0x358] sm:$0xff]  }
0x4648   :  { %v11018_v40 = vld [vmem:[%s14690_s17 + $0x3d8] sm:$0xff]  }
0x464a   :  { %10440 = vmatpush3.bf16.msra.mxu1 %v10991_v42  ;;  %10462 = vmatpush3.bf16.msra.mxu0 %v10992_v46  ;;  %v11019_v42 = vld [vmem:[%s14690_s17 + $0x318] sm:$0xff]  }
0x464b   :  { %10441 = vmatprep.subr.bf16.mxu1 %v10993_v3  ;;  %10463 = vmatprep.subr.bf16.mxu0 %v10994_v8  ;;  %v11020_v46 = vld [vmem:[%s14690_s17 + $0x398] sm:$0xff]   ;;  %v11021_v3 = vld [vmem:[%s14690_s17 + $0x360] sm:$0xff]  }
0x464c   :  { %v11022_v8 = vld [vmem:[%s14690_s17 + $0x3e0] sm:$0xff]  }
0x464e   :  { %10442 = vmatpush3.bf16.msra.mxu1 %v10995_v51  ;;  %10464 = vmatpush3.bf16.msra.mxu0 %v10996_v58  ;;  %v11023_v51 = vld [vmem:[%s14690_s17 + $0x320] sm:$0xff]  }
0x464f   :  { %10443 = vmatprep.subr.bf16.mxu1 %v10997_v14  ;;  %10465 = vmatprep.subr.bf16.mxu0 %v10998_v50  ;;  %v11024_v58 = vld [vmem:[%s14690_s17 + $0x3a0] sm:$0xff]   ;;  %v11025_v14 = vld [vmem:[%s14690_s17 + $0x368] sm:$0xff]  }
0x4650   :  { %v4695_v41 = vpop.f32.mrb[60].mxu1  ;;  %v4736_v22 = vpop.f32.mrb[72].mxu0  ;;  %v11026_v50 = vld [vmem:[%s14690_s17 + $0x3e8] sm:$0xff]  }
0x4651   :  { %v4696_v37 = vadd.f32 %v4695_v41, %v3809_v11  ;;  %v4737_v21 = vadd.f32 %v4736_v22, %v3817_v18  ;;  %v4697_v61 = vpop.f32.mrb[61].mxu1  ;;  %v4738_v0 = vpop.f32.mrb[73].mxu0  ;;  %v11027_v11 = vld [vmem:[%s14690_s17 + $0x328] sm:$0xff]   ;;  %v11031_v41 = vld [vmem:[%s14690_s17 + $0x330] sm:$0xff]  }
0x4652   :  { %v4698_v13 = vadd.f32 %v4697_v61, %v3813_v7  ;;  %v4739_v17 = vadd.f32 %v4738_v0, %v3821_v49  ;;  %v4699_v60 = vpop.f32.mrb[62].mxu1  ;;  %v4740_v10 = vpop.f32.mrb[74].mxu0  ;;  %10444 = vmatpush3.bf16.msra.mxu1 %v10999_v33  ;;  %10466 = vmatpush3.bf16.msra.mxu0 %v11000_v1  ;;  %v11028_v18 = vld [vmem:[%s14690_s17 + $0x3a8] sm:$0xff]   ;;  %v11029_v7 = vld [vmem:[%s14690_s17 + $0x370] sm:$0xff]   ;;  %v3825_v33 = vrot.slane %v13542_v56, %v13418_v43 }
0x4653   :  { %v4833_v39 = vmax.f32 %v4696_v37, 0.0  ;;  %v4835_v32 = vmax.f32 %v4737_v21, 0.0  ;;  %v4700_v25 = vpop.f32.mrb[63].mxu1  ;;  %v4741_v23 = vpop.f32.mrb[75].mxu0  ;;  %10445 = vmatprep.subr.bf16.mxu1 %v11001_v20  ;;  %10467 = vmatprep.subr.bf16.mxu0 %v11002_v55  ;;  %v11030_v49 = vld [vmem:[%s14690_s17 + $0x3f0] sm:$0xff]   ;;  %v3833_v1 = vrot.slane %v13542_v56, %v13421_v45  ;;  %v3829_v20 = vrot.slane %v13542_v56, %v13430_v6  ;;  %v11033_v37 = vld [vmem:[%s14690_s17 + $0x378] sm:$0xff]  }
0x4654   :  { %v4834_v12 = vmax.f32 %v4698_v13, 0.0  ;;  %v4836_v52 = vmax.f32 %v4739_v17, 0.0  ;;  %v3837_v55 = vrot.slane %v13542_v56, %v13433_v44  ;;  %v11032_v22 = vld [vmem:[%s14690_s17 + $0x3b0] sm:$0xff]   ;;  %v11034_v21 = vld [vmem:[%s14690_s17 + $0x3f8] sm:$0xff]  }
0x4655   :  { %v4849_v5 = vpack.c.bf16 %v4833_v39, %v4833_v39  ;;  %v4851_v62 = vpack.c.bf16 %v4835_v32, %v4835_v32  ;;  %v11035_v32 = vld [vmem:[%s14690_s17 + $0x338] sm:$0xff]  }
0x4656   :  { %v4850_v27 = vpack.c.bf16 %v4834_v12, %v4834_v12  ;;  %v4852_v30 = vpack.c.bf16 %v4836_v52, %v4836_v52  ;;  %10446 = vmatpush3.bf16.msra.mxu1 %v11003_v19  ;;  %10468 = vmatpush3.bf16.msra.mxu0 %v11004_v28  ;;  %v11036_v25 = vld [vmem:[%s14690_s17 + $0x3b8] sm:$0xff]  }
0x4657   :  { %10475 = vmatprep.subr.bf16.mxu1 %v11005_v26  ;;  %10497 = vmatprep.subr.bf16.mxu0 %v11006_v29 }
0x4658   :  { %6078 = vmatprep.mubr.bf16.mxu1 %v4850_v27  ;;  %6118 = vmatprep.mubr.bf16.mxu0 %v4852_v30 }
0x4659   :  { %6079 = vmatmul.mubr.bf16.vlgmr.msra.gmra.mrb[76].mxu1 %v4849_v5  ;;  %6119 = vmatmul.mubr.bf16.vlgmr.msra.gmra.mrb[88].mxu0 %v4851_v62  ;;  %v11037_v62 = vld [vmem:[%s14684_s11 + $0x40] sm:$0xff]  }
0x465a   :  { %10476 = vmatpush3.bf16.msra.mxu1 %v11007_v31  ;;  %10498 = vmatpush3.bf16.msra.mxu0 %v11008_v63 }
0x465b   :  { %10477 = vmatprep.subr.bf16.mxu1 %v11009_v24  ;;  %10499 = vmatprep.subr.bf16.mxu0 %v11010_v9 }
0x465e   :  { %10478 = vmatpush3.bf16.msra.mxu1 %v11011_v47  ;;  %10500 = vmatpush3.bf16.msra.mxu0 %v11012_v36  ;;  %v9488_v47 = vld [vmem:[%s14691_s18] ss:$0 sm:$0xff] }
0x465f   :  { %10479 = vmatprep.subr.bf16.mxu1 %v11013_v53  ;;  %10501 = vmatprep.subr.bf16.mxu0 %v11014_v48 }
0x4662   :  { %10480 = vmatpush3.bf16.msra.mxu1 %v11015_v38  ;;  %10502 = vmatpush3.bf16.msra.mxu0 %v11016_v34 }
0x4663   :  { %10481 = vmatprep.subr.bf16.mxu1 %v11017_v35  ;;  %10503 = vmatprep.subr.bf16.mxu0 %v11018_v40 }
0x4666   :  { %10482 = vmatpush3.bf16.msra.mxu1 %v11019_v42  ;;  %10504 = vmatpush3.bf16.msra.mxu0 %v11020_v46 }
0x4667   :  { %10483 = vmatprep.subr.bf16.mxu1 %v11021_v3  ;;  %10505 = vmatprep.subr.bf16.mxu0 %v11022_v8 }
0x466a   :  { %10484 = vmatpush3.bf16.msra.mxu1 %v11023_v51  ;;  %10506 = vmatpush3.bf16.msra.mxu0 %v11024_v58 }
0x466b   :  { %10485 = vmatprep.subr.bf16.mxu1 %v11025_v14  ;;  %10507 = vmatprep.subr.bf16.mxu0 %v11026_v50 }
0x466e   :  { %10486 = vmatpush3.bf16.msra.mxu1 %v11027_v11  ;;  %10508 = vmatpush3.bf16.msra.mxu0 %v11028_v18 }
0x466f   :  { %10487 = vmatprep.subr.bf16.mxu1 %v11029_v7  ;;  %10509 = vmatprep.subr.bf16.mxu0 %v11030_v49 }
0x4670   :  { %v4777_v61 = vpop.f32.mrb[64].mxu1  ;;  %v4818_v56 = vpop.f32.mrb[76].mxu0 }
0x4671   :  { %v4778_v0 = vadd.f32 %v4777_v61, %v3825_v33  ;;  %v4819_v13 = vadd.f32 %v4818_v56, %v3833_v1  ;;  %v4779_v17 = vpop.f32.mrb[65].mxu1  ;;  %v4820_v60 = vpop.f32.mrb[77].mxu0 }
0x4672   :  { %v4780_v10 = vadd.f32 %v4779_v17, %v3829_v20  ;;  %v4821_v19 = vadd.f32 %v4820_v60, %v3837_v55  ;;  %v4781_v28 = vpop.f32.mrb[66].mxu1  ;;  %v4822_v39 = vpop.f32.mrb[78].mxu0  ;;  %10488 = vmatpush3.bf16.msra.mxu1 %v11031_v41  ;;  %10510 = vmatpush3.bf16.msra.mxu0 %v11032_v22 }
0x4673   :  { %v4837_v23 = vmax.f32 %v4778_v0, 0.0  ;;  %v4839_v26 = vmax.f32 %v4819_v13, 0.0  ;;  %v4782_v29 = vpop.f32.mrb[67].mxu1  ;;  %v4823_v12 = vpop.f32.mrb[79].mxu0  ;;  %10489 = vmatprep.subr.bf16.mxu1 %v11033_v37  ;;  %10511 = vmatprep.subr.bf16.mxu0 %v11034_v21 }
0x4674   :  { %v4838_v52 = vmax.f32 %v4780_v10, 0.0  ;;  %v4840_v27 = vmax.f32 %v4821_v19, 0.0 }
0x4675   :  { %v4853_v63 = vpack.c.bf16 %v4837_v23, %v4837_v23  ;;  %v4855_v5 = vpack.c.bf16 %v4839_v26, %v4839_v26 }
0x4676   :  { %v4854_v30 = vpack.c.bf16 %v4838_v52, %v4838_v52  ;;  %v4856_v31 = vpack.c.bf16 %v4840_v27, %v4840_v27  ;;  %10490 = vmatpush3.bf16.msra.mxu1 %v11035_v32  ;;  %10512 = vmatpush3.bf16.msra.mxu0 %v11036_v25 }
0x4677   :  { %10762 = vmatprep.subr.bf16.mxu1 %v11617_v4  ;;  %10782 = vmatprep.subr.bf16.mxu0 %v11617_v4 }
0x4678   :  { %6158 = vmatprep.mubr.bf16.mxu1 %v4854_v30  ;;  %6198 = vmatprep.mubr.bf16.mxu0 %v4856_v31 }
0x4679   :  { %6159 = vmatmul.mubr.bf16.vlgmr.msra.gmra.mrb[80].mxu1 %v4853_v63  ;;  %6199 = vmatmul.mubr.bf16.vlgmr.msra.gmra.mrb[92].mxu0 %v4855_v5 }
0x467a   :  { %10778 = vmatprep.mubr.msk.bf16.mxu1 %vm11618_vm11, %v11617_v4  ;;  %10798 = vmatprep.mubr.msk.bf16.mxu0 %vm11618_vm11, %v11617_v4 }
0x467b   :  { %10763 = vmatpush3.bf16.msra.mxu1 %v11037_v62 }
0x467c   :  { %10764 = vmatprep.subr.bf16.mxu1 %v11617_v4 }
0x46ec   :  { %v10359_v24 = vpop.f32.mrb[68].mxu1  ;;  %v10381_v9 = vpop.f32.mrb[80].mxu0 }
0x46ed   :  { %v10360_v36 = vpop.f32.mrb[69].mxu1  ;;  %v10382_v53 = vpop.f32.mrb[81].mxu0 }
0x46ee   :  { %v10361_v48 = vadd.f32 %v10360_v36, %v10359_v24  ;;  %v10383_v38 = vadd.f32 %v10382_v53, %v10381_v9  ;;  %v10362_v34 = vpop.f32.mrb[70].mxu1  ;;  %v10384_v35 = vpop.f32.mrb[82].mxu0  ;;  %v11038_v9 = vld [vmem:[%s14684_s11 + $0x48] sm:$0xff]   ;;  %v11041_v36 = vld [vmem:[%s14684_s11 + $0x60] sm:$0xff]  }
0x46ef   :  { %v10363_v40 = vpop.f32.mrb[71].mxu1  ;;  %v10385_v42 = vpop.f32.mrb[83].mxu0  ;;  %10765 = vmatpush3.bf16.msra.mxu1 %v11038_v9  ;;  %v11042_v53 = vld [vmem:[%s14684_s11 + $0x68] sm:$0xff]   ;;  %v11045_v34 = vld [vmem:[%s14686_s13 + $0x40] sm:$0xff]  }
0x46f0   :  { %v5921_v46 = vadd.f32 %v10361_v48, %v9488_v47  ;;  %10766 = vmatprep.subr.bf16.mxu1 %v11617_v4  ;;  %v11039_v47 = vld [vmem:[%s14684_s11 + $0x50] sm:$0xff]   ;;  %10783 = vmatpush3.bf16.msra.mxu0 %v11045_v34  ;;  %v11046_v35 = vld [vmem:[%s14686_s13 + $0x48] sm:$0xff]   ;;  %v11048_v42 = vld [vmem:[%s14686_s13 + $0x58] sm:$0xff]  }
0x46f1   :  { %v11043_v48 = vld [vmem:[%s14684_s11 + $0x70] sm:$0xff]   ;;  %10784 = vmatprep.subr.bf16.mxu0 %v11617_v4  ;;  %v9696_v34 = vld [vmem:[%s14688_s15 + $0x4c8] sm:$0xff] }
0x46f2   :  { %v5961_v3 = vadd.f32 %v10383_v38, %v5921_v46  ;;  %v11044_v38 = vld [vmem:[%s14684_s11 + $0x78] sm:$0xff]   ;;  %v11047_v40 = vld [vmem:[%s14686_s13 + $0x50] sm:$0xff]   ;;  %v11049_v46 = vld [vmem:[%s14686_s13 + $0x60] sm:$0xff]  }
0x46f3   :  { %10767 = vmatpush3.bf16.msra.mxu1 %v11039_v47 }
0x46f4   :  { %10768 = vmatprep.subr.bf16.mxu1 %v11617_v4  ;;  %10785 = vmatpush3.bf16.msra.mxu0 %v11046_v35 }
0x46f5   :  { %10786 = vmatprep.subr.bf16.mxu0 %v11617_v4 }
0x46f8   :  { %10787 = vmatpush3.bf16.msra.mxu0 %v11047_v40 }
0x46f9   :  { %10788 = vmatprep.subr.bf16.mxu0 %v11617_v4 }
0x46fc   :  { %10789 = vmatpush3.bf16.msra.mxu0 %v11048_v42 }
0x46fd   :  { %10790 = vmatprep.subr.bf16.mxu0 %v11617_v4 }
0x4700   :  { %10791 = vmatpush3.bf16.msra.mxu0 %v11049_v46  ;;  %v9703_v46 = vld [vmem:[%s14688_s15 + $0x500] sm:$0xff] }
0x4701   :  { %10792 = vmatprep.subr.bf16.mxu0 %v11617_v4 }
0x470c   :  { %v10403_v8 = vpop.f32.mrb[72].mxu1  ;;  %v10425_v51 = vpop.f32.mrb[84].mxu0 }
0x470d   :  { %v10404_v58 = vpop.f32.mrb[73].mxu1  ;;  %v10426_v14 = vpop.f32.mrb[85].mxu0 }
0x470e   :  { %v10405_v50 = vadd.f32 %v10404_v58, %v10403_v8  ;;  %v10427_v11 = vadd.f32 %v10426_v14, %v10425_v51  ;;  %v10406_v18 = vpop.f32.mrb[74].mxu1  ;;  %v10428_v7 = vpop.f32.mrb[86].mxu0  ;;  %v11051_v8 = vld [vmem:[%s14686_s13 + $0x70] sm:$0xff]  }
0x470f   :  { %v10407_v49 = vpop.f32.mrb[75].mxu1  ;;  %v10429_v33 = vpop.f32.mrb[87].mxu0 }
0x4710   :  { %v6001_v1 = vadd.f32 %v10405_v50, %v5961_v3  ;;  %v11050_v3 = vld [vmem:[%s14686_s13 + $0x68] sm:$0xff]  }
0x4711   :  { %10793 = vmatpush3.bf16.msra.mxu0 %v11050_v3  ;;  %v9711_v3 = vld [vmem:[%s14688_s15 + $0x540] sm:$0xff] }
0x4712   :  { %v6041_v20 = vadd.f32 %v10427_v11, %v6001_v1  ;;  %10794 = vmatprep.subr.bf16.mxu0 %v11617_v4  ;;  %v9617_v1 = vld [vmem:[%s14694_s21] ss:$0 sm:$0xff] }
0x4715   :  { %10795 = vmatpush3.bf16.msra.mxu0 %v11051_v8  ;;  %v9704_v8 = vld [vmem:[%s14688_s15 + $0x508] sm:$0xff] }
0x4716   :  { %10796 = vmatprep.subr.bf16.mxu0 %v11617_v4 }
0x472c   :  { %v10447_v55 = vpop.f32.mrb[76].mxu1  ;;  %v10469_v41 = vpop.f32.mrb[88].mxu0 }
0x472d   :  { %v10448_v22 = vpop.f32.mrb[77].mxu1  ;;  %v10470_v37 = vpop.f32.mrb[89].mxu0 }
0x472e   :  { %v10449_v21 = vadd.f32 %v10448_v22, %v10447_v55  ;;  %v10471_v61 = vadd.f32 %v10470_v37, %v10469_v41  ;;  %v10450_v56 = vpop.f32.mrb[78].mxu1  ;;  %v10472_v0 = vpop.f32.mrb[90].mxu0  ;;  %v9618_v55 = vld [vmem:[%s14695_s22] ss:$0 sm:$0xff] }
0x472f   :  { %v10451_v13 = vpop.f32.mrb[79].mxu1  ;;  %v10473_v17 = vpop.f32.mrb[91].mxu0  ;;  %v9635_v56 = vld [vmem:[%s14685_s12 + $0x1] ss:$0 sm:$0xff] }
0x4730   :  { %v6081_v60 = vadd.f32 %v10449_v21, %v6041_v20 }
0x4732   :  { %v6121_v10 = vadd.f32 %v10471_v61, %v6081_v60  ;;  %v11052_v61 = vld [vmem:[%s14686_s13 + $0x78] sm:$0xff]  }
0x4733   :  { %10797 = vmatpush3.bf16.msra.mxu0 %v11052_v61 }
0x474c   :  { %v10491_v19 = vpop.f32.mrb[80].mxu1  ;;  %v10513_v28 = vpop.f32.mrb[92].mxu0 }
0x474d   :  { %v10492_v39 = vpop.f32.mrb[81].mxu1  ;;  %v10514_v32 = vpop.f32.mrb[93].mxu0 }
0x474e   :  { %v10493_v25 = vadd.f32 %v10492_v39, %v10491_v19  ;;  %v10515_v23 = vadd.f32 %v10514_v32, %v10513_v28  ;;  %v10494_v26 = vpop.f32.mrb[82].mxu1  ;;  %v10516_v29 = vpop.f32.mrb[94].mxu0  ;;  %v9671_v28 = vld [vmem:[%s14688_s15 + $0x400] sm:$0xff]  ;;  %v9672_v32 = vld [vmem:[%s14688_s15 + $0x408] sm:$0xff] }
0x474f   :  { %v10495_v12 = vpop.f32.mrb[83].mxu1  ;;  %v10517_v52 = vpop.f32.mrb[95].mxu0  ;;  %v9679_v39 = vld [vmem:[%s14688_s15 + $0x440] sm:$0xff]  ;;  %v9680_v26 = vld [vmem:[%s14688_s15 + $0x448] sm:$0xff] }
0x4750   :  { %v6161_v27 = vadd.f32 %v10493_v25, %v6121_v10  ;;  %v9801_v25 = vcombine.low %v9671_v28, %v9679_v39  ;;  %v9803_v29 = vcombine.low %v9672_v32, %v9680_v26  ;;  %v9804_v12 = vcombine.high %v9672_v32, %v9680_v26  ;;  %v9660_v52 = vld [vmem:[%s14687_s14 + $0x1] ss:$0 sm:$0xff] }
0x4751   :  { %v9767_v26 = vld [vmem:[%s14688_s15 + $0x700] sm:$0xff] }
0x4752   :  { %v6201_v30 = vadd.f32 %v10515_v23, %v6161_v27  ;;  %v9802_v23 = vcombine.high %v9671_v28, %v9679_v39  ;;  %7393 = vmatprep.subr.bf16.mxu0 %v9804_v12  ;;  %v9760_v39 = vld [vmem:[%s14688_s15 + $0x6c8] sm:$0xff] }
0x4753   :  { %v9768_v12 = vld [vmem:[%s14688_s15 + $0x708] sm:$0xff] }
0x4754   :  { %v6207_v31 = vrot.slane %v6201_v30, 2 }
0x4756   :  { %v6209_v63 = vadd.f32 %v6207_v31, %v12940_v57  ;;  %v11040_v57 = vld [vmem:[%s14684_s11 + $0x58] sm:$0xff]  }
0x4757   :  { %10769 = vmatpush3.bf16.msra.mxu1 %v11040_v57 }
0x4758   :  { %v6212_v5 = vsel %vm3614_vm12, %v6209_v63, 0.0  ;;  %v6216_v62 = vmul.f32 %v6209_v63, %v6209_v63  ;;  %10770 = vmatprep.subr.bf16.mxu1 %v11617_v4 }
0x4759   :  { %6213 = vadd.xlane.f32.xlu0 %v6212_v5 }
0x475a   :  { %v6217_v24 = vsel %vm3614_vm12, %v6216_v62, 0.0 }
0x475b   :  { %6218 = vadd.xlane.f32.xlu1 %v6217_v24  ;;  %10771 = vmatpush3.bf16.msra.mxu1 %v11041_v36  ;;  %v9687_v36 = vld [vmem:[%s14688_s15 + $0x480] sm:$0xff] }
0x475c   :  { %10772 = vmatprep.subr.bf16.mxu1 %v11617_v4 }
0x475f   :  { %10773 = vmatpush3.bf16.msra.mxu1 %v11042_v53  ;;  %v9695_v53 = vld [vmem:[%s14688_s15 + $0x4c0] sm:$0xff] }
0x4760   :  { %10774 = vmatprep.subr.bf16.mxu1 %v11617_v4  ;;  %v9817_v35 = vcombine.low %v9687_v36, %v9695_v53 }
0x4763   :  { %10775 = vmatpush3.bf16.msra.mxu1 %v11043_v48  ;;  %v9688_v48 = vld [vmem:[%s14688_s15 + $0x488] sm:$0xff] }
0x4764   :  { %10776 = vmatprep.subr.bf16.mxu1 %v11617_v4  ;;  %v9819_v40 = vcombine.low %v9688_v48, %v9696_v34  ;;  %v9820_v42 = vcombine.high %v9688_v48, %v9696_v34  ;;  %v9681_v34 = vld [vmem:[%s14688_s15 + $0x450] sm:$0xff] }
0x4767   :  { %10777 = vmatpush3.bf16.msra.mxu1 %v11044_v38  ;;  %v9818_v38 = vcombine.high %v9687_v36, %v9695_v53 }
0x4768   :  { %7352 = vmatprep.subr.bf16.mxu1 %v9802_v23 }
0x47e6   :  { %v6214_v51 = vpop.xlane.xlu0 %6213 }
0x47e7   :  { %v6215_v58 = vmul.f32 0.013888889, %v6214_v51  ;;  %v9834_v51 = vcombine.high %v9703_v46, %v9711_v3 }
0x47e8   :  { %v6219_v14 = vpop.xlane.xlu1 %6218 }
0x47e9   :  { %v6221_v50 = vmul.f32 %v6215_v58, %v6215_v58  ;;  %v6220_v11 = vmul.f32 0.013888889, %v6219_v14  ;;  %v6223_v49 = vsub.f32 %v6209_v63, %v6215_v58  ;;  %v9712_v58 = vld [vmem:[%s14688_s15 + $0x548] sm:$0xff]  ;;  %v9833_v14 = vcombine.low %v9703_v46, %v9711_v3 }
0x47eb   :  { %v6222_v18 = vsub.f32 %v6220_v11, %v6221_v50  ;;  %v9835_v50 = vcombine.low %v9704_v8, %v9712_v58  ;;  %v9836_v11 = vcombine.high %v9704_v8, %v9712_v58 }
0x47ed   :  { %v6224_v7 = vadd.f32 1e-05, %v6222_v18  ;;  %v9719_v18 = vld [vmem:[%s14688_s15 + $0x580] sm:$0xff] }
0x47ef   :  { %11575 = vrsqrt.f32 %v6224_v7  ;;  %v9727_v7 = vld [vmem:[%s14688_s15 + $0x5c0] sm:$0xff] }
0x47f9   :  { %v11576_v33 = vpop.eup %11575 }
0x47fa   :  { %v6226_v20 = vmul.f32 %v11576_v33, %v6223_v49  ;;  %v9720_v49 = vld [vmem:[%s14688_s15 + $0x588] sm:$0xff]  ;;  %v9850_v33 = vcombine.high %v9719_v18, %v9727_v7 }
0x47fc   :  { %v6231_v41 = vmul.f32 %v9617_v1, %v6226_v20  ;;  %v9728_v1 = vld [vmem:[%s14688_s15 + $0x5c8] sm:$0xff]  ;;  %v9849_v20 = vcombine.low %v9719_v18, %v9727_v7 }
0x47fe   :  { %v6236_v22 = vadd.f32 %v9618_v55, %v6231_v41  ;;  %v9851_v55 = vcombine.low %v9720_v49, %v9728_v1  ;;  %v9852_v41 = vcombine.high %v9720_v49, %v9728_v1  ;;  %v9669_v1 = vld [vmem:[%s14692_s19 + $0x1] ss:$0 sm:$0xff] }
0x4800   :  { %v6237_v37 = vpack.c.bf16 %v6236_v22, %v6236_v22 }
0x4802   :  { %v6261_v21 = vrot.slane %v6237_v37, 3  ;;  %v9743_v37 = vld [vmem:[%s14688_s15 + $0x640] sm:$0xff] }
0x4804   :  { %10779 = vmatmul.mubr.bf16.vlgmr.msra.gmra.mrb[84].mxu1 %v6261_v21  ;;  %v9736_v21 = vld [vmem:[%s14688_s15 + $0x608] sm:$0xff] }
0x4805   :  { %7384 = vmatprep.mubr.bf16.mxu1 %v11613_v2  ;;  %7353 = vmatpush1.bf16.msra.mxu1 %v9801_v25 }
0x4806   :  { %7354 = vmatprep.subr.bf16.mxu1 %v9818_v38  ;;  %v9673_v38 = vld [vmem:[%s14688_s15 + $0x410] sm:$0xff] }
0x4807   :  { %v9805_v46 = vcombine.low %v9673_v38, %v9681_v34 }
0x4809   :  { %7355 = vmatpush1.bf16.msra.mxu1 %v9817_v35  ;;  %v9674_v35 = vld [vmem:[%s14688_s15 + $0x418] sm:$0xff] }
0x480a   :  { %7356 = vmatprep.subr.bf16.mxu1 %v9834_v51 }
0x480d   :  { %7357 = vmatpush1.bf16.msra.mxu1 %v9833_v14 }
0x480e   :  { %7358 = vmatprep.subr.bf16.mxu1 %v9850_v33 }
0x4811   :  { %7359 = vmatpush1.bf16.msra.mxu1 %v9849_v20 }
0x48d7   :  { %v6345_v0 = vpop.f32.mrb[84].mxu1 }
0x48d8   :  { %v6346_v13 = vadd.f32 %v9635_v56, %v6345_v0  ;;  %v10780_v17 = vpop.f32.mrb[85].mxu1  ;;  %v9744_v56 = vld [vmem:[%s14688_s15 + $0x648] sm:$0xff] }
0x48d9   :  { %v6348_v60 = vpop.f32.mrb[86].mxu1  ;;  %v9868_v17 = vcombine.high %v9736_v21, %v9744_v56 }
0x48da   :  { %v6351_v10 = vpack.c.bf16 %v6346_v13, %v6346_v13  ;;  %v10781_v19 = vpop.f32.mrb[87].mxu1  ;;  %v9867_v13 = vcombine.low %v9736_v21, %v9744_v56  ;;  %v9751_v60 = vld [vmem:[%s14688_s15 + $0x680] sm:$0xff]  ;;  %v9690_v21 = vld [vmem:[%s14688_s15 + $0x498] sm:$0xff] }
0x48db   :  { %v9752_v19 = vld [vmem:[%s14688_s15 + $0x688] sm:$0xff] }
0x48dc   :  { %10799 = vmatmul.mubr.bf16.vlgmr.msra.gmra.mrb[96].mxu0 %v6351_v10  ;;  %v9759_v10 = vld [vmem:[%s14688_s15 + $0x6c0] sm:$0xff]  ;;  %v9883_v25 = vcombine.low %v9752_v19, %v9760_v39  ;;  %v9884_v23 = vcombine.high %v9752_v19, %v9760_v39  ;;  %v9706_v19 = vld [vmem:[%s14688_s15 + $0x518] sm:$0xff] }
0x48dd   :  { %7425 = vmatprep.mubr.bf16.mxu0 %v11613_v2  ;;  %7394 = vmatpush1.bf16.msra.mxu0 %v9803_v29  ;;  %v9882_v28 = vcombine.high %v9751_v60, %v9759_v10  ;;  %v9881_v32 = vcombine.low %v9751_v60, %v9759_v10  ;;  %v9775_v29 = vld [vmem:[%s14688_s15 + $0x740] sm:$0xff]  ;;  %v9705_v60 = vld [vmem:[%s14688_s15 + $0x510] sm:$0xff] }
0x48de   :  { %7395 = vmatprep.subr.bf16.mxu0 %v9820_v42  ;;  %v9682_v42 = vld [vmem:[%s14688_s15 + $0x458] sm:$0xff]  ;;  %v9713_v10 = vld [vmem:[%s14688_s15 + $0x550] sm:$0xff] }
0x48df   :  { %v9807_v3 = vcombine.low %v9674_v35, %v9682_v42  ;;  %v9808_v8 = vcombine.high %v9674_v35, %v9682_v42  ;;  %v9754_v35 = vld [vmem:[%s14688_s15 + $0x698] sm:$0xff] }
0x48e1   :  { %7396 = vmatpush1.bf16.msra.mxu0 %v9819_v40  ;;  %v9806_v40 = vcombine.high %v9673_v38, %v9681_v34  ;;  %v9753_v38 = vld [vmem:[%s14688_s15 + $0x690] sm:$0xff] }
0x48e2   :  { %7397 = vmatprep.subr.bf16.mxu0 %v9836_v11  ;;  %v9761_v34 = vld [vmem:[%s14688_s15 + $0x6d0] sm:$0xff] }
0x48e5   :  { %7398 = vmatpush1.bf16.msra.mxu0 %v9835_v50 }
0x48e6   :  { %7399 = vmatprep.subr.bf16.mxu0 %v9852_v41 }
0x48e9   :  { %7400 = vmatpush1.bf16.msra.mxu0 %v9851_v55  ;;  %v9670_v55 = vld [vmem:[%s14693_s20 + $0x1] ss:$0 sm:$0xff]  ;;  %s11619_s20 = smov [#allocation4]  }
0x48ea   :  { %7401 = vmatprep.subr.bf16.mxu0 %v9868_v17  ;;  %s9216_s27 = sshll.u32 %s11619_s20, 4  ;;  %s9217_s27 = int_to_ptr.vmem [resolvable:$true] %s9216_s27 }
0x48eb   :  { %p11594_p1 = scmp.lt.s32.totalorder %s9217_s27, %s9217_s27 }
0x48ed   :  { %7402 = vmatpush1.bf16.msra.mxu0 %v9867_v13 }
0x48ee   :  { %7403 = vmatprep.subr.bf16.mxu0 %v9884_v23 }
0x48f1   :  { %7404 = vmatpush1.bf16.msra.mxu0 %v9883_v25  ;;  %v9838_v25 = vcombine.high %v9705_v60, %v9713_v10 }
0x49af   :  { %v6456_v27 = vpop.f32.mrb[96].mxu0 }
0x49b0   :  { %v6457_v30 = vadd.f32 %v9660_v52, %v6456_v27  ;;  %v10800_v31 = vpop.f32.mrb[97].mxu0  ;;  %v9898_v52 = vcombine.high %v9767_v26, %v9775_v29  ;;  %v9776_v27 = vld [vmem:[%s14688_s15 + $0x748] sm:$0xff] }
0x49b1   :  { %v6459_v63 = vpop.f32.mrb[98].mxu0  ;;  %v9899_v31 = vcombine.low %v9768_v12, %v9776_v27 }
0x49b2   :  { %v6463_v5 = vrot.slane %v6457_v30, 2  ;;  %v10801_v62 = vpop.f32.mrb[99].mxu0  ;;  %v9897_v30 = vcombine.low %v9767_v26, %v9775_v29  ;;  %v9900_v63 = vcombine.high %v9768_v12, %v9776_v27  ;;  %v9721_v26 = vld [vmem:[%s14688_s15 + $0x590] sm:$0xff]  ;;  %v9722_v12 = vld [vmem:[%s14688_s15 + $0x598] sm:$0xff]  ;;  %v9837_v27 = vcombine.low %v9705_v60, %v9713_v10 }
0x49b3   :  { %v9791_v62 = vld [vmem:[%s14688_s15 + $0x7c0] sm:$0xff]  ;;  %v9729_v29 = vld [vmem:[%s14688_s15 + $0x5d0] sm:$0xff] }
0x49b4   :  { %v13780_v24 = vadd.f32 %v6463_v5, %v6236_v22  ;;  %v9735_v22 = vld [vmem:[%s14688_s15 + $0x600] sm:$0xff]  ;;  %7405 = vmatprep.subr.bf16.mxu0 %v9900_v63 }
0x49b5   :  { %v9866_v61 = vcombine.high %v9735_v22, %v9743_v37  ;;  %v9865_v0 = vcombine.low %v9735_v22, %v9743_v37  ;;  %v9783_v5 = vld [vmem:[%s14688_s15 + $0x780] sm:$0xff]  ;;  %7406 = vmatpush1.bf16.msra.mxu0 %v9899_v31  ;;  %v9689_v37 = vld [vmem:[%s14688_s15 + $0x490] sm:$0xff]  ;;  %v9854_v31 = vcombine.high %v9721_v26, %v9729_v29 }
0x49b6   :  { %v6468_v9 = vsel %vm3614_vm12, %v13780_v24, 0.0  ;;  %v6472_v47 = vmul.f32 %v13780_v24, %v13780_v24  ;;  %v9913_v36 = vcombine.low %v9783_v5, %v9791_v62 }
0x49b7   :  { %6469 = vadd.xlane.f32.xlu0 %v6468_v9  ;;  %7360 = vmatprep.subr.bf16.mxu1 %v9866_v61  ;;  %v9784_v9 = vld [vmem:[%s14688_s15 + $0x788] sm:$0xff]  ;;  %v9698_v61 = vld [vmem:[%s14688_s15 + $0x4d8] sm:$0xff] }
0x49b8   :  { %v6473_v57 = vsel %vm3614_vm12, %v6472_v47, 0.0  ;;  %7361 = vmatpush1.bf16.msra.mxu1 %v9865_v0  ;;  %v9914_v47 = vcombine.high %v9783_v5, %v9791_v62  ;;  %v9824_v17 = vcombine.high %v9690_v21, %v9698_v61  ;;  %v9737_v5 = vld [vmem:[%s14688_s15 + $0x610] sm:$0xff] }
0x49b9   :  { %6474 = vadd.xlane.f32.xlu1 %v6473_v57  ;;  %7362 = vmatprep.subr.bf16.mxu1 %v9882_v28  ;;  %v9792_v57 = vld [vmem:[%s14688_s15 + $0x7c8] sm:$0xff]  ;;  %v9714_v28 = vld [vmem:[%s14688_s15 + $0x558] sm:$0xff]  ;;  %v9745_v62 = vld [vmem:[%s14688_s15 + $0x650] sm:$0xff] }
0x49ba   :  { %v9915_v53 = vcombine.low %v9784_v9, %v9792_v57  ;;  %v9916_v48 = vcombine.high %v9784_v9, %v9792_v57  ;;  %v9840_v23 = vcombine.high %v9706_v19, %v9714_v28  ;;  %v9738_v9 = vld [vmem:[%s14688_s15 + $0x618] sm:$0xff]  ;;  %v9853_v57 = vcombine.low %v9721_v26, %v9729_v29 }
0x49bb   :  { %v9869_v42 = vcombine.low %v9737_v5, %v9745_v62 }
0x49bc   :  { %7363 = vmatpush1.bf16.msra.mxu1 %v9881_v32  ;;  %7407 = vmatprep.subr.bf16.mxu0 %v9916_v48  ;;  %v9823_v32 = vcombine.low %v9690_v21, %v9698_v61  ;;  %v9675_v61 = vld [vmem:[%s14688_s15 + $0x420] sm:$0xff] }
0x49bd   :  { %7364 = vmatprep.subr.bf16.mxu1 %v9898_v52  ;;  %7408 = vmatpush1.bf16.msra.mxu0 %v9915_v53  ;;  %v9730_v52 = vld [vmem:[%s14688_s15 + $0x5d8] sm:$0xff]  ;;  %v9870_v53 = vcombine.high %v9737_v5, %v9745_v62 }
0x49be   :  { %7475 = vmatprep.subr.bf16.mxu0 %v9808_v8  ;;  %v9856_v63 = vcombine.high %v9722_v12, %v9730_v52 }
0x49c0   :  { %7365 = vmatpush1.bf16.msra.mxu1 %v9897_v30  ;;  %v9839_v30 = vcombine.low %v9706_v19, %v9714_v28 }
0x49c1   :  { %7366 = vmatprep.subr.bf16.mxu1 %v9914_v47  ;;  %v9746_v47 = vld [vmem:[%s14688_s15 + $0x658] sm:$0xff] }
0x49c2   :  { %v9872_v48 = vcombine.high %v9738_v9, %v9746_v47 }
0x49c4   :  { %7367 = vmatpush1.bf16.msra.mxu1 %v9913_v36  ;;  %v9855_v36 = vcombine.low %v9722_v12, %v9730_v52 }
0x49c5   :  { %7434 = vmatprep.subr.bf16.mxu1 %v9806_v40  ;;  %v9762_v40 = vld [vmem:[%s14688_s15 + $0x6d8] sm:$0xff] }
0x49c6   :  { %v9888_v8 = vcombine.high %v9754_v35, %v9762_v40 }
0x4a44   :  { %v6470_v51 = vpop.xlane.xlu0 %6469 }
0x4a45   :  { %v6471_v58 = vmul.f32 0.013888889, %v6470_v51  ;;  %v9769_v51 = vld [vmem:[%s14688_s15 + $0x710] sm:$0xff] }
0x4a46   :  { %v6475_v14 = vpop.xlane.xlu1 %6474 }
0x4a47   :  { %v6477_v50 = vmul.f32 %v6471_v58, %v6471_v58  ;;  %v6476_v11 = vmul.f32 0.013888889, %v6475_v14  ;;  %v6479_v49 = vsub.f32 %v13780_v24, %v6471_v58  ;;  %v9697_v24 = vld [vmem:[%s14688_s15 + $0x4d0] sm:$0xff]  ;;  %v9770_v14 = vld [vmem:[%s14688_s15 + $0x718] sm:$0xff] }
0x4a48   :  { %v9822_v13 = vcombine.high %v9689_v37, %v9697_v24  ;;  %v9821_v39 = vcombine.low %v9689_v37, %v9697_v24  ;;  %v9777_v58 = vld [vmem:[%s14688_s15 + $0x750] sm:$0xff] }
0x4a49   :  { %v6478_v18 = vsub.f32 %v6476_v11, %v6477_v50  ;;  %v9778_v50 = vld [vmem:[%s14688_s15 + $0x758] sm:$0xff]  ;;  %v9885_v11 = vcombine.low %v9753_v38, %v9761_v34 }
0x4a4a   :  { %v9903_v37 = vcombine.low %v9770_v14, %v9778_v50 }
0x4a4b   :  { %v6480_v7 = vadd.f32 1e-05, %v6478_v18  ;;  %v9887_v18 = vcombine.low %v9754_v35, %v9762_v40 }
0x4a4d   :  { %11577 = vrsqrt.f32 %v6480_v7  ;;  %v9902_v7 = vcombine.high %v9769_v51, %v9777_v58 }
0x4a57   :  { %v11578_v33 = vpop.eup %11577 }
0x4a58   :  { %v6482_v20 = vmul.f32 %v11578_v33, %v6479_v49  ;;  %v9904_v49 = vcombine.high %v9770_v14, %v9778_v50  ;;  %v9785_v33 = vld [vmem:[%s14688_s15 + $0x790] sm:$0xff] }
0x4a5a   :  { %v6487_v41 = vmul.f32 %v9669_v1, %v6482_v20  ;;  %v9793_v1 = vld [vmem:[%s14688_s15 + $0x7d0] sm:$0xff]  ;;  %v9786_v20 = vld [vmem:[%s14688_s15 + $0x798] sm:$0xff] }
0x4a5b   :  { %v9918_v24 = vcombine.high %v9785_v33, %v9793_v1  ;;  %v9917_v60 = vcombine.low %v9785_v33, %v9793_v1 }
0x4a5c   :  { %v13890_v22 = vadd.f32 %v9670_v55, %v6487_v41  ;;  %v9794_v55 = vld [vmem:[%s14688_s15 + $0x7d8] sm:$0xff]  ;;  %v9901_v41 = vcombine.low %v9769_v51, %v9777_v58 }
0x4a5d   :  { %v9920_v21 = vcombine.high %v9786_v20, %v9794_v55  ;;  %v9919_v10 = vcombine.low %v9786_v20, %v9794_v55 }
0x4a5e   :  { %v6493_v56 = vpack.c.bf16 %v13890_v22, %v13890_v22 }
0x4a60   :  { %v13906_v0 = vrot.slane %v6493_v56, 3  ;;  %v9683_v56 = vld [vmem:[%s14688_s15 + $0x460] sm:$0xff] }
0x4a61   :  { %v9810_v19 = vcombine.high %v9675_v61, %v9683_v56  ;;  %v9809_v26 = vcombine.low %v9675_v61, %v9683_v56 }
0x4a62   :  { %7385 = vmatmul.mubr.bf16.vlgmr.msra.gmra.mrb[88].mxu1 %v13906_v0  ;;  %7426 = vmatmul.mubr.bf16.vlgmr.msra.gmra.mrb[100].mxu0 %v13906_v0 }
0x4a63   :  { %7435 = vmatpush1.bf16.msra.mxu1 %v9805_v46  ;;  %7476 = vmatpush1.bf16.msra.mxu0 %v9807_v3  ;;  %v9871_v46 = vcombine.low %v9738_v9, %v9746_v47  ;;  %v9886_v3 = vcombine.high %v9753_v38, %v9761_v34 }
0x4a64   :  { %7436 = vmatprep.subr.bf16.mxu1 %v9822_v13  ;;  %7477 = vmatprep.subr.bf16.mxu0 %v9824_v17  ;;  %v9676_v13 = vld [vmem:[%s14688_s15 + $0x428] sm:$0xff] }
0x4a65   :  { %7466 = vmatprep.mubr.bf16.mxu1 %v11613_v2  ;;  %7507 = vmatprep.mubr.bf16.mxu0 %v11613_v2  ;;  %v9684_v17 = vld [vmem:[%s14688_s15 + $0x468] sm:$0xff] }
0x4a66   :  { %v9812_v28 = vcombine.high %v9676_v13, %v9684_v17  ;;  %v9811_v29 = vcombine.low %v9676_v13, %v9684_v17 }
0x4a67   :  { %7437 = vmatpush1.bf16.msra.mxu1 %v9821_v39  ;;  %7478 = vmatpush1.bf16.msra.mxu0 %v9823_v32  ;;  %v9691_v39 = vld [vmem:[%s14688_s15 + $0x4a0] sm:$0xff] }
0x4a68   :  { %7438 = vmatprep.subr.bf16.mxu1 %v9838_v25  ;;  %7479 = vmatprep.subr.bf16.mxu0 %v9840_v23  ;;  %v9699_v32 = vld [vmem:[%s14688_s15 + $0x4e0] sm:$0xff]  ;;  %v9692_v25 = vld [vmem:[%s14688_s15 + $0x4a8] sm:$0xff] }
0x4a69   :  { %v9700_v23 = vld [vmem:[%s14688_s15 + $0x4e8] sm:$0xff]  ;;  %v9826_v12 = vcombine.high %v9691_v39, %v9699_v32  ;;  %v9825_v5 = vcombine.low %v9691_v39, %v9699_v32 }
0x4a6a   :  { %v9828_v52 = vcombine.high %v9692_v25, %v9700_v23  ;;  %v9827_v62 = vcombine.low %v9692_v25, %v9700_v23 }
0x4a6b   :  { %7439 = vmatpush1.bf16.msra.mxu1 %v9837_v27  ;;  %7480 = vmatpush1.bf16.msra.mxu0 %v9839_v30  ;;  %v9707_v27 = vld [vmem:[%s14688_s15 + $0x520] sm:$0xff] }
0x4a6c   :  { %7440 = vmatprep.subr.bf16.mxu1 %v9854_v31  ;;  %7481 = vmatprep.subr.bf16.mxu0 %v9856_v63  ;;  %v9715_v30 = vld [vmem:[%s14688_s15 + $0x560] sm:$0xff]  ;;  %v9708_v31 = vld [vmem:[%s14688_s15 + $0x528] sm:$0xff] }
0x4a6d   :  { %v9716_v63 = vld [vmem:[%s14688_s15 + $0x568] sm:$0xff]  ;;  %v9842_v9 = vcombine.high %v9707_v27, %v9715_v30  ;;  %v9841_v38 = vcombine.low %v9707_v27, %v9715_v30 }
0x4a6e   :  { %v9844_v47 = vcombine.high %v9708_v31, %v9716_v63  ;;  %v9843_v34 = vcombine.low %v9708_v31, %v9716_v63 }
0x4a6f   :  { %7441 = vmatpush1.bf16.msra.mxu1 %v9853_v57  ;;  %7482 = vmatpush1.bf16.msra.mxu0 %v9855_v36  ;;  %v9723_v57 = vld [vmem:[%s14688_s15 + $0x5a0] sm:$0xff] }
0x4a70   :  { %7442 = vmatprep.subr.bf16.mxu1 %v9870_v53  ;;  %7483 = vmatprep.subr.bf16.mxu0 %v9872_v48  ;;  %v9731_v36 = vld [vmem:[%s14688_s15 + $0x5e0] sm:$0xff]  ;;  %v9724_v53 = vld [vmem:[%s14688_s15 + $0x5a8] sm:$0xff] }
0x4a71   :  { %v9732_v48 = vld [vmem:[%s14688_s15 + $0x5e8] sm:$0xff]  ;;  %v9858_v35 = vcombine.high %v9723_v57, %v9731_v36  ;;  %v9857_v51 = vcombine.low %v9723_v57, %v9731_v36 }
0x4a72   :  { %v9860_v40 = vcombine.high %v9724_v53, %v9732_v48  ;;  %v9859_v58 = vcombine.low %v9724_v53, %v9732_v48 }
0x4a73   :  { %7443 = vmatpush1.bf16.msra.mxu1 %v9869_v42  ;;  %7484 = vmatpush1.bf16.msra.mxu0 %v9871_v46  ;;  %v9739_v42 = vld [vmem:[%s14688_s15 + $0x620] sm:$0xff] }
0x4a74   :  { %7444 = vmatprep.subr.bf16.mxu1 %v9886_v3  ;;  %7485 = vmatprep.subr.bf16.mxu0 %v9888_v8  ;;  %v9747_v46 = vld [vmem:[%s14688_s15 + $0x660] sm:$0xff]  ;;  %v9740_v3 = vld [vmem:[%s14688_s15 + $0x628] sm:$0xff] }
0x4a75   :  { %v9748_v8 = vld [vmem:[%s14688_s15 + $0x668] sm:$0xff]  ;;  %v9874_v14 = vcombine.high %v9739_v42, %v9747_v46  ;;  %v9873_v33 = vcombine.low %v9739_v42, %v9747_v46 }
0x4a76   :  { %v9876_v50 = vcombine.high %v9740_v3, %v9748_v8  ;;  %v9875_v1 = vcombine.low %v9740_v3, %v9748_v8 }
0x4a77   :  { %7445 = vmatpush1.bf16.msra.mxu1 %v9885_v11  ;;  %7486 = vmatpush1.bf16.msra.mxu0 %v9887_v18  ;;  %v9755_v11 = vld [vmem:[%s14688_s15 + $0x6a0] sm:$0xff] }
0x4a78   :  { %7446 = vmatprep.subr.bf16.mxu1 %v9902_v7  ;;  %7487 = vmatprep.subr.bf16.mxu0 %v9904_v49  ;;  %v9763_v18 = vld [vmem:[%s14688_s15 + $0x6e0] sm:$0xff]  ;;  %v9756_v7 = vld [vmem:[%s14688_s15 + $0x6a8] sm:$0xff] }
0x4a79   :  { %v9764_v49 = vld [vmem:[%s14688_s15 + $0x6e8] sm:$0xff]  ;;  %v9890_v20 = vcombine.high %v9755_v11, %v9763_v18  ;;  %v9889_v61 = vcombine.low %v9755_v11, %v9763_v18 }
0x4a7a   :  { %v9892_v55 = vcombine.high %v9756_v7, %v9764_v49  ;;  %v9891_v56 = vcombine.low %v9756_v7, %v9764_v49 }
0x4a7b   :  { %7447 = vmatpush1.bf16.msra.mxu1 %v9901_v41  ;;  %7488 = vmatpush1.bf16.msra.mxu0 %v9903_v37  ;;  %v9771_v41 = vld [vmem:[%s14688_s15 + $0x720] sm:$0xff] }
0x4a7c   :  { %7448 = vmatprep.subr.bf16.mxu1 %v9918_v24  ;;  %7489 = vmatprep.subr.bf16.mxu0 %v9920_v21  ;;  %v9779_v37 = vld [vmem:[%s14688_s15 + $0x760] sm:$0xff]  ;;  %v9772_v24 = vld [vmem:[%s14688_s15 + $0x728] sm:$0xff] }
0x4a7d   :  { %v9780_v21 = vld [vmem:[%s14688_s15 + $0x768] sm:$0xff]  ;;  %v9906_v13 = vcombine.high %v9771_v41, %v9779_v37  ;;  %v9905_v39 = vcombine.low %v9771_v41, %v9779_v37 }
0x4a7e   :  { %v9908_v17 = vcombine.high %v9772_v24, %v9780_v21  ;;  %v9907_v32 = vcombine.low %v9772_v24, %v9780_v21  ;;  %v9757_v21 = vld [vmem:[%s14688_s15 + $0x6b0] sm:$0xff] }
0x4a7f   :  { %7449 = vmatpush1.bf16.msra.mxu1 %v9917_v60  ;;  %7490 = vmatpush1.bf16.msra.mxu0 %v9919_v10  ;;  %v9787_v60 = vld [vmem:[%s14688_s15 + $0x7a0] sm:$0xff] }
0x4a80   :  { %7516 = vmatprep.subr.bf16.mxu1 %v9810_v19  ;;  %7557 = vmatprep.subr.bf16.mxu0 %v9812_v28  ;;  %v9795_v10 = vld [vmem:[%s14688_s15 + $0x7e0] sm:$0xff]  ;;  %v9788_v19 = vld [vmem:[%s14688_s15 + $0x7a8] sm:$0xff] }
0x4a81   :  { %v9796_v28 = vld [vmem:[%s14688_s15 + $0x7e8] sm:$0xff]  ;;  %v9922_v25 = vcombine.high %v9787_v60, %v9795_v10  ;;  %v9921_v27 = vcombine.low %v9787_v60, %v9795_v10 }
0x4a82   :  { %7467 = vmatmul.mubr.bf16.vlgmr.msra.gmra.mrb[92].mxu1 %v13906_v0  ;;  %7508 = vmatmul.mubr.bf16.vlgmr.msra.gmra.mrb[104].mxu0 %v13906_v0  ;;  %v9924_v23 = vcombine.high %v9788_v19, %v9796_v28  ;;  %v9923_v30 = vcombine.low %v9788_v19, %v9796_v28  ;;  %v9773_v28 = vld [vmem:[%s14688_s15 + $0x730] sm:$0xff] }
0x4a83   :  { %7517 = vmatpush1.bf16.msra.mxu1 %v9809_v26  ;;  %7558 = vmatpush1.bf16.msra.mxu0 %v9811_v29  ;;  %v9677_v26 = vld [vmem:[%s14688_s15 + $0x430] sm:$0xff] }
0x4a84   :  { %7518 = vmatprep.subr.bf16.mxu1 %v9826_v12  ;;  %7559 = vmatprep.subr.bf16.mxu0 %v9828_v52  ;;  %v9685_v29 = vld [vmem:[%s14688_s15 + $0x470] sm:$0xff]  ;;  %v9678_v12 = vld [vmem:[%s14688_s15 + $0x438] sm:$0xff] }
0x4a85   :  { %7548 = vmatprep.mubr.bf16.mxu1 %v11613_v2  ;;  %7589 = vmatprep.mubr.bf16.mxu0 %v11613_v2  ;;  %v9686_v52 = vld [vmem:[%s14688_s15 + $0x478] sm:$0xff]  ;;  %v9814_v31 = vcombine.high %v9677_v26, %v9685_v29  ;;  %v9813_v57 = vcombine.low %v9677_v26, %v9685_v29 }
0x4a86   :  { %v9816_v63 = vcombine.high %v9678_v12, %v9686_v52  ;;  %v9815_v36 = vcombine.low %v9678_v12, %v9686_v52  ;;  %v9789_v52 = vld [vmem:[%s14688_s15 + $0x7b0] sm:$0xff] }
0x4a87   :  { %7519 = vmatpush1.bf16.msra.mxu1 %v9825_v5  ;;  %7560 = vmatpush1.bf16.msra.mxu0 %v9827_v62  ;;  %v9693_v5 = vld [vmem:[%s14688_s15 + $0x4b0] sm:$0xff] }
0x4a88   :  { %7520 = vmatprep.subr.bf16.mxu1 %v9842_v9  ;;  %7561 = vmatprep.subr.bf16.mxu0 %v9844_v47  ;;  %v9701_v62 = vld [vmem:[%s14688_s15 + $0x4f0] sm:$0xff]  ;;  %v9694_v9 = vld [vmem:[%s14688_s15 + $0x4b8] sm:$0xff] }
0x4a89   :  { %v9702_v47 = vld [vmem:[%s14688_s15 + $0x4f8] sm:$0xff]  ;;  %v9830_v53 = vcombine.high %v9693_v5, %v9701_v62  ;;  %v9829_v42 = vcombine.low %v9693_v5, %v9701_v62 }
0x4a8a   :  { %v9832_v48 = vcombine.high %v9694_v9, %v9702_v47  ;;  %v9831_v46 = vcombine.low %v9694_v9, %v9702_v47 }
0x4a8b   :  { %7521 = vmatpush1.bf16.msra.mxu1 %v9841_v38  ;;  %7562 = vmatpush1.bf16.msra.mxu0 %v9843_v34  ;;  %v9709_v38 = vld [vmem:[%s14688_s15 + $0x530] sm:$0xff] }
0x4a8c   :  { %7522 = vmatprep.subr.bf16.mxu1 %v9858_v35  ;;  %7563 = vmatprep.subr.bf16.mxu0 %v9860_v40  ;;  %v9717_v34 = vld [vmem:[%s14688_s15 + $0x570] sm:$0xff]  ;;  %v9710_v35 = vld [vmem:[%s14688_s15 + $0x538] sm:$0xff] }
0x4a8d   :  { %v9718_v40 = vld [vmem:[%s14688_s15 + $0x578] sm:$0xff]  ;;  %v9846_v3 = vcombine.high %v9709_v38, %v9717_v34  ;;  %v9845_v11 = vcombine.low %v9709_v38, %v9717_v34  ;;  %v11056_v38 = vld [vmem:[%s14690_s17 + $0x480] sm:$0xff]   ;;  %v11057_v34 = vld [vmem:[%s14690_s17 + $0x448] sm:$0xff]  }
0x4a8e   :  { %v9848_v8 = vcombine.high %v9710_v35, %v9718_v40  ;;  %v9847_v18 = vcombine.low %v9710_v35, %v9718_v40  ;;  %v11058_v35 = vld [vmem:[%s14690_s17 + $0x4c8] sm:$0xff]  }
0x4a8f   :  { %7523 = vmatpush1.bf16.msra.mxu1 %v9857_v51  ;;  %7564 = vmatpush1.bf16.msra.mxu0 %v9859_v58  ;;  %v9725_v51 = vld [vmem:[%s14688_s15 + $0x5b0] sm:$0xff]  ;;  %v11059_v40 = vld [vmem:[%s14690_s17 + $0x408] sm:$0xff]  }
0x4a90   :  { %7524 = vmatprep.subr.bf16.mxu1 %v9874_v14  ;;  %7565 = vmatprep.subr.bf16.mxu0 %v9876_v50  ;;  %v9733_v58 = vld [vmem:[%s14688_s15 + $0x5f0] sm:$0xff]  ;;  %v9726_v14 = vld [vmem:[%s14688_s15 + $0x5b8] sm:$0xff] }
0x4a91   :  { %v9734_v50 = vld [vmem:[%s14688_s15 + $0x5f8] sm:$0xff]  ;;  %v9862_v7 = vcombine.high %v9725_v51, %v9733_v58 }
0x4a92   :  { %v9864_v49 = vcombine.high %v9726_v14, %v9734_v50  ;;  %v9863_v41 = vcombine.low %v9726_v14, %v9734_v50  ;;  %v11067_v14 = vld [vmem:[%s14690_s17 + $0x418] sm:$0xff]  }
0x4a93   :  { %7525 = vmatpush1.bf16.msra.mxu1 %v9873_v33  ;;  %7566 = vmatpush1.bf16.msra.mxu0 %v9875_v1  ;;  %v9741_v33 = vld [vmem:[%s14688_s15 + $0x630] sm:$0xff]  ;;  %v11068_v50 = vld [vmem:[%s14690_s17 + $0x498] sm:$0xff]  }
0x4a94   :  { %7526 = vmatprep.subr.bf16.mxu1 %v9890_v20  ;;  %7567 = vmatprep.subr.bf16.mxu0 %v9892_v55  ;;  %v9749_v1 = vld [vmem:[%s14688_s15 + $0x670] sm:$0xff]  ;;  %v9750_v20 = vld [vmem:[%s14688_s15 + $0x678] sm:$0xff]  ;;  %v9861_v55 = vcombine.low %v9725_v51, %v9733_v58 }
0x4a95   :  { %v9878_v37 = vcombine.high %v9741_v33, %v9749_v1  ;;  %v11065_v51 = vld [vmem:[%s14690_s17 + $0x458] sm:$0xff]  }
0x4a96   :  { %v11066_v58 = vld [vmem:[%s14690_s17 + $0x4d8] sm:$0xff]  }
0x4a97   :  { %7527 = vmatpush1.bf16.msra.mxu1 %v9889_v61  ;;  %7568 = vmatpush1.bf16.msra.mxu0 %v9891_v56  ;;  %v9765_v61 = vld [vmem:[%s14688_s15 + $0x6f0] sm:$0xff]  ;;  %v9758_v56 = vld [vmem:[%s14688_s15 + $0x6b8] sm:$0xff] }
0x4a98   :  { %7528 = vmatprep.subr.bf16.mxu1 %v9906_v13  ;;  %7569 = vmatprep.subr.bf16.mxu0 %v9908_v17  ;;  %v9766_v13 = vld [vmem:[%s14688_s15 + $0x6f8] sm:$0xff]  ;;  %v9877_v17 = vcombine.low %v9741_v33, %v9749_v1  ;;  %v9894_v10 = vcombine.high %v9757_v21, %v9765_v61  ;;  %v11073_v33 = vld [vmem:[%s14690_s17 + $0x468] sm:$0xff]  }
0x4a99   :  { %v9896_v19 = vcombine.high %v9758_v56, %v9766_v13  ;;  %v9895_v26 = vcombine.low %v9758_v56, %v9766_v13  ;;  %v11074_v1 = vld [vmem:[%s14690_s17 + $0x4e8] sm:$0xff]   ;;  %v11083_v56 = vld [vmem:[%s14690_s17 + $0x438] sm:$0xff]  }
0x4a9a   :  { %v11084_v13 = vld [vmem:[%s14690_s17 + $0x4b8] sm:$0xff]  }
0x4a9b   :  { %7529 = vmatpush1.bf16.msra.mxu1 %v9905_v39  ;;  %7570 = vmatpush1.bf16.msra.mxu0 %v9907_v32  ;;  %v9781_v39 = vld [vmem:[%s14688_s15 + $0x770] sm:$0xff]  ;;  %v9774_v32 = vld [vmem:[%s14688_s15 + $0x738] sm:$0xff] }
0x4a9c   :  { %7530 = vmatprep.subr.bf16.mxu1 %v9922_v25  ;;  %7571 = vmatprep.subr.bf16.mxu0 %v9924_v23  ;;  %v9782_v25 = vld [vmem:[%s14688_s15 + $0x778] sm:$0xff]  ;;  %v9893_v23 = vcombine.low %v9757_v21, %v9765_v61  ;;  %v9910_v29 = vcombine.high %v9773_v28, %v9781_v39 }
0x4a9d   :  { %v9912_v12 = vcombine.high %v9774_v32, %v9782_v25  ;;  %v9911_v5 = vcombine.low %v9774_v32, %v9782_v25  ;;  %v11081_v21 = vld [vmem:[%s14690_s17 + $0x478] sm:$0xff]  }
0x4a9e   :  { %v11082_v61 = vld [vmem:[%s14690_s17 + $0x4f8] sm:$0xff]  }
0x4a9f   :  { %7531 = vmatpush1.bf16.msra.mxu1 %v9921_v27  ;;  %7572 = vmatpush1.bf16.msra.mxu0 %v9923_v30  ;;  %v9797_v27 = vld [vmem:[%s14688_s15 + $0x7f0] sm:$0xff]  ;;  %v9790_v30 = vld [vmem:[%s14688_s15 + $0x7b8] sm:$0xff] }
0x4aa0   :  { %7598 = vmatprep.subr.bf16.mxu1 %v9814_v31  ;;  %7639 = vmatprep.subr.bf16.mxu0 %v9816_v63  ;;  %v9798_v31 = vld [vmem:[%s14688_s15 + $0x7f8] sm:$0xff]  ;;  %v9909_v63 = vcombine.low %v9773_v28, %v9781_v39  ;;  %v9926_v62 = vcombine.high %v9789_v52, %v9797_v27  ;;  %v9925_v47 = vcombine.low %v9789_v52, %v9797_v27 }
0x4aa1   :  { %v9928_v9 = vcombine.high %v9790_v30, %v9798_v31 }
0x4aa2   :  { %7549 = vmatmul.mubr.bf16.vlgmr.msra.gmra.mrb[96].mxu1 %v13906_v0  ;;  %7590 = vmatmul.mubr.bf16.vlgmr.msra.gmra.mrb[108].mxu0 %v13906_v0 }
0x4aa3   :  { %7599 = vmatpush1.bf16.msra.mxu1 %v9813_v57  ;;  %7640 = vmatpush1.bf16.msra.mxu0 %v9815_v36  ;;  %v9927_v57 = vcombine.low %v9790_v30, %v9798_v31  ;;  %v11053_v36 = vld [vmem:[%s14690_s17 + $0x440] sm:$0xff]  }
0x4aa4   :  { %7600 = vmatprep.subr.bf16.mxu1 %v9830_v53  ;;  %7641 = vmatprep.subr.bf16.mxu0 %v9832_v48  ;;  %v11054_v53 = vld [vmem:[%s14690_s17 + $0x4c0] sm:$0xff]  }
0x4aa5   :  { %7630 = vmatprep.mubr.bf16.mxu1 %v11613_v2  ;;  %7671 = vmatprep.mubr.bf16.mxu0 %v11613_v2  ;;  %v9742_v2 = vld [vmem:[%s14688_s15 + $0x638] sm:$0xff]  ;;  %v11055_v48 = vld [vmem:[%s14690_s17 + $0x400] sm:$0xff]  }
0x4aa6   :  { %v9880_v24 = vcombine.high %v9742_v2, %v9750_v20  ;;  %v9879_v60 = vcombine.low %v9742_v2, %v9750_v20  ;;  %v11075_v2 = vld [vmem:[%s14690_s17 + $0x428] sm:$0xff]  }
0x4aa7   :  { %7601 = vmatpush1.bf16.msra.mxu1 %v9829_v42  ;;  %7642 = vmatpush1.bf16.msra.mxu0 %v9831_v46  ;;  %v11060_v42 = vld [vmem:[%s14690_s17 + $0x488] sm:$0xff]   ;;  %v11061_v46 = vld [vmem:[%s14690_s17 + $0x450] sm:$0xff]  }
0x4aa8   :  { %7602 = vmatprep.subr.bf16.mxu1 %v9846_v3  ;;  %7643 = vmatprep.subr.bf16.mxu0 %v9848_v8  ;;  %v11063_v3 = vld [vmem:[%s14690_s17 + $0x410] sm:$0xff]   ;;  %v11076_v20 = vld [vmem:[%s14690_s17 + $0x4a8] sm:$0xff]  }
0x4aa9   :  { %v11064_v8 = vld [vmem:[%s14690_s17 + $0x490] sm:$0xff]  }
0x4aab   :  { %7603 = vmatpush1.bf16.msra.mxu1 %v9845_v11  ;;  %7644 = vmatpush1.bf16.msra.mxu0 %v9847_v18  ;;  %v11069_v11 = vld [vmem:[%s14690_s17 + $0x460] sm:$0xff]  }
0x4aac   :  { %7604 = vmatprep.subr.bf16.mxu1 %v9862_v7  ;;  %7645 = vmatprep.subr.bf16.mxu0 %v9864_v49  ;;  %v11070_v18 = vld [vmem:[%s14690_s17 + $0x4e0] sm:$0xff]  }
0x4aad   :  { %v11071_v7 = vld [vmem:[%s14690_s17 + $0x420] sm:$0xff]  }
0x4aae   :  { %v11072_v49 = vld [vmem:[%s14690_s17 + $0x4a0] sm:$0xff]  }
0x4aaf   :  { %7605 = vmatpush1.bf16.msra.mxu1 %v9861_v55  ;;  %7646 = vmatpush1.bf16.msra.mxu0 %v9863_v41  ;;  %v11077_v55 = vld [vmem:[%s14690_s17 + $0x470] sm:$0xff]  }
0x4ab0   :  { %7606 = vmatprep.subr.bf16.mxu1 %v9878_v37  ;;  %7647 = vmatprep.subr.bf16.mxu0 %v9880_v24  ;;  %v11078_v41 = vld [vmem:[%s14690_s17 + $0x4f0] sm:$0xff]  }
0x4ab1   :  { %v11079_v37 = vld [vmem:[%s14690_s17 + $0x430] sm:$0xff]  }
0x4ab2   :  { %v11080_v24 = vld [vmem:[%s14690_s17 + $0x4b0] sm:$0xff]  }
0x4ab3   :  { %7607 = vmatpush1.bf16.msra.mxu1 %v9877_v17  ;;  %7648 = vmatpush1.bf16.msra.mxu0 %v9879_v60  ;;  %v11085_v17 = vld [vmem:[%s14690_s17 + $0x540] sm:$0xff]  }
0x4ab4   :  { %7608 = vmatprep.subr.bf16.mxu1 %v9894_v10  ;;  %7649 = vmatprep.subr.bf16.mxu0 %v9896_v19  ;;  %v11086_v60 = vld [vmem:[%s14690_s17 + $0x5c0] sm:$0xff]  }
0x4ab5   :  { %v14291_v10 = vld [vmem:[%s14689_s16 + $0x1] ss:$2 sm:$0xff] }
0x4ab6   :  { %v6632_v19 = vrot.slane %v14291_v10, %v11791_v15  ;;  %v6640_v28 = vrot.slane %v14291_v10, %v13339_v54  ;;  %v6636_v39 = vrot.slane %v14291_v10, %v11794_v16  ;;  %v6644_v32 = vrot.slane %v14291_v10, %v13347_v59 }
0x4ab7   :  { %7609 = vmatpush1.bf16.msra.mxu1 %v9893_v23  ;;  %7650 = vmatpush1.bf16.msra.mxu0 %v9895_v26 }
0x4ab8   :  { %7610 = vmatprep.subr.bf16.mxu1 %v9910_v29  ;;  %7651 = vmatprep.subr.bf16.mxu0 %v9912_v12 }
0x4abb   :  { %7611 = vmatpush1.bf16.msra.mxu1 %v9909_v63  ;;  %7652 = vmatpush1.bf16.msra.mxu0 %v9911_v5 }
0x4abc   :  { %7612 = vmatprep.subr.bf16.mxu1 %v9926_v62  ;;  %7653 = vmatprep.subr.bf16.mxu0 %v9928_v9 }
0x4abf   :  { %7613 = vmatpush1.bf16.msra.mxu1 %v9925_v47  ;;  %7654 = vmatpush1.bf16.msra.mxu0 %v9927_v57 }
0x4ac0   :  { %10537 = vmatprep.subr.bf16.mxu1 %v11053_v36  ;;  %10559 = vmatprep.subr.bf16.mxu0 %v11054_v53 }
0x4ac2   :  { %7631 = vmatmul.mubr.bf16.vlgmr.msra.gmra.mrb[100].mxu1 %v13906_v0  ;;  %7672 = vmatmul.mubr.bf16.vlgmr.msra.gmra.mrb[112].mxu0 %v13906_v0  ;;  %v11062_v0 = vld [vmem:[%s14690_s17 + $0x4d0] sm:$0xff]  }
0x4ac3   :  { %10538 = vmatpush3.bf16.msra.mxu1 %v11055_v48  ;;  %10560 = vmatpush3.bf16.msra.mxu0 %v11056_v38  ;;  %v11087_v38 = vld [vmem:[%s14690_s17 + $0x500] sm:$0xff]  }
0x4ac4   :  { %10539 = vmatprep.subr.bf16.mxu1 %v11057_v34  ;;  %10561 = vmatprep.subr.bf16.mxu0 %v11058_v35  ;;  %v11088_v34 = vld [vmem:[%s14690_s17 + $0x580] sm:$0xff]  }
0x4ac7   :  { %10540 = vmatpush3.bf16.msra.mxu1 %v11059_v40  ;;  %10562 = vmatpush3.bf16.msra.mxu0 %v11060_v42  ;;  %v11089_v42 = vld [vmem:[%s14690_s17 + $0x548] sm:$0xff]  }
0x4ac8   :  { %10541 = vmatprep.subr.bf16.mxu1 %v11061_v46  ;;  %10563 = vmatprep.subr.bf16.mxu0 %v11062_v0  ;;  %v11090_v46 = vld [vmem:[%s14690_s17 + $0x5c8] sm:$0xff]  }
0x4ac9   :  { %v11091_v0 = vld [vmem:[%s14690_s17 + $0x508] sm:$0xff]  }
0x4acb   :  { %10542 = vmatpush3.bf16.msra.mxu1 %v11063_v3  ;;  %10564 = vmatpush3.bf16.msra.mxu0 %v11064_v8  ;;  %v11092_v3 = vld [vmem:[%s14690_s17 + $0x588] sm:$0xff]   ;;  %v11093_v8 = vld [vmem:[%s14690_s17 + $0x550] sm:$0xff]  }
0x4acc   :  { %10543 = vmatprep.subr.bf16.mxu1 %v11065_v51  ;;  %10565 = vmatprep.subr.bf16.mxu0 %v11066_v58  ;;  %v11094_v51 = vld [vmem:[%s14690_s17 + $0x5d0] sm:$0xff]  }
0x4acd   :  { %v11095_v58 = vld [vmem:[%s14690_s17 + $0x510] sm:$0xff]  }
0x4acf   :  { %10544 = vmatpush3.bf16.msra.mxu1 %v11067_v14  ;;  %10566 = vmatpush3.bf16.msra.mxu0 %v11068_v50  ;;  %v11096_v14 = vld [vmem:[%s14690_s17 + $0x590] sm:$0xff]   ;;  %v11097_v50 = vld [vmem:[%s14690_s17 + $0x558] sm:$0xff]  }
0x4ad0   :  { %10545 = vmatprep.subr.bf16.mxu1 %v11069_v11  ;;  %10567 = vmatprep.subr.bf16.mxu0 %v11070_v18  ;;  %v11098_v11 = vld [vmem:[%s14690_s17 + $0x5d8] sm:$0xff]  }
0x4ad1   :  { %v11099_v18 = vld [vmem:[%s14690_s17 + $0x518] sm:$0xff]  }
0x4ad3   :  { %10546 = vmatpush3.bf16.msra.mxu1 %v11071_v7  ;;  %10568 = vmatpush3.bf16.msra.mxu0 %v11072_v49  ;;  %v11100_v7 = vld [vmem:[%s14690_s17 + $0x598] sm:$0xff]   ;;  %v11101_v49 = vld [vmem:[%s14690_s17 + $0x560] sm:$0xff]  }
0x4ad4   :  { %10547 = vmatprep.subr.bf16.mxu1 %v11073_v33  ;;  %10569 = vmatprep.subr.bf16.mxu0 %v11074_v1  ;;  %v11102_v33 = vld [vmem:[%s14690_s17 + $0x5e0] sm:$0xff]  }
0x4ad5   :  { %v11103_v1 = vld [vmem:[%s14690_s17 + $0x520] sm:$0xff]  }
0x4ad7   :  { %10548 = vmatpush3.bf16.msra.mxu1 %v11075_v2  ;;  %10570 = vmatpush3.bf16.msra.mxu0 %v11076_v20  ;;  %v11104_v2 = vld [vmem:[%s14690_s17 + $0x5a0] sm:$0xff]   ;;  %v11105_v20 = vld [vmem:[%s14690_s17 + $0x568] sm:$0xff]  }
0x4ad8   :  { %10549 = vmatprep.subr.bf16.mxu1 %v11077_v55  ;;  %10571 = vmatprep.subr.bf16.mxu0 %v11078_v41  ;;  %v11106_v55 = vld [vmem:[%s14690_s17 + $0x5e8] sm:$0xff]  }
0x4ad9   :  { %v11107_v41 = vld [vmem:[%s14690_s17 + $0x528] sm:$0xff]  }
0x4adb   :  { %10550 = vmatpush3.bf16.msra.mxu1 %v11079_v37  ;;  %10572 = vmatpush3.bf16.msra.mxu0 %v11080_v24  ;;  %v11108_v37 = vld [vmem:[%s14690_s17 + $0x5a8] sm:$0xff]   ;;  %v11109_v24 = vld [vmem:[%s14690_s17 + $0x570] sm:$0xff]  }
0x4adc   :  { %10551 = vmatprep.subr.bf16.mxu1 %v11081_v21  ;;  %10573 = vmatprep.subr.bf16.mxu0 %v11082_v61  ;;  %v11110_v21 = vld [vmem:[%s14690_s17 + $0x5f0] sm:$0xff]   ;;  %v6648_v61 = vrot.slane %v14291_v10, %v13418_v43 }
0x4adf   :  { %10552 = vmatpush3.bf16.msra.mxu1 %v11083_v56  ;;  %10574 = vmatpush3.bf16.msra.mxu0 %v11084_v13  ;;  %v6656_v56 = vrot.slane %v14291_v10, %v13421_v45  ;;  %v6652_v13 = vrot.slane %v14291_v10, %v13430_v6 }
0x4ae0   :  { %10581 = vmatprep.subr.bf16.mxu1 %v11085_v17  ;;  %10603 = vmatprep.subr.bf16.mxu0 %v11086_v60  ;;  %v6660_v17 = vrot.slane %v14291_v10, %v13433_v44  ;;  %v11111_v60 = vld [vmem:[%s14690_s17 + $0x530] sm:$0xff]  }
0x4b35   :  { %v7386_v25 = vpop.f32.mrb[88].mxu1  ;;  %v7427_v23 = vpop.f32.mrb[100].mxu0 }
0x4b36   :  { %v7387_v26 = vadd.f32 %v7386_v25, %v6632_v19  ;;  %v7428_v29 = vadd.f32 %v7427_v23, %v6640_v28  ;;  %v7388_v12 = vpop.f32.mrb[89].mxu1  ;;  %v7429_v52 = vpop.f32.mrb[101].mxu0  ;;  %v11112_v19 = vld [vmem:[%s14690_s17 + $0x5b0] sm:$0xff]   ;;  %v11113_v28 = vld [vmem:[%s14690_s17 + $0x578] sm:$0xff]  }
0x4b37   :  { %v7389_v27 = vadd.f32 %v7388_v12, %v6636_v39  ;;  %v7430_v30 = vadd.f32 %v7429_v52, %v6644_v32  ;;  %v7390_v31 = vpop.f32.mrb[90].mxu1  ;;  %v7431_v63 = vpop.f32.mrb[102].mxu0  ;;  %v11114_v39 = vld [vmem:[%s14690_s17 + $0x5f8] sm:$0xff]  }
0x4b38   :  { %v7680_v5 = vmax.f32 %v7387_v26, 0.0  ;;  %v7682_v62 = vmax.f32 %v7428_v29, 0.0  ;;  %v7391_v9 = vpop.f32.mrb[91].mxu1  ;;  %v7432_v47 = vpop.f32.mrb[103].mxu0  ;;  %v11115_v31 = vld [vmem:[%s14690_s17 + $0x538] sm:$0xff]  }
0x4b39   :  { %v7681_v57 = vmax.f32 %v7389_v27, 0.0  ;;  %v7683_v36 = vmax.f32 %v7430_v30, 0.0  ;;  %v11116_v63 = vld [vmem:[%s14690_s17 + $0x5b8] sm:$0xff]  }
0x4b3a   :  { %v7696_v35 = vpack.c.bf16 %v7680_v5, %v7680_v5  ;;  %v7698_v40 = vpack.c.bf16 %v7682_v62, %v7682_v62 }
0x4b3b   :  { %v7697_v53 = vpack.c.bf16 %v7681_v57, %v7681_v57  ;;  %v7699_v48 = vpack.c.bf16 %v7683_v36, %v7683_v36  ;;  %v11117_v57 = vld [vmem:[%s14690_s17 + $0x640] sm:$0xff]  }
0x4b3c   :  { %v11118_v36 = vld [vmem:[%s14690_s17 + $0x6c0] sm:$0xff]  }
0x4b3d   :  { %8774 = vmatprep.mubr.bf16.mxu1 %v7697_v53  ;;  %8814 = vmatprep.mubr.bf16.mxu0 %v7699_v48 }
0x4b3e   :  { %8775 = vmatmul.mubr.bf16.vlgmr.msra.gmra.mrb[104].mxu1 %v7696_v35  ;;  %8815 = vmatmul.mubr.bf16.vlgmr.msra.gmra.mrb[116].mxu0 %v7698_v40  ;;  %v11119_v35 = vld [vmem:[%s14690_s17 + $0x600] sm:$0xff]  }
0x4b3f   :  { %10582 = vmatpush3.bf16.msra.mxu1 %v11087_v38  ;;  %10604 = vmatpush3.bf16.msra.mxu0 %v11088_v34  ;;  %v11120_v40 = vld [vmem:[%s14690_s17 + $0x680] sm:$0xff]  }
0x4b40   :  { %10583 = vmatprep.subr.bf16.mxu1 %v11089_v42  ;;  %10605 = vmatprep.subr.bf16.mxu0 %v11090_v46 }
0x4b43   :  { %10584 = vmatpush3.bf16.msra.mxu1 %v11091_v0  ;;  %10606 = vmatpush3.bf16.msra.mxu0 %v11092_v3  ;;  %v11121_v0 = vld [vmem:[%s14690_s17 + $0x648] sm:$0xff]  }
0x4b44   :  { %10585 = vmatprep.subr.bf16.mxu1 %v11093_v8  ;;  %10607 = vmatprep.subr.bf16.mxu0 %v11094_v51  ;;  %v11122_v3 = vld [vmem:[%s14690_s17 + $0x6c8] sm:$0xff]  }
0x4b45   :  { %v11123_v8 = vld [vmem:[%s14690_s17 + $0x608] sm:$0xff]  }
0x4b46   :  { %v11124_v51 = vld [vmem:[%s14690_s17 + $0x688] sm:$0xff]  }
0x4b47   :  { %10586 = vmatpush3.bf16.msra.mxu1 %v11095_v58  ;;  %10608 = vmatpush3.bf16.msra.mxu0 %v11096_v14  ;;  %v11125_v58 = vld [vmem:[%s14690_s17 + $0x650] sm:$0xff]  }
0x4b48   :  { %10587 = vmatprep.subr.bf16.mxu1 %v11097_v50  ;;  %10609 = vmatprep.subr.bf16.mxu0 %v11098_v11  ;;  %v11126_v14 = vld [vmem:[%s14690_s17 + $0x6d0] sm:$0xff]  }
0x4b49   :  { %v11127_v50 = vld [vmem:[%s14690_s17 + $0x610] sm:$0xff]  }
0x4b4a   :  { %v11128_v11 = vld [vmem:[%s14690_s17 + $0x690] sm:$0xff]  }
0x4b4b   :  { %10588 = vmatpush3.bf16.msra.mxu1 %v11099_v18  ;;  %10610 = vmatpush3.bf16.msra.mxu0 %v11100_v7  ;;  %v11129_v18 = vld [vmem:[%s14690_s17 + $0x658] sm:$0xff]  }
0x4b4c   :  { %10589 = vmatprep.subr.bf16.mxu1 %v11101_v49  ;;  %10611 = vmatprep.subr.bf16.mxu0 %v11102_v33  ;;  %v11130_v7 = vld [vmem:[%s14690_s17 + $0x6d8] sm:$0xff]  }
0x4b4d   :  { %v11131_v49 = vld [vmem:[%s14690_s17 + $0x618] sm:$0xff]  }
0x4b4e   :  { %v11132_v33 = vld [vmem:[%s14690_s17 + $0x698] sm:$0xff]  }
0x4b4f   :  { %10590 = vmatpush3.bf16.msra.mxu1 %v11103_v1  ;;  %10612 = vmatpush3.bf16.msra.mxu0 %v11104_v2  ;;  %v11133_v1 = vld [vmem:[%s14690_s17 + $0x660] sm:$0xff]  }
0x4b50   :  { %10591 = vmatprep.subr.bf16.mxu1 %v11105_v20  ;;  %10613 = vmatprep.subr.bf16.mxu0 %v11106_v55  ;;  %v11134_v2 = vld [vmem:[%s14690_s17 + $0x6e0] sm:$0xff]  }
0x4b51   :  { %v11135_v20 = vld [vmem:[%s14690_s17 + $0x620] sm:$0xff]  }
0x4b52   :  { %v11136_v55 = vld [vmem:[%s14690_s17 + $0x6a0] sm:$0xff]  }
0x4b53   :  { %10592 = vmatpush3.bf16.msra.mxu1 %v11107_v41  ;;  %10614 = vmatpush3.bf16.msra.mxu0 %v11108_v37  ;;  %v11137_v41 = vld [vmem:[%s14690_s17 + $0x668] sm:$0xff]  }
0x4b54   :  { %10593 = vmatprep.subr.bf16.mxu1 %v11109_v24  ;;  %10615 = vmatprep.subr.bf16.mxu0 %v11110_v21  ;;  %v11138_v37 = vld [vmem:[%s14690_s17 + $0x6e8] sm:$0xff]  }
0x4b55   :  { %v7468_v32 = vpop.f32.mrb[92].mxu1  ;;  %v7509_v10 = vpop.f32.mrb[104].mxu0  ;;  %v11139_v24 = vld [vmem:[%s14690_s17 + $0x628] sm:$0xff]  }
0x4b56   :  { %v7469_v25 = vadd.f32 %v7468_v32, %v6648_v61  ;;  %v7510_v23 = vadd.f32 %v7509_v10, %v6656_v56  ;;  %v7470_v26 = vpop.f32.mrb[93].mxu1  ;;  %v7511_v29 = vpop.f32.mrb[105].mxu0  ;;  %v11140_v21 = vld [vmem:[%s14690_s17 + $0x6a8] sm:$0xff]   ;;  %v14474_v61 = vld [vmem:[%s14689_s16 + $0x11] ss:$2 sm:$0xff] }
0x4b57   :  { %v7471_v12 = vadd.f32 %v7470_v26, %v6652_v13  ;;  %v7512_v52 = vadd.f32 %v7511_v29, %v6660_v17  ;;  %v7472_v27 = vpop.f32.mrb[94].mxu1  ;;  %v7513_v30 = vpop.f32.mrb[106].mxu0  ;;  %10594 = vmatpush3.bf16.msra.mxu1 %v11111_v60  ;;  %10616 = vmatpush3.bf16.msra.mxu0 %v11112_v19  ;;  %v11141_v56 = vld [vmem:[%s14690_s17 + $0x670] sm:$0xff]   ;;  %v6664_v17 = vrot.slane %v14474_v61, %v11791_v15  ;;  %v11145_v15 = vld [vmem:[%s14690_s17 + $0x678] sm:$0xff]  }
0x4b58   :  { %v7684_v5 = vmax.f32 %v7469_v25, 0.0  ;;  %v7686_v62 = vmax.f32 %v7510_v23, 0.0  ;;  %v7473_v9 = vpop.f32.mrb[95].mxu1  ;;  %v7514_v47 = vpop.f32.mrb[107].mxu0  ;;  %10595 = vmatprep.subr.bf16.mxu1 %v11113_v28  ;;  %10617 = vmatprep.subr.bf16.mxu0 %v11114_v39  ;;  %v11142_v13 = vld [vmem:[%s14690_s17 + $0x6f0] sm:$0xff]   ;;  %v6672_v60 = vrot.slane %v14474_v61, %v13339_v54  ;;  %v6668_v19 = vrot.slane %v14474_v61, %v11794_v16  ;;  %v11146_v16 = vld [vmem:[%s14690_s17 + $0x6f8] sm:$0xff]  }
0x4b59   :  { %v7685_v53 = vmax.f32 %v7471_v12, 0.0  ;;  %v7687_v48 = vmax.f32 %v7512_v52, 0.0  ;;  %v6676_v28 = vrot.slane %v14474_v61, %v13347_v59  ;;  %v11143_v39 = vld [vmem:[%s14690_s17 + $0x630] sm:$0xff]   ;;  %v11147_v30 = vld [vmem:[%s14690_s17 + $0x638] sm:$0xff]   ;;  %v11149_v47 = vld [vmem:[%s14690_s17 + $0x740] sm:$0xff]  }
0x4b5a   :  { %v7700_v42 = vpack.c.bf16 %v7684_v5, %v7684_v5  ;;  %v7702_v46 = vpack.c.bf16 %v7686_v62, %v7686_v62  ;;  %v11144_v32 = vld [vmem:[%s14690_s17 + $0x6b0] sm:$0xff]  }
0x4b5b   :  { %v7701_v38 = vpack.c.bf16 %v7685_v53, %v7685_v53  ;;  %v7703_v34 = vpack.c.bf16 %v7687_v48, %v7687_v48  ;;  %10596 = vmatpush3.bf16.msra.mxu1 %v11115_v31  ;;  %10618 = vmatpush3.bf16.msra.mxu0 %v11116_v63  ;;  %v11148_v31 = vld [vmem:[%s14690_s17 + $0x6b8] sm:$0xff]  }
0x4b5c   :  { %10625 = vmatprep.subr.bf16.mxu1 %v11117_v57  ;;  %10647 = vmatprep.subr.bf16.mxu0 %v11118_v36  ;;  %v11150_v57 = vld [vmem:[%s14690_s17 + $0x7c0] sm:$0xff]  }
0x4b5d   :  { %8854 = vmatprep.mubr.bf16.mxu1 %v7701_v38  ;;  %8894 = vmatprep.mubr.bf16.mxu0 %v7703_v34  ;;  %v11151_v34 = vld [vmem:[%s14690_s17 + $0x700] sm:$0xff]  }
0x4b5e   :  { %8855 = vmatmul.mubr.bf16.vlgmr.msra.gmra.mrb[108].mxu1 %v7700_v42  ;;  %8895 = vmatmul.mubr.bf16.vlgmr.msra.gmra.mrb[120].mxu0 %v7702_v46  ;;  %v11153_v46 = vld [vmem:[%s14690_s17 + $0x748] sm:$0xff]  }
0x4b5f   :  { %10626 = vmatpush3.bf16.msra.mxu1 %v11119_v35  ;;  %10648 = vmatpush3.bf16.msra.mxu0 %v11120_v40  ;;  %v11152_v35 = vld [vmem:[%s14690_s17 + $0x780] sm:$0xff]  }
0x4b60   :  { %10627 = vmatprep.subr.bf16.mxu1 %v11121_v0  ;;  %10649 = vmatprep.subr.bf16.mxu0 %v11122_v3  ;;  %v11154_v0 = vld [vmem:[%s14690_s17 + $0x7c8] sm:$0xff]  }
0x4b61   :  { %v11155_v3 = vld [vmem:[%s14690_s17 + $0x708] sm:$0xff]  }
0x4b63   :  { %10628 = vmatpush3.bf16.msra.mxu1 %v11123_v8  ;;  %10650 = vmatpush3.bf16.msra.mxu0 %v11124_v51  ;;  %v11156_v8 = vld [vmem:[%s14690_s17 + $0x788] sm:$0xff]   ;;  %v11157_v51 = vld [vmem:[%s14690_s17 + $0x750] sm:$0xff]  }
0x4b64   :  { %10629 = vmatprep.subr.bf16.mxu1 %v11125_v58  ;;  %10651 = vmatprep.subr.bf16.mxu0 %v11126_v14  ;;  %v11158_v58 = vld [vmem:[%s14690_s17 + $0x7d0] sm:$0xff]  }
0x4b65   :  { %v11159_v14 = vld [vmem:[%s14690_s17 + $0x710] sm:$0xff]  }
0x4b67   :  { %10630 = vmatpush3.bf16.msra.mxu1 %v11127_v50  ;;  %10652 = vmatpush3.bf16.msra.mxu0 %v11128_v11  ;;  %v11160_v50 = vld [vmem:[%s14690_s17 + $0x790] sm:$0xff]   ;;  %v11161_v11 = vld [vmem:[%s14690_s17 + $0x758] sm:$0xff]  }
0x4b68   :  { %10631 = vmatprep.subr.bf16.mxu1 %v11129_v18  ;;  %10653 = vmatprep.subr.bf16.mxu0 %v11130_v7  ;;  %v11162_v18 = vld [vmem:[%s14690_s17 + $0x7d8] sm:$0xff]  }
0x4b69   :  { %v11163_v7 = vld [vmem:[%s14690_s17 + $0x718] sm:$0xff]  }
0x4b6b   :  { %10632 = vmatpush3.bf16.msra.mxu1 %v11131_v49  ;;  %10654 = vmatpush3.bf16.msra.mxu0 %v11132_v33  ;;  %v11164_v49 = vld [vmem:[%s14690_s17 + $0x798] sm:$0xff]   ;;  %v11165_v33 = vld [vmem:[%s14690_s17 + $0x760] sm:$0xff]  }
0x4b6c   :  { %10633 = vmatprep.subr.bf16.mxu1 %v11133_v1  ;;  %10655 = vmatprep.subr.bf16.mxu0 %v11134_v2  ;;  %v11166_v1 = vld [vmem:[%s14690_s17 + $0x7e0] sm:$0xff]  }
0x4b6d   :  { %v11167_v2 = vld [vmem:[%s14690_s17 + $0x720] sm:$0xff]  }
0x4b6f   :  { %10634 = vmatpush3.bf16.msra.mxu1 %v11135_v20  ;;  %10656 = vmatpush3.bf16.msra.mxu0 %v11136_v55  ;;  %v11168_v20 = vld [vmem:[%s14690_s17 + $0x7a0] sm:$0xff]   ;;  %v11169_v55 = vld [vmem:[%s14690_s17 + $0x768] sm:$0xff]  }
0x4b70   :  { %10635 = vmatprep.subr.bf16.mxu1 %v11137_v41  ;;  %10657 = vmatprep.subr.bf16.mxu0 %v11138_v37  ;;  %v11170_v41 = vld [vmem:[%s14690_s17 + $0x7e8] sm:$0xff]  }
0x4b71   :  { %v11171_v37 = vld [vmem:[%s14690_s17 + $0x728] sm:$0xff]  }
0x4b73   :  { %10636 = vmatpush3.bf16.msra.mxu1 %v11139_v24  ;;  %10658 = vmatpush3.bf16.msra.mxu0 %v11140_v21  ;;  %v11172_v24 = vld [vmem:[%s14690_s17 + $0x7a8] sm:$0xff]   ;;  %v11173_v21 = vld [vmem:[%s14690_s17 + $0x770] sm:$0xff]  }
0x4b74   :  { %10637 = vmatprep.subr.bf16.mxu1 %v11141_v56  ;;  %10659 = vmatprep.subr.bf16.mxu0 %v11142_v13  ;;  %v11174_v56 = vld [vmem:[%s14690_s17 + $0x7f0] sm:$0xff]   ;;  %v6680_v13 = vrot.slane %v14474_v61, %v13418_v43  ;;  %v11177_v43 = vld [vmem:[%s14690_s17 + $0x778] sm:$0xff]  }
0x4b75   :  { %v7550_v54 = vpop.f32.mrb[96].mxu1  ;;  %v7591_v59 = vpop.f32.mrb[108].mxu0 }
0x4b76   :  { %v7551_v10 = vadd.f32 %v7550_v54, %v6664_v17  ;;  %v7592_v25 = vadd.f32 %v7591_v59, %v6672_v60  ;;  %v7552_v23 = vpop.f32.mrb[97].mxu1  ;;  %v7593_v26 = vpop.f32.mrb[109].mxu0  ;;  %v6688_v17 = vrot.slane %v14474_v61, %v13421_v45  ;;  %v6684_v60 = vrot.slane %v14474_v61, %v13430_v6  ;;  %v11178_v45 = vld [vmem:[%s14690_s17 + $0x7f8] sm:$0xff]  }
0x4b77   :  { %v7553_v29 = vadd.f32 %v7552_v23, %v6668_v19  ;;  %v7594_v12 = vadd.f32 %v7593_v26, %v6676_v28  ;;  %v7554_v52 = vpop.f32.mrb[98].mxu1  ;;  %v7595_v27 = vpop.f32.mrb[110].mxu0  ;;  %10638 = vmatpush3.bf16.msra.mxu1 %v11143_v39  ;;  %10660 = vmatpush3.bf16.msra.mxu0 %v11144_v32  ;;  %v6692_v19 = vrot.slane %v14474_v61, %v13433_v44  ;;  %v11175_v28 = vld [vmem:[%s14690_s17 + $0x730] sm:$0xff]   ;;  %v11179_v23 = vld [vmem:[%s14690_s17 + $0x738] sm:$0xff]  }
0x4b78   :  { %v7688_v63 = vmax.f32 %v7551_v10, 0.0  ;;  %v7690_v5 = vmax.f32 %v7592_v25, 0.0  ;;  %v7555_v62 = vpop.f32.mrb[99].mxu1  ;;  %v7596_v9 = vpop.f32.mrb[111].mxu0  ;;  %10639 = vmatprep.subr.bf16.mxu1 %v11145_v15  ;;  %10661 = vmatprep.subr.bf16.mxu0 %v11146_v16  ;;  %v11176_v39 = vld [vmem:[%s14690_s17 + $0x7b0] sm:$0xff]   ;;  %v11180_v26 = vld [vmem:[%s14690_s17 + $0x7b8] sm:$0xff]  }
0x4b79   :  { %v7689_v36 = vmax.f32 %v7553_v29, 0.0  ;;  %v7691_v53 = vmax.f32 %v7594_v12, 0.0 }
0x4b7a   :  { %v7704_v40 = vpack.c.bf16 %v7688_v63, %v7688_v63  ;;  %v7706_v42 = vpack.c.bf16 %v7690_v5, %v7690_v5 }
0x4b7b   :  { %v7705_v48 = vpack.c.bf16 %v7689_v36, %v7689_v36  ;;  %v7707_v38 = vpack.c.bf16 %v7691_v53, %v7691_v53  ;;  %10640 = vmatpush3.bf16.msra.mxu1 %v11147_v30  ;;  %10662 = vmatpush3.bf16.msra.mxu0 %v11148_v31  ;;  %v10185_v53 = vld [vmem:[%s14691_s18 + $0x1] ss:$0 sm:$0xff] }
0x4b7c   :  { %10669 = vmatprep.subr.bf16.mxu1 %v11149_v47  ;;  %10691 = vmatprep.subr.bf16.mxu0 %v11150_v57  ;;  %v11181_v47 = vld [vmem:[%s14696_s23] sm:$0xff]  }
0x4b7d   :  { %8934 = vmatprep.mubr.bf16.mxu1 %v7705_v48  ;;  %8974 = vmatprep.mubr.bf16.mxu0 %v7707_v38 }
0x4b7e   :  { %8935 = vmatmul.mubr.bf16.vlgmr.msra.gmra.mrb[112].mxu1 %v7704_v40  ;;  %8975 = vmatmul.mubr.bf16.vlgmr.msra.gmra.mrb[124].mxu0 %v7706_v42 }
0x4b7f   :  { %10670 = vmatpush3.bf16.msra.mxu1 %v11151_v34  ;;  %10692 = vmatpush3.bf16.msra.mxu0 %v11152_v35 }
0x4b80   :  { %10671 = vmatprep.subr.bf16.mxu1 %v11153_v46  ;;  %10693 = vmatprep.subr.bf16.mxu0 %v11154_v0 }
0x4b83   :  { %10672 = vmatpush3.bf16.msra.mxu1 %v11155_v3  ;;  %10694 = vmatpush3.bf16.msra.mxu0 %v11156_v8 }
0x4b84   :  { %10673 = vmatprep.subr.bf16.mxu1 %v11157_v51  ;;  %10695 = vmatprep.subr.bf16.mxu0 %v11158_v58 }
0x4b87   :  { %10674 = vmatpush3.bf16.msra.mxu1 %v11159_v14  ;;  %10696 = vmatpush3.bf16.msra.mxu0 %v11160_v50 }
0x4b88   :  { %10675 = vmatprep.subr.bf16.mxu1 %v11161_v11  ;;  %10697 = vmatprep.subr.bf16.mxu0 %v11162_v18 }
0x4b8b   :  { %10676 = vmatpush3.bf16.msra.mxu1 %v11163_v7  ;;  %10698 = vmatpush3.bf16.msra.mxu0 %v11164_v49 }
0x4b8c   :  { %10677 = vmatprep.subr.bf16.mxu1 %v11165_v33  ;;  %10699 = vmatprep.subr.bf16.mxu0 %v11166_v1 }
0x4b8f   :  { %10678 = vmatpush3.bf16.msra.mxu1 %v11167_v2  ;;  %10700 = vmatpush3.bf16.msra.mxu0 %v11168_v20 }
0x4b90   :  { %10679 = vmatprep.subr.bf16.mxu1 %v11169_v55  ;;  %10701 = vmatprep.subr.bf16.mxu0 %v11170_v41 }
0x4b93   :  { %10680 = vmatpush3.bf16.msra.mxu1 %v11171_v37  ;;  %10702 = vmatpush3.bf16.msra.mxu0 %v11172_v24 }
0x4b94   :  { %10681 = vmatprep.subr.bf16.mxu1 %v11173_v21  ;;  %10703 = vmatprep.subr.bf16.mxu0 %v11174_v56 }
0x4b95   :  { %v7632_v6 = vpop.f32.mrb[100].mxu1  ;;  %v7673_v44 = vpop.f32.mrb[112].mxu0 }
0x4b96   :  { %v7633_v61 = vadd.f32 %v7632_v6, %v6680_v13  ;;  %v7674_v32 = vadd.f32 %v7673_v44, %v6688_v17  ;;  %v7634_v15 = vpop.f32.mrb[101].mxu1  ;;  %v7675_v16 = vpop.f32.mrb[113].mxu0 }
0x4b97   :  { %v7635_v54 = vadd.f32 %v7634_v15, %v6684_v60  ;;  %v7676_v59 = vadd.f32 %v7675_v16, %v6692_v19  ;;  %v7636_v10 = vpop.f32.mrb[102].mxu1  ;;  %v7677_v25 = vpop.f32.mrb[114].mxu0  ;;  %10682 = vmatpush3.bf16.msra.mxu1 %v11175_v28  ;;  %10704 = vmatpush3.bf16.msra.mxu0 %v11176_v39 }
0x4b98   :  { %v7692_v29 = vmax.f32 %v7633_v61, 0.0  ;;  %v7694_v12 = vmax.f32 %v7674_v32, 0.0  ;;  %v7637_v52 = vpop.f32.mrb[103].mxu1  ;;  %v7678_v27 = vpop.f32.mrb[115].mxu0  ;;  %10683 = vmatprep.subr.bf16.mxu1 %v11177_v43  ;;  %10705 = vmatprep.subr.bf16.mxu0 %v11178_v45 }
0x4b99   :  { %v7693_v30 = vmax.f32 %v7635_v54, 0.0  ;;  %v7695_v31 = vmax.f32 %v7676_v59, 0.0  ;;  %v11182_v27 = vld [vmem:[%s14696_s23 + $0x8] sm:$0xff]  }
0x4b9a   :  { %v7708_v62 = vpack.c.bf16 %v7692_v29, %v7692_v29  ;;  %v7710_v9 = vpack.c.bf16 %v7694_v12, %v7694_v12 }
0x4b9b   :  { %v7709_v63 = vpack.c.bf16 %v7693_v30, %v7693_v30  ;;  %v7711_v5 = vpack.c.bf16 %v7695_v31, %v7695_v31  ;;  %10684 = vmatpush3.bf16.msra.mxu1 %v11179_v23  ;;  %10706 = vmatpush3.bf16.msra.mxu0 %v11180_v26  ;;  %v11183_v30 = vld [vmem:[%s14696_s23 + $0x10] sm:$0xff]   ;;  %v11185_v31 = vld [vmem:[%s14696_s23 + $0x20] sm:$0xff]  }
0x4b9c   :  { %10802 = vmatprep.subr.bf16.mxu1 %v11617_v4 }
0x4b9d   :  { %9014 = vmatprep.mubr.bf16.mxu1 %v7709_v63  ;;  %9054 = vmatprep.mubr.bf16.mxu0 %v7711_v5  ;;  %v11186_v63 = vld [vmem:[%s14696_s23 + $0x28] sm:$0xff]   ;;  %v11187_v5 = vld [vmem:[%s14696_s23 + $0x30] sm:$0xff]  }
0x4b9e   :  { %9015 = vmatmul.mubr.bf16.vlgmr.msra.gmra.mrb[116].mxu1 %v7708_v62  ;;  %9055 = vmatmul.mubr.bf16.vlgmr.msra.gmra.mrb[128].mxu0 %v7710_v9  ;;  %v11188_v62 = vld [vmem:[%s14696_s23 + $0x38] sm:$0xff]  }
0x4b9f   :  { %10818 = vmatprep.mubr.msk.bf16.mxu1 %vm11618_vm11, %v11617_v4  ;;  %10803 = vmatpush3.bf16.msra.mxu1 %v11181_v47 }
0x4ba0   :  { %10804 = vmatprep.subr.bf16.mxu1 %v11617_v4 }
0x4ba3   :  { %10805 = vmatpush3.bf16.msra.mxu1 %v11182_v27 }
0x4ba4   :  { %10806 = vmatprep.subr.bf16.mxu1 %v11617_v4 }
0x4ba7   :  { %10807 = vmatpush3.bf16.msra.mxu1 %v11183_v30 }
0x4ba8   :  { %10808 = vmatprep.subr.bf16.mxu1 %v11617_v4 }
0x4c11   :  { %v10553_v57 = vpop.f32.mrb[104].mxu1  ;;  %v10575_v36 = vpop.f32.mrb[116].mxu0 }
0x4c12   :  { %v10554_v48 = vpop.f32.mrb[105].mxu1  ;;  %v10576_v38 = vpop.f32.mrb[117].mxu0 }
0x4c13   :  { %v10555_v34 = vadd.f32 %v10554_v48, %v10553_v57  ;;  %v10577_v35 = vadd.f32 %v10576_v38, %v10575_v36  ;;  %v10556_v40 = vpop.f32.mrb[106].mxu1  ;;  %v10578_v42 = vpop.f32.mrb[118].mxu0 }
0x4c14   :  { %v10557_v46 = vpop.f32.mrb[107].mxu1  ;;  %v10579_v0 = vpop.f32.mrb[119].mxu0  ;;  %v10314_v40 = vld [vmem:[%s14694_s21 + $0x1] ss:$0 sm:$0xff]  ;;  %s11589_s21 = scalar_lea.vmem %s9217_s27, 32 }
0x4c15   :  { %v8777_v3 = vadd.f32 %v10555_v34, %v10185_v53  ;;  %p11590_p0 = scmp.ne.s32.totalorder %s9217_s27, %s11589_s21  ;;  %p11595_p2 = scmp.lt.s32.totalorder %s11589_s21, %s11589_s21 }
0x4c17   :  { %v8817_v8 = vadd.f32 %v10577_v35, %v8777_v3  ;;  %p11596_p3 = por %p11595_p2, %p11594_p1 }
0x4c19   :  { %p11597_p4 = pnand %p11596_p3, %p11590_p0 }
0x4c31   :  { %v10597_v51 = vpop.f32.mrb[108].mxu1  ;;  %v10619_v58 = vpop.f32.mrb[120].mxu0 }
0x4c32   :  { %v10598_v14 = vpop.f32.mrb[109].mxu1  ;;  %v10620_v50 = vpop.f32.mrb[121].mxu0 }
0x4c33   :  { %v10599_v11 = vadd.f32 %v10598_v14, %v10597_v51  ;;  %v10621_v18 = vadd.f32 %v10620_v50, %v10619_v58  ;;  %v10600_v7 = vpop.f32.mrb[110].mxu1  ;;  %v10622_v49 = vpop.f32.mrb[122].mxu0  ;;  %v10316_v51 = vld [vmem:[%s14697_s24] ss:$0 sm:$0xff] }
0x4c34   :  { %v10601_v33 = vpop.f32.mrb[111].mxu1  ;;  %v10623_v1 = vpop.f32.mrb[123].mxu0 }
0x4c35   :  { %v8857_v2 = vadd.f32 %v10599_v11, %v8817_v8 }
0x4c37   :  { %v8897_v20 = vadd.f32 %v10621_v18, %v8857_v2 }
0x4c51   :  { %v10641_v55 = vpop.f32.mrb[112].mxu1  ;;  %v10663_v41 = vpop.f32.mrb[124].mxu0 }
0x4c52   :  { %v10642_v37 = vpop.f32.mrb[113].mxu1  ;;  %v10664_v24 = vpop.f32.mrb[125].mxu0 }
0x4c53   :  { %v10643_v21 = vadd.f32 %v10642_v37, %v10641_v55  ;;  %v10665_v56 = vadd.f32 %v10664_v24, %v10663_v41  ;;  %v10644_v13 = vpop.f32.mrb[114].mxu1  ;;  %v10666_v17 = vpop.f32.mrb[126].mxu0 }
0x4c54   :  { %v10645_v60 = vpop.f32.mrb[115].mxu1  ;;  %v10667_v19 = vpop.f32.mrb[127].mxu0 }
0x4c55   :  { %v8937_v28 = vadd.f32 %v10643_v21, %v8897_v20 }
0x4c57   :  { %v8977_v39 = vadd.f32 %v10665_v56, %v8937_v28 }
0x4c71   :  { %v10685_v43 = vpop.f32.mrb[116].mxu1  ;;  %v10707_v45 = vpop.f32.mrb[128].mxu0 }
0x4c72   :  { %v10686_v6 = vpop.f32.mrb[117].mxu1  ;;  %v10708_v44 = vpop.f32.mrb[129].mxu0 }
0x4c73   :  { %v10687_v61 = vadd.f32 %v10686_v6, %v10685_v43  ;;  %v10709_v32 = vadd.f32 %v10708_v44, %v10707_v45  ;;  %v10688_v15 = vpop.f32.mrb[118].mxu1  ;;  %v10710_v16 = vpop.f32.mrb[130].mxu0 }
0x4c74   :  { %v10689_v54 = vpop.f32.mrb[119].mxu1  ;;  %v10711_v59 = vpop.f32.mrb[131].mxu0 }
0x4c75   :  { %v9017_v10 = vadd.f32 %v10687_v61, %v8977_v39 }
0x4c77   :  { %v9057_v25 = vadd.f32 %v10709_v32, %v9017_v10 }
0x4c79   :  { %v9063_v23 = vrot.slane %v9057_v25, 2 }
0x4c7b   :  { %v9065_v26 = vadd.f32 %v9063_v23, %v13890_v22  ;;  %v11184_v22 = vld [vmem:[%s14696_s23 + $0x18] sm:$0xff]  }
0x4c7c   :  { %10809 = vmatpush3.bf16.msra.mxu1 %v11184_v22 }
0x4c7d   :  { %v9068_v29 = vsel %vm3614_vm12, %v9065_v26, 0.0  ;;  %v9072_v12 = vmul.f32 %v9065_v26, %v9065_v26  ;;  %10810 = vmatprep.subr.bf16.mxu1 %v11617_v4 }
0x4c7e   :  { %9069 = vadd.xlane.f32.xlu0 %v9068_v29 }
0x4c7f   :  { %v9073_v52 = vsel %vm3614_vm12, %v9072_v12, 0.0 }
0x4c80   :  { %9074 = vadd.xlane.f32.xlu1 %v9073_v52  ;;  %10811 = vmatpush3.bf16.msra.mxu1 %v11185_v31 }
0x4c81   :  { %10812 = vmatprep.subr.bf16.mxu1 %v11617_v4 }
0x4c84   :  { %10813 = vmatpush3.bf16.msra.mxu1 %v11186_v63 }
0x4c85   :  { %10814 = vmatprep.subr.bf16.mxu1 %v11617_v4 }
0x4c88   :  { %10815 = vmatpush3.bf16.msra.mxu1 %v11187_v5 }
0x4c89   :  { %10816 = vmatprep.subr.bf16.mxu1 %v11617_v4  ;;  %v10315_v4 = vld [vmem:[%s14695_s22 + $0x1] ss:$0 sm:$0xff] }
0x4c8c   :  { %10817 = vmatpush3.bf16.msra.mxu1 %v11188_v62 }
0x4d0b   :  { %v9070_v9 = vpop.xlane.xlu0 %9069 }
0x4d0c   :  { %v9071_v47 = vmul.f32 0.013888889, %v9070_v9 }
0x4d0d   :  { %v9075_v57 = vpop.xlane.xlu1 %9074 }
0x4d0e   :  { %v9077_v36 = vmul.f32 %v9071_v47, %v9071_v47  ;;  %v9076_v53 = vmul.f32 0.013888889, %v9075_v57  ;;  %v9079_v34 = vsub.f32 %v9065_v26, %v9071_v47 }
0x4d10   :  { %v9078_v48 = vsub.f32 %v9076_v53, %v9077_v36 }
0x4d12   :  { %v9080_v38 = vadd.f32 1e-05, %v9078_v48 }
0x4d14   :  { %11579 = vrsqrt.f32 %v9080_v38 }
0x4d1e   :  { %v11580_v35 = vpop.eup %11579 }
0x4d1f   :  { %v9082_v42 = vmul.f32 %v11580_v35, %v9079_v34 }
0x4d21   :  { %v9087_v46 = vmul.f32 %v10314_v40, %v9082_v42 }
0x4d23   :  { %v9092_v0 = vadd.f32 %v10315_v4, %v9087_v46 }
0x4d25   :  { %v9093_v3 = vpack.c.bf16 %v9092_v0, %v9092_v0 }
0x4d27   :  { %v9118_v8 = vrot.slane %v9093_v3, 3 }
0x4d29   :  { %10819 = vmatmul.mubr.bf16.vlgmr.msra.gmra.mrb[120].mxu1 %v9118_v8 }
0x4dfc   :  { %v9202_v58 = vpop.f32.mrb[120].mxu1 }
0x4dfd   :  { %v9203_v14 = vadd.f32 %v10316_v51, %v9202_v58  ;;  %v10820_v50 = vpop.f32.mrb[121].mxu1 }
0x4dfe   :  { %v9205_v11 = vpop.f32.mrb[122].mxu1 }
0x4dff   :  { %v10821_v18 = vpop.f32.mrb[123].mxu1  ;;  %9209 = vst.msk [vmem:[#allocation4] sm:$0x3] %vm9208_vm13, %v9203_v14 }
0x4e00   :  { %11600 = shalt.err (!%p11597_p4)
}
0x4e01   :  { %s11601_s24 = scalar_lea.hbm %s14698_s25, 32 }
0x4e02   :  { %p11602_p5 = scmp.ne.s32.totalorder %s14698_s25, %s11601_s24  ;;  %p11605_p6 = scmp.lt.u32.totalorder %s11601_s24, %s14698_s25 }
0x4e04   :  { %p11607_p7 = pnand %p11605_p6, %p11602_p5 }
0x4e06   :  { %11610 = shalt.err (!%p11607_p7)
}
0x4e07   :  { %9219 = dma.vmem_to_hbm [thread:$0]  %s9217_s27, 32, %s14698_s25, [#allocation5]  }
0x4e08   :  { %11611 = dma.done.wait [#allocation5], 32  }
0x4e09   :  { %11612 = vsyncadd [#allocation5], 4294967264 }
0x4e0a   :  { %9223 = vsyncpa [#allocation5], 1 }

</bundles_post_ra>
